<compile_context>
chip_gen: v7x
topology: tpu7x:2x2x1
jax: 0.10.0
libtpu: 0.0.40
codegen_flags: <defaults>
</compile_context>

<pallas_src>
import functools

import jax
import jax.numpy as jnp
import numpy as np
from jax import lax
from jax.experimental import pallas as pl
from jax.experimental.pallas import tpu as pltpu

SEQ_LEN = 110   # 110 -conv16-> 95 -pool-> 47 -conv6-> 42 -pool-> 21 -conv3-> 19 -pool-> 9
T1, P1 = 95, 47
T2, P2 = 42, 21
T3, P3 = 19, 9
K1, K2, K3 = 16, 6, 3
C0, C1, C2, C3 = 5, 64, 128, 256
KSEG = P3 * C3            # 2304 flattened features per sample ((t, c) ordering)
HID = 1152
VMEM_LIMIT = 32 * 1024 * 1024


def _pick_bt(batch):
    """Batch elements per conv-tower grid step: multiple of 8, <= 64, ~2 blocks."""
    bt = -(-batch // 2)          # ceil(B/2): aim for 2 blocks (v7x megacore)
    bt = -(-bt // 8) * 8         # round up to a multiple of 8 (sublane alignment)
    return max(8, min(64, bt))


def _pick_nh():
    """Hidden-dim split for fc_head: 1 on single-TC v5e/v6e, 9 on 2-TC v7x."""
    try:
        kind = jax.devices()[0].device_kind.lower()
    except Exception:
        kind = ""
    return 9 if "v7" in kind else 1


# ---------------------------------------------------------------------------
# Conv tower kernel (flat time-major / batch-minor layout: row = t*bt + b).
# ---------------------------------------------------------------------------
def _pool_pairs(y, t_out, bt):
    """MaxPool1d(k=2, s=2, floor) on a (t_in*bt, C) slab -> (t_out*bt, C)."""
    c = y.shape[-1]
    v = y[: 2 * t_out * bt].reshape(t_out, 2 * bt, c)
    return jnp.maximum(v[:, :bt, :], v[:, bt:, :]).reshape(t_out * bt, c)


def conv_tower_kernel(x_ref, w1_ref, b1_ref, w2_ref, b2_ref, w3_ref, b3_ref,
                      out_ref, p1_ref, p2_ref, *, bt):
    # ---- stage 1: im2col conv1 (K=80 -> 64) as ONE bf16 matmul --------------
    y1 = jnp.dot(x_ref[0], w1_ref[...], preferred_element_type=jnp.float32)
    y1 = jnp.maximum(y1 + b1_ref[...], 0.0)                      # (95*bt, 64) f32
    p1_ref[...] = _pool_pairs(y1, P1, bt).astype(p1_ref.dtype)   # (47*bt, 64) bf16

    # ---- stage 2: conv2, taps stacked into one K=384 matmul -----------------
    slab2 = jnp.concatenate(
        [p1_ref[k * bt:(k + T2) * bt, :] for k in range(K2)], axis=-1)  # (42*bt, 384)
    y2 = jnp.dot(slab2, w2_ref[...], preferred_element_type=jnp.float32)
    y2 = jnp.maximum(y2 + b2_ref[...], 0.0)                      # (42*bt, 128) f32
    p2_ref[...] = _pool_pairs(y2, P2, bt).astype(p2_ref.dtype)   # (21*bt, 128) bf16

    # ---- stage 3: conv3, taps stacked into one K=384 matmul -----------------
    slab3 = jnp.concatenate(
        [p2_ref[k * bt:(k + T3) * bt, :] for k in range(K3)], axis=-1)  # (19*bt, 384)
    y3 = jnp.dot(slab3, w3_ref[...], preferred_element_type=jnp.float32)
    y3 = jnp.maximum(y3 + b3_ref[...], 0.0)                      # (19*bt, 256) f32
    pooled = _pool_pairs(y3, P3, bt).astype(out_ref.dtype)       # (9*bt, 256) bf16

    # ---- lane-dense (bt, 2304) output: nine contiguous (bt, 256) slab stores
    for t in range(P3):
        out_ref[0, :, t * C3:(t + 1) * C3] = pooled[t * bt:(t + 1) * bt, :]


def conv_tower(x_in, w1, b1, w2, b2, w3, b3, *, bt):
    nb = x_in.shape[0]
    kernel = functools.partial(conv_tower_kernel, bt=bt)
    return pl.pallas_call(
        kernel,
        out_shape=jax.ShapeDtypeStruct((nb, bt, KSEG), jnp.bfloat16),
        grid_spec=pltpu.PrefetchScalarGridSpec(
            num_scalar_prefetch=0,
            grid=(nb,),
            in_specs=[
                pl.BlockSpec((1, T1 * bt, K1 * C0), lambda i: (i, 0, 0)),
                pl.BlockSpec((K1 * C0, C1), lambda i: (0, 0)),
                pl.BlockSpec((1, C1),       lambda i: (0, 0)),
                pl.BlockSpec((K2 * C1, C2), lambda i: (0, 0)),
                pl.BlockSpec((1, C2),       lambda i: (0, 0)),
                pl.BlockSpec((K3 * C2, C3), lambda i: (0, 0)),
                pl.BlockSpec((1, C3),       lambda i: (0, 0)),
            ],
            out_specs=pl.BlockSpec((1, bt, KSEG), lambda i: (i, 0, 0)),
            scratch_shapes=[
                pltpu.VMEM((P1 * bt, C1), jnp.bfloat16),
                pltpu.VMEM((P2 * bt, C2), jnp.bfloat16),
            ]),
        compiler_params=pltpu.CompilerParams(
            dimension_semantics=("parallel",),
            vmem_limit_bytes=VMEM_LIMIT),
    )(x_in, w1, b1, w2, b2, w3, b3)


# ---------------------------------------------------------------------------
# FC head: relu(features_all @ W1 + b1) then fc2 as a VPU row-reduce.
# The K grid axis (length 2) doubles as the half selector: step k contracts
# flat[half*k : half*(k+1)] against fc1 weight rows [k*2304:(k+1)*2304], so the
# torch.cat of the two halves never materializes.
# ---------------------------------------------------------------------------
def fc_head_kernel(xa_ref, w1_ref, b1_ref, w2_ref, out_ref, acc_ref):
    k = pl.program_id(1)

    @pl.when(k == 0)
    def _():
        acc_ref[...] = jnp.zeros_like(acc_ref)

    acc_ref[...] += jnp.dot(xa_ref[0], w1_ref[...],
                            preferred_element_type=jnp.float32)

    @pl.when(k == pl.num_programs(1) - 1)
    def _():
        h = jnp.maximum(acc_ref[...] + b1_ref[...], 0.0)
        # fc2 partial for this hidden slice as a VPU row-reduce (avoids N=1 MXU op)
        out_ref[0] = jnp.sum(h * w2_ref[...], axis=-1, keepdims=True)


def fc_head(xa, w1t, b1, w2_row, *, nh):
    _, half, kseg = xa.shape
    assert kseg == KSEG
    assert HID % nh == 0
    hb = HID // nh
    assert hb % 128 == 0
    return pl.pallas_call(
        fc_head_kernel,
        out_shape=jax.ShapeDtypeStruct((nh, half, 1), jnp.float32),
        grid_spec=pltpu.PrefetchScalarGridSpec(
            num_scalar_prefetch=0,
            grid=(nh, 2),
            in_specs=[
                pl.BlockSpec((1, half, KSEG), lambda h, k: (k, 0, 0)),
                pl.BlockSpec((KSEG, hb),      lambda h, k: (k, h)),
                pl.BlockSpec((1, hb),         lambda h, k: (0, h)),
                pl.BlockSpec((1, hb),         lambda h, k: (0, h)),
            ],
            out_specs=pl.BlockSpec((1, half, 1), lambda h, k: (h, 0, 0)),
            scratch_shapes=[pltpu.VMEM((half, hb), jnp.float32)]),
        compiler_params=pltpu.CompilerParams(
            dimension_semantics=("parallel", "arbitrary"),
            vmem_limit_bytes=VMEM_LIMIT),
    )(xa, w1t, b1, w2_row)


# ---------------------------------------------------------------------------
# One-time parameter relayout (hoisted out of the forward pass).
# ---------------------------------------------------------------------------
def prepare_params(p):
    bf = jnp.bfloat16
    # conv weights: torch (Cout, Cin, K) -> (K, Cin, Cout) -> tap-stacked (K*Cin, Cout)
    w1 = jnp.transpose(p["conv1_w"], (2, 1, 0)).reshape(K1 * C0, C1)   # row = k*5 + c
    w2 = jnp.transpose(p["conv2_w"], (2, 1, 0)).reshape(K2 * C1, C2)   # row = k*64 + c
    w3 = jnp.transpose(p["conv3_w"], (2, 1, 0)).reshape(K3 * C2, C3)   # row = k*128 + c
    # fc1: permute input columns once so it consumes the kernel's (t, c) flatten
    fc1 = jnp.transpose(p["fc1_w"].reshape(HID, 2, C3, P3),
                        (0, 1, 3, 2)).reshape(HID, 2 * KSEG)
    # TODO(synk): optional int8 (v5e/v6e) / fp8 (v7x) fc1 weights would halve the
    # weight stream again; kept bf16 here to stay within the validation tolerance.
    return {
        "conv1_w": w1.astype(bf), "conv1_b": p["conv1_b"][None, :],
        "conv2_w": w2.astype(bf), "conv2_b": p["conv2_b"][None, :],
        "conv3_w": w3.astype(bf), "conv3_b": p["conv3_b"][None, :],
        "fc1_wt": fc1.T.astype(bf),           # (4608, 1152) bf16
        "fc1_b": p["fc1_b"][None, :],         # (1, 1152) f32
        "fc2_row": p["fc2_w"],                # (1, 1152) f32
        "fc2_b": p["fc2_b"],                  # (1,)
    }


# ---------------------------------------------------------------------------
# Full forward (PyTorch-facing wrapper).  Glue only: bf16 im2col for conv1,
# batch padding, free reshapes; all conv/matmul/relu/pool/fc is in kernels.
# ---------------------------------------------------------------------------
def promoter_net_forward(x_ncl, prep, *, bt=None, nh=None):
    B, C, L = x_ncl.shape
    assert C == C0 and L == SEQ_LEN, "PromoterNet is hard-wired to (B, 5, 110) inputs"
    assert B % 2 == 0, "batch must be even (forward concatenates the two halves)"
    half = B // 2
    if bt is None:
        bt = _pick_bt(B)
    if nh is None:
        nh = _pick_nh()
    nb = -(-B // bt)
    b_pad = nb * bt

    # im2col for conv1 in bf16: 16 taps x 5 channels -> (B, 95, 80), col = k*5 + c
    x_blc = jnp.transpose(x_ncl, (0, 2, 1)).astype(jnp.bfloat16)        # (B, 110, 5)
    xcol = jnp.concatenate([x_blc[:, k:k + T1, :] for k in range(K1)], axis=-1)
    if b_pad != B:
        xcol = jnp.pad(xcol, ((0, b_pad - B), (0, 0), (0, 0)))
    # time-major, batch-minor layout inside each block of `bt` samples
    x_in = jnp.transpose(xcol.reshape(nb, bt, T1, K1 * C0),
                         (0, 2, 1, 3)).reshape(nb, T1 * bt, K1 * C0)

    feat = conv_tower(x_in,
                      prep["conv1_w"], prep["conv1_b"],
                      prep["conv2_w"], prep["conv2_b"],
                      prep["conv3_w"], prep["conv3_b"], bt=bt)          # (nb, bt, 2304) bf16
    flat = feat.reshape(b_pad, KSEG)                                    # free (contiguous)
    if b_pad != B:
        flat = flat[:B]
    xa = flat.reshape(2, half, KSEG)                                    # halves on axis 0

    partials = fc_head(xa, prep["fc1_wt"], prep["fc1_b"], prep["fc2_row"], nh=nh)
    return jnp.sum(partials, axis=0)[:, 0] + prep["fc2_b"]              # (half,)


# ---------------------------------------------------------------------------
# Pure-JAX f32 reference (mirrors the PyTorch module) for a correctness check.
# ---------------------------------------------------------------------------
def reference_forward(x_ncl, p):
    def conv_relu(x, w, b):
        y = lax.conv_general_dilated(x, w, window_strides=(1,), padding="VALID",
                                     dimension_numbers=("NCH", "OIH", "NCH"))
        return jax.nn.relu(y + b[None, :, None])

    def maxpool2(x):
        T = x.shape[-1] // 2
        return jnp.max(x[..., :2 * T].reshape(x.shape[0], x.shape[1], T, 2), axis=-1)

    x = maxpool2(conv_relu(x_ncl, p["conv1_w"], p["conv1_b"]))
    x = maxpool2(conv_relu(x, p["conv2_w"], p["conv2_b"]))
    x = maxpool2(conv_relu(x, p["conv3_w"], p["conv3_b"]))
    B = x.shape[0]
    half = B // 2
    flat = x.reshape(B, -1)
    xa = jnp.concatenate([flat[:half], flat[half:]], axis=1)
    h = jax.nn.relu(xa @ p["fc1_w"].T + p["fc1_b"])
    out = h @ p["fc2_w"].T + p["fc2_b"]
    return out[:, 0]


if __name__ == "__main__":
    key = jax.random.PRNGKey(0)
    keys = jax.random.split(key, 12)

    def init(k, shape, scale=0.05):
        return scale * jax.random.normal(k, shape, dtype=jnp.float32)

    params = {
        "conv1_w": init(keys[0], (64, 5, 16)),
        "conv1_b": init(keys[1], (64,)),
        "conv2_w": init(keys[2], (128, 64, 6)),
        "conv2_b": init(keys[3], (128,)),
        "conv3_w": init(keys[4], (256, 128, 3)),
        "conv3_b": init(keys[5], (256,)),
        "fc1_w":   init(keys[6], (1152, 4608)),
        "fc1_b":   init(keys[7], (1152,)),
        "fc2_w":   init(keys[8], (1, 1152)),
        "fc2_b":   init(keys[9], (1,)),
    }

    B = 16                                   # even batch; bt auto-picked (=8 -> 2 conv blocks)
    x = jax.random.normal(keys[10], (B, 5, SEQ_LEN), dtype=jnp.float32)

    prep = prepare_params(params)            # one-time weight relayout (hoisted)
    fwd = jax.jit(promoter_net_forward)

    out = jax.block_until_ready(fwd(x, prep))

    ref = reference_forward(x, params)
    # bf16 conv activations/weights + bf16 fc1 (f32 accumulation throughout)
    np.testing.assert_allclose(np.asarray(out), np.asarray(ref),
                               rtol=5e-2, atol=5e-2)
    print("KERNEL_OK")
</pallas_src>

<mosaic_0001>
module attributes {stable_mosaic.version = 11 : i64} {
  func.func @fc_head_kernel(%arg0: i32, %arg1: i32, %arg2: memref<1x8x2304xbf16, #tpu.memory_space<vmem>>, %arg3: memref<2304x1152xbf16, #tpu.memory_space<vmem>>, %arg4: memref<1x1152xf32, #tpu.memory_space<vmem>>, %arg5: memref<1x1152xf32, #tpu.memory_space<vmem>>, %arg6: memref<1x8x1xf32, #tpu.memory_space<vmem>>, %arg7: memref<8x1152xf32, #tpu.memory_space<vmem>>) attributes {dimension_semantics = [#tpu.dimension_semantics<parallel>, #tpu.dimension_semantics<arbitrary>], iteration_bounds = array<i64: 1, 2>, scalar_prefetch = 0 : i64, scratch_operands = 1 : i64, tpu.core_type = #tpu.core_type<tc>, window_params = [{transform_indices = @transform_0, window_bounds = array<i64: 1, 8, 2304>}, {transform_indices = @transform_1, window_bounds = array<i64: 2304, 1152>}, {transform_indices = @transform_2, window_bounds = array<i64: 1, 1152>}, {transform_indices = @transform_3, window_bounds = array<i64: 1, 1152>}, {transform_indices = @transform_4, window_bounds = array<i64: 1, 8, 1>}]} {
    %c0_i32 = arith.constant 0 : i32
    %0 = arith.cmpi eq, %arg1, %c0_i32 : i32
    %1 = arith.extui %0 : i1 to i32
    %c0_i32_0 = arith.constant 0 : i32
    %2 = arith.cmpi ne, %1, %c0_i32_0 : i32
    scf.if %2 {
      %cst_10 = arith.constant 0.000000e+00 : f32
      %13 = vector.broadcast %cst_10 : f32 to vector<8x1152xf32>
      %c0_11 = arith.constant 0 : index
      %c0_12 = arith.constant 0 : index
      %14 = vector.load %arg7[%c0_11, %c0_12] : memref<8x1152xf32, #tpu.memory_space<vmem>>, vector<8x1152xf32>
      tpu.vector_store %arg7[%c0_11, %c0_12], %13 {strides = array<i32>} : memref<8x1152xf32, #tpu.memory_space<vmem>>, vector<8x1152xf32>,
    } else {
    }
    %c0 = arith.constant 0 : index
    %c0_1 = arith.constant 0 : index
    %3 = vector.load %arg7[%c0, %c0_1] : memref<8x1152xf32, #tpu.memory_space<vmem>>, vector<8x1152xf32>
    %c0_2 = arith.constant 0 : index
    %c0_3 = arith.constant 0 : index
    %c0_4 = arith.constant 0 : index
    %4 = vector.load %arg2[%c0_2, %c0_3, %c0_4] : memref<1x8x2304xbf16, #tpu.memory_space<vmem>>, vector<1x8x2304xbf16>
    %5 = vector.shape_cast %4 : vector<1x8x2304xbf16> to vector<8x2304xbf16>
    %c0_5 = arith.constant 0 : index
    %c0_6 = arith.constant 0 : index
    %6 = vector.load %arg3[%c0_5, %c0_6] : memref<2304x1152xbf16, #tpu.memory_space<vmem>>, vector<2304x1152xbf16>
    %cst = arith.constant dense<0.000000e+00> : vector<8x1152xf32>
    %7 = tpu.matmul %5, %6, %cst {dimension_numbers = #tpu.dot_dimension_numbers<[1], [0], [0], [1], [0, 0, 1, 1], [], []>} : vector<8x2304xbf16>, vector<2304x1152xbf16>, vector<8x1152xf32> -> vector<8x1152xf32>
    %8 = arith.addf %3, %7 : vector<8x1152xf32>
    %c0_7 = arith.constant 0 : index
    %c0_8 = arith.constant 0 : index
    %9 = vector.load %arg7[%c0_7, %c0_8] : memref<8x1152xf32, #tpu.memory_space<vmem>>, vector<8x1152xf32>
    tpu.vector_store %arg7[%c0_7, %c0_8], %8 {strides = array<i32>} : memref<8x1152xf32, #tpu.memory_space<vmem>>, vector<8x1152xf32>,
    %c1_i32 = arith.constant 1 : i32
    %10 = arith.cmpi eq, %arg1, %c1_i32 : i32
    %11 = arith.extui %10 : i1 to i32
    %c0_i32_9 = arith.constant 0 : i32
    %12 = arith.cmpi ne, %11, %c0_i32_9 : i32
    scf.if %12 {
      %c0_10 = arith.constant 0 : index
      %c0_11 = arith.constant 0 : index
      %13 = vector.load %arg7[%c0_10, %c0_11] : memref<8x1152xf32, #tpu.memory_space<vmem>>, vector<8x1152xf32>
      %c0_12 = arith.constant 0 : index
      %c0_13 = arith.constant 0 : index
      %14 = vector.load %arg4[%c0_12, %c0_13] : memref<1x1152xf32, #tpu.memory_space<vmem>>, vector<1x1152xf32>
      %15 = vector.broadcast %14 : vector<1x1152xf32> to vector<8x1152xf32>
      %16 = arith.addf %13, %15 : vector<8x1152xf32>
      %cst_14 = arith.constant 0.000000e+00 : f32
      %17 = vector.broadcast %cst_14 : f32 to vector<8x1152xf32>
      %18 = arith.maximumf %16, %17 : vector<8x1152xf32>
      %c0_15 = arith.constant 0 : index
      %c0_16 = arith.constant 0 : index
      %19 = vector.load %arg5[%c0_15, %c0_16] : memref<1x1152xf32, #tpu.memory_space<vmem>>, vector<1x1152xf32>
      %20 = vector.broadcast %19 : vector<1x1152xf32> to vector<8x1152xf32>
      %21 = arith.mulf %18, %20 : vector<8x1152xf32>
      %cst_17 = arith.constant dense<0.000000e+00> : vector<8xf32>
      %22 = vector.multi_reduction <add>, %21, %cst_17 [1] : vector<8x1152xf32> to vector<8xf32>
      %23 = vector.shape_cast %22 : vector<8xf32> to vector<8x1xf32>
      %c0_18 = arith.constant 0 : index
      %c0_19 = arith.constant 0 : index
      %c0_20 = arith.constant 0 : index
      %24 = vector.load %arg6[%c0_18, %c0_19, %c0_20] : memref<1x8x1xf32, #tpu.memory_space<vmem>>, vector<1x8x1xf32>
      %25 = vector.shape_cast %24 : vector<1x8x1xf32> to vector<8x1xf32>
      %26 = vector.shape_cast %23 : vector<8x1xf32> to vector<1x8x1xf32>
      tpu.vector_store %arg6[%c0_18, %c0_19, %c0_20], %26 {strides = array<i32>} : memref<1x8x1xf32, #tpu.memory_space<vmem>>, vector<1x8x1xf32>,
    } else {
    }
    return
  }
  func.func @transform_0(%arg0: i32, %arg1: i32) -> (i32, i32, i32) {
    %c0_i32 = arith.constant 0 : i32
    %c0_i32_0 = arith.constant 0 : i32
    %c0_i32_1 = arith.constant 0 : i32
    return %arg1, %c0_i32, %c0_i32_0 : i32, i32, i32
  }
  func.func @transform_1(%arg0: i32, %arg1: i32) -> (i32, i32) {
    %c0_i32 = arith.constant 0 : i32
    return %arg1, %arg0 : i32, i32
  }
  func.func @transform_2(%arg0: i32, %arg1: i32) -> (i32, i32) {
    %c0_i32 = arith.constant 0 : i32
    %c0_i32_0 = arith.constant 0 : i32
    return %c0_i32, %arg0 : i32, i32
  }
  func.func @transform_3(%arg0: i32, %arg1: i32) -> (i32, i32) {
    %c0_i32 = arith.constant 0 : i32
    %c0_i32_0 = arith.constant 0 : i32
    return %c0_i32, %arg0 : i32, i32
  }
  func.func @transform_4(%arg0: i32, %arg1: i32) -> (i32, i32, i32) {
    %c0_i32 = arith.constant 0 : i32
    %c0_i32_0 = arith.constant 0 : i32
    %c0_i32_1 = arith.constant 0 : i32
    return %arg0, %c0_i32, %c0_i32_0 : i32, i32, i32
  }
}

module attributes {stable_mosaic.version = 11 : i64} {
  func.func @conv_tower_kernel(%arg0: i32, %arg1: memref<1x760x80xbf16, #tpu.memory_space<vmem>>, %arg2: memref<80x64xbf16, #tpu.memory_space<vmem>>, %arg3: memref<1x64xf32, #tpu.memory_space<vmem>>, %arg4: memref<384x128xbf16, #tpu.memory_space<vmem>>, %arg5: memref<1x128xf32, #tpu.memory_space<vmem>>, %arg6: memref<384x256xbf16, #tpu.memory_space<vmem>>, %arg7: memref<1x256xf32, #tpu.memory_space<vmem>>, %arg8: memref<1x8x2304xbf16, #tpu.memory_space<vmem>>, %arg9: memref<376x64xbf16, #tpu.memory_space<vmem>>, %arg10: memref<168x128xbf16, #tpu.memory_space<vmem>>) attributes {dimension_semantics = [#tpu.dimension_semantics<parallel>], iteration_bounds = array<i64: 2>, scalar_prefetch = 0 : i64, scratch_operands = 2 : i64, tpu.core_type = #tpu.core_type<tc>, window_params = [{transform_indices = @transform_0, window_bounds = array<i64: 1, 760, 80>}, {pipeline_mode = #tpu.pipeline_mode<synchronous>, transform_indices = @transform_1, window_bounds = array<i64: 80, 64>}, {pipeline_mode = #tpu.pipeline_mode<synchronous>, transform_indices = @transform_2, window_bounds = array<i64: 1, 64>}, {pipeline_mode = #tpu.pipeline_mode<synchronous>, transform_indices = @transform_3, window_bounds = array<i64: 384, 128>}, {pipeline_mode = #tpu.pipeline_mode<synchronous>, transform_indices = @transform_4, window_bounds = array<i64: 1, 128>}, {pipeline_mode = #tpu.pipeline_mode<synchronous>, transform_indices = @transform_5, window_bounds = array<i64: 384, 256>}, {pipeline_mode = #tpu.pipeline_mode<synchronous>, transform_indices = @transform_6, window_bounds = array<i64: 1, 256>}, {transform_indices = @transform_7, window_bounds = array<i64: 1, 8, 2304>}]} {
    %c0 = arith.constant 0 : index
    %c0_0 = arith.constant 0 : index
    %c0_1 = arith.constant 0 : index
    %0 = vector.load %arg1[%c0, %c0_0, %c0_1] : memref<1x760x80xbf16, #tpu.memory_space<vmem>>, vector<1x760x80xbf16>
    %1 = vector.shape_cast %0 : vector<1x760x80xbf16> to vector<760x80xbf16>
    %c0_2 = arith.constant 0 : index
    %c0_3 = arith.constant 0 : index
    %2 = vector.load %arg2[%c0_2, %c0_3] : memref<80x64xbf16, #tpu.memory_space<vmem>>, vector<80x64xbf16>
    %cst = arith.constant dense<0.000000e+00> : vector<760x64xf32>
    %3 = tpu.matmul %1, %2, %cst {dimension_numbers = #tpu.dot_dimension_numbers<[1], [0], [0], [1], [0, 0, 1, 1], [], []>} : vector<760x80xbf16>, vector<80x64xbf16>, vector<760x64xf32> -> vector<760x64xf32>
    %c0_4 = arith.constant 0 : index
    %c0_5 = arith.constant 0 : index
    %4 = vector.load %arg3[%c0_4, %c0_5] : memref<1x64xf32, #tpu.memory_space<vmem>>, vector<1x64xf32>
    %5 = vector.broadcast %4 : vector<1x64xf32> to vector<760x64xf32>
    %6 = arith.addf %3, %5 : vector<760x64xf32>
    %cst_6 = arith.constant 0.000000e+00 : f32
    %7 = vector.broadcast %cst_6 : f32 to vector<760x64xf32>
    %8 = arith.maximumf %6, %7 : vector<760x64xf32>
    %9 = vector.extract_strided_slice %8 {offsets = [0, 0], sizes = [752, 64], strides = [1, 1]} : vector<760x64xf32> to vector<752x64xf32>
    %10 = vector.shape_cast %9 : vector<752x64xf32> to vector<47x16x64xf32>
    %11 = vector.extract_strided_slice %10 {offsets = [0, 0, 0], sizes = [47, 8, 64], strides = [1, 1, 1]} : vector<47x16x64xf32> to vector<47x8x64xf32>
    %12 = vector.extract_strided_slice %10 {offsets = [0, 8, 0], sizes = [47, 8, 64], strides = [1, 1, 1]} : vector<47x16x64xf32> to vector<47x8x64xf32>
    %13 = arith.maximumf %11, %12 : vector<47x8x64xf32>
    %14 = vector.shape_cast %13 : vector<47x8x64xf32> to vector<376x64xf32>
    %15 = arith.truncf %14 : vector<376x64xf32> to vector<376x64xbf16>
    %c0_7 = arith.constant 0 : index
    %c0_8 = arith.constant 0 : index
    %16 = vector.load %arg9[%c0_7, %c0_8] : memref<376x64xbf16, #tpu.memory_space<vmem>>, vector<376x64xbf16>
    tpu.vector_store %arg9[%c0_7, %c0_8], %15 {strides = array<i32>} : memref<376x64xbf16, #tpu.memory_space<vmem>>, vector<376x64xbf16>,
    %c0_9 = arith.constant 0 : index
    %c0_10 = arith.constant 0 : index
    %17 = vector.load %arg9[%c0_9, %c0_10] : memref<376x64xbf16, #tpu.memory_space<vmem>>, vector<336x64xbf16>
    %c8 = arith.constant 8 : index
    %c0_11 = arith.constant 0 : index
    %18 = vector.load %arg9[%c8, %c0_11] : memref<376x64xbf16, #tpu.memory_space<vmem>>, vector<336x64xbf16>
    %c16 = arith.constant 16 : index
    %c0_12 = arith.constant 0 : index
    %19 = vector.load %arg9[%c16, %c0_12] : memref<376x64xbf16, #tpu.memory_space<vmem>>, vector<336x64xbf16>
    %c24 = arith.constant 24 : index
    %c0_13 = arith.constant 0 : index
    %20 = vector.load %arg9[%c24, %c0_13] : memref<376x64xbf16, #tpu.memory_space<vmem>>, vector<336x64xbf16>
    %c32 = arith.constant 32 : index
    %c0_14 = arith.constant 0 : index
    %21 = vector.load %arg9[%c32, %c0_14] : memref<376x64xbf16, #tpu.memory_space<vmem>>, vector<336x64xbf16>
    %c40 = arith.constant 40 : index
    %c0_15 = arith.constant 0 : index
    %22 = vector.load %arg9[%c40, %c0_15] : memref<376x64xbf16, #tpu.memory_space<vmem>>, vector<336x64xbf16>
    %23 = tpu.concatenate %17, %18, %19, %20, %21, %22 in 1 : vector<336x64xbf16>, vector<336x64xbf16>, vector<336x64xbf16>, vector<336x64xbf16>, vector<336x64xbf16>, vector<336x64xbf16> -> vector<336x384xbf16>
    %c0_16 = arith.constant 0 : index
    %c0_17 = arith.constant 0 : index
    %24 = vector.load %arg4[%c0_16, %c0_17] : memref<384x128xbf16, #tpu.memory_space<vmem>>, vector<384x128xbf16>
    %cst_18 = arith.constant dense<0.000000e+00> : vector<336x128xf32>
    %25 = tpu.matmul %23, %24, %cst_18 {dimension_numbers = #tpu.dot_dimension_numbers<[1], [0], [0], [1], [0, 0, 1, 1], [], []>} : vector<336x384xbf16>, vector<384x128xbf16>, vector<336x128xf32> -> vector<336x128xf32>
    %c0_19 = arith.constant 0 : index
    %c0_20 = arith.constant 0 : index
    %26 = vector.load %arg5[%c0_19, %c0_20] : memref<1x128xf32, #tpu.memory_space<vmem>>, vector<1x128xf32>
    %27 = vector.broadcast %26 : vector<1x128xf32> to vector<336x128xf32>
    %28 = arith.addf %25, %27 : vector<336x128xf32>
    %cst_21 = arith.constant 0.000000e+00 : f32
    %29 = vector.broadcast %cst_21 : f32 to vector<336x128xf32>
    %30 = arith.maximumf %28, %29 : vector<336x128xf32>
    %31 = vector.shape_cast %30 : vector<336x128xf32> to vector<21x16x128xf32>
    %32 = vector.extract_strided_slice %31 {offsets = [0, 0, 0], sizes = [21, 8, 128], strides = [1, 1, 1]} : vector<21x16x128xf32> to vector<21x8x128xf32>
    %33 = vector.extract_strided_slice %31 {offsets = [0, 8, 0], sizes = [21, 8, 128], strides = [1, 1, 1]} : vector<21x16x128xf32> to vector<21x8x128xf32>
    %34 = arith.maximumf %32, %33 : vector<21x8x128xf32>
    %35 = vector.shape_cast %34 : vector<21x8x128xf32> to vector<168x128xf32>
    %36 = arith.truncf %35 : vector<168x128xf32> to vector<168x128xbf16>
    %c0_22 = arith.constant 0 : index
    %c0_23 = arith.constant 0 : index
    %37 = vector.load %arg10[%c0_22, %c0_23] : memref<168x128xbf16, #tpu.memory_space<vmem>>, vector<168x128xbf16>
    tpu.vector_store %arg10[%c0_22, %c0_23], %36 {strides = array<i32>} : memref<168x128xbf16, #tpu.memory_space<vmem>>, vector<168x128xbf16>,
    %c0_24 = arith.constant 0 : index
    %c0_25 = arith.constant 0 : index
    %38 = vector.load %arg10[%c0_24, %c0_25] : memref<168x128xbf16, #tpu.memory_space<vmem>>, vector<152x128xbf16>
    %c8_26 = arith.constant 8 : index
    %c0_27 = arith.constant 0 : index
    %39 = vector.load %arg10[%c8_26, %c0_27] : memref<168x128xbf16, #tpu.memory_space<vmem>>, vector<152x128xbf16>
    %c16_28 = arith.constant 16 : index
    %c0_29 = arith.constant 0 : index
    %40 = vector.load %arg10[%c16_28, %c0_29] : memref<168x128xbf16, #tpu.memory_space<vmem>>, vector<152x128xbf16>
    %41 = tpu.concatenate %38, %39, %40 in 1 : vector<152x128xbf16>, vector<152x128xbf16>, vector<152x128xbf16> -> vector<152x384xbf16>
    %c0_30 = arith.constant 0 : index
    %c0_31 = arith.constant 0 : index
    %42 = vector.load %arg6[%c0_30, %c0_31] : memref<384x256xbf16, #tpu.memory_space<vmem>>, vector<384x256xbf16>
    %cst_32 = arith.constant dense<0.000000e+00> : vector<152x256xf32>
    %43 = tpu.matmul %41, %42, %cst_32 {dimension_numbers = #tpu.dot_dimension_numbers<[1], [0], [0], [1], [0, 0, 1, 1], [], []>} : vector<152x384xbf16>, vector<384x256xbf16>, vector<152x256xf32> -> vector<152x256xf32>
    %c0_33 = arith.constant 0 : index
    %c0_34 = arith.constant 0 : index
    %44 = vector.load %arg7[%c0_33, %c0_34] : memref<1x256xf32, #tpu.memory_space<vmem>>, vector<1x256xf32>
    %45 = vector.broadcast %44 : vector<1x256xf32> to vector<152x256xf32>
    %46 = arith.addf %43, %45 : vector<152x256xf32>
    %cst_35 = arith.constant 0.000000e+00 : f32
    %47 = vector.broadcast %cst_35 : f32 to vector<152x256xf32>
    %48 = arith.maximumf %46, %47 : vector<152x256xf32>
    %49 = vector.extract_strided_slice %48 {offsets = [0, 0], sizes = [144, 256], strides = [1, 1]} : vector<152x256xf32> to vector<144x256xf32>
    %50 = vector.shape_cast %49 : vector<144x256xf32> to vector<9x16x256xf32>
    %51 = vector.extract_strided_slice %50 {offsets = [0, 0, 0], sizes = [9, 8, 256], strides = [1, 1, 1]} : vector<9x16x256xf32> to vector<9x8x256xf32>
    %52 = vector.extract_strided_slice %50 {offsets = [0, 8, 0], sizes = [9, 8, 256], strides = [1, 1, 1]} : vector<9x16x256xf32> to vector<9x8x256xf32>
    %53 = arith.maximumf %51, %52 : vector<9x8x256xf32>
    %54 = vector.shape_cast %53 : vector<9x8x256xf32> to vector<72x256xf32>
    %55 = arith.truncf %54 : vector<72x256xf32> to vector<72x256xbf16>
    %56 = vector.extract_strided_slice %55 {offsets = [0, 0], sizes = [8, 256], strides = [1, 1]} : vector<72x256xbf16> to vector<8x256xbf16>
    %c0_36 = arith.constant 0 : index
    %c0_37 = arith.constant 0 : index
    %c0_38 = arith.constant 0 : index
    %57 = vector.load %arg8[%c0_36, %c0_37, %c0_38] : memref<1x8x2304xbf16, #tpu.memory_space<vmem>>, vector<1x8x256xbf16>
    %58 = vector.shape_cast %57 : vector<1x8x256xbf16> to vector<8x256xbf16>
    %59 = vector.shape_cast %56 : vector<8x256xbf16> to vector<1x8x256xbf16>
    tpu.vector_store %arg8[%c0_36, %c0_37, %c0_38], %59 {strides = array<i32>} : memref<1x8x2304xbf16, #tpu.memory_space<vmem>>, vector<1x8x256xbf16>,
    %60 = vector.extract_strided_slice %55 {offsets = [8, 0], sizes = [8, 256], strides = [1, 1]} : vector<72x256xbf16> to vector<8x256xbf16>
    %c0_39 = arith.constant 0 : index
    %c0_40 = arith.constant 0 : index
    %c256 = arith.constant 256 : index
    %61 = vector.load %arg8[%c0_39, %c0_40, %c256] : memref<1x8x2304xbf16, #tpu.memory_space<vmem>>, vector<1x8x256xbf16>
    %62 = vector.shape_cast %61 : vector<1x8x256xbf16> to vector<8x256xbf16>
    %63 = vector.shape_cast %60 : vector<8x256xbf16> to vector<1x8x256xbf16>
    tpu.vector_store %arg8[%c0_39, %c0_40, %c256], %63 {strides = array<i32>} : memref<1x8x2304xbf16, #tpu.memory_space<vmem>>, vector<1x8x256xbf16>,
    %64 = vector.extract_strided_slice %55 {offsets = [16, 0], sizes = [8, 256], strides = [1, 1]} : vector<72x256xbf16> to vector<8x256xbf16>
    %c0_41 = arith.constant 0 : index
    %c0_42 = arith.constant 0 : index
    %c512 = arith.constant 512 : index
    %65 = vector.load %arg8[%c0_41, %c0_42, %c512] : memref<1x8x2304xbf16, #tpu.memory_space<vmem>>, vector<1x8x256xbf16>
    %66 = vector.shape_cast %65 : vector<1x8x256xbf16> to vector<8x256xbf16>
    %67 = vector.shape_cast %64 : vector<8x256xbf16> to vector<1x8x256xbf16>
    tpu.vector_store %arg8[%c0_41, %c0_42, %c512], %67 {strides = array<i32>} : memref<1x8x2304xbf16, #tpu.memory_space<vmem>>, vector<1x8x256xbf16>,
    %68 = vector.extract_strided_slice %55 {offsets = [24, 0], sizes = [8, 256], strides = [1, 1]} : vector<72x256xbf16> to vector<8x256xbf16>
    %c0_43 = arith.constant 0 : index
    %c0_44 = arith.constant 0 : index
    %c768 = arith.constant 768 : index
    %69 = vector.load %arg8[%c0_43, %c0_44, %c768] : memref<1x8x2304xbf16, #tpu.memory_space<vmem>>, vector<1x8x256xbf16>
    %70 = vector.shape_cast %69 : vector<1x8x256xbf16> to vector<8x256xbf16>
    %71 = vector.shape_cast %68 : vector<8x256xbf16> to vector<1x8x256xbf16>
    tpu.vector_store %arg8[%c0_43, %c0_44, %c768], %71 {strides = array<i32>} : memref<1x8x2304xbf16, #tpu.memory_space<vmem>>, vector<1x8x256xbf16>,
    %72 = vector.extract_strided_slice %55 {offsets = [32, 0], sizes = [8, 256], strides = [1, 1]} : vector<72x256xbf16> to vector<8x256xbf16>
    %c0_45 = arith.constant 0 : index
    %c0_46 = arith.constant 0 : index
    %c1024 = arith.constant 1024 : index
    %73 = vector.load %arg8[%c0_45, %c0_46, %c1024] : memref<1x8x2304xbf16, #tpu.memory_space<vmem>>, vector<1x8x256xbf16>
    %74 = vector.shape_cast %73 : vector<1x8x256xbf16> to vector<8x256xbf16>
    %75 = vector.shape_cast %72 : vector<8x256xbf16> to vector<1x8x256xbf16>
    tpu.vector_store %arg8[%c0_45, %c0_46, %c1024], %75 {strides = array<i32>} : memref<1x8x2304xbf16, #tpu.memory_space<vmem>>, vector<1x8x256xbf16>,
    %76 = vector.extract_strided_slice %55 {offsets = [40, 0], sizes = [8, 256], strides = [1, 1]} : vector<72x256xbf16> to vector<8x256xbf16>
    %c0_47 = arith.constant 0 : index
    %c0_48 = arith.constant 0 : index
    %c1280 = arith.constant 1280 : index
    %77 = vector.load %arg8[%c0_47, %c0_48, %c1280] : memref<1x8x2304xbf16, #tpu.memory_space<vmem>>, vector<1x8x256xbf16>
    %78 = vector.shape_cast %77 : vector<1x8x256xbf16> to vector<8x256xbf16>
    %79 = vector.shape_cast %76 : vector<8x256xbf16> to vector<1x8x256xbf16>
    tpu.vector_store %arg8[%c0_47, %c0_48, %c1280], %79 {strides = array<i32>} : memref<1x8x2304xbf16, #tpu.memory_space<vmem>>, vector<1x8x256xbf16>,
    %80 = vector.extract_strided_slice %55 {offsets = [48, 0], sizes = [8, 256], strides = [1, 1]} : vector<72x256xbf16> to vector<8x256xbf16>
    %c0_49 = arith.constant 0 : index
    %c0_50 = arith.constant 0 : index
    %c1536 = arith.constant 1536 : index
    %81 = vector.load %arg8[%c0_49, %c0_50, %c1536] : memref<1x8x2304xbf16, #tpu.memory_space<vmem>>, vector<1x8x256xbf16>
    %82 = vector.shape_cast %81 : vector<1x8x256xbf16> to vector<8x256xbf16>
    %83 = vector.shape_cast %80 : vector<8x256xbf16> to vector<1x8x256xbf16>
    tpu.vector_store %arg8[%c0_49, %c0_50, %c1536], %83 {strides = array<i32>} : memref<1x8x2304xbf16, #tpu.memory_space<vmem>>, vector<1x8x256xbf16>,
    %84 = vector.extract_strided_slice %55 {offsets = [56, 0], sizes = [8, 256], strides = [1, 1]} : vector<72x256xbf16> to vector<8x256xbf16>
    %c0_51 = arith.constant 0 : index
    %c0_52 = arith.constant 0 : index
    %c1792 = arith.constant 1792 : index
    %85 = vector.load %arg8[%c0_51, %c0_52, %c1792] : memref<1x8x2304xbf16, #tpu.memory_space<vmem>>, vector<1x8x256xbf16>
    %86 = vector.shape_cast %85 : vector<1x8x256xbf16> to vector<8x256xbf16>
    %87 = vector.shape_cast %84 : vector<8x256xbf16> to vector<1x8x256xbf16>
    tpu.vector_store %arg8[%c0_51, %c0_52, %c1792], %87 {strides = array<i32>} : memref<1x8x2304xbf16, #tpu.memory_space<vmem>>, vector<1x8x256xbf16>,
    %88 = vector.extract_strided_slice %55 {offsets = [64, 0], sizes = [8, 256], strides = [1, 1]} : vector<72x256xbf16> to vector<8x256xbf16>
    %c0_53 = arith.constant 0 : index
    %c0_54 = arith.constant 0 : index
    %c2048 = arith.constant 2048 : index
    %89 = vector.load %arg8[%c0_53, %c0_54, %c2048] : memref<1x8x2304xbf16, #tpu.memory_space<vmem>>, vector<1x8x256xbf16>
    %90 = vector.shape_cast %89 : vector<1x8x256xbf16> to vector<8x256xbf16>
    %91 = vector.shape_cast %88 : vector<8x256xbf16> to vector<1x8x256xbf16>
    tpu.vector_store %arg8[%c0_53, %c0_54, %c2048], %91 {strides = array<i32>} : memref<1x8x2304xbf16, #tpu.memory_space<vmem>>, vector<1x8x256xbf16>,
    return
  }
  func.func @transform_0(%arg0: i32) -> (i32, i32, i32) {
    %c0_i32 = arith.constant 0 : i32
    %c0_i32_0 = arith.constant 0 : i32
    %c0_i32_1 = arith.constant 0 : i32
    return %arg0, %c0_i32, %c0_i32_0 : i32, i32, i32
  }
  func.func @transform_1(%arg0: i32) -> (i32, i32) {
    %c0_i32 = arith.constant 0 : i32
    %c0_i32_0 = arith.constant 0 : i32
    %c0_i32_1 = arith.constant 0 : i32
    return %c0_i32, %c0_i32_0 : i32, i32
  }
  func.func @transform_2(%arg0: i32) -> (i32, i32) {
    %c0_i32 = arith.constant 0 : i32
    %c0_i32_0 = arith.constant 0 : i32
    %c0_i32_1 = arith.constant 0 : i32
    return %c0_i32, %c0_i32_0 : i32, i32
  }
  func.func @transform_3(%arg0: i32) -> (i32, i32) {
    %c0_i32 = arith.constant 0 : i32
    %c0_i32_0 = arith.constant 0 : i32
    %c0_i32_1 = arith.constant 0 : i32
    return %c0_i32, %c0_i32_0 : i32, i32
  }
  func.func @transform_4(%arg0: i32) -> (i32, i32) {
    %c0_i32 = arith.constant 0 : i32
    %c0_i32_0 = arith.constant 0 : i32
    %c0_i32_1 = arith.constant 0 : i32
    return %c0_i32, %c0_i32_0 : i32, i32
  }
  func.func @transform_5(%arg0: i32) -> (i32, i32) {
    %c0_i32 = arith.constant 0 : i32
    %c0_i32_0 = arith.constant 0 : i32
    %c0_i32_1 = arith.constant 0 : i32
    return %c0_i32, %c0_i32_0 : i32, i32
  }
  func.func @transform_6(%arg0: i32) -> (i32, i32) {
    %c0_i32 = arith.constant 0 : i32
    %c0_i32_0 = arith.constant 0 : i32
    %c0_i32_1 = arith.constant 0 : i32
    return %c0_i32, %c0_i32_0 : i32, i32
  }
  func.func @transform_7(%arg0: i32) -> (i32, i32, i32) {
    %c0_i32 = arith.constant 0 : i32
    %c0_i32_0 = arith.constant 0 : i32
    %c0_i32_1 = arith.constant 0 : i32
    return %arg0, %c0_i32, %c0_i32_0 : i32, i32, i32
  }
}

</mosaic_0001>

<bundles_post_ra>
// kernel: promoter_net_forward.2
= control target key start
LH: loop header
LB: loop body
LE: loop exit
PB: predicated region body
PF: predicated region fallthrough
CT: control target
= control target key end

     0   :  { %12 = vsyncpa [#allocation5], 0  ;;  %s6162_s0 = inlined_call_operand.vmem [shape: bf16[2,760,80], index: 0, kind: input, shape index: {}]   ;;  %s6163_s1 = inlined_call_operand.vmem [shape: bf16[80,64], index: 1, kind: input, shape index: {}]   ;;  %s6164_s2 = inlined_call_operand.hbm [shape: f32[1,64], index: 2, kind: input, shape index: {}]   ;;  %s6165_s3 = inlined_call_operand.hbm [shape: bf16[384,128], index: 3, kind: input, shape index: {}]   ;;  %s6166_s4 = inlined_call_operand.hbm [shape: f32[1,128], index: 4, kind: input, shape index: {}]   ;;  %s6167_s5 = inlined_call_operand.hbm [shape: bf16[384,256], index: 5, kind: input, shape index: {}]   ;;  %s6168_s6 = inlined_call_operand.hbm [shape: f32[1,256], index: 6, kind: input, shape index: {}]   ;;  %s6169_s7 = inlined_call_operand.vmem [shape: bf16[2,8,2304], index: 7, kind: output, shape index: {}]  }
   0x1   :  { %13 = vsyncpa [#allocation7], 0 }
   0x2   :  { %14 = vsyncpa [#allocation10], 0  ;;  %s5177_s24 = smov 0  }
   0x3 LB: > { %s5124_s25 = smov [#allocation6]   ;;  %s5183_s27 = sadd.s32 4294967295, %s5122_s24   ;;  %s5122_s24 = sphi %s5177_s24, %s20_s24  }
   0x4   : > { %s229_s26 = sshll.u32 %s5124_s25, 4  ;;  %p3722_p0 = scmp.ge.s32.totalorder %s5122_s24, 1  ;;  %s5188_s26 = int_to_ptr.vmem [resolvable:$true] %s229_s26 }
   0x5   : > { %p203_p1 = scmp.lt.s32.totalorder %s5122_s24, 3  ;;  %p6170_p2 = scmp.eq.s32.totalorder %s5183_s27, 0 }
   0x6   : > { %s5125_s29 = smov [#allocation9]   ;;  %s5126_s9 = smov [#allocation4]  }
   0x7   : > { %p5190_p3 = pnand %p3722_p0, %p203_p1  ;;  %s253_s30 = sshll.u32 %s5125_s29, 4  ;;  %s5196_s30 = int_to_ptr.vmem [resolvable:$true] %s253_s30 }
   0x8   : > { %s5204_s10 = sshll.u32 %s5126_s9, 4  ;;  %s4964_s13 = scalar_lea.hbm %s6165_s3, 3072  ;;  %s220_s10 = int_to_ptr.vmem [resolvable:$true] %s5204_s10 }
   0x9   : > { %s6174_s28 = scalar_select %p5190_p3, 1, 0 }
   0xa   : > { %p4711_p4 = pneg %p5190_p3  ;;  %p4965_p6 = scmp.ne.s32.totalorder %s6165_s3, %s4964_s13 }
   0xb   : > { %p4971_p10 = scmp.lt.u32.totalorder %s4964_s13, %s6165_s3 }
   0xc   : > { %p5200_p5 = pnand %p6170_p2, %p4711_p4 }
   0xe   : > { %p5214_p7 = pneg %p5200_p5 }
  0x10   : > { %p4967_p8 = pnand %p5214_p7, %p4965_p6 }
  0x12   : > { %p4968_p9 = pneg %p4967_p8 }
  0x14   : > { %p4973_p11 = pnand %p4971_p10, %p4968_p9 }
  0x16   : > { %4976 = shalt.err (!%p4973_p11)
}
  0x17   : > { %s4977_s19 = scalar_lea.vmem %s5188_s26, 3072  ;;  %p4985_p1 = scmp.lt.s32.totalorder %s5188_s26, %s5188_s26 }
  0x18   : > { %p4978_p12 = scmp.ne.s32.totalorder %s5188_s26, %s4977_s19  ;;  %p4986_p4 = scmp.lt.s32.totalorder %s4977_s19, %s4977_s19 }
  0x1a   : > { %p4980_p13 = pnand %p4978_p12, %p5214_p7  ;;  %p4987_p6 = por %p4986_p4, %p4985_p1 }
  0x1c   : > { %p4981_p0 = pneg %p4980_p13 }
  0x1e   : > { %p4988_p8 = pnand %p4987_p6, %p4981_p0 }
  0x20   : > { %4991 = shalt.err (!%p4988_p8)
}
  0x21   : > { %s5127_s20 = smov 64   ;;  %s5128_s21 = smov 4  }
  0x22   : > { %4717 = dma.hbm_to_vmem [thread:$0]  (!%p5200_p5), %s6165_s3, 3072, %s5188_s26, [#allocation7], %s5127_s20, %s5127_s20, %s5128_s21  }
  0x23   : > { %s4992_s9 = scalar_lea.hbm %s6167_s5, 6144 }
  0x24   : > { %p4993_p9 = scmp.ne.s32.totalorder %s6167_s5, %s4992_s9  ;;  %p4999_p12 = scmp.lt.u32.totalorder %s4992_s9, %s6167_s5 }
  0x26   : > { %p4995_p10 = pnand %p4993_p9, %p5214_p7 }
  0x28   : > { %p4996_p11 = pneg %p4995_p10 }
  0x2a   : > { %p5001_p13 = pnand %p4999_p12, %p4996_p11 }
  0x2c   : > { %5004 = shalt.err (!%p5001_p13)
}
  0x2d   : > { %s5005_s26 = scalar_lea.vmem %s5196_s30, 6144  ;;  %p5013_p6 = scmp.lt.s32.totalorder %s5196_s30, %s5196_s30 }
  0x2e   : > { %p5006_p0 = scmp.ne.s32.totalorder %s5196_s30, %s5005_s26  ;;  %p5014_p8 = scmp.lt.s32.totalorder %s5005_s26, %s5005_s26 }
  0x30   : > { %p5008_p1 = pnand %p5006_p0, %p5214_p7  ;;  %p5015_p9 = por %p5014_p8, %p5013_p6 }
  0x32   : > { %p5009_p4 = pneg %p5008_p1 }
  0x34   : > { %p5016_p10 = pnand %p5015_p9, %p5009_p4 }
  0x36   : > { %5019 = shalt.err (!%p5016_p10)
}
  0x37   : > { %s5129_s15 = smov 128   ;;  %s5130_s17 = smov 8  }
  0x38   : > { %4723 = dma.hbm_to_vmem [thread:$0]  (!%p5200_p5), %s6167_s5, 6144, %s5196_s30, [#allocation10], %s5129_s15, %s5129_s15, %s5130_s17  }
  0x39   : > { %s5131_s20 = smov [#allocation8]   ;;  %s5020_s25 = scalar_lea.hbm %s6164_s2, 16 }
  0x3a   : > { %s243_s21 = sshll.u32 %s5131_s20, 4  ;;  %p5021_p11 = scmp.ne.s32.totalorder %s6164_s2, %s5020_s25  ;;  %s244_s21 = int_to_ptr.vmem [resolvable:$true] %s243_s21 }
  0x3b   : > { %p5027_p0 = scmp.lt.u32.totalorder %s5020_s25, %s6164_s2 }
  0x3c   : > { %p5023_p12 = pnand %p5021_p11, %p5214_p7 }
  0x3e   : > { %p5024_p13 = pneg %p5023_p12 }
  0x40   : > { %p5029_p1 = pnand %p5027_p0, %p5024_p13 }
  0x42   : > { %5032 = shalt.err (!%p5029_p1)
}
  0x43   : > { %s5033_s30 = scalar_lea.vmem %s220_s10, 16  ;;  %s5040_s13 = scalar_lea.vmem %s220_s10, 32 }
  0x44   : > { %p5034_p4 = scmp.ne.s32.totalorder %s220_s10, %s5033_s30  ;;  %p5041_p9 = scmp.lt.s32.totalorder %s220_s10, %s220_s10 }
  0x45   : > { %p5042_p10 = scmp.lt.s32.totalorder %s5040_s13, %s5033_s30 }
  0x46   : > { %p5036_p6 = pnand %p5034_p4, %p5214_p7 }
  0x47   : > { %p5043_p2 = por %p5042_p10, %p5041_p9 }
  0x48   : > { %p5037_p8 = pneg %p5036_p6 }
  0x4a   : > { %p5044_p3 = pnand %p5043_p2, %p5037_p8 }
  0x4c   : > { %5047 = shalt.err (!%p5044_p3)
}
  0x4d   : > { %4714 = dma.hbm_to_vmem [thread:$0]  (!%p5200_p5), %s6164_s2, 16, %s220_s10, [#allocation5]  }
  0x4e   : > { %s5048_s18 = scalar_lea.hbm %s6166_s4, 16 }
  0x4f   : > { %p5049_p11 = scmp.ne.s32.totalorder %s6166_s4, %s5048_s18  ;;  %p5055_p3 = scmp.lt.u32.totalorder %s5048_s18, %s6166_s4 }
  0x51   : > { %p5051_p12 = pnand %p5049_p11, %p5214_p7 }
  0x53   : > { %p5052_p2 = pneg %p5051_p12 }
  0x55   : > { %p5057_p13 = pnand %p5055_p3, %p5052_p2 }
  0x57   : > { %5060 = shalt.err (!%p5057_p13)
}
  0x58   : > { %s5061_s25 = scalar_lea.vmem %s244_s21, 16  ;;  %s5068_s10 = scalar_lea.vmem %s244_s21, 32 }
  0x59   : > { %p5062_p0 = scmp.ne.s32.totalorder %s244_s21, %s5061_s25  ;;  %p5069_p6 = scmp.lt.s32.totalorder %s244_s21, %s244_s21 }
  0x5a   : > { %p5070_p8 = scmp.lt.s32.totalorder %s5068_s10, %s5061_s25 }
  0x5b   : > { %p5064_p1 = pnand %p5062_p0, %p5214_p7 }
  0x5c   : > { %p5071_p9 = por %p5070_p8, %p5069_p6 }
  0x5d   : > { %p5065_p4 = pneg %p5064_p1 }
  0x5f   : > { %p5072_p10 = pnand %p5071_p9, %p5065_p4 }
  0x61   : > { %5075 = shalt.err (!%p5072_p10)
}
  0x62   : > { %4720 = dma.hbm_to_vmem [thread:$0]  (!%p5200_p5), %s6166_s4, 16, %s244_s21, [#allocation7]  }
  0x63   : > { %s5132_s11 = smov [#allocation11]   ;;  %s5076_s14 = scalar_lea.hbm %s6168_s6, 32 }
  0x64   : > { %s267_s12 = sshll.u32 %s5132_s11, 4  ;;  %p5077_p11 = scmp.ne.s32.totalorder %s6168_s6, %s5076_s14  ;;  %s268_s12 = int_to_ptr.vmem [resolvable:$true] %s267_s12 }
  0x65   : > { %p5083_p3 = scmp.lt.u32.totalorder %s5076_s14, %s6168_s6 }
  0x66   : > { %p5079_p12 = pnand %p5077_p11, %p5214_p7 }
  0x68   : > { %p5080_p2 = pneg %p5079_p12 }
  0x6a   : > { %p5085_p13 = pnand %p5083_p3, %p5080_p2 }
  0x6c   : > { %5088 = shalt.err (!%p5085_p13)
}
  0x6d   : > { %s5089_s21 = scalar_lea.vmem %s268_s12, 32  ;;  %p5097_p6 = scmp.lt.s32.totalorder %s268_s12, %s268_s12 }
  0x6e   : > { %p5090_p0 = scmp.ne.s32.totalorder %s268_s12, %s5089_s21  ;;  %p5098_p8 = scmp.lt.s32.totalorder %s5089_s21, %s5089_s21 }
  0x70   : > { %p5092_p1 = pnand %p5090_p0, %p5214_p7  ;;  %p5099_p9 = por %p5098_p8, %p5097_p6 }
  0x72   : > { %p5093_p4 = pneg %p5092_p1 }
  0x74   : > { %p5100_p10 = pnand %p5099_p9, %p5093_p4 }
  0x76   : > { %5103 = shalt.err (!%p5100_p10)
}
  0x77   : > { %4726 = dma.hbm_to_vmem [thread:$0]  (!%p5200_p5), %s6168_s6, 32, %s268_s12, [#allocation10]  }
  0x78   : > { %p6177_p11 = scmp.ne.s32.totalorder %s6174_s28, 0 }
  0x79   : > { %p6178_p12 = scmp.eq.s32.totalorder (!%p6177_p11), %s5183_s27, 0 }
  0x7a   : > { %288 = sbr.rel (%p6177_p11) target bundleno = 1384 (0x568), region = 48 }
  0x81   : > { %5109 = dma.done.wait (%p6178_p12), [#allocation5], 16   ;;  %p6179_p7 = pmov %p6178_p12 }
  0x83   : > { %5111 = vsyncadd (%p6179_p7), [#allocation5], 4294967280  ;;  %p6180_p2 = pmov %p6179_p7 }
  0x85   : > { %5113 = dma.done.wait (%p6180_p2), [#allocation7], 3088   ;;  %p6181_p3 = pmov %p6180_p2 }
  0x86   : > { %p6182_p13 = pmov %p6180_p2 }
  0x87   : > { %5115 = vsyncadd (%p6181_p3), [#allocation7], 4294964208 }
  0x88   : > { %5117 = dma.done.wait (%p6182_p13), [#allocation10], 6176   ;;  %p6183_p5 = pmov %p6180_p2 }
  0x89   : > { %p336_p0 = scmp.lt.s32.totalorder %s5183_s27, 1  ;;  %v4758_v0 = vld [vmem:[%s6163_s1] sm:$0xff]   ;;  %v4759_v1 = vld [vmem:[%s6163_s1 + $0x8] sm:$0xff]   ;;  %v4760_v2 = vld [vmem:[%s6163_s1 + $0x10] sm:$0xff]   ;;  %vm727_vm0 = vcmask 654336   ;;  %v6172_v53 = vmov 0  }
  0x8a   : > { %5119 = vsyncadd (%p6183_p5), [#allocation10], 4294961120  ;;  %4285 = vmatprep.subr.bf16.mxu0 %v4758_v0  ;;  %v4761_v4 = vld [vmem:[%s6163_s1 + $0x18] sm:$0xff]   ;;  %v4762_v5 = vld [vmem:[%s6163_s1 + $0x20] sm:$0xff]   ;;  %2190 = vmatprep.subr.bf16.mxu1 %v6172_v53  ;;  %vm1617_vm1 = vcmask 519168   ;;  %s5134_s26 = smov 64  }
  0x8b   : > { %s6192_s27 = smov (!%p336_p0, %s5183_s27), 1  ;;  %4286 = vmatpush3.bf16.msra.mxu0 %v4758_v0  ;;  %v4820_v52 = vld [vmem:[#allocation6] sm:$0xff]   ;;  %v4822_v55 = vld [vmem:[#allocation6 + $0x8] sm:$0xff]   ;;  %v4823_v56 = vld [vmem:[#allocation6 + $0x10] sm:$0xff]   ;;  %vm1898_vm2 = vcmask 523264   ;;  %vm5136_vm3 = vmmov 0  }
  0x8c   : > { %s4689_s28 = smul.u32 380, %s6192_s27  ;;  %4287 = vmatprep.subr.bf16.mxu0 %v4759_v1  ;;  %2191 = vmatpush1.bf16.msra.mxu1 %v4820_v52  ;;  %v4825_v57 = vld [vmem:[#allocation6 + $0x18] sm:$0xff]   ;;  %v4826_v58 = vld [vmem:[#allocation6 + $0x20] sm:$0xff]   ;;  %v4828_v59 = vld [vmem:[#allocation6 + $0x28] sm:$0xff]  }
  0x8d   : > { %2192 = vmatprep.subr.bf16.mxu1 %v6172_v53  ;;  %v4829_v60 = vld [vmem:[#allocation6 + $0x30] sm:$0xff]   ;;  %v4831_v61 = vld [vmem:[#allocation6 + $0x38] sm:$0xff]   ;;  %v4832_v62 = vld [vmem:[#allocation6 + $0x40] sm:$0xff]   ;;  %s4690_s15 = smul.u32 72, %s6192_s27 }
  0x8e   : > { %s5341_s29 = scalar_lea.vmem %s6162_s0, %s4689_s28  ;;  %v5457_v63 = vld [vmem:[#allocation4] ss:$0 sm:$0xff] }
  0x8f   : > { %v4763_v3 = vld [vmem:[%s5341_s29] sm:$0xff]   ;;  %4288 = vmatpush3.bf16.msra.mxu0 %v4759_v1  ;;  %v4764_v6 = vld [vmem:[%s5341_s29 + $0x8] sm:$0xff]   ;;  %v4765_v7 = vld [vmem:[%s5341_s29 + $0x10] sm:$0xff]   ;;  %s6116_s21 = scalar_lea.vmem %s6169_s7, %s4690_s15 }
  0x90   : > { %4295 = vmatprep.mubr.msk.bf16.mxu0 %vm727_vm0, %v4763_v3  ;;  %4289 = vmatprep.subr.bf16.mxu0 %v4760_v2  ;;  %v4766_v8 = vld [vmem:[%s5341_s29 + $0x18] sm:$0xff]   ;;  %v4767_v9 = vld [vmem:[%s5341_s29 + $0x20] sm:$0xff]   ;;  %v4768_v10 = vld [vmem:[%s5341_s29 + $0x28] sm:$0xff]  }
  0x91   : > { %v4769_v11 = vld [vmem:[%s5341_s29 + $0x30] sm:$0xff]   ;;  %v4770_v12 = vld [vmem:[%s5341_s29 + $0x38] sm:$0xff]   ;;  %v4771_v13 = vld [vmem:[%s5341_s29 + $0x40] sm:$0xff]   ;;  %2193 = vmatpush1.bf16.msra.mxu1 %v4822_v55 }
  0x92   : > { %v4772_v14 = vld [vmem:[%s5341_s29 + $0x48] sm:$0xff]   ;;  %v4773_v15 = vld [vmem:[%s5341_s29 + $0x50] sm:$0xff]   ;;  %v4774_v16 = vld [vmem:[%s5341_s29 + $0x58] sm:$0xff]   ;;  %2194 = vmatprep.subr.bf16.mxu1 %v6172_v53 }
  0x93   : > { %4290 = vmatpush3.bf16.msra.mxu0 %v4760_v2  ;;  %v4775_v17 = vld [vmem:[%s5341_s29 + $0x60] sm:$0xff]   ;;  %v4776_v18 = vld [vmem:[%s5341_s29 + $0x68] sm:$0xff]   ;;  %v4777_v19 = vld [vmem:[%s5341_s29 + $0x70] sm:$0xff]  }
  0x94   : > { %4291 = vmatprep.subr.bf16.mxu0 %v4761_v4  ;;  %v4778_v20 = vld [vmem:[%s5341_s29 + $0x78] sm:$0xff]   ;;  %v4779_v21 = vld [vmem:[%s5341_s29 + $0x80] sm:$0xff]   ;;  %v4780_v22 = vld [vmem:[%s5341_s29 + $0x88] sm:$0xff]  }
  0x95   : > { %v4781_v23 = vld [vmem:[%s5341_s29 + $0x90] sm:$0xff]   ;;  %v4782_v24 = vld [vmem:[%s5341_s29 + $0x98] sm:$0xff]   ;;  %v4783_v25 = vld [vmem:[%s5341_s29 + $0xa0] sm:$0xff]   ;;  %2195 = vmatpush1.bf16.msra.mxu1 %v4823_v56 }
  0x96   : > { %v4784_v26 = vld [vmem:[%s5341_s29 + $0xa8] sm:$0xff]   ;;  %v4785_v27 = vld [vmem:[%s5341_s29 + $0xb0] sm:$0xff]   ;;  %v4786_v28 = vld [vmem:[%s5341_s29 + $0xb8] sm:$0xff]   ;;  %2196 = vmatprep.subr.bf16.mxu1 %v6172_v53 }
  0x97   : > { %4292 = vmatpush3.bf16.msra.mxu0 %v4761_v4  ;;  %v4787_v29 = vld [vmem:[%s5341_s29 + $0xc0] sm:$0xff]   ;;  %v4788_v30 = vld [vmem:[%s5341_s29 + $0xc8] sm:$0xff]   ;;  %v4789_v31 = vld [vmem:[%s5341_s29 + $0xd0] sm:$0xff]  }
  0x98   : > { %4293 = vmatprep.subr.bf16.mxu0 %v4762_v5  ;;  %v4790_v32 = vld [vmem:[%s5341_s29 + $0xd8] sm:$0xff]   ;;  %v4791_v33 = vld [vmem:[%s5341_s29 + $0xe0] sm:$0xff]   ;;  %v4792_v34 = vld [vmem:[%s5341_s29 + $0xe8] sm:$0xff]  }
  0x99   : > { %v4793_v35 = vld [vmem:[%s5341_s29 + $0xf0] sm:$0xff]   ;;  %v4794_v36 = vld [vmem:[%s5341_s29 + $0xf8] sm:$0xff]   ;;  %v4795_v37 = vld [vmem:[%s5341_s29 + $0x100] sm:$0xff]   ;;  %2197 = vmatpush1.bf16.msra.mxu1 %v4825_v57 }
  0x9a   : > { %v4796_v38 = vld [vmem:[%s5341_s29 + $0x108] sm:$0xff]   ;;  %v4797_v39 = vld [vmem:[%s5341_s29 + $0x110] sm:$0xff]   ;;  %v4798_v40 = vld [vmem:[%s5341_s29 + $0x118] sm:$0xff]   ;;  %2198 = vmatprep.subr.bf16.mxu1 %v6172_v53 }
  0x9b   : > { %4294 = vmatpush3.bf16.msra.mxu0 %v4762_v5  ;;  %v4799_v41 = vld [vmem:[%s5341_s29 + $0x120] sm:$0xff]   ;;  %v4800_v42 = vld [vmem:[%s5341_s29 + $0x128] sm:$0xff]   ;;  %v4801_v43 = vld [vmem:[%s5341_s29 + $0x130] sm:$0xff]  }
  0x9c   : > { %v4802_v44 = vld [vmem:[%s5341_s29 + $0x138] sm:$0xff]   ;;  %v4803_v45 = vld [vmem:[%s5341_s29 + $0x140] sm:$0xff]   ;;  %v4804_v46 = vld [vmem:[%s5341_s29 + $0x148] sm:$0xff]  }
  0x9d   : > { %v4805_v47 = vld [vmem:[%s5341_s29 + $0x150] sm:$0xff]   ;;  %v4806_v48 = vld [vmem:[%s5341_s29 + $0x158] sm:$0xff]   ;;  %v4807_v49 = vld [vmem:[%s5341_s29 + $0x160] sm:$0xff]   ;;  %2199 = vmatpush1.bf16.msra.mxu1 %v4826_v58 }
  0x9e   : > { %4296 = vmatmul.mubr.msk.bf16.vlgmr.msra.gmra.mrb[0].mxu0 %vm727_vm0, %v4764_v6  ;;  %v4808_v50 = vld [vmem:[%s5341_s29 + $0x168] sm:$0xff]   ;;  %v4809_v51 = vld [vmem:[%s5341_s29 + $0x170] sm:$0xff]   ;;  %v4810_v54 = vld [vmem:[%s5341_s29 + $0x178] ss:$0 sps:$4 sm:$0xff]   ;;  %2200 = vmatprep.subr.bf16.mxu1 %v6172_v53 }
  0x9f   : > { %4299 = vmatprep.mubr.msk.bf16.mxu0 %vm727_vm0, %v4765_v7  ;;  %v4834_v3 = vld [vmem:[#allocation6 + $0x48] sm:$0xff]   ;;  %v4843_v57 = vld [vmem:[#allocation6 + $0x78] sm:$0xff]  }
  0xa1   : > { %2201 = vmatpush1.bf16.msra.mxu1 %v4828_v59 }
  0xa2   : > { %2202 = vmatprep.subr.bf16.mxu1 %v6172_v53 }
  0xa5   : > { %2203 = vmatpush1.bf16.msra.mxu1 %v4829_v60 }
  0xa6   : > { %4300 = vmatmul.mubr.msk.bf16.gmra.mrb[4].mxu0 %vm727_vm0, %v4766_v8  ;;  %2204 = vmatprep.subr.bf16.mxu1 %v6172_v53 }
  0xa7   : > { %4303 = vmatprep.mubr.msk.bf16.mxu0 %vm727_vm0, %v4767_v9 }
  0xa9   : > { %2205 = vmatpush1.bf16.msra.mxu1 %v4831_v61 }
  0xaa   : > { %2206 = vmatprep.subr.bf16.mxu1 %v6172_v53 }
  0xad   : > { %2207 = vmatpush1.bf16.msra.mxu1 %v4832_v62 }
  0xae   : > { %4304 = vmatmul.mubr.msk.bf16.gmra.mrb[8].mxu0 %vm727_vm0, %v4768_v10  ;;  %2208 = vmatprep.subr.bf16.mxu1 %v6172_v53 }
  0xaf   : > { %4307 = vmatprep.mubr.msk.bf16.mxu0 %vm727_vm0, %v4769_v11  ;;  %v4835_v11 = vld [vmem:[#allocation6 + $0x50] sm:$0xff]  }
  0xb1   : > { %2209 = vmatpush1.bf16.msra.mxu1 %v4834_v3 }
  0xb2   : > { %2210 = vmatprep.subr.bf16.mxu1 %v6172_v53 }
  0xb5   : > { %2211 = vmatpush1.bf16.msra.mxu1 %v4835_v11 }
  0xb6   : > { %4308 = vmatmul.mubr.msk.bf16.gmra.mrb[12].mxu0 %vm727_vm0, %v4770_v12  ;;  %2212 = vmatprep.subr.bf16.mxu1 %v6172_v53 }
  0xb7   : > { %4311 = vmatprep.mubr.msk.bf16.mxu0 %vm727_vm0, %v4771_v13 }
  0xbe   : > { %4312 = vmatmul.mubr.msk.bf16.gmra.mrb[16].mxu0 %vm727_vm0, %v4772_v14 }
  0xbf   : > { %4315 = vmatprep.mubr.msk.bf16.mxu0 %vm727_vm0, %v4773_v15 }
  0xc6   : > { %4316 = vmatmul.mubr.msk.bf16.gmra.mrb[20].mxu0 %vm727_vm0, %v4774_v16 }
  0xc7   : > { %4319 = vmatprep.mubr.msk.bf16.mxu0 %vm727_vm0, %v4775_v17 }
  0xce   : > { %4320 = vmatmul.mubr.msk.bf16.gmra.mrb[24].mxu0 %vm727_vm0, %v4776_v18 }
  0xcf   : > { %4323 = vmatprep.mubr.msk.bf16.mxu0 %vm727_vm0, %v4777_v19 }
  0xd6   : > { %4324 = vmatmul.mubr.msk.bf16.gmra.mrb[28].mxu0 %vm727_vm0, %v4778_v20  ;;  %v4837_v20 = vld [vmem:[#allocation6 + $0x58] sm:$0xff]  }
  0xd7   : > { %4327 = vmatprep.mubr.msk.bf16.mxu0 %vm727_vm0, %v4779_v21  ;;  %2213 = vmatpush1.bf16.msra.mxu1 %v4837_v20 }
  0xd8   : > { %2214 = vmatprep.subr.bf16.mxu1 %v6172_v53 }
  0xde   : > { %4328 = vmatmul.mubr.msk.bf16.gmra.mrb[32].mxu0 %vm727_vm0, %v4780_v22 }
  0xdf   : > { %4331 = vmatprep.mubr.msk.bf16.mxu0 %vm727_vm0, %v4781_v23 }
  0xe6   : > { %4332 = vmatmul.mubr.msk.bf16.gmra.mrb[36].mxu0 %vm727_vm0, %v4782_v24 }
  0xe7   : > { %4335 = vmatprep.mubr.msk.bf16.mxu0 %vm727_vm0, %v4783_v25 }
  0xee   : > { %4336 = vmatmul.mubr.msk.bf16.gmra.mrb[40].mxu0 %vm727_vm0, %v4784_v26 }
  0xef   : > { %4339 = vmatprep.mubr.msk.bf16.mxu0 %vm727_vm0, %v4785_v27 }
  0xf6   : > { %4340 = vmatmul.mubr.msk.bf16.gmra.mrb[44].mxu0 %vm727_vm0, %v4786_v28 }
  0xf7   : > { %4343 = vmatprep.mubr.msk.bf16.mxu0 %vm727_vm0, %v4787_v29  ;;  %v4838_v29 = vld [vmem:[#allocation6 + $0x60] sm:$0xff]  }
  0xf8   : > { %2215 = vmatpush1.bf16.msra.mxu1 %v4838_v29 }
  0xf9   : > { %2216 = vmatprep.subr.bf16.mxu1 %v6172_v53 }
  0xfe   : > { %4344 = vmatmul.mubr.msk.bf16.gmra.mrb[48].mxu0 %vm727_vm0, %v4788_v30 }
  0xff   : > { %4347 = vmatprep.mubr.msk.bf16.mxu0 %vm727_vm0, %v4789_v31 }
 0x106   : > { %4348 = vmatmul.mubr.msk.bf16.gmra.mrb[52].mxu0 %vm727_vm0, %v4790_v32 }
 0x107   : > { %4351 = vmatprep.mubr.msk.bf16.mxu0 %vm727_vm0, %v4791_v33 }
 0x10e   : > { %4352 = vmatmul.mubr.msk.bf16.gmra.mrb[56].mxu0 %vm727_vm0, %v4792_v34 }
 0x10f   : > { %4355 = vmatprep.mubr.msk.bf16.mxu0 %vm727_vm0, %v4793_v35 }
 0x116   : > { %4356 = vmatmul.mubr.msk.bf16.gmra.mrb[60].mxu0 %vm727_vm0, %v4794_v36 }
 0x117   : > { %4359 = vmatprep.mubr.msk.bf16.mxu0 %vm727_vm0, %v4795_v37 }
 0x11e   : > { %4360 = vmatmul.mubr.msk.bf16.gmra.mrb[64].mxu0 %vm727_vm0, %v4796_v38  ;;  %v4840_v38 = vld [vmem:[#allocation6 + $0x68] sm:$0xff]  }
 0x11f   : > { %4363 = vmatprep.mubr.msk.bf16.mxu0 %vm727_vm0, %v4797_v39  ;;  %2217 = vmatpush1.bf16.msra.mxu1 %v4840_v38 }
 0x120   : > { %2218 = vmatprep.subr.bf16.mxu1 %v6172_v53 }
 0x126   : > { %4364 = vmatmul.mubr.msk.bf16.gmra.mrb[68].mxu0 %vm727_vm0, %v4798_v40 }
 0x127   : > { %4367 = vmatprep.mubr.msk.bf16.mxu0 %vm727_vm0, %v4799_v41 }
 0x12e   : > { %4368 = vmatmul.mubr.msk.bf16.gmra.mrb[72].mxu0 %vm727_vm0, %v4800_v42 }
 0x12f   : > { %4371 = vmatprep.mubr.msk.bf16.mxu0 %vm727_vm0, %v4801_v43 }
 0x136   : > { %4372 = vmatmul.mubr.msk.bf16.gmra.mrb[76].mxu0 %vm727_vm0, %v4802_v44 }
 0x137   : > { %4375 = vmatprep.mubr.msk.bf16.mxu0 %vm727_vm0, %v4803_v45 }
 0x13e   : > { %4376 = vmatmul.mubr.msk.bf16.gmra.mrb[80].mxu0 %vm727_vm0, %v4804_v46 }
 0x13f   : > { %4379 = vmatprep.mubr.msk.bf16.mxu0 %vm727_vm0, %v4805_v47  ;;  %v4841_v47 = vld [vmem:[#allocation6 + $0x70] sm:$0xff]  }
 0x140   : > { %2219 = vmatpush1.bf16.msra.mxu1 %v4841_v47 }
 0x141   : > { %2220 = vmatprep.subr.bf16.mxu1 %v6172_v53 }
 0x144   : > { %2221 = vmatpush1.bf16.msra.mxu1 %v4843_v57 }
 0x146   : > { %4380 = vmatmul.mubr.msk.bf16.gmra.mrb[84].mxu0 %vm727_vm0, %v4806_v48 }
 0x147   : > { %4383 = vmatprep.mubr.msk.bf16.mxu0 %vm727_vm0, %v4807_v49 }
 0x14e   : > { %4384 = vmatmul.mubr.msk.bf16.gmra.mrb[88].mxu0 %vm727_vm0, %v4808_v50 }
 0x14f   : > { %4387 = vmatprep.mubr.msk.bf16.mxu0 %vm727_vm0, %v4809_v51 }
 0x156   : > { %4388 = vmatmul.mubr.msk.bf16.gmra.mrb[92].mxu0 %vm727_vm0, %v4810_v54 }
 0x171   : > { %v4297_v0 = vpop.f32.mrb[0].mxu0 }
 0x172   : > { %v915_v1 = vadd.f32 %v4297_v0, %v5457_v63  ;;  %v906_v2 = vpop.f32.mrb[1].mxu0 }
 0x173   : > { %v907_v4 = vadd.f32 %v5457_v63, %v906_v2  ;;  %v4298_v5 = vpop.f32.mrb[2].mxu0 }
 0x174   : > { %v918_v6 = vadd.f32 %v4298_v5, %v5457_v63  ;;  %v909_v7 = vpop.f32.mrb[3].mxu0  ;;  %v1289_v9 = vmax.f32 %v915_v1, 0.0 }
 0x175   : > { %v910_v8 = vadd.f32 %v5457_v63, %v909_v7  ;;  %v1287_v12 = vmax.f32 %v907_v4, 0.0 }
 0x176   : > { %v1290_v10 = vmax.f32 %v918_v6, 0.0 }
 0x177   : > { %v1288_v13 = vmax.f32 %v910_v8, 0.0 }
 0x178   : > { %v1382_v14 = vmax.f32 %v1289_v9, %v1290_v10 }
 0x179   : > { %v1381_v15 = vmax.f32 %v1287_v12, %v1288_v13  ;;  %v4301_v16 = vpop.f32.mrb[4].mxu0 }
 0x17a   : > { %v4068_v17 = vpack.c.bf16 %v1382_v14, %v1382_v14  ;;  %v931_v18 = vadd.f32 %v4301_v16, %v5457_v63  ;;  %v922_v19 = vpop.f32.mrb[5].mxu0 }
 0x17b   : > { %v4067_v21 = vpack.c.bf16 %v1381_v15, %v1381_v15  ;;  %v923_v22 = vadd.f32 %v5457_v63, %v922_v19  ;;  %v4302_v23 = vpop.f32.mrb[6].mxu0 }
 0x17c   : > { %1619 = vst.msk [vmem:[#allocation2 + $0x4] sm:$0xf] %vm1617_vm1, %v4068_v17  ;;  %v934_v24 = vadd.f32 %v4302_v23, %v5457_v63  ;;  %v925_v25 = vpop.f32.mrb[7].mxu0  ;;  %v1293_v27 = vmax.f32 %v931_v18, 0.0 }
 0x17d   : > { %1618 = vst.msk [vmem:[#allocation2] sm:$0xf] %vm1617_vm1, %v4067_v21  ;;  %v926_v26 = vadd.f32 %v5457_v63, %v925_v25  ;;  %v1291_v30 = vmax.f32 %v923_v22, 0.0 }
 0x17e   : > { %v1294_v28 = vmax.f32 %v934_v24, 0.0 }
 0x17f   : > { %v1292_v31 = vmax.f32 %v926_v26, 0.0 }
 0x180   : > { %v1384_v32 = vmax.f32 %v1293_v27, %v1294_v28  ;;  %v5135_v28 = vmov 0.0  }
 0x181   : > { %v1383_v33 = vmax.f32 %v1291_v30, %v1292_v31  ;;  %v4305_v34 = vpop.f32.mrb[8].mxu0  ;;  %4391 = vmatprep.subr.bf16.mxu1 %v5135_v28 }
 0x182   : > { %v4070_v35 = vpack.c.bf16 %v1384_v32, %v1384_v32  ;;  %v947_v36 = vadd.f32 %v4305_v34, %v5457_v63  ;;  %v938_v37 = vpop.f32.mrb[9].mxu0 }
 0x183   : > { %v4069_v39 = vpack.c.bf16 %v1383_v33, %v1383_v33  ;;  %v939_v40 = vadd.f32 %v5457_v63, %v938_v37  ;;  %v4306_v41 = vpop.f32.mrb[10].mxu0  ;;  %v5510_v30 = vld [vmem:[#allocation2 + $0x4] sm:$0xf] }
 0x184   : > { %1621 = vst.msk [vmem:[#allocation2 + $0xc] sm:$0xf] %vm1617_vm1, %v4070_v35  ;;  %v950_v42 = vadd.f32 %v4306_v41, %v5457_v63  ;;  %v941_v43 = vpop.f32.mrb[11].mxu0  ;;  %v1297_v45 = vmax.f32 %v947_v36, 0.0 }
 0x185   : > { %1620 = vst.msk [vmem:[#allocation2 + $0x8] sm:$0xf] %vm1617_vm1, %v4069_v39  ;;  %v942_v44 = vadd.f32 %v5457_v63, %v941_v43  ;;  %v1295_v48 = vmax.f32 %v939_v40, 0.0 }
 0x186   : > { %v1298_v46 = vmax.f32 %v950_v42, 0.0 }
 0x187   : > { %v1296_v49 = vmax.f32 %v942_v44, 0.0 }
 0x188   : > { %v1386_v50 = vmax.f32 %v1297_v45, %v1298_v46 }
 0x189   : > { %v1385_v51 = vmax.f32 %v1295_v48, %v1296_v49  ;;  %v4309_v52 = vpop.f32.mrb[12].mxu0 }
 0x18a   : > { %v4072_v54 = vpack.c.bf16 %v1386_v50, %v1386_v50  ;;  %v963_v55 = vadd.f32 %v4309_v52, %v5457_v63  ;;  %v954_v56 = vpop.f32.mrb[13].mxu0 }
 0x18b   : > { %v4071_v58 = vpack.c.bf16 %v1385_v51, %v1385_v51  ;;  %v955_v59 = vadd.f32 %v5457_v63, %v954_v56  ;;  %v4310_v60 = vpop.f32.mrb[14].mxu0  ;;  %v5484_v61 = vld [vmem:[#allocation2 + $0xc] sm:$0xf] }
 0x18c   : > { %1623 = vst.msk [vmem:[#allocation2 + $0x14] sm:$0xf] %vm1617_vm1, %v4072_v54  ;;  %v1301_v62 = vmax.f32 %v963_v55, 0.0  ;;  %v966_v0 = vadd.f32 %v4310_v60, %v5457_v63  ;;  %v957_v1 = vpop.f32.mrb[15].mxu0  ;;  %v5488_v2 = vld [vmem:[#allocation2 + $0x8] sm:$0xf] }
 0x18d   : > { %1622 = vst.msk [vmem:[#allocation2 + $0x10] sm:$0xf] %vm1617_vm1, %v4071_v58  ;;  %v1299_v3 = vmax.f32 %v955_v59, 0.0  ;;  %v958_v4 = vadd.f32 %v5457_v63, %v957_v1  ;;  %v3887_v5 = vcombine.low %v5488_v2, %v5484_v61  ;;  %v3907_v33 = vcombine.low %v5510_v30, %v5488_v2 }
 0x18e   : > { %v1302_v6 = vmax.f32 %v966_v0, 0.0 }
 0x18f   : > { %v1300_v7 = vmax.f32 %v958_v4, 0.0 }
 0x190   : > { %v1388_v8 = vmax.f32 %v1301_v62, %v1302_v6 }
 0x191   : > { %v1387_v9 = vmax.f32 %v1299_v3, %v1300_v7  ;;  %v4313_v10 = vpop.f32.mrb[16].mxu0 }
 0x192   : > { %v4074_v11 = vpack.c.bf16 %v1388_v8, %v1388_v8  ;;  %v979_v12 = vadd.f32 %v4313_v10, %v5457_v63  ;;  %v970_v13 = vpop.f32.mrb[17].mxu0 }
 0x193   : > { %v4073_v14 = vpack.c.bf16 %v1387_v9, %v1387_v9  ;;  %v971_v15 = vadd.f32 %v5457_v63, %v970_v13  ;;  %v4314_v16 = vpop.f32.mrb[18].mxu0  ;;  %v5496_v17 = vld [vmem:[#allocation2 + $0x14] sm:$0xf] }
 0x194   : > { %1625 = vst.msk [vmem:[#allocation2 + $0x1c] sm:$0xf] %vm1617_vm1, %v4074_v11  ;;  %v1305_v18 = vmax.f32 %v979_v12, 0.0  ;;  %v982_v19 = vadd.f32 %v4314_v16, %v5457_v63  ;;  %v973_v20 = vpop.f32.mrb[19].mxu0  ;;  %v5500_v21 = vld [vmem:[#allocation2 + $0x10] sm:$0xf] }
 0x195   : > { %1624 = vst.msk [vmem:[#allocation2 + $0x18] sm:$0xf] %vm1617_vm1, %v4073_v14  ;;  %v1303_v22 = vmax.f32 %v971_v15, 0.0  ;;  %v974_v23 = vadd.f32 %v5457_v63, %v973_v20  ;;  %v3908_v24 = vcombine.low %v5484_v61, %v5500_v21  ;;  %v3888_v25 = vcombine.low %v5500_v21, %v5496_v17  ;;  %v4845_v61 = vld [vmem:[#allocation6 + $0x80] sm:$0xff]  }
 0x196   : > { %v1306_v26 = vmax.f32 %v982_v19, 0.0 }
 0x197   : > { %v1304_v27 = vmax.f32 %v974_v23, 0.0  ;;  %1842 = vrot.lane.b32.xlu0 %v3908_v24, %s5134_s26 }
 0x198   : > { %v1390_v29 = vmax.f32 %v1305_v18, %v1306_v26 }
 0x199   : > { %v1389_v31 = vmax.f32 %v1303_v22, %v1304_v27  ;;  %v4317_v32 = vpop.f32.mrb[20].mxu0 }
 0x19a   : > { %v4076_v34 = vpack.c.bf16 %v1390_v29, %v1390_v29  ;;  %v995_v35 = vadd.f32 %v4317_v32, %v5457_v63  ;;  %v986_v36 = vpop.f32.mrb[21].mxu0 }
 0x19b   : > { %v4075_v37 = vpack.c.bf16 %v1389_v31, %v1389_v31  ;;  %v987_v38 = vadd.f32 %v5457_v63, %v986_v36  ;;  %v4318_v39 = vpop.f32.mrb[22].mxu0  ;;  %1840 = vrot.lane.b32.xlu0 %v3907_v33, %s5134_s26  ;;  %v5517_v40 = vld [vmem:[#allocation2 + $0x1c] sm:$0xf] }
 0x19c   : > { %1627 = vst.msk [vmem:[#allocation2 + $0x24] sm:$0xf] %vm1617_vm1, %v4076_v34  ;;  %v1309_v41 = vmax.f32 %v995_v35, 0.0  ;;  %v998_v42 = vadd.f32 %v4318_v39, %v5457_v63  ;;  %v989_v43 = vpop.f32.mrb[23].mxu0  ;;  %v5521_v44 = vld [vmem:[#allocation2 + $0x18] sm:$0xf] }
 0x19d   : > { %1626 = vst.msk [vmem:[#allocation2 + $0x20] sm:$0xf] %vm1617_vm1, %v4075_v37  ;;  %v1307_v45 = vmax.f32 %v987_v38, 0.0  ;;  %v990_v46 = vadd.f32 %v5457_v63, %v989_v43  ;;  %v3909_v47 = vcombine.low %v5496_v17, %v5521_v44  ;;  %v3889_v48 = vcombine.low %v5521_v44, %v5517_v40  ;;  %v4853_v17 = vld [vmem:[#allocation6 + $0x90] sm:$0xff]  }
 0x19e   : > { %v1310_v49 = vmax.f32 %v998_v42, 0.0 }
 0x19f   : > { %v1308_v50 = vmax.f32 %v990_v46, 0.0  ;;  %1844 = vrot.lane.b32.xlu1 %v3909_v47, %s5134_s26 }
 0x1a0   : > { %v1392_v51 = vmax.f32 %v1309_v41, %v1310_v49 }
 0x1a1   : > { %v1391_v52 = vmax.f32 %v1307_v45, %v1308_v50  ;;  %v4321_v54 = vpop.f32.mrb[24].mxu0 }
 0x1a2   : > { %v4078_v55 = vpack.c.bf16 %v1392_v51, %v1392_v51  ;;  %v1011_v56 = vadd.f32 %v4321_v54, %v5457_v63  ;;  %v1002_v57 = vpop.f32.mrb[25].mxu0 }
 0x1a3   : > { %v4077_v58 = vpack.c.bf16 %v1391_v52, %v1391_v52  ;;  %v1003_v59 = vadd.f32 %v5457_v63, %v1002_v57  ;;  %v4322_v60 = vpop.f32.mrb[26].mxu0  ;;  %v5532_v62 = vld [vmem:[#allocation2 + $0x24] sm:$0xf] }
 0x1a4   : > { %1629 = vst.msk [vmem:[#allocation2 + $0x2c] sm:$0xf] %vm1617_vm1, %v4078_v55  ;;  %v1313_v0 = vmax.f32 %v1011_v56, 0.0  ;;  %v1014_v1 = vadd.f32 %v4322_v60, %v5457_v63  ;;  %v1005_v3 = vpop.f32.mrb[27].mxu0  ;;  %v5536_v4 = vld [vmem:[#allocation2 + $0x20] sm:$0xf] }
 0x1a5   : > { %1628 = vst.msk [vmem:[#allocation2 + $0x28] sm:$0xf] %vm1617_vm1, %v4077_v58  ;;  %v1311_v6 = vmax.f32 %v1003_v59, 0.0  ;;  %v1006_v7 = vadd.f32 %v5457_v63, %v1005_v3  ;;  %v3910_v8 = vcombine.low %v5517_v40, %v5536_v4  ;;  %v3890_v9 = vcombine.low %v5536_v4, %v5532_v62  ;;  %v4857_v40 = vld [vmem:[#allocation6 + $0xa0] sm:$0xff]  }
 0x1a6   : > { %v1314_v10 = vmax.f32 %v1014_v1, 0.0 }
 0x1a7   : > { %v1312_v11 = vmax.f32 %v1006_v7, 0.0  ;;  %1846 = vrot.lane.b32.xlu1 %v3910_v8, %s5134_s26 }
 0x1a8   : > { %v1394_v12 = vmax.f32 %v1313_v0, %v1314_v10 }
 0x1a9   : > { %v1393_v13 = vmax.f32 %v1311_v6, %v1312_v11  ;;  %v4325_v14 = vpop.f32.mrb[28].mxu0 }
 0x1aa   : > { %v4080_v15 = vpack.c.bf16 %v1394_v12, %v1394_v12  ;;  %v1027_v16 = vadd.f32 %v4325_v14, %v5457_v63  ;;  %v1018_v18 = vpop.f32.mrb[29].mxu0 }
 0x1ab   : > { %v4079_v19 = vpack.c.bf16 %v1393_v13, %v1393_v13  ;;  %v1019_v20 = vadd.f32 %v5457_v63, %v1018_v18  ;;  %v4326_v22 = vpop.f32.mrb[30].mxu0  ;;  %v5547_v23 = vld [vmem:[#allocation2 + $0x2c] sm:$0xf] }
 0x1ac   : > { %1631 = vst.msk [vmem:[#allocation2 + $0x34] sm:$0xf] %vm1617_vm1, %v4080_v15  ;;  %v1317_v24 = vmax.f32 %v1027_v16, 0.0  ;;  %v1030_v26 = vadd.f32 %v4326_v22, %v5457_v63  ;;  %v1021_v27 = vpop.f32.mrb[31].mxu0  ;;  %v5551_v29 = vld [vmem:[#allocation2 + $0x28] sm:$0xf] }
 0x1ad   : > { %1630 = vst.msk [vmem:[#allocation2 + $0x30] sm:$0xf] %vm1617_vm1, %v4079_v19  ;;  %v1315_v31 = vmax.f32 %v1019_v20, 0.0  ;;  %v1022_v32 = vadd.f32 %v5457_v63, %v1021_v27  ;;  %v3911_v33 = vcombine.low %v5532_v62, %v5551_v29  ;;  %v3891_v34 = vcombine.low %v5551_v29, %v5547_v23  ;;  %v4859_v62 = vld [vmem:[#allocation6 + $0xb0] sm:$0xff]  }
 0x1ae   : > { %v1318_v35 = vmax.f32 %v1030_v26, 0.0 }
 0x1af   : > { %v1316_v36 = vmax.f32 %v1022_v32, 0.0  ;;  %1848 = vrot.lane.b32.xlu0 %v3911_v33, %s5134_s26 }
 0x1b0   : > { %v1396_v37 = vmax.f32 %v1317_v24, %v1318_v35 }
 0x1b1   : > { %v1395_v38 = vmax.f32 %v1315_v31, %v1316_v36  ;;  %v4329_v39 = vpop.f32.mrb[32].mxu0 }
 0x1b2   : > { %v4082_v41 = vpack.c.bf16 %v1396_v37, %v1396_v37  ;;  %v1043_v42 = vadd.f32 %v4329_v39, %v5457_v63  ;;  %v1034_v43 = vpop.f32.mrb[33].mxu0 }
 0x1b3   : > { %v4081_v45 = vpack.c.bf16 %v1395_v38, %v1395_v38  ;;  %v1035_v46 = vadd.f32 %v5457_v63, %v1034_v43  ;;  %v4330_v47 = vpop.f32.mrb[34].mxu0  ;;  %v5562_v49 = vld [vmem:[#allocation2 + $0x34] sm:$0xf] }
 0x1b4   : > { %1633 = vst.msk [vmem:[#allocation2 + $0x3c] sm:$0xf] %vm1617_vm1, %v4082_v41  ;;  %v1321_v50 = vmax.f32 %v1043_v42, 0.0  ;;  %v1046_v51 = vadd.f32 %v4330_v47, %v5457_v63  ;;  %v1037_v52 = vpop.f32.mrb[35].mxu0  ;;  %v5566_v54 = vld [vmem:[#allocation2 + $0x30] sm:$0xf] }
 0x1b5   : > { %1632 = vst.msk [vmem:[#allocation2 + $0x38] sm:$0xf] %vm1617_vm1, %v4081_v45  ;;  %v1319_v55 = vmax.f32 %v1035_v46, 0.0  ;;  %v1038_v56 = vadd.f32 %v5457_v63, %v1037_v52  ;;  %v3912_v57 = vcombine.low %v5547_v23, %v5566_v54  ;;  %v3892_v58 = vcombine.low %v5566_v54, %v5562_v49 }
 0x1b6   : > { %v1322_v59 = vmax.f32 %v1046_v51, 0.0 }
 0x1b7   : > { %v1320_v60 = vmax.f32 %v1038_v56, 0.0  ;;  %1850 = vrot.lane.b32.xlu1 %v3912_v57, %s5134_s26 }
 0x1b8   : > { %v1398_v0 = vmax.f32 %v1321_v50, %v1322_v59 }
 0x1b9   : > { %v1397_v1 = vmax.f32 %v1319_v55, %v1320_v60  ;;  %v4333_v3 = vpop.f32.mrb[36].mxu0 }
 0x1ba   : > { %v4084_v6 = vpack.c.bf16 %v1398_v0, %v1398_v0  ;;  %v1059_v7 = vadd.f32 %v4333_v3, %v5457_v63  ;;  %v1050_v8 = vpop.f32.mrb[37].mxu0 }
 0x1bb   : > { %v4083_v10 = vpack.c.bf16 %v1397_v1, %v1397_v1  ;;  %v1051_v11 = vadd.f32 %v5457_v63, %v1050_v8  ;;  %v4334_v12 = vpop.f32.mrb[38].mxu0  ;;  %v5577_v13 = vld [vmem:[#allocation2 + $0x3c] sm:$0xf] }
 0x1bc   : > { %1635 = vst.msk [vmem:[#allocation2 + $0x44] sm:$0xf] %vm1617_vm1, %v4084_v6  ;;  %v1325_v14 = vmax.f32 %v1059_v7, 0.0  ;;  %v1062_v15 = vadd.f32 %v4334_v12, %v5457_v63  ;;  %v1053_v16 = vpop.f32.mrb[39].mxu0  ;;  %v5581_v18 = vld [vmem:[#allocation2 + $0x38] sm:$0xf] }
 0x1bd   : > { %1634 = vst.msk [vmem:[#allocation2 + $0x40] sm:$0xf] %vm1617_vm1, %v4083_v10  ;;  %v1323_v19 = vmax.f32 %v1051_v11, 0.0  ;;  %v1054_v20 = vadd.f32 %v5457_v63, %v1053_v16  ;;  %v3913_v22 = vcombine.low %v5562_v49, %v5581_v18  ;;  %v3893_v24 = vcombine.low %v5581_v18, %v5577_v13 }
 0x1be   : > { %v1326_v26 = vmax.f32 %v1062_v15, 0.0 }
 0x1bf   : > { %v1324_v27 = vmax.f32 %v1054_v20, 0.0  ;;  %1852 = vrot.lane.b32.xlu0 %v3913_v22, %s5134_s26 }
 0x1c0   : > { %v1400_v31 = vmax.f32 %v1325_v14, %v1326_v26 }
 0x1c1   : > { %v1399_v32 = vmax.f32 %v1323_v19, %v1324_v27  ;;  %v4337_v33 = vpop.f32.mrb[40].mxu0 }
 0x1c2   : > { %v4086_v35 = vpack.c.bf16 %v1400_v31, %v1400_v31  ;;  %v1075_v36 = vadd.f32 %v4337_v33, %v5457_v63  ;;  %v1066_v37 = vpop.f32.mrb[41].mxu0 }
 0x1c3   : > { %v4085_v38 = vpack.c.bf16 %v1399_v32, %v1399_v32  ;;  %v1067_v39 = vadd.f32 %v5457_v63, %v1066_v37  ;;  %v4338_v41 = vpop.f32.mrb[42].mxu0  ;;  %v5592_v42 = vld [vmem:[#allocation2 + $0x44] sm:$0xf] }
 0x1c4   : > { %1637 = vst.msk [vmem:[#allocation2 + $0x4c] sm:$0xf] %vm1617_vm1, %v4086_v35  ;;  %v1329_v43 = vmax.f32 %v1075_v36, 0.0  ;;  %v1078_v45 = vadd.f32 %v4338_v41, %v5457_v63  ;;  %v1069_v46 = vpop.f32.mrb[43].mxu0  ;;  %v5596_v47 = vld [vmem:[#allocation2 + $0x40] sm:$0xf] }
 0x1c5   : > { %1636 = vst.msk [vmem:[#allocation2 + $0x48] sm:$0xf] %vm1617_vm1, %v4085_v38  ;;  %v1327_v50 = vmax.f32 %v1067_v39, 0.0  ;;  %v1070_v51 = vadd.f32 %v5457_v63, %v1069_v46  ;;  %v3914_v52 = vcombine.low %v5577_v13, %v5596_v47  ;;  %v3894_v55 = vcombine.low %v5596_v47, %v5592_v42 }
 0x1c6   : > { %v1330_v56 = vmax.f32 %v1078_v45, 0.0 }
 0x1c7   : > { %v1328_v57 = vmax.f32 %v1070_v51, 0.0  ;;  %1854 = vrot.lane.b32.xlu1 %v3914_v52, %s5134_s26 }
 0x1c8   : > { %v1402_v59 = vmax.f32 %v1329_v43, %v1330_v56 }
 0x1c9   : > { %v1401_v60 = vmax.f32 %v1327_v50, %v1328_v57  ;;  %v4341_v0 = vpop.f32.mrb[44].mxu0 }
 0x1ca   : > { %v4088_v1 = vpack.c.bf16 %v1402_v59, %v1402_v59  ;;  %v1091_v3 = vadd.f32 %v4341_v0, %v5457_v63  ;;  %v1082_v6 = vpop.f32.mrb[45].mxu0 }
 0x1cb   : > { %v4087_v7 = vpack.c.bf16 %v1401_v60, %v1401_v60  ;;  %v1083_v8 = vadd.f32 %v5457_v63, %v1082_v6  ;;  %v4342_v10 = vpop.f32.mrb[46].mxu0  ;;  %v5607_v11 = vld [vmem:[#allocation2 + $0x4c] sm:$0xf] }
 0x1cc   : > { %1639 = vst.msk [vmem:[#allocation2 + $0x54] sm:$0xf] %vm1617_vm1, %v4088_v1  ;;  %v1333_v12 = vmax.f32 %v1091_v3, 0.0  ;;  %v1094_v14 = vadd.f32 %v4342_v10, %v5457_v63  ;;  %v1085_v15 = vpop.f32.mrb[47].mxu0  ;;  %v5611_v16 = vld [vmem:[#allocation2 + $0x48] sm:$0xf] }
 0x1cd   : > { %1638 = vst.msk [vmem:[#allocation2 + $0x50] sm:$0xf] %vm1617_vm1, %v4087_v7  ;;  %v1331_v19 = vmax.f32 %v1083_v8, 0.0  ;;  %v1086_v20 = vadd.f32 %v5457_v63, %v1085_v15  ;;  %v3915_v22 = vcombine.low %v5592_v42, %v5611_v16  ;;  %v3895_v26 = vcombine.low %v5611_v16, %v5607_v11 }
 0x1ce   : > { %v1334_v27 = vmax.f32 %v1094_v14, 0.0 }
 0x1cf   : > { %v1332_v31 = vmax.f32 %v1086_v20, 0.0  ;;  %1856 = vrot.lane.b32.xlu0 %v3915_v22, %s5134_s26 }
 0x1d0   : > { %v1404_v32 = vmax.f32 %v1333_v12, %v1334_v27 }
 0x1d1   : > { %v1403_v33 = vmax.f32 %v1331_v19, %v1332_v31  ;;  %v4345_v35 = vpop.f32.mrb[48].mxu0 }
 0x1d2   : > { %v4090_v36 = vpack.c.bf16 %v1404_v32, %v1404_v32  ;;  %v1107_v37 = vadd.f32 %v4345_v35, %v5457_v63  ;;  %v1098_v38 = vpop.f32.mrb[49].mxu0 }
 0x1d3   : > { %v4089_v39 = vpack.c.bf16 %v1403_v33, %v1403_v33  ;;  %v1099_v41 = vadd.f32 %v5457_v63, %v1098_v38  ;;  %v4346_v43 = vpop.f32.mrb[50].mxu0  ;;  %v5622_v45 = vld [vmem:[#allocation2 + $0x54] sm:$0xf] }
 0x1d4   : > { %1641 = vst.msk [vmem:[#allocation2 + $0x5c] sm:$0xf] %vm1617_vm1, %v4090_v36  ;;  %v1337_v46 = vmax.f32 %v1107_v37, 0.0  ;;  %v1110_v50 = vadd.f32 %v4346_v43, %v5457_v63  ;;  %v1101_v51 = vpop.f32.mrb[51].mxu0  ;;  %v5626_v52 = vld [vmem:[#allocation2 + $0x50] sm:$0xf] }
 0x1d5   : > { %1640 = vst.msk [vmem:[#allocation2 + $0x58] sm:$0xf] %vm1617_vm1, %v4089_v39  ;;  %v1335_v56 = vmax.f32 %v1099_v41, 0.0  ;;  %v1102_v57 = vadd.f32 %v5457_v63, %v1101_v51  ;;  %v3916_v59 = vcombine.low %v5607_v11, %v5626_v52  ;;  %v3896_v60 = vcombine.low %v5626_v52, %v5622_v45 }
 0x1d6   : > { %v1338_v0 = vmax.f32 %v1110_v50, 0.0 }
 0x1d7   : > { %v1336_v1 = vmax.f32 %v1102_v57, 0.0  ;;  %1858 = vrot.lane.b32.xlu1 %v3916_v59, %s5134_s26 }
 0x1d8   : > { %v1406_v3 = vmax.f32 %v1337_v46, %v1338_v0 }
 0x1d9   : > { %v1405_v6 = vmax.f32 %v1335_v56, %v1336_v1  ;;  %v4349_v7 = vpop.f32.mrb[52].mxu0 }
 0x1da   : > { %v4092_v8 = vpack.c.bf16 %v1406_v3, %v1406_v3  ;;  %v1123_v10 = vadd.f32 %v4349_v7, %v5457_v63  ;;  %v1114_v12 = vpop.f32.mrb[53].mxu0 }
 0x1db   : > { %v4091_v14 = vpack.c.bf16 %v1405_v6, %v1405_v6  ;;  %v1115_v15 = vadd.f32 %v5457_v63, %v1114_v12  ;;  %v4350_v19 = vpop.f32.mrb[54].mxu0  ;;  %v5637_v20 = vld [vmem:[#allocation2 + $0x5c] sm:$0xf] }
 0x1dc   : > { %1643 = vst.msk [vmem:[#allocation2 + $0x64] sm:$0xf] %vm1617_vm1, %v4092_v8  ;;  %v1341_v22 = vmax.f32 %v1123_v10, 0.0  ;;  %v1126_v27 = vadd.f32 %v4350_v19, %v5457_v63  ;;  %v1117_v31 = vpop.f32.mrb[55].mxu0  ;;  %v5641_v32 = vld [vmem:[#allocation2 + $0x58] sm:$0xf] }
 0x1dd   : > { %1642 = vst.msk [vmem:[#allocation2 + $0x60] sm:$0xf] %vm1617_vm1, %v4091_v14  ;;  %v1339_v33 = vmax.f32 %v1115_v15, 0.0  ;;  %v1118_v35 = vadd.f32 %v5457_v63, %v1117_v31  ;;  %v3917_v36 = vcombine.low %v5622_v45, %v5641_v32 }
 0x1de   : > { %v1342_v38 = vmax.f32 %v1126_v27, 0.0 }
 0x1df   : > { %v1340_v39 = vmax.f32 %v1118_v35, 0.0  ;;  %1860 = vrot.lane.b32.xlu0 %v3917_v36, %s5134_s26 }
 0x1e0   : > { %v1408_v41 = vmax.f32 %v1341_v22, %v1342_v38 }
 0x1e1   : > { %v1407_v43 = vmax.f32 %v1339_v33, %v1340_v39  ;;  %v4353_v46 = vpop.f32.mrb[56].mxu0 }
 0x1e2   : > { %v4094_v50 = vpack.c.bf16 %v1408_v41, %v1408_v41  ;;  %v1139_v51 = vadd.f32 %v4353_v46, %v5457_v63  ;;  %v1130_v56 = vpop.f32.mrb[57].mxu0 }
 0x1e3   : > { %v4093_v57 = vpack.c.bf16 %v1407_v43, %v1407_v43  ;;  %v1131_v59 = vadd.f32 %v5457_v63, %v1130_v56  ;;  %v4354_v0 = vpop.f32.mrb[58].mxu0  ;;  %v5652_v1 = vld [vmem:[#allocation2 + $0x64] sm:$0xf] }
 0x1e4   : > { %1645 = vst.msk [vmem:[#allocation2 + $0x6c] sm:$0xf] %vm1617_vm1, %v4094_v50  ;;  %v1345_v3 = vmax.f32 %v1139_v51, 0.0  ;;  %v1142_v6 = vadd.f32 %v4354_v0, %v5457_v63  ;;  %v1133_v7 = vpop.f32.mrb[59].mxu0  ;;  %v5656_v8 = vld [vmem:[#allocation2 + $0x60] sm:$0xf] }
 0x1e5   : > { %1644 = vst.msk [vmem:[#allocation2 + $0x68] sm:$0xf] %vm1617_vm1, %v4093_v57  ;;  %v1343_v10 = vmax.f32 %v1131_v59, 0.0  ;;  %v1134_v12 = vadd.f32 %v5457_v63, %v1133_v7  ;;  %v3918_v14 = vcombine.low %v5637_v20, %v5656_v8 }
 0x1e6   : > { %v1346_v19 = vmax.f32 %v1142_v6, 0.0 }
 0x1e7   : > { %v1344_v22 = vmax.f32 %v1134_v12, 0.0  ;;  %1862 = vrot.lane.b32.xlu1 %v3918_v14, %s5134_s26 }
 0x1e8   : > { %v1410_v27 = vmax.f32 %v1345_v3, %v1346_v19 }
 0x1e9   : > { %v1409_v31 = vmax.f32 %v1343_v10, %v1344_v22  ;;  %v4357_v33 = vpop.f32.mrb[60].mxu0 }
 0x1ea   : > { %v4096_v35 = vpack.c.bf16 %v1410_v27, %v1410_v27  ;;  %v1155_v36 = vadd.f32 %v4357_v33, %v5457_v63  ;;  %v1146_v38 = vpop.f32.mrb[61].mxu0 }
 0x1eb   : > { %v4095_v39 = vpack.c.bf16 %v1409_v31, %v1409_v31  ;;  %v1147_v41 = vadd.f32 %v5457_v63, %v1146_v38  ;;  %v4358_v43 = vpop.f32.mrb[62].mxu0  ;;  %v5667_v46 = vld [vmem:[#allocation2 + $0x6c] sm:$0xf] }
 0x1ec   : > { %1647 = vst.msk [vmem:[#allocation2 + $0x74] sm:$0xf] %vm1617_vm1, %v4096_v35  ;;  %v1349_v50 = vmax.f32 %v1155_v36, 0.0  ;;  %v1158_v51 = vadd.f32 %v4358_v43, %v5457_v63  ;;  %v1149_v56 = vpop.f32.mrb[63].mxu0  ;;  %v5671_v57 = vld [vmem:[#allocation2 + $0x68] sm:$0xf] }
 0x1ed   : > { %1646 = vst.msk [vmem:[#allocation2 + $0x70] sm:$0xf] %vm1617_vm1, %v4095_v39  ;;  %v1347_v59 = vmax.f32 %v1147_v41, 0.0  ;;  %v1150_v0 = vadd.f32 %v5457_v63, %v1149_v56  ;;  %v3919_v3 = vcombine.low %v5652_v1, %v5671_v57 }
 0x1ee   : > { %v1350_v7 = vmax.f32 %v1158_v51, 0.0 }
 0x1ef   : > { %v1348_v10 = vmax.f32 %v1150_v0, 0.0  ;;  %1864 = vrot.lane.b32.xlu0 %v3919_v3, %s5134_s26 }
 0x1f0   : > { %v1412_v12 = vmax.f32 %v1349_v50, %v1350_v7 }
 0x1f1   : > { %v1411_v14 = vmax.f32 %v1347_v59, %v1348_v10  ;;  %v4361_v19 = vpop.f32.mrb[64].mxu0 }
 0x1f2   : > { %v4098_v22 = vpack.c.bf16 %v1412_v12, %v1412_v12  ;;  %v1171_v27 = vadd.f32 %v4361_v19, %v5457_v63  ;;  %v1162_v31 = vpop.f32.mrb[65].mxu0 }
 0x1f3   : > { %v4097_v33 = vpack.c.bf16 %v1411_v14, %v1411_v14  ;;  %v1163_v35 = vadd.f32 %v5457_v63, %v1162_v31  ;;  %v4362_v36 = vpop.f32.mrb[66].mxu0  ;;  %v5682_v38 = vld [vmem:[#allocation2 + $0x74] sm:$0xf] }
 0x1f4   : > { %1649 = vst.msk [vmem:[#allocation2 + $0x7c] sm:$0xf] %vm1617_vm1, %v4098_v22  ;;  %v1353_v39 = vmax.f32 %v1171_v27, 0.0  ;;  %v1174_v41 = vadd.f32 %v4362_v36, %v5457_v63  ;;  %v1165_v43 = vpop.f32.mrb[67].mxu0  ;;  %v5686_v51 = vld [vmem:[#allocation2 + $0x70] sm:$0xf] }
 0x1f5   : > { %1648 = vst.msk [vmem:[#allocation2 + $0x78] sm:$0xf] %vm1617_vm1, %v4097_v33  ;;  %v1351_v50 = vmax.f32 %v1163_v35, 0.0  ;;  %v1166_v56 = vadd.f32 %v5457_v63, %v1165_v43  ;;  %v3920_v59 = vcombine.low %v5667_v46, %v5686_v51 }
 0x1f6   : > { %v1354_v3 = vmax.f32 %v1174_v41, 0.0 }
 0x1f7   : > { %v1352_v7 = vmax.f32 %v1166_v56, 0.0  ;;  %1866 = vrot.lane.b32.xlu1 %v3920_v59, %s5134_s26 }
 0x1f8   : > { %v1414_v10 = vmax.f32 %v1353_v39, %v1354_v3 }
 0x1f9   : > { %v1413_v12 = vmax.f32 %v1351_v50, %v1352_v7  ;;  %v4365_v14 = vpop.f32.mrb[68].mxu0 }
 0x1fa   : > { %v4100_v19 = vpack.c.bf16 %v1414_v10, %v1414_v10  ;;  %v1187_v22 = vadd.f32 %v4365_v14, %v5457_v63  ;;  %v1178_v27 = vpop.f32.mrb[69].mxu0 }
 0x1fb   : > { %v4099_v31 = vpack.c.bf16 %v1413_v12, %v1413_v12  ;;  %v1179_v33 = vadd.f32 %v5457_v63, %v1178_v27  ;;  %v4366_v35 = vpop.f32.mrb[70].mxu0  ;;  %v5697_v36 = vld [vmem:[#allocation2 + $0x7c] sm:$0xf] }
 0x1fc   : > { %1651 = vst.msk [vmem:[#allocation2 + $0x84] sm:$0xf] %vm1617_vm1, %v4100_v19  ;;  %v1357_v43 = vmax.f32 %v1187_v22, 0.0  ;;  %v1190_v41 = vadd.f32 %v4366_v35, %v5457_v63  ;;  %v1181_v56 = vpop.f32.mrb[71].mxu0  ;;  %v5701_v59 = vld [vmem:[#allocation2 + $0x78] sm:$0xf] }
 0x1fd   : > { %1650 = vst.msk [vmem:[#allocation2 + $0x80] sm:$0xf] %vm1617_vm1, %v4099_v31  ;;  %v1355_v39 = vmax.f32 %v1179_v33, 0.0  ;;  %v1182_v50 = vadd.f32 %v5457_v63, %v1181_v56  ;;  %v3921_v3 = vcombine.low %v5682_v38, %v5701_v59 }
 0x1fe   : > { %v1358_v10 = vmax.f32 %v1190_v41, 0.0 }
 0x1ff   : > { %v1356_v12 = vmax.f32 %v1182_v50, 0.0  ;;  %1868 = vrot.lane.b32.xlu0 %v3921_v3, %s5134_s26 }
 0x200   : > { %v1416_v14 = vmax.f32 %v1357_v43, %v1358_v10 }
 0x201   : > { %v1415_v19 = vmax.f32 %v1355_v39, %v1356_v12  ;;  %v4369_v22 = vpop.f32.mrb[72].mxu0 }
 0x202   : > { %v4102_v27 = vpack.c.bf16 %v1416_v14, %v1416_v14  ;;  %v1203_v35 = vadd.f32 %v4369_v22, %v5457_v63  ;;  %v1194_v31 = vpop.f32.mrb[73].mxu0  ;;  %v1665_v22 = vld [vmem:[#allocation2] sm:$0xf] }
 0x203   : > { %v4101_v33 = vpack.c.bf16 %v1415_v19, %v1415_v19  ;;  %v1195_v56 = vadd.f32 %v5457_v63, %v1194_v31  ;;  %v4370_v53 = vpop.f32.mrb[74].mxu0  ;;  %v5712_v0 = vld [vmem:[#allocation2 + $0x84] sm:$0xf] }
 0x204   : > { %1653 = vst.msk [vmem:[#allocation2 + $0x8c] sm:$0xf] %vm1617_vm1, %v4102_v27  ;;  %v1361_v7 = vmax.f32 %v1203_v35, 0.0  ;;  %v1206_v41 = vadd.f32 %v4370_v53, %v5457_v63  ;;  %v1197_v50 = vpop.f32.mrb[75].mxu0  ;;  %v5716_v3 = vld [vmem:[#allocation2 + $0x80] sm:$0xf] }
 0x205   : > { %1652 = vst.msk [vmem:[#allocation2 + $0x88] sm:$0xf] %vm1617_vm1, %v4101_v33  ;;  %v1359_v43 = vmax.f32 %v1195_v56, 0.0  ;;  %v1198_v39 = vadd.f32 %v5457_v63, %v1197_v50  ;;  %v3922_v10 = vcombine.low %v5697_v36, %v5716_v3 }
 0x206   : > { %v1362_v14 = vmax.f32 %v1206_v41, 0.0 }
 0x207   : > { %v1360_v19 = vmax.f32 %v1198_v39, 0.0  ;;  %1870 = vrot.lane.b32.xlu1 %v3922_v10, %s5134_s26 }
 0x208   : > { %v1418_v53 = vmax.f32 %v1361_v7, %v1362_v14  ;;  %v3886_v7 = vcombine.low %v1665_v22, %v5510_v30 }
 0x209   : > { %v1417_v27 = vmax.f32 %v1359_v43, %v1360_v19  ;;  %v4373_v35 = vpop.f32.mrb[76].mxu0  ;;  %v1843_v31 = vpop.permute.xlu0 %1842 }
 0x20a   : > { %v4104_v33 = vpack.c.bf16 %v1418_v53, %v1418_v53  ;;  %v1219_v56 = vadd.f32 %v4373_v35, %v5457_v63  ;;  %v1210_v50 = vpop.f32.mrb[77].mxu0  ;;  %v1905_v6 = vsel %vm1898_vm2, %v3887_v5, %v1843_v31 }
 0x20b   : > { %v4103_v12 = vpack.c.bf16 %v1417_v27, %v1417_v27  ;;  %v1211_v41 = vadd.f32 %v5457_v63, %v1210_v50  ;;  %v4374_v39 = vpop.f32.mrb[78].mxu0  ;;  %2222 = vmatprep.mubr.bf16.mxu1 %v1905_v6  ;;  %v5731_v10 = vld [vmem:[#allocation2 + $0x8c] sm:$0xf] }
 0x20c   : > { %1655 = vst.msk [vmem:[#allocation2 + $0x94] sm:$0xf] %vm1617_vm1, %v4104_v33  ;;  %v1365_v43 = vmax.f32 %v1219_v56, 0.0  ;;  %v1222_v14 = vadd.f32 %v4374_v39, %v5457_v63  ;;  %v1213_v19 = vpop.f32.mrb[79].mxu0  ;;  %v5736_v53 = vld [vmem:[#allocation2 + $0x88] sm:$0xf] }
 0x20d   : > { %1654 = vst.msk [vmem:[#allocation2 + $0x90] sm:$0xf] %vm1617_vm1, %v4103_v12  ;;  %v1363_v2 = vmax.f32 %v1211_v41, 0.0  ;;  %v1214_v5 = vadd.f32 %v5457_v63, %v1213_v19  ;;  %v1841_v27 = vpop.permute.xlu0 %1840  ;;  %v3923_v35 = vcombine.low %v5712_v0, %v5736_v53  ;;  %v3903_v30 = vcombine.low %v5736_v53, %v5731_v10  ;;  %v4848_v12 = vld [vmem:[#allocation6 + $0x88] sm:$0xff]  }
 0x20e   : > { %v1366_v22 = vmax.f32 %v1222_v14, 0.0  ;;  %v1901_v31 = vsel %vm1898_vm2, %v3886_v7, %v1841_v27 }
 0x20f   : > { %v1364_v33 = vmax.f32 %v1214_v5, 0.0  ;;  %1872 = vrot.lane.b32.xlu0 %v3923_v35, %s5134_s26  ;;  %2223 = vmatmul.mubr.bf16.vlgmr.msra.gmra.mrb[0].mxu1 %v1901_v31 }
 0x210   : > { %v1420_v56 = vmax.f32 %v1365_v43, %v1366_v22  ;;  %4392 = vmatpush3.bf16.msra.mxu1 %v4845_v61 }
 0x211   : > { %v1419_v50 = vmax.f32 %v1363_v2, %v1364_v33  ;;  %v4377_v41 = vpop.f32.mrb[80].mxu0  ;;  %v1845_v39 = vpop.permute.xlu1 %1844  ;;  %4393 = vmatprep.subr.bf16.mxu1 %v5135_v28 }
 0x212   : > { %v4106_v19 = vpack.c.bf16 %v1420_v56, %v1420_v56  ;;  %v1235_v15 = vadd.f32 %v4377_v41, %v5457_v63  ;;  %v1226_v37 = vpop.f32.mrb[81].mxu0  ;;  %v5752_v7 = vsel %vm1898_vm2, %v3888_v25, %v1845_v39 }
 0x213   : > { %v4105_v14 = vpack.c.bf16 %v1419_v50, %v1419_v50  ;;  %v1227_v43 = vadd.f32 %v5457_v63, %v1226_v37  ;;  %v4378_v61 = vpop.f32.mrb[82].mxu0  ;;  %2230 = vmatprep.mubr.bf16.mxu1 %v5752_v7  ;;  %v5756_v2 = vld [vmem:[#allocation2 + $0x94] sm:$0xf] }
 0x214   : > { %1657 = vst.msk [vmem:[#allocation2 + $0x9c] sm:$0xf] %vm1617_vm1, %v4106_v19  ;;  %v1369_v5 = vmax.f32 %v1235_v15, 0.0  ;;  %v1238_v27 = vadd.f32 %v4378_v61, %v5457_v63  ;;  %v1229_v35 = vpop.f32.mrb[83].mxu0  ;;  %v5760_v22 = vld [vmem:[#allocation2 + $0x90] sm:$0xf]  ;;  %4394 = vmatpush3.bf16.msra.mxu1 %v4848_v12 }
 0x215   : > { %1656 = vst.msk [vmem:[#allocation2 + $0x98] sm:$0xf] %vm1617_vm1, %v4105_v14  ;;  %v1367_v21 = vmax.f32 %v1227_v43, 0.0  ;;  %v1230_v25 = vadd.f32 %v5457_v63, %v1229_v35  ;;  %v3924_v37 = vcombine.low %v5731_v10, %v5760_v22  ;;  %v3904_v31 = vcombine.low %v5760_v22, %v5756_v2  ;;  %4395 = vmatprep.subr.bf16.mxu1 %v5135_v28  ;;  %v4856_v12 = vld [vmem:[#allocation6 + $0x98] sm:$0xff]  }
 0x216   : > { %v1370_v15 = vmax.f32 %v1238_v27, 0.0  ;;  %v5771_v19 = vld [vmem:[#allocation4] ss:$0 sm:$0xff] }
 0x217   : > { %v1368_v33 = vmax.f32 %v1230_v25, 0.0  ;;  %1874 = vrot.lane.b32.xlu1 %v3924_v37, %s5134_s26  ;;  %2231 = vmatmul.mubr.bf16.gmra.mrb[4].mxu1 %v1905_v6 }
 0x218   : > { %v1422_v56 = vmax.f32 %v1369_v5, %v1370_v15  ;;  %4396 = vmatpush3.bf16.msra.mxu1 %v4853_v17 }
 0x219   : > { %v1421_v50 = vmax.f32 %v1367_v21, %v1368_v33  ;;  %v4381_v41 = vpop.f32.mrb[84].mxu0  ;;  %v1847_v39 = vpop.permute.xlu1 %1846  ;;  %4397 = vmatprep.subr.bf16.mxu1 %v5135_v28 }
 0x21a   : > { %v4108_v63 = vpack.c.bf16 %v1422_v56, %v1422_v56  ;;  %v1251_v14 = vadd.f32 %v5771_v19, %v4381_v41  ;;  %v1242_v43 = vpop.f32.mrb[85].mxu0  ;;  %v5778_v61 = vsel %vm1898_vm2, %v3889_v48, %v1847_v39  ;;  %v4858_v41 = vld [vmem:[#allocation6 + $0xa8] sm:$0xff]  }
 0x21b   : > { %v4107_v6 = vpack.c.bf16 %v1421_v50, %v1421_v50  ;;  %v1243_v5 = vadd.f32 %v5771_v19, %v1242_v43  ;;  %v4382_v27 = vpop.f32.mrb[86].mxu0  ;;  %2238 = vmatprep.mubr.bf16.mxu1 %v5778_v61  ;;  %v5782_v35 = vld [vmem:[#allocation2 + $0x9c] sm:$0xf] }
 0x21c   : > { %1659 = vst.msk [vmem:[#allocation2 + $0xa4] sm:$0xf] %vm1617_vm1, %v4108_v63  ;;  %v1373_v17 = vmax.f32 %v1251_v14, 0.0  ;;  %v1254_v21 = vadd.f32 %v5771_v19, %v4382_v27  ;;  %v1245_v25 = vpop.f32.mrb[87].mxu0  ;;  %v5786_v37 = vld [vmem:[#allocation2 + $0x98] sm:$0xf]  ;;  %4398 = vmatpush3.bf16.msra.mxu1 %v4856_v12 }
 0x21d   : > { %1658 = vst.msk [vmem:[#allocation2 + $0xa0] sm:$0xf] %vm1617_vm1, %v4107_v6  ;;  %v1371_v44 = vmax.f32 %v1243_v5, 0.0  ;;  %v1246_v48 = vadd.f32 %v5771_v19, %v1245_v25  ;;  %v3925_v15 = vcombine.low %v5756_v2, %v5786_v37  ;;  %v3905_v33 = vcombine.low %v5786_v37, %v5782_v35  ;;  %4399 = vmatprep.subr.bf16.mxu1 %v5135_v28  ;;  %v4864_v37 = vld [vmem:[#allocation9 + $0x10] ss:$8 sps:$4 sm:$0xff]  }
 0x21e   : > { %v1374_v56 = vmax.f32 %v1254_v21, 0.0 }
 0x21f   : > { %v1372_v50 = vmax.f32 %v1246_v48, 0.0  ;;  %1876 = vrot.lane.b32.xlu0 %v3925_v15, %s5134_s26  ;;  %2239 = vmatmul.mubr.bf16.gmra.mrb[8].mxu1 %v5752_v7 }
 0x220   : > { %v1424_v12 = vmax.f32 %v1373_v17, %v1374_v56  ;;  %4400 = vmatpush3.bf16.msra.mxu1 %v4857_v40 }
 0x221   : > { %v1423_v39 = vmax.f32 %v1371_v44, %v1372_v50  ;;  %v4385_v63 = vpop.f32.mrb[88].mxu0  ;;  %v1849_v14 = vpop.permute.xlu0 %1848  ;;  %4401 = vmatprep.subr.bf16.mxu1 %v5135_v28 }
 0x222   : > { %v4110_v43 = vpack.c.bf16 %v1424_v12, %v1424_v12  ;;  %v1267_v6 = vadd.f32 %v5771_v19, %v4385_v63  ;;  %v1258_v5 = vpop.f32.mrb[89].mxu0  ;;  %v5803_v27 = vsel %vm1898_vm2, %v3890_v9, %v1849_v14  ;;  %v4860_v14 = vld [vmem:[#allocation6 + $0xb8] sm:$0xff]  }
 0x223   : > { %v4109_v21 = vpack.c.bf16 %v1423_v39, %v1423_v39  ;;  %v1259_v17 = vadd.f32 %v5771_v19, %v1258_v5  ;;  %v4386_v25 = vpop.f32.mrb[90].mxu0  ;;  %2246 = vmatprep.mubr.bf16.mxu1 %v5803_v27  ;;  %v5807_v40 = vld [vmem:[#allocation2 + $0xa4] sm:$0xf] }
 0x224   : > { %1661 = vst.msk [vmem:[#allocation2 + $0xac] sm:$0xf] %vm1617_vm1, %v4110_v43  ;;  %v1377_v44 = vmax.f32 %v1267_v6, 0.0  ;;  %v1270_v48 = vadd.f32 %v5771_v19, %v4386_v25  ;;  %v1261_v15 = vpop.f32.mrb[91].mxu0  ;;  %v5811_v56 = vld [vmem:[#allocation2 + $0xa0] sm:$0xf]  ;;  %4402 = vmatpush3.bf16.msra.mxu1 %v4858_v41 }
 0x225   : > { %1660 = vst.msk [vmem:[#allocation2 + $0xa8] sm:$0xf] %vm1617_vm1, %v4109_v21  ;;  %v1375_v4 = vmax.f32 %v1259_v17, 0.0  ;;  %v1262_v9 = vadd.f32 %v5771_v19, %v1261_v15  ;;  %v3926_v50 = vcombine.low %v5782_v35, %v5811_v56  ;;  %v3906_v12 = vcombine.low %v5811_v56, %v5807_v40  ;;  %4403 = vmatprep.subr.bf16.mxu1 %v5135_v28  ;;  %v4863_v35 = vld [vmem:[#allocation9 + $0x4] ss:$8 sps:$4 sm:$0xff]  }
 0x226   : > { %v1378_v39 = vmax.f32 %v1270_v48, 0.0  ;;  %3238 = vmatprep.subr.bf16.mxu0 %v4863_v35  ;;  %v4872_v56 = vld [vmem:[#allocation9 + $0x34] ss:$8 sps:$4 sm:$0xff]  }
 0x227   : > { %v1376_v63 = vmax.f32 %v1262_v9, 0.0  ;;  %1878 = vrot.lane.b32.xlu1 %v3926_v50, %s5134_s26  ;;  %2247 = vmatmul.mubr.bf16.gmra.mrb[12].mxu1 %v5778_v61 }
 0x228   : > { %v1426_v41 = vmax.f32 %v1377_v44, %v1378_v39  ;;  %4404 = vmatpush3.bf16.msra.mxu1 %v4859_v62 }
 0x229   : > { %v1425_v43 = vmax.f32 %v1375_v4, %v1376_v63  ;;  %v4389_v6 = vpop.f32.mrb[92].mxu0  ;;  %v1851_v5 = vpop.permute.xlu1 %1850  ;;  %4405 = vmatprep.subr.bf16.mxu1 %v5135_v28 }
 0x22a   : > { %v4112_v21 = vpack.c.bf16 %v1426_v41, %v1426_v41  ;;  %v1274_v17 = vpop.f32.mrb[93].mxu0  ;;  %v5827_v25 = vsel %vm1898_vm2, %v3891_v34, %v1851_v5 }
 0x22b   : > { %v4111_v48 = vpack.c.bf16 %v1425_v43, %v1425_v43  ;;  %v1275_v15 = vadd.f32 %v5771_v19, %v1274_v17  ;;  %v4390_v9 = vpop.f32.mrb[94].mxu0  ;;  %2254 = vmatprep.mubr.bf16.mxu1 %v5827_v25  ;;  %v5831_v44 = vld [vmem:[#allocation2 + $0xac] sm:$0xf] }
 0x22c   : > { %1663 = vst.msk [vmem:[#allocation2 + $0xb4] sm:$0xf] %vm1617_vm1, %v4112_v21  ;;  %v1277_v62 = vpop.f32.mrb[95].mxu0  ;;  %v5834_v4 = vld [vmem:[#allocation2 + $0xa8] sm:$0xf]  ;;  %4406 = vmatpush3.bf16.msra.mxu1 %v4860_v14 }
 0x22d   : > { %1662 = vst.msk [vmem:[#allocation2 + $0xb0] sm:$0xf] %vm1617_vm1, %v4111_v48  ;;  %v1379_v23 = vmax.f32 %v1275_v15, 0.0  ;;  %v1278_v29 = vadd.f32 %v5771_v19, %v1277_v62  ;;  %v3927_v34 = vcombine.low %v5807_v40, %v5834_v4  ;;  %v3928_v50 = vcombine.low %v5834_v4, %v5831_v44  ;;  %v4869_v40 = vld [vmem:[#allocation9 + $0x24] ss:$8 sps:$4 sm:$0xff]  }
 0x22e   : > { %v4881_v4 = vld [vmem:[#allocation9 + $0x64] ss:$8 sps:$4 sm:$0xff]  }
 0x22f   : > { %v1380_v39 = vmax.f32 %v1278_v29, 0.0  ;;  %1880 = vrot.lane.b32.xlu0 %v3927_v34, %s5134_s26  ;;  %2255 = vmatmul.mubr.bf16.gmra.mrb[16].mxu1 %v5803_v27  ;;  %v4879_v29 = vld [vmem:[#allocation9 + $0x60] ss:$8 sps:$4 sm:$0xff]   ;;  %v4882_v34 = vld [vmem:[#allocation9 + $0x70] ss:$8 sps:$4 sm:$0xff]  }
 0x231   : > { %v1427_v63 = vmax.f32 %v1379_v23, %v1380_v39  ;;  %v1853_v41 = vpop.permute.xlu0 %1852  ;;  %v4887_v39 = vld [vmem:[#allocation9 + $0x84] ss:$8 sps:$4 sm:$0xff]  }
 0x232   : > { %v5848_v14 = vsel %vm1898_vm2, %v3892_v58, %v1853_v41  ;;  %v4890_v41 = vld [vmem:[#allocation9 + $0x94] ss:$8 sps:$4 sm:$0xff]  }
 0x233   : > { %v4113_v19 = vpack.c.bf16 %v1427_v63, %v1427_v63  ;;  %2262 = vmatprep.mubr.bf16.mxu1 %v5848_v14  ;;  %v5851_v43 = vld [vmem:[#allocation2 + $0xb4] sm:$0xf] }
 0x234   : > { %v5853_v6 = vld [vmem:[#allocation2 + $0xb0] sm:$0xf]  ;;  %v4885_v63 = vld [vmem:[#allocation9 + $0x80] ss:$8 sps:$4 sm:$0xff]  }
 0x235   : > { %1664 = vst.msk [vmem:[#allocation2 + $0xb8] sm:$0xf] %vm1617_vm1, %v4113_v19  ;;  %v3929_v5 = vcombine.low %v5831_v44, %v5853_v6  ;;  %v3930_v21 = vcombine.low %v5853_v6, %v5851_v43  ;;  %v4876_v44 = vld [vmem:[#allocation9 + $0x50] ss:$8 sps:$4 sm:$0xff]   ;;  %v4893_v19 = vld [vmem:[#allocation9 + $0xa4] ss:$8 sps:$4 sm:$0xff]  }
 0x237   : > { %1888 = vrot.lane.b32.xlu1 %v3929_v5, %s5134_s26  ;;  %2263 = vmatmul.mubr.bf16.gmra.mrb[20].mxu1 %v5827_v25  ;;  %v4891_v5 = vld [vmem:[#allocation9 + $0xa0] ss:$8 sps:$4 sm:$0xff]  }
 0x239   : > { %v1855_v49 = vpop.permute.xlu1 %1854 }
 0x23a   : > { %v5866_v54 = vsel %vm1898_vm2, %v3893_v24, %v1855_v49  ;;  %v4896_v49 = vld [vmem:[#allocation9 + $0xb4] ss:$8 sps:$4 sm:$0xff]  }
 0x23b   : > { %2270 = vmatprep.mubr.bf16.mxu1 %v5866_v54 }
 0x23c   : > { %v1711_v58 = vld [vmem:[#allocation2 + $0xb8] sm:$0xf] }
 0x23d   : > { %v3931_v17 = vcombine.low %v5851_v43, %v1711_v58  ;;  %v4899_v58 = vld [vmem:[#allocation9 + $0xc4] ss:$8 sps:$4 sm:$0xff]  }
 0x23f   : > { %1896 = vrot.lane.b32.xlu0 %v3931_v17, %s5134_s26  ;;  %2271 = vmatmul.mubr.bf16.gmra.mrb[24].mxu1 %v5848_v14  ;;  %v4897_v17 = vld [vmem:[#allocation9 + $0xc0] ss:$8 sps:$4 sm:$0xff]  }
 0x241   : > { %v1857_v48 = vpop.permute.xlu0 %1856 }
 0x242   : > { %v5876_v15 = vsel %vm1898_vm2, %v3894_v55, %v1857_v48  ;;  %v6184_v55 = vcombine.low %v5641_v32, %v5637_v20  ;;  %v4902_v48 = vld [vmem:[#allocation9 + $0xd4] ss:$8 sps:$4 sm:$0xff]  }
 0x243   : > { %2278 = vmatprep.mubr.bf16.mxu1 %v5876_v15 }
 0x247   : > { %2279 = vmatmul.mubr.bf16.gmra.mrb[28].mxu1 %v5866_v54 }
 0x249   : > { %v1859_v13 = vpop.permute.xlu1 %1858 }
 0x24a   : > { %v5884_v18 = vsel %vm1898_vm2, %v3895_v26, %v1859_v13  ;;  %v6185_v26 = vcombine.low %v5656_v8, %v5652_v1  ;;  %v6187_v1 = vcombine.low %v5686_v51, %v5682_v38  ;;  %v6189_v38 = vcombine.low %v5716_v3, %v5712_v0  ;;  %v4905_v13 = vld [vmem:[#allocation9 + $0xe4] ss:$8 sps:$4 sm:$0xff]  }
 0x24b   : > { %2286 = vmatprep.mubr.bf16.mxu1 %v5884_v18 }
 0x24f   : > { %2287 = vmatmul.mubr.bf16.gmra.mrb[32].mxu1 %v5876_v15 }
 0x251   : > { %v1861_v24 = vpop.permute.xlu0 %1860 }
 0x252   : > { %v5892_v42 = vsel %vm1898_vm2, %v3896_v60, %v1861_v24  ;;  %v6186_v60 = vcombine.low %v5671_v57, %v5667_v46  ;;  %v6188_v46 = vcombine.low %v5701_v59, %v5697_v36  ;;  %v4908_v24 = vld [vmem:[#allocation9 + $0xf4] ss:$8 sps:$4 sm:$0xff]  }
 0x253   : > { %2294 = vmatprep.mubr.bf16.mxu1 %v5892_v42 }
 0x257   : > { %2295 = vmatmul.mubr.bf16.gmra.mrb[36].mxu1 %v5884_v18 }
 0x259   : > { %v1863_v47 = vpop.permute.xlu1 %1862 }
 0x25a   : > { %v5900_v11 = vsel %vm1898_vm2, %v6184_v55, %v1863_v47 }
 0x25b   : > { %2302 = vmatprep.mubr.bf16.mxu1 %v5900_v11 }
 0x25f   : > { %2303 = vmatmul.mubr.bf16.gmra.mrb[40].mxu1 %v5892_v42 }
 0x261   : > { %v1865_v16 = vpop.permute.xlu0 %1864 }
 0x262   : > { %v5908_v45 = vsel %vm1898_vm2, %v6185_v26, %v1865_v16  ;;  %v6050_v16 = vld [vmem:[#allocation8] ss:$0 sm:$0xff] }
 0x263   : > { %2310 = vmatprep.mubr.bf16.mxu1 %v5908_v45 }
 0x267   : > { %2311 = vmatmul.mubr.bf16.gmra.mrb[44].mxu1 %v5900_v11 }
 0x269   : > { %v1867_v52 = vpop.permute.xlu1 %1866 }
 0x26a   : > { %v5916_v20 = vsel %vm1898_vm2, %v6186_v60, %v1867_v52 }
 0x26b   : > { %2318 = vmatprep.mubr.bf16.mxu1 %v5916_v20 }
 0x26f   : > { %2319 = vmatmul.mubr.bf16.gmra.mrb[48].mxu1 %v5908_v45 }
 0x271   : > { %v1869_v32 = vpop.permute.xlu0 %1868 }
 0x272   : > { %v5924_v8 = vsel %vm1898_vm2, %v6187_v1, %v1869_v32 }
 0x273   : > { %2326 = vmatprep.mubr.bf16.mxu1 %v5924_v8 }
 0x277   : > { %2327 = vmatmul.mubr.bf16.gmra.mrb[52].mxu1 %v5916_v20 }
 0x279   : > { %v1871_v9 = vpop.permute.xlu1 %1870 }
 0x27a   : > { %v5932_v57 = vsel %vm1898_vm2, %v6188_v46, %v1871_v9 }
 0x27b   : > { %2334 = vmatprep.mubr.bf16.mxu1 %v5932_v57 }
 0x27f   : > { %2335 = vmatmul.mubr.bf16.gmra.mrb[56].mxu1 %v5924_v8 }
 0x281   : > { %v1873_v62 = vpop.permute.xlu0 %1872 }
 0x282   : > { %v5940_v51 = vsel %vm1898_vm2, %v6189_v38, %v1873_v62 }
 0x283   : > { %2342 = vmatprep.mubr.bf16.mxu1 %v5940_v51 }
 0x287   : > { %2343 = vmatmul.mubr.bf16.gmra.mrb[60].mxu1 %v5932_v57 }
 0x289   : > { %v1875_v23 = vpop.permute.xlu1 %1874 }
 0x28a   : > { %v5948_v36 = vsel %vm1898_vm2, %v3903_v30, %v1875_v23 }
 0x28b   : > { %2350 = vmatprep.mubr.bf16.mxu1 %v5948_v36 }
 0x28f   : > { %2351 = vmatmul.mubr.bf16.gmra.mrb[64].mxu1 %v5940_v51 }
 0x291   : > { %v1877_v59 = vpop.permute.xlu0 %1876 }
 0x292   : > { %v5956_v0 = vsel %vm1898_vm2, %v3904_v31, %v1877_v59  ;;  %v4861_v31 = vld [vmem:[#allocation9] ss:$8 sps:$4 sm:$0xff]  }
 0x293   : > { %2358 = vmatprep.mubr.bf16.mxu1 %v5956_v0  ;;  %3239 = vmatpush1.bf16.msra.mxu0 %v4861_v31 }
 0x297   : > { %2359 = vmatmul.mubr.bf16.gmra.mrb[68].mxu1 %v5948_v36 }
 0x299   : > { %v1879_v3 = vpop.permute.xlu1 %1878 }
 0x29a   : > { %v5964_v10 = vsel %vm1898_vm2, %v3905_v33, %v1879_v3  ;;  %v4866_v33 = vld [vmem:[#allocation9 + $0x14] ss:$8 sps:$4 sm:$0xff]  }
 0x29b   : > { %2366 = vmatprep.mubr.bf16.mxu1 %v5964_v10  ;;  %3240 = vmatprep.subr.bf16.mxu0 %v4866_v33 }
 0x29c   : > { %3241 = vmatpush1.bf16.msra.mxu0 %v4864_v37 }
 0x29d   : > { %3242 = vmatprep.subr.bf16.mxu0 %v4869_v40 }
 0x29f   : > { %2367 = vmatmul.mubr.bf16.gmra.mrb[72].mxu1 %v5956_v0 }
 0x2a1   : > { %v1881_v53 = vpop.permute.xlu0 %1880 }
 0x2a2   : > { %v5972_v30 = vsel %vm1898_vm2, %v3906_v12, %v1881_v53  ;;  %v4873_v12 = vld [vmem:[#allocation9 + $0x40] ss:$8 sps:$4 sm:$0xff]  }
 0x2a3   : > { %2374 = vmatprep.mubr.bf16.mxu1 %v5972_v30 }
 0x2a7   : > { %2375 = vmatmul.mubr.bf16.gmra.mrb[76].mxu1 %v5964_v10 }
 0x2a9   : > { %v1889_v2 = vpop.permute.xlu1 %1888 }
 0x2aa   : > { %v5980_v22 = vsel %vm1898_vm2, %v3928_v50, %v1889_v2  ;;  %v4884_v50 = vld [vmem:[#allocation9 + $0x74] ss:$8 sps:$4 sm:$0xff]  }
 0x2ab   : > { %2382 = vmatprep.mubr.bf16.mxu1 %v5980_v22 }
 0x2af   : > { %2383 = vmatmul.mubr.bf16.gmra.mrb[80].mxu1 %v5972_v30 }
 0x2b0   : > { %4407 = vmatprep.mubr.msk.bf16.mxu1 %vm5136_vm3, %v5135_v28 }
 0x2b1   : > { %v1897_v47 = vpop.permute.xlu0 %1896 }
 0x2b2   : > { %v1989_v55 = vsel %vm1898_vm2, %v3930_v21, %v1897_v47 }
 0x2b7   : > { %4408 = vmatmul.mubr.bf16.vlgmr.msra.gmra.mrb[0].mxu1 %v5752_v7  ;;  %v4867_v7 = vld [vmem:[#allocation9 + $0x20] ss:$8 sps:$4 sm:$0xff]  }
 0x2b8   : > { %4411 = vmatprep.mubr.msk.bf16.mxu1 %vm5136_vm3, %v5135_v28  ;;  %3243 = vmatpush1.bf16.msra.mxu0 %v4867_v7 }
 0x2b9   : > { %3244 = vmatprep.subr.bf16.mxu0 %v4872_v56 }
 0x2bf   : > { %4412 = vmatmul.mubr.bf16.gmra.mrb[4].mxu1 %v5778_v61  ;;  %v4870_v61 = vld [vmem:[#allocation9 + $0x30] ss:$8 sps:$4 sm:$0xff]  }
 0x2c0   : > { %4415 = vmatprep.mubr.msk.bf16.mxu1 %vm5136_vm3, %v5135_v28  ;;  %3245 = vmatpush1.bf16.msra.mxu0 %v4870_v61 }
 0x2c7   : > { %4416 = vmatmul.mubr.bf16.gmra.mrb[8].mxu1 %v5803_v27  ;;  %v4875_v27 = vld [vmem:[#allocation9 + $0x44] ss:$8 sps:$4 sm:$0xff]  }
 0x2c8   : > { %4419 = vmatprep.mubr.msk.bf16.mxu1 %vm5136_vm3, %v5135_v28  ;;  %3246 = vmatprep.subr.bf16.mxu0 %v4875_v27 }
 0x2c9   : > { %3247 = vmatpush1.bf16.msra.mxu0 %v4873_v12 }
 0x2cf   : > { %4420 = vmatmul.mubr.bf16.gmra.mrb[12].mxu1 %v5827_v25  ;;  %v4878_v25 = vld [vmem:[#allocation9 + $0x54] ss:$8 sps:$4 sm:$0xff]  }
 0x2d0   : > { %4423 = vmatprep.mubr.msk.bf16.mxu1 %vm5136_vm3, %v5135_v28  ;;  %3248 = vmatprep.subr.bf16.mxu0 %v4878_v25 }
 0x2d1   : > { %3249 = vmatpush1.bf16.msra.mxu0 %v4876_v44 }
 0x2d2   : > { %3250 = vmatprep.subr.bf16.mxu0 %v4881_v4 }
 0x2d5   : > { %3251 = vmatpush1.bf16.msra.mxu0 %v4879_v29 }
 0x2d6   : > { %3252 = vmatprep.subr.bf16.mxu0 %v4884_v50 }
 0x2d7   : > { %4424 = vmatmul.mubr.bf16.gmra.mrb[16].mxu1 %v5848_v14  ;;  %v4888_v14 = vld [vmem:[#allocation9 + $0x90] ss:$8 sps:$4 sm:$0xff]  }
 0x2d8   : > { %4427 = vmatprep.mubr.msk.bf16.mxu1 %vm5136_vm3, %v5135_v28 }
 0x2d9   : > { %3253 = vmatpush1.bf16.msra.mxu0 %v4882_v34 }
 0x2da   : > { %3254 = vmatprep.subr.bf16.mxu0 %v4887_v39 }
 0x2dd   : > { %3255 = vmatpush1.bf16.msra.mxu0 %v4885_v63 }
 0x2de   : > { %3256 = vmatprep.subr.bf16.mxu0 %v4890_v41 }
 0x2df   : > { %4428 = vmatmul.mubr.bf16.gmra.mrb[20].mxu1 %v5866_v54  ;;  %v4894_v54 = vld [vmem:[#allocation9 + $0xb0] ss:$8 sps:$4 sm:$0xff]  }
 0x2e0   : > { %4431 = vmatprep.mubr.msk.bf16.mxu1 %vm5136_vm3, %v5135_v28 }
 0x2e1   : > { %3257 = vmatpush1.bf16.msra.mxu0 %v4888_v14 }
 0x2e2   : > { %3258 = vmatprep.subr.bf16.mxu0 %v4893_v19 }
 0x2e5   : > { %3259 = vmatpush1.bf16.msra.mxu0 %v4891_v5 }
 0x2e6   : > { %3260 = vmatprep.subr.bf16.mxu0 %v4896_v49 }
 0x2e7   : > { %4432 = vmatmul.mubr.bf16.gmra.mrb[24].mxu1 %v5876_v15  ;;  %v4900_v15 = vld [vmem:[#allocation9 + $0xd0] ss:$8 sps:$4 sm:$0xff]  }
 0x2e8   : > { %4435 = vmatprep.mubr.msk.bf16.mxu1 %vm5136_vm3, %v5135_v28 }
 0x2e9   : > { %3261 = vmatpush1.bf16.msra.mxu0 %v4894_v54 }
 0x2ea   : > { %3262 = vmatprep.subr.bf16.mxu0 %v4899_v58 }
 0x2ed   : > { %3263 = vmatpush1.bf16.msra.mxu0 %v4897_v17 }
 0x2ee   : > { %3264 = vmatprep.subr.bf16.mxu0 %v4902_v48 }
 0x2ef   : > { %4436 = vmatmul.mubr.bf16.gmra.mrb[28].mxu1 %v5884_v18  ;;  %v4903_v18 = vld [vmem:[#allocation9 + $0xe0] ss:$8 sps:$4 sm:$0xff]  }
 0x2f0   : > { %4439 = vmatprep.mubr.msk.bf16.mxu1 %vm5136_vm3, %v5135_v28 }
 0x2f1   : > { %3265 = vmatpush1.bf16.msra.mxu0 %v4900_v15 }
 0x2f2   : > { %3266 = vmatprep.subr.bf16.mxu0 %v4905_v13 }
 0x2f5   : > { %3267 = vmatpush1.bf16.msra.mxu0 %v4903_v18  ;;  %v4918_v18 = vld [vmem:[#allocation9 + $0x100] ss:$8 sps:$4 sm:$0xff]  }
 0x2f6   : > { %3268 = vmatprep.subr.bf16.mxu0 %v4908_v24 }
 0x2f7   : > { %4440 = vmatmul.mubr.bf16.gmra.mrb[32].mxu1 %v5892_v42  ;;  %v4906_v42 = vld [vmem:[#allocation9 + $0xf0] ss:$8 sps:$4 sm:$0xff]  }
 0x2f8   : > { %4443 = vmatprep.mubr.msk.bf16.mxu1 %vm5136_vm3, %v5135_v28 }
 0x2f9   : > { %3269 = vmatpush1.bf16.msra.mxu0 %v4906_v42  ;;  %v4924_v42 = vld [vmem:[#allocation9 + $0x114] ss:$8 sps:$4 sm:$0xff]  }
 0x2ff   : > { %4444 = vmatmul.mubr.bf16.gmra.mrb[36].mxu1 %v5900_v11  ;;  %v4920_v11 = vld [vmem:[#allocation9 + $0x104] ss:$8 sps:$4 sm:$0xff]  }
 0x300   : > { %4447 = vmatprep.mubr.msk.bf16.mxu1 %vm5136_vm3, %v5135_v28  ;;  %3367 = vmatprep.subr.bf16.mxu0 %v4920_v11 }
 0x307   : > { %4448 = vmatmul.mubr.bf16.gmra.mrb[40].mxu1 %v5908_v45 }
 0x308   : > { %4451 = vmatprep.mubr.msk.bf16.mxu1 %vm5136_vm3, %v5135_v28 }
 0x30f   : > { %4452 = vmatmul.mubr.bf16.gmra.mrb[44].mxu1 %v5916_v20 }
 0x310   : > { %4455 = vmatprep.mubr.msk.bf16.mxu1 %vm5136_vm3, %v5135_v28 }
 0x317   : > { %4456 = vmatmul.mubr.bf16.gmra.mrb[48].mxu1 %v5924_v8 }
 0x318   : > { %4459 = vmatprep.mubr.msk.bf16.mxu1 %vm5136_vm3, %v5135_v28 }
 0x31f   : > { %4460 = vmatmul.mubr.bf16.gmra.mrb[52].mxu1 %v5932_v57 }
 0x320   : > { %4463 = vmatprep.mubr.msk.bf16.mxu1 %vm5136_vm3, %v5135_v28 }
 0x327   : > { %4464 = vmatmul.mubr.bf16.gmra.mrb[56].mxu1 %v5940_v51 }
 0x328   : > { %4467 = vmatprep.mubr.msk.bf16.mxu1 %vm5136_vm3, %v5135_v28 }
 0x32f   : > { %4468 = vmatmul.mubr.bf16.gmra.mrb[60].mxu1 %v5948_v36 }
 0x330   : > { %4471 = vmatprep.mubr.msk.bf16.mxu1 %vm5136_vm3, %v5135_v28 }
 0x337   : > { %4472 = vmatmul.mubr.bf16.gmra.mrb[64].mxu1 %v5956_v0 }
 0x338   : > { %4475 = vmatprep.mubr.msk.bf16.mxu1 %vm5136_vm3, %v5135_v28 }
 0x33f   : > { %4476 = vmatmul.mubr.bf16.gmra.mrb[68].mxu1 %v5964_v10 }
 0x340   : > { %4479 = vmatprep.mubr.msk.bf16.mxu1 %vm5136_vm3, %v5135_v28 }
 0x347   : > { %4480 = vmatmul.mubr.bf16.gmra.mrb[72].mxu1 %v5972_v30 }
 0x348   : > { %4483 = vmatprep.mubr.msk.bf16.mxu1 %vm5136_vm3, %v5135_v28 }
 0x34f   : > { %4484 = vmatmul.mubr.bf16.gmra.mrb[76].mxu1 %v5980_v22 }
 0x350   : > { %4487 = vmatprep.mubr.msk.bf16.mxu1 %vm5136_vm3, %v5135_v28 }
 0x357   : > { %4488 = vmatmul.mubr.bf16.gmra.mrb[80].mxu1 %v1989_v55 }
 0x38a   : > { %v2425_v26 = vpop.f32.mrb[0].mxu1 }
 0x38b   : > { %v4491_v45 = vadd.f32 %v6050_v16, %v2425_v26  ;;  %v4409_v52 = vpop.f32.mrb[1].mxu1  ;;  %v4922_v26 = vld [vmem:[#allocation9 + $0x110] ss:$8 sps:$4 sm:$0xff]  }
 0x38c   : > { %v2428_v60 = vpop.f32.mrb[2].mxu1  ;;  %v4929_v52 = vld [vmem:[#allocation9 + $0x124] ss:$8 sps:$4 sm:$0xff]  }
 0x38d   : > { %v4492_v20 = vadd.f32 %v6050_v16, %v2428_v60  ;;  %v4410_v32 = vpop.f32.mrb[3].mxu1  ;;  %v2592_v28 = vmax.f32 %v4491_v45, 0.0 }
 0x38f   : > { %v2593_v1 = vmax.f32 %v4492_v20, 0.0 }
 0x391   : > { %v2634_v8 = vmax.f32 %v2592_v28, %v2593_v1 }
 0x392   : > { %v2433_v9 = vpop.f32.mrb[4].mxu1 }
 0x393   : > { %v4493_v43 = vadd.f32 %v6050_v16, %v2433_v9  ;;  %v4413_v6 = vpop.f32.mrb[5].mxu1  ;;  %v4927_v9 = vld [vmem:[#allocation9 + $0x120] ss:$8 sps:$4 sm:$0xff]  }
 0x394   : > { %v2436_v21 = vpop.f32.mrb[6].mxu1 }
 0x395   : > { %v4494_v46 = vadd.f32 %v6050_v16, %v2436_v21  ;;  %v4414_v57 = vpop.f32.mrb[7].mxu1  ;;  %v2594_v62 = vmax.f32 %v4493_v43, 0.0  ;;  %v4932_v43 = vld [vmem:[#allocation9 + $0x134] ss:$8 sps:$4 sm:$0xff]  }
 0x396   : > { %v4930_v57 = vld [vmem:[#allocation9 + $0x130] ss:$8 sps:$4 sm:$0xff]  }
 0x397   : > { %v2595_v38 = vmax.f32 %v4494_v46, 0.0 }
 0x399   : > { %v2635_v51 = vmax.f32 %v2594_v62, %v2595_v38  ;;  %v4937_v38 = vld [vmem:[#allocation9 + $0x144] ss:$8 sps:$4 sm:$0xff]  }
 0x39a   : > { %v2441_v23 = vpop.f32.mrb[8].mxu1 }
 0x39b   : > { %v4147_v36 = vpack.c.bf16 %v2635_v51, %v2634_v8  ;;  %v4495_v59 = vadd.f32 %v6050_v16, %v2441_v23  ;;  %v4417_v0 = vpop.f32.mrb[9].mxu1 }
 0x39c   : > { %v2444_v3 = vpop.f32.mrb[10].mxu1 }
 0x39d   : > { %4148 = vst [vmem:[#allocation3] sm:$0xff] %v4147_v36   ;;  %v4496_v10 = vadd.f32 %v6050_v16, %v2444_v3  ;;  %v4418_v53 = vpop.f32.mrb[11].mxu1  ;;  %v2596_v30 = vmax.f32 %v4495_v59, 0.0  ;;  %v4935_v3 = vld [vmem:[#allocation9 + $0x140] ss:$8 sps:$4 sm:$0xff]  }
 0x39f   : > { %v2597_v2 = vmax.f32 %v4496_v10, 0.0 }
 0x3a1   : > { %v2636_v22 = vmax.f32 %v2596_v30, %v2597_v2 }
 0x3a2   : > { %v2449_v31 = vpop.f32.mrb[12].mxu1 }
 0x3a3   : > { %v4497_v35 = vadd.f32 %v6050_v16, %v2449_v31  ;;  %v4421_v37 = vpop.f32.mrb[13].mxu1 }
 0x3a4   : > { %v2452_v33 = vpop.f32.mrb[14].mxu1  ;;  %v2761_v49 = vld [vmem:[#allocation3] sm:$0xf]  ;;  %v2762_v54 = vld [vmem:[#allocation3 + $0x4] sm:$0xf] }
 0x3a5   : > { %v4498_v7 = vadd.f32 %v6050_v16, %v2452_v33  ;;  %v4422_v40 = vpop.f32.mrb[15].mxu1  ;;  %v2598_v61 = vmax.f32 %v4497_v35, 0.0  ;;  %v3978_v24 = vcombine.low %v2761_v49, %v2762_v54  ;;  %v4940_v33 = vld [vmem:[#allocation9 + $0x150] ss:$8 sps:$4 sm:$0xff]  }
 0x3a6   : > { %v4945_v40 = vld [vmem:[#allocation9 + $0x164] ss:$8 sps:$4 sm:$0xff]  }
 0x3a7   : > { %v2599_v56 = vmax.f32 %v4498_v7, 0.0 }
 0x3a9   : > { %v2637_v27 = vmax.f32 %v2598_v61, %v2599_v56 }
 0x3aa   : > { %v2457_v12 = vpop.f32.mrb[16].mxu1 }
 0x3ab   : > { %v4152_v25 = vpack.c.bf16 %v2637_v27, %v2636_v22  ;;  %v4499_v44 = vadd.f32 %v6050_v16, %v2457_v12  ;;  %v4425_v4 = vpop.f32.mrb[17].mxu1  ;;  %v4942_v22 = vld [vmem:[#allocation9 + $0x154] ss:$8 sps:$4 sm:$0xff]  }
 0x3ac   : > { %v2460_v29 = vpop.f32.mrb[18].mxu1  ;;  %v4943_v4 = vld [vmem:[#allocation9 + $0x160] ss:$8 sps:$4 sm:$0xff]  }
 0x3ad   : > { %4194 = vst [vmem:[#allocation3 + $0x8] sm:$0xff] %v4152_v25   ;;  %v4500_v34 = vadd.f32 %v6050_v16, %v2460_v29  ;;  %v4426_v50 = vpop.f32.mrb[19].mxu1  ;;  %v2600_v39 = vmax.f32 %v4499_v44, 0.0  ;;  %v4951_v29 = vld [vmem:[#allocation9 + $0x174] ss:$8 sps:$4 sm:$0xff]  }
 0x3af   : > { %v2601_v63 = vmax.f32 %v4500_v34, 0.0 }
 0x3b1   : > { %v2638_v41 = vmax.f32 %v2600_v39, %v2601_v63  ;;  %v4949_v63 = vld [vmem:[#allocation9 + $0x170] ss:$8 sps:$4 sm:$0xff]  }
 0x3b2   : > { %v2465_v14 = vpop.f32.mrb[20].mxu1 }
 0x3b3   : > { %v4501_v19 = vadd.f32 %v6050_v16, %v2465_v14  ;;  %v4429_v5 = vpop.f32.mrb[21].mxu1 }
 0x3b4   : > { %v2468_v58 = vpop.f32.mrb[22].mxu1  ;;  %v2763_v17 = vld [vmem:[#allocation3 + $0x8] sm:$0xf]  ;;  %v2764_v36 = vld [vmem:[#allocation3 + $0xc] sm:$0xf] }
 0x3b5   : > { %v4502_v48 = vadd.f32 %v6050_v16, %v2468_v58  ;;  %v4430_v15 = vpop.f32.mrb[23].mxu1  ;;  %v3988_v13 = vcombine.low %v2762_v54, %v2763_v17  ;;  %v2602_v47 = vmax.f32 %v4501_v19, 0.0  ;;  %v3979_v2 = vcombine.low %v2763_v17, %v2764_v36 }
 0x3b7   : > { %v2603_v55 = vmax.f32 %v4502_v48, 0.0  ;;  %3270 = vmatprep.mubr.bf16.mxu0 %v3988_v13 }
 0x3b8   : > { %3271 = vmatmul.mubr.bf16.vlgmr.msra.gmra.mrb[96].mxu0 %v3978_v24 }
 0x3b9   : > { %v2639_v11 = vmax.f32 %v2602_v47, %v2603_v55  ;;  %3368 = vmatpush1.bf16.msra.mxu0 %v4918_v18 }
 0x3ba   : > { %v2473_v45 = vpop.f32.mrb[24].mxu1  ;;  %3369 = vmatprep.subr.bf16.mxu0 %v4924_v42 }
 0x3bb   : > { %v4157_v60 = vpack.c.bf16 %v2639_v11, %v2638_v41  ;;  %v4503_v20 = vadd.f32 %v6050_v16, %v2473_v45  ;;  %v4433_v32 = vpop.f32.mrb[25].mxu1 }
 0x3bc   : > { %v2476_v28 = vpop.f32.mrb[26].mxu1 }
 0x3bd   : > { %4195 = vst [vmem:[#allocation3 + $0x10] sm:$0xff] %v4157_v60   ;;  %v4504_v1 = vadd.f32 %v6050_v16, %v2476_v28  ;;  %v4434_v8 = vpop.f32.mrb[27].mxu1  ;;  %3370 = vmatpush1.bf16.msra.mxu0 %v4922_v26  ;;  %v2604_v6 = vmax.f32 %v4503_v20, 0.0 }
 0x3be   : > { %3371 = vmatprep.subr.bf16.mxu0 %v4929_v52 }
 0x3bf   : > { %v2605_v21 = vmax.f32 %v4504_v1, 0.0 }
 0x3c1   : > { %v2640_v46 = vmax.f32 %v2604_v6, %v2605_v21  ;;  %3372 = vmatpush1.bf16.msra.mxu0 %v4927_v9 }
 0x3c2   : > { %v2481_v62 = vpop.f32.mrb[28].mxu1  ;;  %3373 = vmatprep.subr.bf16.mxu0 %v4932_v43 }
 0x3c3   : > { %v4505_v51 = vadd.f32 %v6050_v16, %v2481_v62  ;;  %v4437_v23 = vpop.f32.mrb[29].mxu1 }
 0x3c4   : > { %v2484_v59 = vpop.f32.mrb[30].mxu1  ;;  %v2765_v0 = vld [vmem:[#allocation3 + $0x10] sm:$0xf]  ;;  %v2766_v5 = vld [vmem:[#allocation3 + $0x14] sm:$0xf] }
 0x3c5   : > { %v4506_v10 = vadd.f32 %v6050_v16, %v2484_v59  ;;  %v4438_v53 = vpop.f32.mrb[31].mxu1  ;;  %v3989_v30 = vcombine.low %v2764_v36, %v2765_v0  ;;  %3374 = vmatpush1.bf16.msra.mxu0 %v4930_v57  ;;  %v2606_v31 = vmax.f32 %v4505_v51, 0.0  ;;  %v3980_v15 = vcombine.low %v2765_v0, %v2766_v5 }
 0x3c6   : > { %3375 = vmatprep.subr.bf16.mxu0 %v4937_v38 }
 0x3c7   : > { %v2607_v35 = vmax.f32 %v4506_v10, 0.0  ;;  %3280 = vmatprep.mubr.bf16.mxu0 %v3989_v30 }
 0x3c8   : > { %3281 = vmatmul.mubr.bf16.gmra.mrb[100].mxu0 %v3979_v2 }
 0x3c9   : > { %v2641_v37 = vmax.f32 %v2606_v31, %v2607_v35  ;;  %3376 = vmatpush1.bf16.msra.mxu0 %v4935_v3 }
 0x3ca   : > { %v2489_v7 = vpop.f32.mrb[32].mxu1  ;;  %3377 = vmatprep.subr.bf16.mxu0 %v4942_v22 }
 0x3cb   : > { %v4162_v61 = vpack.c.bf16 %v2641_v37, %v2640_v46  ;;  %v4507_v56 = vadd.f32 %v6050_v16, %v2489_v7  ;;  %v4441_v27 = vpop.f32.mrb[33].mxu1 }
 0x3cc   : > { %v2492_v12 = vpop.f32.mrb[34].mxu1 }
 0x3cd   : > { %4196 = vst [vmem:[#allocation3 + $0x18] sm:$0xff] %v4162_v61   ;;  %v4508_v25 = vadd.f32 %v6050_v16, %v2492_v12  ;;  %v4442_v44 = vpop.f32.mrb[35].mxu1  ;;  %3378 = vmatpush1.bf16.msra.mxu0 %v4940_v33  ;;  %v2608_v34 = vmax.f32 %v4507_v56, 0.0 }
 0x3ce   : > { %3379 = vmatprep.subr.bf16.mxu0 %v4945_v40 }
 0x3cf   : > { %v2609_v50 = vmax.f32 %v4508_v25, 0.0 }
 0x3d1   : > { %v2642_v39 = vmax.f32 %v2608_v34, %v2609_v50  ;;  %3380 = vmatpush1.bf16.msra.mxu0 %v4943_v4 }
 0x3d2   : > { %v2497_v41 = vpop.f32.mrb[36].mxu1  ;;  %3381 = vmatprep.subr.bf16.mxu0 %v4951_v29 }
 0x3d3   : > { %v4509_v14 = vadd.f32 %v6050_v16, %v2497_v41  ;;  %v4445_v19 = vpop.f32.mrb[37].mxu1 }
 0x3d4   : > { %v2500_v49 = vpop.f32.mrb[38].mxu1  ;;  %v2767_v54 = vld [vmem:[#allocation3 + $0x18] sm:$0xf]  ;;  %v2768_v9 = vld [vmem:[#allocation3 + $0x1c] sm:$0xf] }
 0x3d5   : > { %v4510_v58 = vadd.f32 %v6050_v16, %v2500_v49  ;;  %v4446_v17 = vpop.f32.mrb[39].mxu1  ;;  %v3990_v48 = vcombine.low %v2766_v5, %v2767_v54  ;;  %3382 = vmatpush1.bf16.msra.mxu0 %v4949_v63  ;;  %v2610_v13 = vmax.f32 %v4509_v14, 0.0  ;;  %v3981_v62 = vcombine.low %v2767_v54, %v2768_v9 }
 0x3d7   : > { %v2611_v18 = vmax.f32 %v4510_v58, 0.0  ;;  %3290 = vmatprep.mubr.bf16.mxu0 %v3990_v48 }
 0x3d8   : > { %3291 = vmatmul.mubr.bf16.gmra.mrb[104].mxu0 %v3980_v15 }
 0x3d9   : > { %v2643_v24 = vmax.f32 %v2610_v13, %v2611_v18 }
 0x3da   : > { %v2505_v42 = vpop.f32.mrb[40].mxu1 }
 0x3db   : > { %v4167_v47 = vpack.c.bf16 %v2643_v24, %v2642_v39  ;;  %v4511_v55 = vadd.f32 %v6050_v16, %v2505_v42  ;;  %v4449_v11 = vpop.f32.mrb[41].mxu1 }
 0x3dc   : > { %v2508_v26 = vpop.f32.mrb[42].mxu1 }
 0x3dd   : > { %4197 = vst [vmem:[#allocation3 + $0x20] sm:$0xff] %v4167_v47   ;;  %v4512_v45 = vadd.f32 %v6050_v16, %v2508_v26  ;;  %v4450_v52 = vpop.f32.mrb[43].mxu1  ;;  %v2612_v60 = vmax.f32 %v4511_v55, 0.0 }
 0x3df   : > { %v2613_v20 = vmax.f32 %v4512_v45, 0.0 }
 0x3e1   : > { %v2644_v32 = vmax.f32 %v2612_v60, %v2613_v20 }
 0x3e2   : > { %v2513_v28 = vpop.f32.mrb[44].mxu1 }
 0x3e3   : > { %v4513_v1 = vadd.f32 %v6050_v16, %v2513_v28  ;;  %v4453_v8 = vpop.f32.mrb[45].mxu1 }
 0x3e4   : > { %v2516_v43 = vpop.f32.mrb[46].mxu1  ;;  %v2769_v6 = vld [vmem:[#allocation3 + $0x20] sm:$0xf]  ;;  %v2770_v7 = vld [vmem:[#allocation3 + $0x24] sm:$0xf] }
 0x3e5   : > { %v4514_v21 = vadd.f32 %v6050_v16, %v2516_v43  ;;  %v4454_v46 = vpop.f32.mrb[47].mxu1  ;;  %v3991_v57 = vcombine.low %v2768_v9, %v2769_v6  ;;  %v2614_v38 = vmax.f32 %v4513_v1, 0.0  ;;  %v3982_v25 = vcombine.low %v2769_v6, %v2770_v7 }
 0x3e7   : > { %v2615_v51 = vmax.f32 %v4514_v21, 0.0  ;;  %3300 = vmatprep.mubr.bf16.mxu0 %v3991_v57 }
 0x3e8   : > { %3301 = vmatmul.mubr.bf16.gmra.mrb[108].mxu0 %v3981_v62 }
 0x3e9   : > { %v2645_v23 = vmax.f32 %v2614_v38, %v2615_v51 }
 0x3ea   : > { %v2521_v36 = vpop.f32.mrb[48].mxu1 }
 0x3eb   : > { %v4172_v59 = vpack.c.bf16 %v2645_v23, %v2644_v32  ;;  %v4515_v0 = vadd.f32 %v6050_v16, %v2521_v36  ;;  %v4457_v3 = vpop.f32.mrb[49].mxu1 }
 0x3ec   : > { %v2524_v10 = vpop.f32.mrb[50].mxu1 }
 0x3ed   : > { %4198 = vst [vmem:[#allocation3 + $0x28] sm:$0xff] %v4172_v59   ;;  %v4516_v53 = vadd.f32 %v6050_v16, %v2524_v10  ;;  %v4458_v30 = vpop.f32.mrb[51].mxu1  ;;  %v2616_v2 = vmax.f32 %v4515_v0, 0.0 }
 0x3ef   : > { %v2617_v22 = vmax.f32 %v4516_v53, 0.0 }
 0x3f1   : > { %v2646_v31 = vmax.f32 %v2616_v2, %v2617_v22 }
 0x3f2   : > { %v2529_v35 = vpop.f32.mrb[52].mxu1 }
 0x3f3   : > { %v4517_v37 = vadd.f32 %v6050_v16, %v2529_v35  ;;  %v4461_v33 = vpop.f32.mrb[53].mxu1 }
 0x3f4   : > { %v2532_v40 = vpop.f32.mrb[54].mxu1  ;;  %v2771_v61 = vld [vmem:[#allocation3 + $0x28] sm:$0xf]  ;;  %v2772_v15 = vld [vmem:[#allocation3 + $0x2c] sm:$0xf] }
 0x3f5   : > { %v4518_v56 = vadd.f32 %v6050_v16, %v2532_v40  ;;  %v4462_v27 = vpop.f32.mrb[55].mxu1  ;;  %v3992_v12 = vcombine.low %v2770_v7, %v2771_v61  ;;  %v2618_v44 = vmax.f32 %v4517_v37, 0.0  ;;  %v3983_v55 = vcombine.low %v2771_v61, %v2772_v15 }
 0x3f7   : > { %v2619_v4 = vmax.f32 %v4518_v56, 0.0  ;;  %3310 = vmatprep.mubr.bf16.mxu0 %v3992_v12 }
 0x3f8   : > { %3311 = vmatmul.mubr.bf16.gmra.mrb[112].mxu0 %v3982_v25 }
 0x3f9   : > { %v2647_v29 = vmax.f32 %v2618_v44, %v2619_v4 }
 0x3fa   : > { %v2537_v34 = vpop.f32.mrb[56].mxu1 }
 0x3fb   : > { %v4177_v50 = vpack.c.bf16 %v2647_v29, %v2646_v31  ;;  %v4519_v39 = vadd.f32 %v6050_v16, %v2537_v34  ;;  %v4465_v63 = vpop.f32.mrb[57].mxu1 }
 0x3fc   : > { %v2540_v41 = vpop.f32.mrb[58].mxu1 }
 0x3fd   : > { %4199 = vst [vmem:[#allocation3 + $0x30] sm:$0xff] %v4177_v50   ;;  %v4520_v14 = vadd.f32 %v6050_v16, %v2540_v41  ;;  %v4466_v19 = vpop.f32.mrb[59].mxu1  ;;  %v2620_v5 = vmax.f32 %v4519_v39, 0.0 }
 0x3ff   : > { %v2621_v49 = vmax.f32 %v4520_v14, 0.0 }
 0x401   : > { %v2648_v54 = vmax.f32 %v2620_v5, %v2621_v49 }
 0x402   : > { %v2545_v58 = vpop.f32.mrb[60].mxu1 }
 0x403   : > { %v4521_v17 = vadd.f32 %v6050_v16, %v2545_v58  ;;  %v4469_v48 = vpop.f32.mrb[61].mxu1 }
 0x404   : > { %v2548_v13 = vpop.f32.mrb[62].mxu1  ;;  %v2773_v18 = vld [vmem:[#allocation3 + $0x30] sm:$0xf]  ;;  %v2774_v62 = vld [vmem:[#allocation3 + $0x34] sm:$0xf] }
 0x405   : > { %v4522_v24 = vadd.f32 %v6050_v16, %v2548_v13  ;;  %v4470_v42 = vpop.f32.mrb[63].mxu1  ;;  %v3993_v47 = vcombine.low %v2772_v15, %v2773_v18  ;;  %v2622_v11 = vmax.f32 %v4521_v17, 0.0  ;;  %v3984_v0 = vcombine.low %v2773_v18, %v2774_v62 }
 0x407   : > { %v2623_v26 = vmax.f32 %v4522_v24, 0.0  ;;  %3320 = vmatprep.mubr.bf16.mxu0 %v3993_v47 }
 0x408   : > { %3321 = vmatmul.mubr.bf16.gmra.mrb[116].mxu0 %v3983_v55 }
 0x409   : > { %v2649_v45 = vmax.f32 %v2622_v11, %v2623_v26 }
 0x40a   : > { %v2553_v52 = vpop.f32.mrb[64].mxu1 }
 0x40b   : > { %v4182_v60 = vpack.c.bf16 %v2649_v45, %v2648_v54  ;;  %v4523_v20 = vadd.f32 %v6050_v16, %v2553_v52  ;;  %v4473_v32 = vpop.f32.mrb[65].mxu1  ;;  %v6190_v52 = vmov 0  }
 0x40c   : > { %v2556_v28 = vpop.f32.mrb[66].mxu1  ;;  %v4956_v32 = vld [vmem:[#allocation3 + $0x20] sm:$0xff]  }
 0x40d   : > { %4200 = vst [vmem:[#allocation3 + $0x38] sm:$0xff] %v4182_v60   ;;  %v4524_v1 = vadd.f32 %v6050_v16, %v2556_v28  ;;  %v4474_v8 = vpop.f32.mrb[67].mxu1  ;;  %v2624_v9 = vmax.f32 %v4523_v20, 0.0  ;;  %v4953_v60 = vld [vmem:[#allocation3 + $0x8] sm:$0xff]   ;;  %v4955_v20 = vld [vmem:[#allocation3 + $0x18] sm:$0xff]  }
 0x40e   : > { %v4957_v28 = vld [vmem:[#allocation3 + $0x28] sm:$0xff]  }
 0x40f   : > { %v2625_v43 = vmax.f32 %v4524_v1, 0.0  ;;  %v4958_v1 = vld [vmem:[#allocation3 + $0x30] sm:$0xff]  }
 0x411   : > { %v2650_v6 = vmax.f32 %v2624_v9, %v2625_v43 }
 0x412   : > { %v2561_v21 = vpop.f32.mrb[68].mxu1 }
 0x413   : > { %v4525_v46 = vadd.f32 %v6050_v16, %v2561_v21  ;;  %v4477_v57 = vpop.f32.mrb[69].mxu1  ;;  %v2988_v21 = vlaneseq }
 0x414   : > { %v2564_v38 = vpop.f32.mrb[70].mxu1  ;;  %v2775_v51 = vld [vmem:[#allocation3 + $0x38] sm:$0xf]  ;;  %v2776_v25 = vld [vmem:[#allocation3 + $0x3c] sm:$0xf] }
 0x415   : > { %v4526_v23 = vadd.f32 %v6050_v16, %v2564_v38  ;;  %v4478_v36 = vpop.f32.mrb[71].mxu1  ;;  %v3994_v59 = vcombine.low %v2774_v62, %v2775_v51  ;;  %v2626_v3 = vmax.f32 %v4525_v46, 0.0  ;;  %v3985_v39 = vcombine.low %v2775_v51, %v2776_v25  ;;  %v4959_v8 = vld [vmem:[#allocation3 + $0x38] sm:$0xff]  }
 0x416   : > { %v2989_v46 = vshrl.u32 %v2988_v21, 7 }
 0x417   : > { %v2627_v10 = vmax.f32 %v4526_v23, 0.0  ;;  %3330 = vmatprep.mubr.bf16.mxu0 %v3994_v59  ;;  %v2986_v23 = vld [vmem:[#allocation11] sm:$0x3] }
 0x418   : > { %3331 = vmatmul.mubr.bf16.gmra.mrb[120].mxu0 %v3984_v0  ;;  %v2990_v38 = vsub.s32 0, %v2989_v46  ;;  %v2994_v36 = vsub.s32 1, %v2989_v46 }
 0x419   : > { %v2651_v53 = vmax.f32 %v2626_v3, %v2627_v10 }
 0x41a   : > { %v2569_v30 = vpop.f32.mrb[72].mxu1  ;;  %v6104_v0 = vrot.slane %v2986_v23, %v2990_v38  ;;  %v6106_v3 = vrot.slane %v2986_v23, %v2994_v36 }
 0x41b   : > { %v4187_v2 = vpack.c.bf16 %v2651_v53, %v2650_v6  ;;  %v4527_v22 = vadd.f32 %v6050_v16, %v2569_v30  ;;  %v4481_v31 = vpop.f32.mrb[73].mxu1 }
 0x41c   : > { %v2572_v35 = vpop.f32.mrb[74].mxu1 }
 0x41d   : > { %4201 = vst [vmem:[#allocation3 + $0x40] sm:$0xff] %v4187_v2   ;;  %v4528_v37 = vadd.f32 %v6050_v16, %v2572_v35  ;;  %v4482_v33 = vpop.f32.mrb[75].mxu1  ;;  %v2628_v7 = vmax.f32 %v4527_v22, 0.0 }
 0x41f   : > { %v2629_v40 = vmax.f32 %v4528_v37, 0.0 }
 0x421   : > { %v2652_v61 = vmax.f32 %v2628_v7, %v2629_v40 }
 0x422   : > { %v2577_v56 = vpop.f32.mrb[76].mxu1 }
 0x423   : > { %v4529_v27 = vadd.f32 %v6050_v16, %v2577_v56  ;;  %v4485_v12 = vpop.f32.mrb[77].mxu1 }
 0x424   : > { %v2580_v44 = vpop.f32.mrb[78].mxu1  ;;  %v2777_v4 = vld [vmem:[#allocation3 + $0x40] sm:$0xf]  ;;  %v2778_v42 = vld [vmem:[#allocation3 + $0x44] sm:$0xf] }
 0x425   : > { %v4530_v29 = vadd.f32 %v6050_v16, %v2580_v44  ;;  %v4486_v34 = vpop.f32.mrb[79].mxu1  ;;  %v3995_v50 = vcombine.low %v2776_v25, %v2777_v4  ;;  %v2630_v63 = vmax.f32 %v4529_v27, 0.0  ;;  %v3986_v11 = vcombine.low %v2777_v4, %v2778_v42  ;;  %v4960_v9 = vld [vmem:[#allocation3 + $0x40] sm:$0xff]  }
 0x427   : > { %v2631_v41 = vmax.f32 %v4530_v29, 0.0  ;;  %3340 = vmatprep.mubr.bf16.mxu0 %v3995_v50 }
 0x428   : > { %3341 = vmatmul.mubr.bf16.gmra.mrb[124].mxu0 %v3985_v39 }
 0x429   : > { %v2653_v14 = vmax.f32 %v2630_v63, %v2631_v41 }
 0x42a   : > { %v2585_v19 = vpop.f32.mrb[80].mxu1 }
 0x42b   : > { %v4192_v5 = vpack.c.bf16 %v2653_v14, %v2652_v61  ;;  %v4531_v49 = vadd.f32 %v6050_v16, %v2585_v19  ;;  %v4489_v54 = vpop.f32.mrb[81].mxu1 }
 0x42c   : > { %v2588_v58 = vpop.f32.mrb[82].mxu1 }
 0x42d   : > { %4202 = vst [vmem:[#allocation3 + $0x48] sm:$0xff] %v4192_v5   ;;  %v4532_v17 = vadd.f32 %v6050_v16, %v2588_v58  ;;  %v4490_v48 = vpop.f32.mrb[83].mxu1  ;;  %v2632_v15 = vmax.f32 %v4531_v49, 0.0  ;;  %v4954_v16 = vld [vmem:[#allocation3 + $0x10] sm:$0xff]  }
 0x42f   : > { %v2633_v13 = vmax.f32 %v4532_v17, 0.0 }
 0x431   : > { %v2654_v18 = vmax.f32 %v2632_v15, %v2633_v13 }
 0x433   : > { %v4134_v24 = vpack.c.bf16 %v2654_v18, %v2654_v18 }
 0x434   : > { %v2779_v47 = vld [vmem:[#allocation3 + $0x48] sm:$0xf]  ;;  %v4948_v26 = vld [vmem:[#allocation3 + $0x4c] ss:$0 sps:$4 sm:$0xff]  }
 0x435   : > { %2760 = vst [vmem:[#allocation3 + $0x50] sm:$0xf] %v4134_v24  ;;  %v3996_v55 = vcombine.low %v2778_v42, %v2779_v47  ;;  %v3987_v45 = vcombine.low %v2779_v47, %v2779_v47  ;;  %v4961_v43 = vld [vmem:[#allocation3 + $0x48] sm:$0xff]  }
 0x437   : > { %3350 = vmatprep.mubr.bf16.mxu0 %v3996_v55 }
 0x438   : > { %3351 = vmatmul.mubr.bf16.gmra.mrb[128].mxu0 %v3986_v11 }
 0x439   : > { %3360 = vmatprep.mubr.bf16.mxu0 %v4948_v26 }
 0x43c   : > { %v4962_v6 = vld [vmem:[#allocation3 + $0x50] ss:$0 sps:$4 sm:$0xff]  }
 0x440   : > { %3361 = vmatmul.mubr.bf16.gmra.mrb[132].mxu0 %v3987_v45 }
 0x441   : > { %3399 = vmatprep.mubr.bf16.mxu0 %v6190_v52 }
 0x448   : > { %3400 = vmatmul.mubr.bf16.vlgmr.msra.gmra.mrb[96].mxu0 %v4953_v60 }
 0x449   : > { %3409 = vmatprep.mubr.bf16.mxu0 %v6190_v52 }
 0x450   : > { %3410 = vmatmul.mubr.bf16.gmra.mrb[100].mxu0 %v4954_v16 }
 0x451   : > { %3419 = vmatprep.mubr.bf16.mxu0 %v6190_v52 }
 0x458   : > { %3420 = vmatmul.mubr.bf16.gmra.mrb[104].mxu0 %v4955_v20 }
 0x459   : > { %3429 = vmatprep.mubr.bf16.mxu0 %v6190_v52 }
 0x460   : > { %3430 = vmatmul.mubr.bf16.gmra.mrb[108].mxu0 %v4956_v32 }
 0x461   : > { %3439 = vmatprep.mubr.bf16.mxu0 %v6190_v52 }
 0x468   : > { %3440 = vmatmul.mubr.bf16.gmra.mrb[112].mxu0 %v4957_v28 }
 0x469   : > { %3449 = vmatprep.mubr.bf16.mxu0 %v6190_v52 }
 0x470   : > { %3450 = vmatmul.mubr.bf16.gmra.mrb[116].mxu0 %v4958_v1 }
 0x471   : > { %3459 = vmatprep.mubr.bf16.mxu0 %v6190_v52 }
 0x478   : > { %3460 = vmatmul.mubr.bf16.gmra.mrb[120].mxu0 %v4959_v8 }
 0x479   : > { %3469 = vmatprep.mubr.bf16.mxu0 %v6190_v52 }
 0x480   : > { %3470 = vmatmul.mubr.bf16.gmra.mrb[124].mxu0 %v4960_v9 }
 0x481   : > { %3479 = vmatprep.mubr.bf16.mxu0 %v6190_v52 }
 0x488   : > { %3480 = vmatmul.mubr.bf16.gmra.mrb[128].mxu0 %v4961_v43 }
 0x489   : > { %3489 = vmatprep.mubr.bf16.mxu0 %v6190_v52 }
 0x490   : > { %3490 = vmatmul.mubr.bf16.gmra.mrb[136].mxu0 %v4962_v6 }
 0x513   : > { %v3362_v57 = vpop.f32.mrb[132].mxu0 }
 0x514   : > { %v3363_v62 = vpop.f32.mrb[133].mxu0 }
 0x515   : > { %v3364_v51 = vpop.f32.mrb[134].mxu0 }
 0x516   : > { %v3365_v59 = vpop.f32.mrb[135].mxu0 }
 0x51b   : > { %v3401_v10 = vpop.f32.mrb[96].mxu0 }
 0x51c   : > { %v4533_v53 = vadd.f32 %v3401_v10, %v6104_v0  ;;  %v3403_v30 = vpop.f32.mrb[97].mxu0 }
 0x51d   : > { %v4534_v2 = vadd.f32 %v3403_v30, %v6106_v3  ;;  %v3405_v22 = vpop.f32.mrb[98].mxu0 }
 0x51e   : > { %v4535_v31 = vadd.f32 %v3405_v22, %v6104_v0  ;;  %v3407_v35 = vpop.f32.mrb[99].mxu0  ;;  %v3496_v33 = vmax.f32 %v4533_v53, 0.0 }
 0x51f   : > { %v4536_v37 = vadd.f32 %v3407_v35, %v6106_v3  ;;  %v3497_v40 = vmax.f32 %v4534_v2, 0.0 }
 0x520   : > { %v3498_v7 = vmax.f32 %v4535_v31, 0.0 }
 0x521   : > { %v3499_v61 = vmax.f32 %v4536_v37, 0.0 }
 0x522   : > { %v3532_v56 = vmax.f32 %v3496_v33, %v3498_v7 }
 0x523   : > { %v3533_v27 = vmax.f32 %v3497_v40, %v3499_v61  ;;  %v3411_v12 = vpop.f32.mrb[100].mxu0 }
 0x524   : > { %v4537_v25 = vadd.f32 %v3411_v12, %v6104_v0  ;;  %v3413_v44 = vpop.f32.mrb[101].mxu0 }
 0x525   : > { %v4135_v4 = vpack.c.bf16 %v3533_v27, %v3532_v56  ;;  %v4538_v29 = vadd.f32 %v3413_v44, %v6106_v3  ;;  %v3415_v34 = vpop.f32.mrb[102].mxu0 }
 0x526   : > { %v4539_v50 = vadd.f32 %v3415_v34, %v6104_v0  ;;  %v3417_v39 = vpop.f32.mrb[103].mxu0  ;;  %v3500_v41 = vmax.f32 %v4537_v25, 0.0 }
 0x527   : > { %3566 = vst [vmem:[%s6116_s21] sm:$0xff] %v4135_v4  ;;  %v4540_v63 = vadd.f32 %v3417_v39, %v6106_v3  ;;  %v3501_v19 = vmax.f32 %v4538_v29, 0.0 }
 0x528   : > { %v3502_v14 = vmax.f32 %v4539_v50, 0.0 }
 0x529   : > { %v3503_v5 = vmax.f32 %v4540_v63, 0.0 }
 0x52a   : > { %v3534_v49 = vmax.f32 %v3500_v41, %v3502_v14 }
 0x52b   : > { %v3535_v54 = vmax.f32 %v3501_v19, %v3503_v5  ;;  %v3421_v58 = vpop.f32.mrb[104].mxu0 }
 0x52c   : > { %v4541_v17 = vadd.f32 %v3421_v58, %v6104_v0  ;;  %v3423_v48 = vpop.f32.mrb[105].mxu0 }
 0x52d   : > { %v4136_v15 = vpack.c.bf16 %v3535_v54, %v3534_v49  ;;  %v4542_v13 = vadd.f32 %v3423_v48, %v6106_v3  ;;  %v3425_v18 = vpop.f32.mrb[106].mxu0 }
 0x52e   : > { %v4543_v24 = vadd.f32 %v3425_v18, %v6104_v0  ;;  %v3427_v42 = vpop.f32.mrb[107].mxu0  ;;  %v3504_v55 = vmax.f32 %v4541_v17, 0.0 }
 0x52f   : > { %3571 = vst [vmem:[%s6116_s21 + $0x8] sm:$0xff] %v4136_v15  ;;  %v4544_v47 = vadd.f32 %v3427_v42, %v6106_v3  ;;  %v3505_v26 = vmax.f32 %v4542_v13, 0.0 }
 0x530   : > { %v3506_v11 = vmax.f32 %v4543_v24, 0.0 }
 0x531   : > { %v3507_v45 = vmax.f32 %v4544_v47, 0.0 }
 0x532   : > { %v3536_v52 = vmax.f32 %v3504_v55, %v3506_v11 }
 0x533   : > { %v3537_v60 = vmax.f32 %v3505_v26, %v3507_v45  ;;  %v3431_v16 = vpop.f32.mrb[108].mxu0 }
 0x534   : > { %v4545_v20 = vadd.f32 %v3431_v16, %v6104_v0  ;;  %v3433_v32 = vpop.f32.mrb[109].mxu0 }
 0x535   : > { %v4137_v28 = vpack.c.bf16 %v3537_v60, %v3536_v52  ;;  %v4546_v1 = vadd.f32 %v3433_v32, %v6106_v3  ;;  %v3435_v8 = vpop.f32.mrb[110].mxu0 }
 0x536   : > { %v4547_v9 = vadd.f32 %v3435_v8, %v6104_v0  ;;  %v3437_v43 = vpop.f32.mrb[111].mxu0  ;;  %v3508_v21 = vmax.f32 %v4545_v20, 0.0 }
 0x537   : > { %3578 = vst [vmem:[%s6116_s21 + $0x10] sm:$0xff] %v4137_v28  ;;  %v4548_v6 = vadd.f32 %v3437_v43, %v6106_v3  ;;  %v3509_v57 = vmax.f32 %v4546_v1, 0.0 }
 0x538   : > { %v3510_v46 = vmax.f32 %v4547_v9, 0.0 }
 0x539   : > { %v3511_v62 = vmax.f32 %v4548_v6, 0.0 }
 0x53a   : > { %v3538_v38 = vmax.f32 %v3508_v21, %v3510_v46 }
 0x53b   : > { %v3539_v51 = vmax.f32 %v3509_v57, %v3511_v62  ;;  %v3441_v23 = vpop.f32.mrb[112].mxu0 }
 0x53c   : > { %v4549_v36 = vadd.f32 %v3441_v23, %v6104_v0  ;;  %v3443_v59 = vpop.f32.mrb[113].mxu0 }
 0x53d   : > { %v4138_v10 = vpack.c.bf16 %v3539_v51, %v3538_v38  ;;  %v4550_v53 = vadd.f32 %v3443_v59, %v6106_v3  ;;  %v3445_v30 = vpop.f32.mrb[114].mxu0 }
 0x53e   : > { %v4551_v2 = vadd.f32 %v3445_v30, %v6104_v0  ;;  %v3447_v22 = vpop.f32.mrb[115].mxu0  ;;  %v3512_v35 = vmax.f32 %v4549_v36, 0.0 }
 0x53f   : > { %3583 = vst [vmem:[%s6116_s21 + $0x18] sm:$0xff] %v4138_v10  ;;  %v4552_v31 = vadd.f32 %v3447_v22, %v6106_v3  ;;  %v3513_v33 = vmax.f32 %v4550_v53, 0.0 }
 0x540   : > { %v3514_v37 = vmax.f32 %v4551_v2, 0.0 }
 0x541   : > { %v3515_v7 = vmax.f32 %v4552_v31, 0.0 }
 0x542   : > { %v3540_v40 = vmax.f32 %v3512_v35, %v3514_v37 }
 0x543   : > { %v3541_v61 = vmax.f32 %v3513_v33, %v3515_v7  ;;  %v3451_v56 = vpop.f32.mrb[116].mxu0 }
 0x544   : > { %v4553_v27 = vadd.f32 %v3451_v56, %v6104_v0  ;;  %v3453_v12 = vpop.f32.mrb[117].mxu0 }
 0x545   : > { %v4139_v25 = vpack.c.bf16 %v3541_v61, %v3540_v40  ;;  %v4554_v44 = vadd.f32 %v3453_v12, %v6106_v3  ;;  %v3455_v4 = vpop.f32.mrb[118].mxu0 }
 0x546   : > { %v4555_v29 = vadd.f32 %v3455_v4, %v6104_v0  ;;  %v3457_v34 = vpop.f32.mrb[119].mxu0  ;;  %v3516_v39 = vmax.f32 %v4553_v27, 0.0 }
 0x547   : > { %3590 = vst [vmem:[%s6116_s21 + $0x20] sm:$0xff] %v4139_v25  ;;  %v4556_v50 = vadd.f32 %v3457_v34, %v6106_v3  ;;  %v3517_v41 = vmax.f32 %v4554_v44, 0.0 }
 0x548   : > { %v3518_v63 = vmax.f32 %v4555_v29, 0.0 }
 0x549   : > { %v3519_v14 = vmax.f32 %v4556_v50, 0.0 }
 0x54a   : > { %v3542_v19 = vmax.f32 %v3516_v39, %v3518_v63 }
 0x54b   : > { %v3543_v5 = vmax.f32 %v3517_v41, %v3519_v14  ;;  %v3461_v49 = vpop.f32.mrb[120].mxu0 }
 0x54c   : > { %v4557_v54 = vadd.f32 %v3461_v49, %v6104_v0  ;;  %v3463_v58 = vpop.f32.mrb[121].mxu0 }
 0x54d   : > { %v4140_v17 = vpack.c.bf16 %v3543_v5, %v3542_v19  ;;  %v4558_v48 = vadd.f32 %v3463_v58, %v6106_v3  ;;  %v3465_v15 = vpop.f32.mrb[122].mxu0 }
 0x54e   : > { %v4559_v13 = vadd.f32 %v3465_v15, %v6104_v0  ;;  %v3467_v18 = vpop.f32.mrb[123].mxu0  ;;  %v3520_v42 = vmax.f32 %v4557_v54, 0.0 }
 0x54f   : > { %3595 = vst [vmem:[%s6116_s21 + $0x28] sm:$0xff] %v4140_v17  ;;  %v4560_v24 = vadd.f32 %v3467_v18, %v6106_v3  ;;  %v3521_v55 = vmax.f32 %v4558_v48, 0.0 }
 0x550   : > { %v3522_v47 = vmax.f32 %v4559_v13, 0.0 }
 0x551   : > { %v3523_v11 = vmax.f32 %v4560_v24, 0.0 }
 0x552   : > { %v3544_v26 = vmax.f32 %v3520_v42, %v3522_v47 }
 0x553   : > { %v3545_v45 = vmax.f32 %v3521_v55, %v3523_v11  ;;  %v3471_v52 = vpop.f32.mrb[124].mxu0 }
 0x554   : > { %v4561_v60 = vadd.f32 %v3471_v52, %v6104_v0  ;;  %v3473_v16 = vpop.f32.mrb[125].mxu0 }
 0x555   : > { %v4141_v20 = vpack.c.bf16 %v3545_v45, %v3544_v26  ;;  %v4562_v32 = vadd.f32 %v3473_v16, %v6106_v3  ;;  %v3475_v28 = vpop.f32.mrb[126].mxu0 }
 0x556   : > { %v4563_v1 = vadd.f32 %v3475_v28, %v6104_v0  ;;  %v3477_v8 = vpop.f32.mrb[127].mxu0  ;;  %v3524_v43 = vmax.f32 %v4561_v60, 0.0 }
 0x557   : > { %3602 = vst [vmem:[%s6116_s21 + $0x30] sm:$0xff] %v4141_v20  ;;  %v4564_v9 = vadd.f32 %v3477_v8, %v6106_v3  ;;  %v3525_v21 = vmax.f32 %v4562_v32, 0.0 }
 0x558   : > { %v3526_v6 = vmax.f32 %v4563_v1, 0.0 }
 0x559   : > { %v3527_v46 = vmax.f32 %v4564_v9, 0.0 }
 0x55a   : > { %v3546_v57 = vmax.f32 %v3524_v43, %v3526_v6 }
 0x55b   : > { %v3547_v62 = vmax.f32 %v3525_v21, %v3527_v46  ;;  %v3481_v38 = vpop.f32.mrb[128].mxu0 }
 0x55c   : > { %v4565_v51 = vadd.f32 %v3481_v38, %v6104_v0  ;;  %v3483_v23 = vpop.f32.mrb[129].mxu0 }
 0x55d   : > { %v4142_v36 = vpack.c.bf16 %v3547_v62, %v3546_v57  ;;  %v4566_v59 = vadd.f32 %v3483_v23, %v6106_v3  ;;  %v3485_v10 = vpop.f32.mrb[130].mxu0 }
 0x55e   : > { %v4567_v53 = vadd.f32 %v3485_v10, %v6104_v0  ;;  %v3487_v30 = vpop.f32.mrb[131].mxu0  ;;  %v3528_v22 = vmax.f32 %v4565_v51, 0.0 }
 0x55f   : > { %3607 = vst [vmem:[%s6116_s21 + $0x38] sm:$0xff] %v4142_v36  ;;  %v4568_v2 = vadd.f32 %v3487_v30, %v6106_v3  ;;  %v3529_v35 = vmax.f32 %v4566_v59, 0.0 }
 0x560   : > { %v3530_v31 = vmax.f32 %v4567_v53, 0.0 }
 0x561   : > { %v3531_v37 = vmax.f32 %v4568_v2, 0.0 }
 0x562   : > { %v3548_v33 = vmax.f32 %v3528_v22, %v3530_v31 }
 0x563   : > { %v3549_v7 = vmax.f32 %v3529_v35, %v3531_v37  ;;  %v3491_v40 = vpop.f32.mrb[136].mxu0 }
 0x564   : > { %v3492_v61 = vpop.f32.mrb[137].mxu0 }
 0x565   : > { %v4143_v56 = vpack.c.bf16 %v3549_v7, %v3548_v33  ;;  %v3493_v27 = vpop.f32.mrb[138].mxu0 }
 0x566   : > { %v3494_v12 = vpop.f32.mrb[139].mxu0 }
 0x567   : > { %3614 = vst [vmem:[%s6116_s21 + $0x40] sm:$0xff] %v4143_v56 }
 0x568 PF: > { %s20_s24 = sadd.s32 1, %s5122_s24  }
 0x569   : > { %p17_p1 = scmp.ge.s32.totalorder %s20_s24, 4  }
 0x56b   :  { %19 = sbr.rel (!%p17_p1) target bundleno = 3 (0x3), region = 99 }
 0x572   :  { %3636 = vsyncpa [#allocation5], 1 }
 0x573   :  { %3638 = vsyncpa [#allocation5 + $0x1], 1 }
 0x574   :  { %3639 = vsyncpa [#allocation7], 1 }
 0x575   :  { %3640 = vsyncpa [#allocation10], 1 }

// kernel: promoter_net_forward.3
= control target key start
LH: loop header
LB: loop body
LE: loop exit
PB: predicated region body
PF: predicated region fallthrough
CT: control target
= control target key end

     0   :  { %9 = vsyncpa [#allocation4], 0  ;;  %s16003_s0 = inlined_call_operand.vmem [shape: bf16[2,8,2304], index: 0, kind: input, shape index: {}]   ;;  %s16004_s1 = inlined_call_operand.hbm [shape: bf16[4608,1152], index: 1, kind: input, shape index: {}]   ;;  %s16005_s2 = inlined_call_operand.hbm [shape: f32[1,1152], index: 2, kind: input, shape index: {}]   ;;  %s16006_s3 = inlined_call_operand.hbm [shape: f32[1,1152], index: 3, kind: input, shape index: {}]   ;;  %s16007_s4 = inlined_call_operand.vmem [shape: f32[1,8,1], index: 4, kind: output, shape index: {}]  }
   0x1   :  { %11 = vsyncpa [#allocation4 + $0x1], 0 }
   0x2   :  { %12 = vsyncpa [#allocation6], 0  ;;  %s14245_s15 = smov 0   ;;  %s14247_s16 = smov 0  }
   0x3   :  { %s14249_s17 = smov 0   ;;  %s14251_s18 = smov 0  }
   0x4   :  { %s14253_s19 = smov 0   ;;  %s14255_s20 = smov 0  }
   0x5 LB: > { %s10569_s21 = sadd.s32 4294967295, %s14212_s20   ;;  %s65_s22 = sadd.s32 1, %s14200_s17  ;;  %s14212_s20 = sphi %s14255_s20, %s18_s20   ;;  %s14208_s19 = sphi %s14253_s19, %s16026_s19   ;;  %s14204_s18 = sphi %s14251_s18, %s16025_s18   ;;  %s14200_s17 = sphi %s14249_s17, %s16024_s17   ;;  %s14196_s16 = sphi %s14247_s16, %s16023_s16   ;;  %s14192_s15 = sphi %s14245_s15, %s16022_s15  }
   0x6   : > { %p72_p0 = scmp.ne.s32.totalorder %s14200_s17, %s14196_s16  ;;  %p73_p1 = scmp.eq.s32.totalorder %s14212_s20, 0 }
   0x7   : > { %p78_p2 = scmp.ne.s32.totalorder %s14196_s16, %s14192_s15  ;;  %p14279_p3 = scmp.eq.s32.totalorder %s10569_s21, 0 }
   0x8   : > { %p74_p4 = por %p73_p1, %p72_p0  ;;  %p10570_p5 = scmp.ge.s32.totalorder %s14212_s20, 1 }
   0x9   : > { %s16013_s23 = scalar_select %p14279_p3, 1, 0 }
   0xa   : > { %p14286_p6 = por %p14279_p3, %p78_p2  ;;  %p167_p7 = scmp.lt.s32.totalorder %s14212_s20, 3 }
   0xb   : > { %s14214_s26 = smov [#allocation5]   ;;  %p12125_p10 = scmp.lt.s32.totalorder %s14212_s20, 2 }
   0xc   : > { %s16014_s24 = scalar_select %p14286_p6, 1, 0 }
   0xd   : > { %p14291_p8 = pnand %p10570_p5, %p167_p7  ;;  %s183_s27 = sshll.u32 %s14214_s26, 4  ;;  %s184_s27 = int_to_ptr.vmem [resolvable:$true] %s183_s27 }
   0xe   : > { %p14304_p12 = pnand %p12125_p10, %p74_p4  ;;  %s14215_s30 = smov [#allocation7]  }
   0xf   : > { %s16015_s25 = scalar_select %p14291_p8, 1, 0 }
  0x10   : > { %p12112_p9 = pneg %p14291_p8  ;;  %s197_s5 = sshll.u32 %s14215_s30, 4  ;;  %s198_s5 = int_to_ptr.vmem [resolvable:$true] %s197_s5 }
  0x11   : > { %s16017_s29 = scalar_select %p14304_p12, 1, 0 }
  0x12   : > { %p14300_p11 = pnand %p12112_p9, %p14279_p3  ;;  %s14072_s8 = scalar_lea.hbm %s16005_s2, 144 }
  0x13   : > { %p14073_p13 = scmp.ne.s32.totalorder %s16005_s2, %s14072_s8  ;;  %p14079_p4 = scmp.lt.u32.totalorder %s14072_s8, %s16005_s2 }
  0x14   : > { %p14074_p0 = pneg %p14300_p11 }
  0x16   : > { %p14075_p1 = pnand %p14074_p0, %p14073_p13 }
  0x18   : > { %p14076_p2 = pneg %p14075_p1 }
  0x1a   : > { %p14081_p5 = pnand %p14079_p4, %p14076_p2 }
  0x1c   : > { %14084 = shalt.err (!%p14081_p5)
}
  0x1d   : > { %s14085_s13 = scalar_lea.vmem %s184_s27, 144  ;;  %s14092_s14 = scalar_lea.vmem %s184_s27, 160 }
  0x1e   : > { %p14086_p7 = scmp.ne.s32.totalorder %s184_s27, %s14085_s13  ;;  %p14093_p3 = scmp.lt.s32.totalorder %s184_s27, %s184_s27 }
  0x1f   : > { %p14094_p6 = scmp.lt.s32.totalorder %s14092_s14, %s14085_s13 }
  0x20   : > { %p14088_p9 = pnand %p14086_p7, %p14074_p0 }
  0x21   : > { %p14095_p8 = por %p14094_p6, %p14093_p3 }
  0x22   : > { %p14089_p10 = pneg %p14088_p9 }
  0x24   : > { %p14096_p12 = pnand %p14095_p8, %p14089_p10 }
  0x26   : > { %14099 = shalt.err (!%p14096_p12)
}
  0x27   : > { %12115 = dma.hbm_to_vmem [thread:$0]  (!%p14300_p11), %s16005_s2, 144, %s184_s27, [#allocation6]  }
  0x28   : > { %s27_s26 = sadd.s32 1, %s14208_s19  ;;  %s14100_s7 = scalar_lea.hbm %s16006_s3, 144 }
  0x29   : > { %p14101_p3 = scmp.ne.s32.totalorder %s16006_s3, %s14100_s7  ;;  %p14107_p12 = scmp.lt.u32.totalorder %s14100_s7, %s16006_s3 }
  0x2b   : > { %p14103_p6 = pnand %p14101_p3, %p14074_p0 }
  0x2d   : > { %p14104_p8 = pneg %p14103_p6 }
  0x2f   : > { %p14109_p13 = pnand %p14107_p12, %p14104_p8 }
  0x31   : > { %14112 = shalt.err (!%p14109_p13)
}
  0x32   : > { %s14113_s27 = scalar_lea.vmem %s198_s5, 144  ;;  %s14120_s12 = scalar_lea.vmem %s198_s5, 160 }
  0x33   : > { %p14114_p1 = scmp.ne.s32.totalorder %s198_s5, %s14113_s27  ;;  %p14121_p5 = scmp.lt.s32.totalorder %s198_s5, %s198_s5 }
  0x34   : > { %p14122_p7 = scmp.lt.s32.totalorder %s14120_s12, %s14113_s27 }
  0x35   : > { %p14116_p2 = pnand %p14114_p1, %p14074_p0 }
  0x36   : > { %p14123_p9 = por %p14122_p7, %p14121_p5 }
  0x37   : > { %p14117_p4 = pneg %p14116_p2 }
  0x39   : > { %p14124_p10 = pnand %p14123_p9, %p14117_p4 }
  0x3b   : > { %14127 = shalt.err (!%p14124_p10)
}
  0x3c   : > { %12118 = dma.hbm_to_vmem [thread:$0]  (!%p14300_p11), %s16006_s3, 144, %s198_s5, [#allocation6]  }
  0x3d   : > { %p28_p0 = scmp.ge.s32.totalorder %s27_s26, 2  ;;  %s216_s15 = sand.u32 1, %s14200_s17  }
  0x3e   : > { %s12098_s21 = smul.u32 10368, %s216_s15  ;;  %s14369_s11 = scalar_lea.sflag [#allocation4], %s216_s15 }
  0x3f   : > { %s16028_s26 = smov (%p28_p0, %s27_s26), 0  ;;  %s12126_s6 = smul.u32 165888, %s14208_s19 }
  0x40   : > { %s60_s30 = ssub.s32 %s14208_s19, %s16028_s26  ;;  %s220_s28 = scalar_lea.vmem [#allocation3], %s12098_s21 }
  0x41   : > { %p63_p3 = scmp.eq.s32.totalorder %s60_s30, 0  ;;  %s230_s7 = sshll.u32 %s220_s28, 4  ;;  %s14362_s7 = int_to_ptr.vmem [resolvable:$true] %s230_s7 }
  0x42   : > { %s14360_s10 = scalar_lea.hbm %s16004_s1, %s12126_s6  ;;  %p16018_p6 = scmp.ne.s32.totalorder %s16017_s29, 0 }
  0x43   : > { %s14367_s5 = scalar_select %p63_p3, %s14200_s17, %s65_s22  }
  0x44   : > { %s14128_s27 = scalar_lea.hbm %s14360_s10, 165888  ;;  %p14130_p8 = pneg %p16018_p6 }
  0x45   : > { %p14129_p11 = scmp.ne.s32.totalorder %s14360_s10, %s14128_s27  ;;  %s14133_s14 = scalar_lea.hbm %s16004_s1, 331776 }
  0x46   : > { %p14134_p1 = scmp.lt.u32.totalorder %s14360_s10, %s16004_s1  ;;  %p14135_p2 = scmp.lt.u32.totalorder %s14133_s14, %s14128_s27 }
  0x47   : > { %p14131_p12 = pnand %p14130_p8, %p14129_p11  ;;  %p14137_p5 = scmp.lt.u32.totalorder %s14128_s27, %s14360_s10 }
  0x48   : > { %p14136_p4 = por %p14135_p2, %p14134_p1 }
  0x49   : > { %p14132_p13 = pneg %p14131_p12 }
  0x4a   : > { %p14138_p7 = por %p14137_p5, %p14136_p4 }
  0x4c   : > { %p14139_p9 = pnand %p14138_p7, %p14132_p13 }
  0x4e   : > { %14142 = shalt.err (!%p14139_p9)
}
  0x4f   : > { %s14143_s22 = scalar_lea.vmem %s14362_s7, 165888  ;;  %s14216_s15 = smov [#allocation3]  }
  0x50   : > { %p14144_p10 = scmp.ne.s32.totalorder %s14362_s7, %s14143_s22  ;;  %s14148_s6 = sshll.u32 %s14216_s15, 4  ;;  %s14149_s6 = int_to_ptr.vmem [resolvable:$false] %s14148_s6 }
  0x51   : > { %s14150_s28 = scalar_lea.vmem %s14149_s6, 331776  ;;  %p14151_p11 = scmp.lt.s32.totalorder %s14362_s7, %s14149_s6 }
  0x52   : > { %p14146_p0 = pnand %p14144_p10, %p14130_p8  ;;  %p14152_p12 = scmp.lt.s32.totalorder %s14150_s28, %s14143_s22 }
  0x54   : > { %p14147_p3 = pneg %p14146_p0  ;;  %p14153_p1 = por %p14152_p12, %p14151_p11 }
  0x56   : > { %p14154_p2 = pnand %p14153_p1, %p14147_p3 }
  0x58   : > { %14157 = shalt.err (!%p14154_p2)
}
  0x59   : > { %s14217_s8 = smov 576   ;;  %s14218_s9 = smov 36  }
  0x5a   : > { %12122 = dma.hbm_to_vmem [thread:$0]  (!%p16018_p6), %s14360_s10, 165888, %s14362_s7, %s14369_s11, %s14217_s8, %s14217_s8, %s14218_s9  }
  0x5b   : > { %p16019_p8 = scmp.ne.s32.totalorder %s16015_s25, 0 }
  0x5c   : > { %s244_s27 = sand.u32 (!%p16019_p8), 1, %s14196_s16   ;;  %p16020_p13 = scmp.ne.s32.totalorder (!%p16019_p8), %s16014_s24, 0 }
  0x5d   : > { %242 = sbr.rel (%p16019_p8) target bundleno = 1806 (0x70e), region = 36  ;;  %s245_s13 = scalar_lea.sflag (!%p16019_p8), [#allocation4], %s244_s27 }
  0x5e   : > { %s12100_s12 = smul.u32 (!%p16019_p8), 10368, %s244_s27 }
  0x60   : > { %s14400_s14 = scalar_lea.vmem (!%p16019_p8), [#allocation3], %s12100_s12 }
  0x64   : > { %14183 = dma.done.wait (%p16020_p13), %s245_s13, 165888  }
  0x65   : > { %14185 = vsyncadd (%p16020_p13), %s245_s13, 4294801408  ;;  %p16021_p4 = scmp.ne.s32.totalorder %s16013_s23, 0 }
  0x67   : > { %14187 = dma.done.wait (%p16021_p4), [#allocation6], 288  }
  0x68   : > { %14189 = vsyncadd (%p16021_p4), [#allocation6], 4294967008  ;;  %p285_p6 = scmp.lt.s32.totalorder %s14204_s18, 1  ;;  %p10579_p5 = scmp.ne.s32.totalorder %s14204_s18, 0 }
  0x69   : > { %v14219_v0 = vmov (!%p10579_p5), 0.0  }
  0x6a   : > { %s286_s25 = scalar_select %p285_p6, %s14204_s18, 1 }
  0x6b   : > { %302 = sbr.rel (%p10579_p5) target bundleno = 114 (0x72), region = 52  ;;  %303 = vst [vmem:[#allocation2] sm:$0xff] (!%p10579_p5), %v14219_v0  ;;  %304 = vst [vmem:[#allocation2 + $0x8] sm:$0xff] (!%p10579_p5), %v14219_v0 }
  0x6c   : > { %s12101_s29 = smul.u32 72, %s286_s25  ;;  %305 = vst [vmem:[#allocation2 + $0x10] sm:$0xff] (!%p10579_p5), %v14219_v0  ;;  %306 = vst [vmem:[#allocation2 + $0x18] sm:$0xff] (!%p10579_p5), %v14219_v0 }
  0x6d   : > { %307 = vst [vmem:[#allocation2 + $0x20] sm:$0xff] (!%p10579_p5), %v14219_v0  ;;  %308 = vst [vmem:[#allocation2 + $0x28] sm:$0xff] (!%p10579_p5), %v14219_v0 }
  0x6e   : > { %s14415_s11 = scalar_lea.vmem %s16003_s0, %s12101_s29  ;;  %309 = vst [vmem:[#allocation2 + $0x30] sm:$0xff] (!%p10579_p5), %v14219_v0  ;;  %310 = vst [vmem:[#allocation2 + $0x38] sm:$0xff] (!%p10579_p5), %v14219_v0 }
  0x6f   : > { %311 = vst [vmem:[#allocation2 + $0x40] sm:$0xff] (!%p10579_p5), %v14219_v0 }
  0x72 PF: > { %v12182_v1 = vld [vmem:[%s14400_s14 + $0x4] ss:$36 sps:$4 sm:$0xff]   ;;  %v12188_v5 = vld [vmem:[%s14400_s14 + $0x4c] ss:$36 sps:$4 sm:$0xff]   ;;  %v12194_v9 = vld [vmem:[%s14400_s14 + $0x94] ss:$36 sps:$4 sm:$0xff]  }
  0x73   : > { %v12184_v2 = vld [vmem:[%s14400_s14 + $0x484] ss:$36 sps:$4 sm:$0xff]   ;;  %8457 = vmatprep.subr.bf16.mxu0 %v12182_v1  ;;  %v12190_v6 = vld [vmem:[%s14400_s14 + $0x4cc] ss:$36 sps:$4 sm:$0xff]   ;;  %v12196_v10 = vld [vmem:[%s14400_s14 + $0x514] ss:$36 sps:$4 sm:$0xff]  }
  0x74   : > { %v12186_v3 = vld [vmem:[%s14400_s14] ss:$36 sps:$4 sm:$0xff]   ;;  %8498 = vmatprep.subr.bf16.mxu1 %v12184_v2  ;;  %v12192_v7 = vld [vmem:[%s14400_s14 + $0x48] ss:$36 sps:$4 sm:$0xff]   ;;  %v12198_v11 = vld [vmem:[%s14400_s14 + $0x90] ss:$36 sps:$4 sm:$0xff]  }
  0x75   : > { %v12187_v4 = vld [vmem:[%s14400_s14 + $0x480] ss:$36 sps:$4 sm:$0xff]   ;;  %8458 = vmatpush1.bf16.msra.mxu0 %v12186_v3  ;;  %v12193_v8 = vld [vmem:[%s14400_s14 + $0x4c8] ss:$36 sps:$4 sm:$0xff]   ;;  %v12199_v12 = vld [vmem:[%s14400_s14 + $0x510] ss:$36 sps:$4 sm:$0xff]  }
  0x76   : > { %8499 = vmatpush1.bf16.msra.mxu1 %v12187_v4  ;;  %8459 = vmatprep.subr.bf16.mxu0 %v12188_v5  ;;  %v12200_v13 = vld [vmem:[%s14400_s14 + $0xdc] ss:$36 sps:$4 sm:$0xff]   ;;  %v12206_v17 = vld [vmem:[%s14400_s14 + $0x124] ss:$36 sps:$4 sm:$0xff]   ;;  %v12212_v21 = vld [vmem:[%s14400_s14 + $0x16c] ss:$36 sps:$4 sm:$0xff]  }
  0x77   : > { %8500 = vmatprep.subr.bf16.mxu1 %v12190_v6  ;;  %v12202_v14 = vld [vmem:[%s14400_s14 + $0x55c] ss:$36 sps:$4 sm:$0xff]   ;;  %v12208_v18 = vld [vmem:[%s14400_s14 + $0x5a4] ss:$36 sps:$4 sm:$0xff]   ;;  %v12214_v22 = vld [vmem:[%s14400_s14 + $0x5ec] ss:$36 sps:$4 sm:$0xff]  }
  0x78   : > { %v12204_v15 = vld [vmem:[%s14400_s14 + $0xd8] ss:$36 sps:$4 sm:$0xff]   ;;  %v12210_v19 = vld [vmem:[%s14400_s14 + $0x120] ss:$36 sps:$4 sm:$0xff]   ;;  %v12216_v23 = vld [vmem:[%s14400_s14 + $0x168] ss:$36 sps:$4 sm:$0xff]  }
  0x79   : > { %8460 = vmatpush1.bf16.msra.mxu0 %v12192_v7  ;;  %v12205_v16 = vld [vmem:[%s14400_s14 + $0x558] ss:$36 sps:$4 sm:$0xff]   ;;  %v12211_v20 = vld [vmem:[%s14400_s14 + $0x5a0] ss:$36 sps:$4 sm:$0xff]   ;;  %v12217_v24 = vld [vmem:[%s14400_s14 + $0x5e8] ss:$36 sps:$4 sm:$0xff]  }
  0x7a   : > { %8501 = vmatpush1.bf16.msra.mxu1 %v12193_v8  ;;  %8461 = vmatprep.subr.bf16.mxu0 %v12194_v9  ;;  %v12218_v25 = vld [vmem:[%s14400_s14 + $0x1b4] ss:$36 sps:$4 sm:$0xff]   ;;  %v12224_v29 = vld [vmem:[%s14400_s14 + $0x1fc] ss:$36 sps:$4 sm:$0xff]   ;;  %v12230_v33 = vld [vmem:[%s14400_s14 + $0x244] ss:$36 sps:$4 sm:$0xff]  }
  0x7b   : > { %8502 = vmatprep.subr.bf16.mxu1 %v12196_v10  ;;  %v12220_v26 = vld [vmem:[%s14400_s14 + $0x634] ss:$36 sps:$4 sm:$0xff]   ;;  %v12226_v30 = vld [vmem:[%s14400_s14 + $0x67c] ss:$36 sps:$4 sm:$0xff]   ;;  %v12232_v34 = vld [vmem:[%s14400_s14 + $0x6c4] ss:$36 sps:$4 sm:$0xff]  }
  0x7c   : > { %v12222_v27 = vld [vmem:[%s14400_s14 + $0x1b0] ss:$36 sps:$4 sm:$0xff]   ;;  %v12228_v31 = vld [vmem:[%s14400_s14 + $0x1f8] ss:$36 sps:$4 sm:$0xff]   ;;  %v12234_v35 = vld [vmem:[%s14400_s14 + $0x240] ss:$36 sps:$4 sm:$0xff]  }
  0x7d   : > { %8462 = vmatpush1.bf16.msra.mxu0 %v12198_v11  ;;  %v12223_v28 = vld [vmem:[%s14400_s14 + $0x630] ss:$36 sps:$4 sm:$0xff]   ;;  %v12229_v32 = vld [vmem:[%s14400_s14 + $0x678] ss:$36 sps:$4 sm:$0xff]   ;;  %v12235_v36 = vld [vmem:[%s14400_s14 + $0x6c0] ss:$36 sps:$4 sm:$0xff]  }
  0x7e   : > { %8503 = vmatpush1.bf16.msra.mxu1 %v12199_v12  ;;  %8463 = vmatprep.subr.bf16.mxu0 %v12200_v13  ;;  %v12236_v37 = vld [vmem:[%s14400_s14 + $0x28c] ss:$36 sps:$4 sm:$0xff]   ;;  %v12242_v41 = vld [vmem:[%s14400_s14 + $0x2d4] ss:$36 sps:$4 sm:$0xff]   ;;  %v12248_v45 = vld [vmem:[%s14400_s14 + $0x31c] ss:$36 sps:$4 sm:$0xff]  }
  0x7f   : > { %8504 = vmatprep.subr.bf16.mxu1 %v12202_v14  ;;  %v12238_v38 = vld [vmem:[%s14400_s14 + $0x70c] ss:$36 sps:$4 sm:$0xff]   ;;  %v12244_v42 = vld [vmem:[%s14400_s14 + $0x754] ss:$36 sps:$4 sm:$0xff]   ;;  %v12250_v46 = vld [vmem:[%s14400_s14 + $0x79c] ss:$36 sps:$4 sm:$0xff]  }
  0x80   : > { %v12240_v39 = vld [vmem:[%s14400_s14 + $0x288] ss:$36 sps:$4 sm:$0xff]   ;;  %v12246_v43 = vld [vmem:[%s14400_s14 + $0x2d0] ss:$36 sps:$4 sm:$0xff]   ;;  %v321_v47 = vld [vmem:[%s14415_s11] sm:$0xff]  ;;  %p11894_p7 = scmp.ne.s32.totalorder %s14204_s18, 1 }
  0x81   : > { %8464 = vmatpush1.bf16.msra.mxu0 %v12204_v15  ;;  %v12241_v40 = vld [vmem:[%s14400_s14 + $0x708] ss:$36 sps:$4 sm:$0xff]   ;;  %v12247_v44 = vld [vmem:[%s14400_s14 + $0x750] ss:$36 sps:$4 sm:$0xff]   ;;  %v14465_v48 = vcombine.high %v321_v47, %v321_v47  ;;  %v322_v49 = vld [vmem:[%s14415_s11 + $0x8] sm:$0xff]  ;;  %v14492_v7 = vcombine.low %v321_v47, %v321_v47  ;;  %vm10459_vm0 = vcmask (!%p11894_p7), 7168  }
  0x82   : > { %8505 = vmatpush1.bf16.msra.mxu1 %v12205_v16  ;;  %8465 = vmatprep.subr.bf16.mxu0 %v12206_v17  ;;  %v12252_v50 = vld [vmem:[%s14400_s14 + $0x318] ss:$36 sps:$4 sm:$0xff]   ;;  %v14470_v52 = vcombine.high %v322_v49, %v322_v49  ;;  %v12254_v53 = vld [vmem:[%s14400_s14 + $0x364] ss:$36 sps:$4 sm:$0xff]   ;;  %v12260_v57 = vld [vmem:[%s14400_s14 + $0x3ac] ss:$36 sps:$4 sm:$0xff]   ;;  %v14494_v8 = vcombine.low %v322_v49, %v322_v49 }
  0x83   : > { %8506 = vmatprep.subr.bf16.mxu1 %v12208_v18  ;;  %v12253_v51 = vld [vmem:[%s14400_s14 + $0x798] ss:$36 sps:$4 sm:$0xff]   ;;  %v12256_v54 = vld [vmem:[%s14400_s14 + $0x7e4] ss:$36 sps:$4 sm:$0xff]   ;;  %8489 = vmatprep.mubr.bf16.mxu0 %v14465_v48  ;;  %v12262_v58 = vld [vmem:[%s14400_s14 + $0x82c] ss:$36 sps:$4 sm:$0xff]  }
  0x84   : > { %8530 = vmatprep.mubr.bf16.mxu1 %v14470_v52  ;;  %v12258_v55 = vld [vmem:[%s14400_s14 + $0x360] ss:$36 sps:$4 sm:$0xff]   ;;  %v12264_v59 = vld [vmem:[%s14400_s14 + $0x3a8] ss:$36 sps:$4 sm:$0xff]   ;;  %v12266_v61 = vld [vmem:[%s14400_s14 + $0x3f4] ss:$36 sps:$4 sm:$0xff]  }
  0x85   : > { %8466 = vmatpush1.bf16.msra.mxu0 %v12210_v19  ;;  %v12259_v56 = vld [vmem:[%s14400_s14 + $0x7e0] ss:$36 sps:$4 sm:$0xff]   ;;  %v12265_v60 = vld [vmem:[%s14400_s14 + $0x828] ss:$36 sps:$4 sm:$0xff]   ;;  %v12268_v62 = vld [vmem:[%s14400_s14 + $0x874] ss:$36 sps:$4 sm:$0xff]  }
  0x86   : > { %8507 = vmatpush1.bf16.msra.mxu1 %v12211_v20  ;;  %8467 = vmatprep.subr.bf16.mxu0 %v12212_v21  ;;  %v12270_v63 = vld [vmem:[%s14400_s14 + $0x3f0] ss:$36 sps:$4 sm:$0xff]   ;;  %v12272_v1 = vld [vmem:[%s14400_s14 + $0x43c] ss:$36 sps:$4 sm:$0xff]   ;;  %v12284_v5 = vld [vmem:[%s14400_s14 + $0x904] ss:$36 sps:$4 sm:$0xff]  }
  0x87   : > { %8508 = vmatprep.subr.bf16.mxu1 %v12214_v22  ;;  %v12271_v0 = vld [vmem:[%s14400_s14 + $0x870] ss:$36 sps:$4 sm:$0xff]   ;;  %v12274_v2 = vld [vmem:[%s14400_s14 + $0x8bc] ss:$36 sps:$4 sm:$0xff]   ;;  %v12287_v6 = vld [vmem:[%s14400_s14 + $0xd84] ss:$36 sps:$4 sm:$0xff]  }
  0x88   : > { %v12276_v3 = vld [vmem:[%s14400_s14 + $0x438] ss:$36 sps:$4 sm:$0xff]   ;;  %v12282_v9 = vld [vmem:[%s14400_s14 + $0x900] ss:$36 sps:$4 sm:$0xff]   ;;  %v12290_v11 = vld [vmem:[%s14400_s14 + $0x94c] ss:$36 sps:$4 sm:$0xff]  }
  0x89   : > { %8468 = vmatpush1.bf16.msra.mxu0 %v12216_v23  ;;  %v12277_v4 = vld [vmem:[%s14400_s14 + $0x8b8] ss:$36 sps:$4 sm:$0xff]   ;;  %v12285_v10 = vld [vmem:[%s14400_s14 + $0xd80] ss:$36 sps:$4 sm:$0xff]   ;;  %v12293_v12 = vld [vmem:[%s14400_s14 + $0xdcc] ss:$36 sps:$4 sm:$0xff]  }
  0x8a   : > { %8509 = vmatpush1.bf16.msra.mxu1 %v12217_v24  ;;  %8469 = vmatprep.subr.bf16.mxu0 %v12218_v25  ;;  %v12288_v13 = vld [vmem:[%s14400_s14 + $0x948] ss:$36 sps:$4 sm:$0xff]   ;;  %v12296_v15 = vld [vmem:[%s14400_s14 + $0x994] ss:$36 sps:$4 sm:$0xff]   ;;  %v12302_v19 = vld [vmem:[%s14400_s14 + $0x9dc] ss:$36 sps:$4 sm:$0xff]  }
  0x8b   : > { %8510 = vmatprep.subr.bf16.mxu1 %v12220_v26  ;;  %v12291_v14 = vld [vmem:[%s14400_s14 + $0xdc8] ss:$36 sps:$4 sm:$0xff]   ;;  %v12299_v16 = vld [vmem:[%s14400_s14 + $0xe14] ss:$36 sps:$4 sm:$0xff]   ;;  %v12305_v20 = vld [vmem:[%s14400_s14 + $0xe5c] ss:$36 sps:$4 sm:$0xff]  }
  0x8c   : > { %v12294_v17 = vld [vmem:[%s14400_s14 + $0x990] ss:$36 sps:$4 sm:$0xff]   ;;  %v12300_v21 = vld [vmem:[%s14400_s14 + $0x9d8] ss:$36 sps:$4 sm:$0xff]   ;;  %v12308_v23 = vld [vmem:[%s14400_s14 + $0xa24] ss:$36 sps:$4 sm:$0xff]  }
  0x8d   : > { %8470 = vmatpush1.bf16.msra.mxu0 %v12222_v27  ;;  %v12297_v18 = vld [vmem:[%s14400_s14 + $0xe10] ss:$36 sps:$4 sm:$0xff]   ;;  %v12303_v22 = vld [vmem:[%s14400_s14 + $0xe58] ss:$36 sps:$4 sm:$0xff]   ;;  %v12311_v24 = vld [vmem:[%s14400_s14 + $0xea4] ss:$36 sps:$4 sm:$0xff]  }
  0x8e   : > { %8511 = vmatpush1.bf16.msra.mxu1 %v12223_v28  ;;  %8471 = vmatprep.subr.bf16.mxu0 %v12224_v29  ;;  %v12306_v25 = vld [vmem:[%s14400_s14 + $0xa20] ss:$36 sps:$4 sm:$0xff]   ;;  %v12314_v27 = vld [vmem:[%s14400_s14 + $0xa6c] ss:$36 sps:$4 sm:$0xff]  }
  0x8f   : > { %8512 = vmatprep.subr.bf16.mxu1 %v12226_v30  ;;  %v12309_v26 = vld [vmem:[%s14400_s14 + $0xea0] ss:$36 sps:$4 sm:$0xff]   ;;  %v12317_v28 = vld [vmem:[%s14400_s14 + $0xeec] ss:$36 sps:$4 sm:$0xff]  }
  0x90   : > { %v12312_v29 = vld [vmem:[%s14400_s14 + $0xa68] ss:$36 sps:$4 sm:$0xff]  }
  0x91   : > { %8472 = vmatpush1.bf16.msra.mxu0 %v12228_v31  ;;  %v12315_v30 = vld [vmem:[%s14400_s14 + $0xee8] ss:$36 sps:$4 sm:$0xff]   ;;  %v12320_v31 = vld [vmem:[%s14400_s14 + $0xab4] ss:$36 sps:$4 sm:$0xff]  }
  0x92   : > { %8513 = vmatpush1.bf16.msra.mxu1 %v12229_v32  ;;  %8473 = vmatprep.subr.bf16.mxu0 %v12230_v33  ;;  %v12323_v32 = vld [vmem:[%s14400_s14 + $0xf34] ss:$36 sps:$4 sm:$0xff]   ;;  %v14523_v33 = vld [vmem:[%s14415_s11 + $0x10] sm:$0xff] }
  0x93   : > { %8514 = vmatprep.subr.bf16.mxu1 %v12232_v34  ;;  %v14526_v34 = vld [vmem:[%s14415_s11 + $0x18] sm:$0xff] }
  0x94   : > { %v12338_v47 = vld [vmem:[%s14400_s14 + $0xb8c] ss:$36 sps:$4 sm:$0xff]  }
  0x95   : > { %8474 = vmatpush1.bf16.msra.mxu0 %v12234_v35  ;;  %v12318_v35 = vld [vmem:[%s14400_s14 + $0xab0] ss:$36 sps:$4 sm:$0xff]  }
  0x96   : > { %8515 = vmatpush1.bf16.msra.mxu1 %v12235_v36  ;;  %8475 = vmatprep.subr.bf16.mxu0 %v12236_v37  ;;  %v12321_v36 = vld [vmem:[%s14400_s14 + $0xf30] ss:$36 sps:$4 sm:$0xff]   ;;  %v14532_v37 = vcombine.high %v14523_v33, %v14523_v33 }
  0x97   : > { %8516 = vmatprep.subr.bf16.mxu1 %v12238_v38  ;;  %v14536_v38 = vcombine.high %v14526_v34, %v14526_v34  ;;  %v12341_v49 = vld [vmem:[%s14400_s14 + $0x100c] ss:$36 sps:$4 sm:$0xff]  }
  0x99   : > { %8476 = vmatpush1.bf16.msra.mxu0 %v12240_v39  ;;  %v12326_v39 = vld [vmem:[%s14400_s14 + $0xafc] ss:$36 sps:$4 sm:$0xff]  }
  0x9a   : > { %8517 = vmatpush1.bf16.msra.mxu1 %v12241_v40  ;;  %8477 = vmatprep.subr.bf16.mxu0 %v12242_v41  ;;  %v12329_v40 = vld [vmem:[%s14400_s14 + $0xf7c] ss:$36 sps:$4 sm:$0xff]  }
  0x9b   : > { %8518 = vmatprep.subr.bf16.mxu1 %v12244_v42  ;;  %v12324_v41 = vld [vmem:[%s14400_s14 + $0xaf8] ss:$36 sps:$4 sm:$0xff]  }
  0x9c   : > { %v12327_v42 = vld [vmem:[%s14400_s14 + $0xf78] ss:$36 sps:$4 sm:$0xff]  }
  0x9d   : > { %8478 = vmatpush1.bf16.msra.mxu0 %v12246_v43  ;;  %v12332_v43 = vld [vmem:[%s14400_s14 + $0xb44] ss:$36 sps:$4 sm:$0xff]  }
  0x9e   : > { %8519 = vmatpush1.bf16.msra.mxu1 %v12247_v44  ;;  %8479 = vmatprep.subr.bf16.mxu0 %v12248_v45  ;;  %v12335_v44 = vld [vmem:[%s14400_s14 + $0xfc4] ss:$36 sps:$4 sm:$0xff]  }
  0x9f   : > { %8520 = vmatprep.subr.bf16.mxu1 %v12250_v46  ;;  %v12330_v45 = vld [vmem:[%s14400_s14 + $0xb40] ss:$36 sps:$4 sm:$0xff]  }
  0xa0   : > { %v12333_v46 = vld [vmem:[%s14400_s14 + $0xfc0] ss:$36 sps:$4 sm:$0xff]  }
  0xa1   : > { %8480 = vmatpush1.bf16.msra.mxu0 %v12252_v50  ;;  %v12336_v50 = vld [vmem:[%s14400_s14 + $0xb88] ss:$36 sps:$4 sm:$0xff]  }
  0xa2   : > { %8521 = vmatpush1.bf16.msra.mxu1 %v12253_v51  ;;  %8481 = vmatprep.subr.bf16.mxu0 %v12254_v53  ;;  %v12339_v51 = vld [vmem:[%s14400_s14 + $0x1008] ss:$36 sps:$4 sm:$0xff]   ;;  %v12344_v53 = vld [vmem:[%s14400_s14 + $0xbd4] ss:$36 sps:$4 sm:$0xff]  }
  0xa3   : > { %8522 = vmatprep.subr.bf16.mxu1 %v12256_v54  ;;  %v12347_v54 = vld [vmem:[%s14400_s14 + $0x1054] ss:$36 sps:$4 sm:$0xff]  }
  0xa5   : > { %8482 = vmatpush1.bf16.msra.mxu0 %v12258_v55  ;;  %v12342_v55 = vld [vmem:[%s14400_s14 + $0xbd0] ss:$36 sps:$4 sm:$0xff]  }
  0xa6   : > { %8523 = vmatpush1.bf16.msra.mxu1 %v12259_v56  ;;  %8483 = vmatprep.subr.bf16.mxu0 %v12260_v57  ;;  %v12345_v56 = vld [vmem:[%s14400_s14 + $0x1050] ss:$36 sps:$4 sm:$0xff]   ;;  %v12350_v57 = vld [vmem:[%s14400_s14 + $0xc1c] ss:$36 sps:$4 sm:$0xff]  }
  0xa7   : > { %8524 = vmatprep.subr.bf16.mxu1 %v12262_v58  ;;  %v12353_v58 = vld [vmem:[%s14400_s14 + $0x109c] ss:$36 sps:$4 sm:$0xff]  }
  0xa9   : > { %8484 = vmatpush1.bf16.msra.mxu0 %v12264_v59  ;;  %v12348_v59 = vld [vmem:[%s14400_s14 + $0xc18] ss:$36 sps:$4 sm:$0xff]  }
  0xaa   : > { %8525 = vmatpush1.bf16.msra.mxu1 %v12265_v60  ;;  %8485 = vmatprep.subr.bf16.mxu0 %v12266_v61  ;;  %v12351_v60 = vld [vmem:[%s14400_s14 + $0x1098] ss:$36 sps:$4 sm:$0xff]   ;;  %v12356_v61 = vld [vmem:[%s14400_s14 + $0xc64] ss:$36 sps:$4 sm:$0xff]  }
  0xab   : > { %8526 = vmatprep.subr.bf16.mxu1 %v12268_v62  ;;  %v12359_v62 = vld [vmem:[%s14400_s14 + $0x10e4] ss:$36 sps:$4 sm:$0xff]  }
  0xad   : > { %8486 = vmatpush1.bf16.msra.mxu0 %v12270_v63  ;;  %v12354_v63 = vld [vmem:[%s14400_s14 + $0xc60] ss:$36 sps:$4 sm:$0xff]  }
  0xae   : > { %8527 = vmatpush1.bf16.msra.mxu1 %v12271_v0  ;;  %8487 = vmatprep.subr.bf16.mxu0 %v12272_v1  ;;  %v12357_v0 = vld [vmem:[%s14400_s14 + $0x10e0] ss:$36 sps:$4 sm:$0xff]   ;;  %v12362_v1 = vld [vmem:[%s14400_s14 + $0xcac] ss:$36 sps:$4 sm:$0xff]  }
  0xaf   : > { %8528 = vmatprep.subr.bf16.mxu1 %v12274_v2  ;;  %v12365_v2 = vld [vmem:[%s14400_s14 + $0x112c] ss:$36 sps:$4 sm:$0xff]  }
  0xb1   : > { %8488 = vmatpush1.bf16.msra.mxu0 %v12276_v3  ;;  %v12360_v3 = vld [vmem:[%s14400_s14 + $0xca8] ss:$36 sps:$4 sm:$0xff]  }
  0xb2   : > { %8529 = vmatpush1.bf16.msra.mxu1 %v12277_v4  ;;  %8539 = vmatprep.subr.bf16.mxu0 %v12284_v5  ;;  %v12363_v4 = vld [vmem:[%s14400_s14 + $0x1128] ss:$36 sps:$4 sm:$0xff]   ;;  %v12368_v5 = vld [vmem:[%s14400_s14 + $0xcf4] ss:$36 sps:$4 sm:$0xff]  }
  0xb3   : > { %8580 = vmatprep.subr.bf16.mxu1 %v12287_v6  ;;  %v12371_v6 = vld [vmem:[%s14400_s14 + $0x1174] ss:$36 sps:$4 sm:$0xff]  }
  0xb4   : > { %8490 = vmatmul.mubr.bf16.vlgmr.msra.gmra.mrb[0].mxu0 %v14492_v7 }
  0xb5   : > { %8531 = vmatmul.mubr.bf16.vlgmr.msra.gmra.mrb[0].mxu1 %v14494_v8  ;;  %8540 = vmatpush1.bf16.msra.mxu0 %v12282_v9  ;;  %v12366_v9 = vld [vmem:[%s14400_s14 + $0xcf0] ss:$36 sps:$4 sm:$0xff]  }
  0xb6   : > { %8581 = vmatpush1.bf16.msra.mxu1 %v12285_v10  ;;  %8541 = vmatprep.subr.bf16.mxu0 %v12290_v11  ;;  %v12369_v10 = vld [vmem:[%s14400_s14 + $0x1170] ss:$36 sps:$4 sm:$0xff]   ;;  %v12374_v11 = vld [vmem:[%s14400_s14 + $0xd3c] ss:$36 sps:$4 sm:$0xff]  }
  0xb7   : > { %8582 = vmatprep.subr.bf16.mxu1 %v12293_v12  ;;  %8571 = vmatprep.mubr.bf16.mxu0 %v14532_v37  ;;  %v12377_v12 = vld [vmem:[%s14400_s14 + $0x11bc] ss:$36 sps:$4 sm:$0xff]  }
  0xb8   : > { %8612 = vmatprep.mubr.bf16.mxu1 %v14536_v38 }
  0xb9   : > { %8542 = vmatpush1.bf16.msra.mxu0 %v12288_v13  ;;  %v12372_v13 = vld [vmem:[%s14400_s14 + $0xd38] ss:$36 sps:$4 sm:$0xff]  }
  0xba   : > { %8583 = vmatpush1.bf16.msra.mxu1 %v12291_v14  ;;  %8543 = vmatprep.subr.bf16.mxu0 %v12296_v15  ;;  %v12375_v14 = vld [vmem:[%s14400_s14 + $0x11b8] ss:$36 sps:$4 sm:$0xff]   ;;  %v12383_v15 = vld [vmem:[%s14400_s14 + $0x1204] ss:$36 sps:$4 sm:$0xff]  }
  0xbb   : > { %8584 = vmatprep.subr.bf16.mxu1 %v12299_v16  ;;  %v12386_v16 = vld [vmem:[%s14400_s14 + $0x1684] ss:$36 sps:$4 sm:$0xff]  }
  0xbd   : > { %8544 = vmatpush1.bf16.msra.mxu0 %v12294_v17  ;;  %v14580_v17 = vcombine.low %v14523_v33, %v14523_v33  ;;  %v12402_v33 = vld [vmem:[%s14400_s14 + $0x12dc] ss:$36 sps:$4 sm:$0xff]  }
  0xbe   : > { %8585 = vmatpush1.bf16.msra.mxu1 %v12297_v18  ;;  %8545 = vmatprep.subr.bf16.mxu0 %v12302_v19  ;;  %v12381_v18 = vld [vmem:[%s14400_s14 + $0x1200] ss:$36 sps:$4 sm:$0xff]  }
  0xbf   : > { %8586 = vmatprep.subr.bf16.mxu1 %v12305_v20  ;;  %v12384_v19 = vld [vmem:[%s14400_s14 + $0x1680] ss:$36 sps:$4 sm:$0xff]   ;;  %v14586_v20 = vcombine.low %v14526_v34, %v14526_v34 }
  0xc0   : > { %v12405_v34 = vld [vmem:[%s14400_s14 + $0x175c] ss:$36 sps:$4 sm:$0xff]  }
  0xc1   : > { %8546 = vmatpush1.bf16.msra.mxu0 %v12300_v21  ;;  %v12390_v21 = vld [vmem:[%s14400_s14 + $0x124c] ss:$36 sps:$4 sm:$0xff]  }
  0xc2   : > { %8587 = vmatpush1.bf16.msra.mxu1 %v12303_v22  ;;  %8547 = vmatprep.subr.bf16.mxu0 %v12308_v23  ;;  %v12393_v22 = vld [vmem:[%s14400_s14 + $0x16cc] ss:$36 sps:$4 sm:$0xff]   ;;  %v14591_v23 = vld [vmem:[%s14415_s11 + $0x20] sm:$0xff] }
  0xc3   : > { %8588 = vmatprep.subr.bf16.mxu1 %v12311_v24  ;;  %v14594_v24 = vld [vmem:[%s14415_s11 + $0x28] sm:$0xff] }
  0xc5   : > { %8548 = vmatpush1.bf16.msra.mxu0 %v12306_v25  ;;  %v14598_v25 = vcombine.high %v14591_v23, %v14591_v23 }
  0xc6   : > { %8589 = vmatpush1.bf16.msra.mxu1 %v12309_v26  ;;  %8549 = vmatprep.subr.bf16.mxu0 %v12314_v27  ;;  %v14602_v26 = vcombine.high %v14594_v24, %v14594_v24  ;;  %v12388_v27 = vld [vmem:[%s14400_s14 + $0x1248] ss:$36 sps:$4 sm:$0xff]  }
  0xc7   : > { %8590 = vmatprep.subr.bf16.mxu1 %v12317_v28  ;;  %v12391_v28 = vld [vmem:[%s14400_s14 + $0x16c8] ss:$36 sps:$4 sm:$0xff]  }
  0xc9   : > { %8550 = vmatpush1.bf16.msra.mxu0 %v12312_v29  ;;  %v12396_v29 = vld [vmem:[%s14400_s14 + $0x1294] ss:$36 sps:$4 sm:$0xff]  }
  0xca   : > { %8591 = vmatpush1.bf16.msra.mxu1 %v12315_v30  ;;  %8551 = vmatprep.subr.bf16.mxu0 %v12320_v31  ;;  %v12399_v30 = vld [vmem:[%s14400_s14 + $0x1714] ss:$36 sps:$4 sm:$0xff]  }
  0xcb   : > { %8592 = vmatprep.subr.bf16.mxu1 %v12323_v32  ;;  %v12394_v31 = vld [vmem:[%s14400_s14 + $0x1290] ss:$36 sps:$4 sm:$0xff]  }
  0xcc   : > { %v12397_v32 = vld [vmem:[%s14400_s14 + $0x1710] ss:$36 sps:$4 sm:$0xff]  }
  0xcd   : > { %8552 = vmatpush1.bf16.msra.mxu0 %v12318_v35  ;;  %v12400_v35 = vld [vmem:[%s14400_s14 + $0x12d8] ss:$36 sps:$4 sm:$0xff]  }
  0xce   : > { %8593 = vmatpush1.bf16.msra.mxu1 %v12321_v36  ;;  %8553 = vmatprep.subr.bf16.mxu0 %v12326_v39  ;;  %v12403_v36 = vld [vmem:[%s14400_s14 + $0x1758] ss:$36 sps:$4 sm:$0xff]   ;;  %v12408_v39 = vld [vmem:[%s14400_s14 + $0x1324] ss:$36 sps:$4 sm:$0xff]  }
  0xcf   : > { %8594 = vmatprep.subr.bf16.mxu1 %v12329_v40  ;;  %v12411_v40 = vld [vmem:[%s14400_s14 + $0x17a4] ss:$36 sps:$4 sm:$0xff]  }
  0xd1   : > { %8554 = vmatpush1.bf16.msra.mxu0 %v12324_v41  ;;  %v12406_v41 = vld [vmem:[%s14400_s14 + $0x1320] ss:$36 sps:$4 sm:$0xff]  }
  0xd2   : > { %8595 = vmatpush1.bf16.msra.mxu1 %v12327_v42  ;;  %8555 = vmatprep.subr.bf16.mxu0 %v12332_v43  ;;  %v12409_v42 = vld [vmem:[%s14400_s14 + $0x17a0] ss:$36 sps:$4 sm:$0xff]   ;;  %v12414_v43 = vld [vmem:[%s14400_s14 + $0x136c] ss:$36 sps:$4 sm:$0xff]  }
  0xd3   : > { %8596 = vmatprep.subr.bf16.mxu1 %v12335_v44  ;;  %v12417_v44 = vld [vmem:[%s14400_s14 + $0x17ec] ss:$36 sps:$4 sm:$0xff]  }
  0xd5   : > { %8556 = vmatpush1.bf16.msra.mxu0 %v12330_v45  ;;  %v12412_v45 = vld [vmem:[%s14400_s14 + $0x1368] ss:$36 sps:$4 sm:$0xff]  }
  0xd6   : > { %8597 = vmatpush1.bf16.msra.mxu1 %v12333_v46  ;;  %8557 = vmatprep.subr.bf16.mxu0 %v12338_v47  ;;  %v12415_v46 = vld [vmem:[%s14400_s14 + $0x17e8] ss:$36 sps:$4 sm:$0xff]   ;;  %v12420_v47 = vld [vmem:[%s14400_s14 + $0x13b4] ss:$36 sps:$4 sm:$0xff]  }
  0xd7   : > { %8598 = vmatprep.subr.bf16.mxu1 %v12341_v49  ;;  %v12423_v49 = vld [vmem:[%s14400_s14 + $0x1834] ss:$36 sps:$4 sm:$0xff]  }
  0xd9   : > { %8558 = vmatpush1.bf16.msra.mxu0 %v12336_v50  ;;  %v12418_v50 = vld [vmem:[%s14400_s14 + $0x13b0] ss:$36 sps:$4 sm:$0xff]  }
  0xda   : > { %8599 = vmatpush1.bf16.msra.mxu1 %v12339_v51  ;;  %8559 = vmatprep.subr.bf16.mxu0 %v12344_v53  ;;  %v12421_v51 = vld [vmem:[%s14400_s14 + $0x1830] ss:$36 sps:$4 sm:$0xff]   ;;  %v12426_v53 = vld [vmem:[%s14400_s14 + $0x13fc] ss:$36 sps:$4 sm:$0xff]  }
  0xdb   : > { %8600 = vmatprep.subr.bf16.mxu1 %v12347_v54  ;;  %v12429_v54 = vld [vmem:[%s14400_s14 + $0x187c] ss:$36 sps:$4 sm:$0xff]  }
  0xdd   : > { %8560 = vmatpush1.bf16.msra.mxu0 %v12342_v55  ;;  %v12424_v55 = vld [vmem:[%s14400_s14 + $0x13f8] ss:$36 sps:$4 sm:$0xff]  }
  0xde   : > { %8601 = vmatpush1.bf16.msra.mxu1 %v12345_v56  ;;  %8561 = vmatprep.subr.bf16.mxu0 %v12350_v57  ;;  %v12427_v56 = vld [vmem:[%s14400_s14 + $0x1878] ss:$36 sps:$4 sm:$0xff]   ;;  %v12432_v57 = vld [vmem:[%s14400_s14 + $0x1444] ss:$36 sps:$4 sm:$0xff]  }
  0xdf   : > { %8602 = vmatprep.subr.bf16.mxu1 %v12353_v58  ;;  %v12435_v58 = vld [vmem:[%s14400_s14 + $0x18c4] ss:$36 sps:$4 sm:$0xff]  }
  0xe1   : > { %8562 = vmatpush1.bf16.msra.mxu0 %v12348_v59  ;;  %v12430_v59 = vld [vmem:[%s14400_s14 + $0x1440] ss:$36 sps:$4 sm:$0xff]  }
  0xe2   : > { %8603 = vmatpush1.bf16.msra.mxu1 %v12351_v60  ;;  %8563 = vmatprep.subr.bf16.mxu0 %v12356_v61  ;;  %v12433_v60 = vld [vmem:[%s14400_s14 + $0x18c0] ss:$36 sps:$4 sm:$0xff]   ;;  %v12438_v61 = vld [vmem:[%s14400_s14 + $0x148c] ss:$36 sps:$4 sm:$0xff]  }
  0xe3   : > { %8604 = vmatprep.subr.bf16.mxu1 %v12359_v62  ;;  %v12441_v62 = vld [vmem:[%s14400_s14 + $0x190c] ss:$36 sps:$4 sm:$0xff]  }
  0xe5   : > { %8564 = vmatpush1.bf16.msra.mxu0 %v12354_v63  ;;  %v12436_v63 = vld [vmem:[%s14400_s14 + $0x1488] ss:$36 sps:$4 sm:$0xff]  }
  0xe6   : > { %8605 = vmatpush1.bf16.msra.mxu1 %v12357_v0  ;;  %8565 = vmatprep.subr.bf16.mxu0 %v12362_v1  ;;  %v12439_v0 = vld [vmem:[%s14400_s14 + $0x1908] ss:$36 sps:$4 sm:$0xff]   ;;  %v12444_v1 = vld [vmem:[%s14400_s14 + $0x14d4] ss:$36 sps:$4 sm:$0xff]  }
  0xe7   : > { %8606 = vmatprep.subr.bf16.mxu1 %v12365_v2  ;;  %v12447_v2 = vld [vmem:[%s14400_s14 + $0x1954] ss:$36 sps:$4 sm:$0xff]  }
  0xe9   : > { %8566 = vmatpush1.bf16.msra.mxu0 %v12360_v3  ;;  %v12442_v3 = vld [vmem:[%s14400_s14 + $0x14d0] ss:$36 sps:$4 sm:$0xff]  }
  0xea   : > { %8607 = vmatpush1.bf16.msra.mxu1 %v12363_v4  ;;  %8567 = vmatprep.subr.bf16.mxu0 %v12368_v5  ;;  %v12445_v4 = vld [vmem:[%s14400_s14 + $0x1950] ss:$36 sps:$4 sm:$0xff]   ;;  %v12450_v5 = vld [vmem:[%s14400_s14 + $0x151c] ss:$36 sps:$4 sm:$0xff]  }
  0xeb   : > { %8608 = vmatprep.subr.bf16.mxu1 %v12371_v6  ;;  %v12453_v6 = vld [vmem:[%s14400_s14 + $0x199c] ss:$36 sps:$4 sm:$0xff]  }
  0xed   : > { %8568 = vmatpush1.bf16.msra.mxu0 %v12366_v9  ;;  %v12448_v9 = vld [vmem:[%s14400_s14 + $0x1518] ss:$36 sps:$4 sm:$0xff]  }
  0xee   : > { %8609 = vmatpush1.bf16.msra.mxu1 %v12369_v10  ;;  %8569 = vmatprep.subr.bf16.mxu0 %v12374_v11  ;;  %v12451_v10 = vld [vmem:[%s14400_s14 + $0x1998] ss:$36 sps:$4 sm:$0xff]   ;;  %v12456_v11 = vld [vmem:[%s14400_s14 + $0x1564] ss:$36 sps:$4 sm:$0xff]  }
  0xef   : > { %8610 = vmatprep.subr.bf16.mxu1 %v12377_v12  ;;  %v12459_v12 = vld [vmem:[%s14400_s14 + $0x19e4] ss:$36 sps:$4 sm:$0xff]  }
  0xf1   : > { %8570 = vmatpush1.bf16.msra.mxu0 %v12372_v13  ;;  %v12454_v13 = vld [vmem:[%s14400_s14 + $0x1560] ss:$36 sps:$4 sm:$0xff]  }
  0xf2   : > { %8611 = vmatpush1.bf16.msra.mxu1 %v12375_v14  ;;  %8621 = vmatprep.subr.bf16.mxu0 %v12383_v15  ;;  %v12457_v14 = vld [vmem:[%s14400_s14 + $0x19e0] ss:$36 sps:$4 sm:$0xff]   ;;  %v12462_v15 = vld [vmem:[%s14400_s14 + $0x15ac] ss:$36 sps:$4 sm:$0xff]  }
  0xf3   : > { %8662 = vmatprep.subr.bf16.mxu1 %v12386_v16  ;;  %v12465_v16 = vld [vmem:[%s14400_s14 + $0x1a2c] ss:$36 sps:$4 sm:$0xff]  }
  0xf4   : > { %8572 = vmatmul.mubr.bf16.vlgmr.msra.gmra.mrb[4].mxu0 %v14580_v17 }
  0xf5   : > { %8613 = vmatmul.mubr.bf16.vlgmr.msra.gmra.mrb[4].mxu1 %v14586_v20  ;;  %8622 = vmatpush1.bf16.msra.mxu0 %v12381_v18  ;;  %v12460_v18 = vld [vmem:[%s14400_s14 + $0x15a8] ss:$36 sps:$4 sm:$0xff]  }
  0xf6   : > { %8663 = vmatpush1.bf16.msra.mxu1 %v12384_v19  ;;  %8623 = vmatprep.subr.bf16.mxu0 %v12390_v21  ;;  %v12463_v19 = vld [vmem:[%s14400_s14 + $0x1a28] ss:$36 sps:$4 sm:$0xff]   ;;  %v12468_v21 = vld [vmem:[%s14400_s14 + $0x15f4] ss:$36 sps:$4 sm:$0xff]  }
  0xf7   : > { %8664 = vmatprep.subr.bf16.mxu1 %v12393_v22  ;;  %8653 = vmatprep.mubr.bf16.mxu0 %v14598_v25  ;;  %v12471_v22 = vld [vmem:[%s14400_s14 + $0x1a74] ss:$36 sps:$4 sm:$0xff]  }
  0xf8   : > { %8694 = vmatprep.mubr.bf16.mxu1 %v14602_v26 }
  0xf9   : > { %8624 = vmatpush1.bf16.msra.mxu0 %v12388_v27  ;;  %v12466_v27 = vld [vmem:[%s14400_s14 + $0x15f0] ss:$36 sps:$4 sm:$0xff]  }
  0xfa   : > { %8665 = vmatpush1.bf16.msra.mxu1 %v12391_v28  ;;  %8625 = vmatprep.subr.bf16.mxu0 %v12396_v29  ;;  %v12469_v28 = vld [vmem:[%s14400_s14 + $0x1a70] ss:$36 sps:$4 sm:$0xff]   ;;  %v12474_v29 = vld [vmem:[%s14400_s14 + $0x163c] ss:$36 sps:$4 sm:$0xff]  }
  0xfb   : > { %8666 = vmatprep.subr.bf16.mxu1 %v12399_v30  ;;  %v12477_v30 = vld [vmem:[%s14400_s14 + $0x1abc] ss:$36 sps:$4 sm:$0xff]  }
  0xfd   : > { %8626 = vmatpush1.bf16.msra.mxu0 %v12394_v31  ;;  %v12472_v31 = vld [vmem:[%s14400_s14 + $0x1638] ss:$36 sps:$4 sm:$0xff]  }
  0xfe   : > { %8667 = vmatpush1.bf16.msra.mxu1 %v12397_v32  ;;  %8627 = vmatprep.subr.bf16.mxu0 %v12402_v33  ;;  %v12475_v32 = vld [vmem:[%s14400_s14 + $0x1ab8] ss:$36 sps:$4 sm:$0xff]   ;;  %v12483_v33 = vld [vmem:[%s14400_s14 + $0x1b04] ss:$36 sps:$4 sm:$0xff]  }
  0xff   : > { %8668 = vmatprep.subr.bf16.mxu1 %v12405_v34  ;;  %v12486_v34 = vld [vmem:[%s14400_s14 + $0x1f84] ss:$36 sps:$4 sm:$0xff]  }
 0x101   : > { %8628 = vmatpush1.bf16.msra.mxu0 %v12400_v35  ;;  %v12481_v35 = vld [vmem:[%s14400_s14 + $0x1b00] ss:$36 sps:$4 sm:$0xff]  }
 0x102   : > { %8669 = vmatpush1.bf16.msra.mxu1 %v12403_v36  ;;  %8629 = vmatprep.subr.bf16.mxu0 %v12408_v39  ;;  %v12484_v36 = vld [vmem:[%s14400_s14 + $0x1f80] ss:$36 sps:$4 sm:$0xff]   ;;  %v14672_v39 = vcombine.low %v14591_v23, %v14591_v23 }
 0x103   : > { %8670 = vmatprep.subr.bf16.mxu1 %v12411_v40  ;;  %v14676_v40 = vcombine.low %v14594_v24, %v14594_v24 }
 0x105   : > { %8630 = vmatpush1.bf16.msra.mxu0 %v12406_v41  ;;  %v14679_v41 = vld [vmem:[%s14415_s11 + $0x30] sm:$0xff] }
 0x106   : > { %8671 = vmatpush1.bf16.msra.mxu1 %v12409_v42  ;;  %8631 = vmatprep.subr.bf16.mxu0 %v12414_v43  ;;  %v14682_v42 = vld [vmem:[%s14415_s11 + $0x38] sm:$0xff]  ;;  %v14688_v23 = vcombine.high %v14679_v41, %v14679_v41 }
 0x107   : > { %8672 = vmatprep.subr.bf16.mxu1 %v12417_v44  ;;  %v12490_v43 = vld [vmem:[%s14400_s14 + $0x1b4c] ss:$36 sps:$4 sm:$0xff]   ;;  %v14692_v24 = vcombine.high %v14682_v42, %v14682_v42 }
 0x108   : > { %v12493_v44 = vld [vmem:[%s14400_s14 + $0x1fcc] ss:$36 sps:$4 sm:$0xff]  }
 0x109   : > { %8632 = vmatpush1.bf16.msra.mxu0 %v12412_v45  ;;  %v12488_v45 = vld [vmem:[%s14400_s14 + $0x1b48] ss:$36 sps:$4 sm:$0xff]  }
 0x10a   : > { %8673 = vmatpush1.bf16.msra.mxu1 %v12415_v46  ;;  %8633 = vmatprep.subr.bf16.mxu0 %v12420_v47  ;;  %v12491_v46 = vld [vmem:[%s14400_s14 + $0x1fc8] ss:$36 sps:$4 sm:$0xff]   ;;  %v12496_v47 = vld [vmem:[%s14400_s14 + $0x1b94] ss:$36 sps:$4 sm:$0xff]  }
 0x10b   : > { %8674 = vmatprep.subr.bf16.mxu1 %v12423_v49  ;;  %v12499_v49 = vld [vmem:[%s14400_s14 + $0x2014] ss:$36 sps:$4 sm:$0xff]  }
 0x10d   : > { %8634 = vmatpush1.bf16.msra.mxu0 %v12418_v50  ;;  %v12494_v50 = vld [vmem:[%s14400_s14 + $0x1b90] ss:$36 sps:$4 sm:$0xff]  }
 0x10e   : > { %8675 = vmatpush1.bf16.msra.mxu1 %v12421_v51  ;;  %8635 = vmatprep.subr.bf16.mxu0 %v12426_v53  ;;  %v12497_v51 = vld [vmem:[%s14400_s14 + $0x2010] ss:$36 sps:$4 sm:$0xff]   ;;  %v12502_v53 = vld [vmem:[%s14400_s14 + $0x1bdc] ss:$36 sps:$4 sm:$0xff]  }
 0x10f   : > { %8676 = vmatprep.subr.bf16.mxu1 %v12429_v54  ;;  %v12505_v54 = vld [vmem:[%s14400_s14 + $0x205c] ss:$36 sps:$4 sm:$0xff]  }
 0x111   : > { %8636 = vmatpush1.bf16.msra.mxu0 %v12424_v55  ;;  %v12500_v55 = vld [vmem:[%s14400_s14 + $0x1bd8] ss:$36 sps:$4 sm:$0xff]  }
 0x112   : > { %8677 = vmatpush1.bf16.msra.mxu1 %v12427_v56  ;;  %8637 = vmatprep.subr.bf16.mxu0 %v12432_v57  ;;  %v12503_v56 = vld [vmem:[%s14400_s14 + $0x2058] ss:$36 sps:$4 sm:$0xff]   ;;  %v12508_v57 = vld [vmem:[%s14400_s14 + $0x1c24] ss:$36 sps:$4 sm:$0xff]  }
 0x113   : > { %8678 = vmatprep.subr.bf16.mxu1 %v12435_v58  ;;  %v12511_v58 = vld [vmem:[%s14400_s14 + $0x20a4] ss:$36 sps:$4 sm:$0xff]  }
 0x115   : > { %8638 = vmatpush1.bf16.msra.mxu0 %v12430_v59  ;;  %v12506_v59 = vld [vmem:[%s14400_s14 + $0x1c20] ss:$36 sps:$4 sm:$0xff]  }
 0x116   : > { %8679 = vmatpush1.bf16.msra.mxu1 %v12433_v60  ;;  %8639 = vmatprep.subr.bf16.mxu0 %v12438_v61  ;;  %v12509_v60 = vld [vmem:[%s14400_s14 + $0x20a0] ss:$36 sps:$4 sm:$0xff]   ;;  %v12514_v61 = vld [vmem:[%s14400_s14 + $0x1c6c] ss:$36 sps:$4 sm:$0xff]  }
 0x117   : > { %8680 = vmatprep.subr.bf16.mxu1 %v12441_v62  ;;  %v12517_v62 = vld [vmem:[%s14400_s14 + $0x20ec] ss:$36 sps:$4 sm:$0xff]  }
 0x119   : > { %8640 = vmatpush1.bf16.msra.mxu0 %v12436_v63  ;;  %v12512_v63 = vld [vmem:[%s14400_s14 + $0x1c68] ss:$36 sps:$4 sm:$0xff]  }
 0x11a   : > { %8681 = vmatpush1.bf16.msra.mxu1 %v12439_v0  ;;  %8641 = vmatprep.subr.bf16.mxu0 %v12444_v1  ;;  %v12515_v0 = vld [vmem:[%s14400_s14 + $0x20e8] ss:$36 sps:$4 sm:$0xff]   ;;  %v12520_v1 = vld [vmem:[%s14400_s14 + $0x1cb4] ss:$36 sps:$4 sm:$0xff]  }
 0x11b   : > { %8682 = vmatprep.subr.bf16.mxu1 %v12447_v2  ;;  %v12523_v2 = vld [vmem:[%s14400_s14 + $0x2134] ss:$36 sps:$4 sm:$0xff]  }
 0x11d   : > { %8642 = vmatpush1.bf16.msra.mxu0 %v12442_v3  ;;  %v12518_v3 = vld [vmem:[%s14400_s14 + $0x1cb0] ss:$36 sps:$4 sm:$0xff]  }
 0x11e   : > { %8683 = vmatpush1.bf16.msra.mxu1 %v12445_v4  ;;  %8643 = vmatprep.subr.bf16.mxu0 %v12450_v5  ;;  %v12521_v4 = vld [vmem:[%s14400_s14 + $0x2130] ss:$36 sps:$4 sm:$0xff]   ;;  %v12526_v5 = vld [vmem:[%s14400_s14 + $0x1cfc] ss:$36 sps:$4 sm:$0xff]  }
 0x11f   : > { %8684 = vmatprep.subr.bf16.mxu1 %v12453_v6  ;;  %v12529_v6 = vld [vmem:[%s14400_s14 + $0x217c] ss:$36 sps:$4 sm:$0xff]  }
 0x121   : > { %8644 = vmatpush1.bf16.msra.mxu0 %v12448_v9  ;;  %v12524_v9 = vld [vmem:[%s14400_s14 + $0x1cf8] ss:$36 sps:$4 sm:$0xff]  }
 0x122   : > { %8685 = vmatpush1.bf16.msra.mxu1 %v12451_v10  ;;  %8645 = vmatprep.subr.bf16.mxu0 %v12456_v11  ;;  %v12527_v10 = vld [vmem:[%s14400_s14 + $0x2178] ss:$36 sps:$4 sm:$0xff]   ;;  %v12532_v11 = vld [vmem:[%s14400_s14 + $0x1d44] ss:$36 sps:$4 sm:$0xff]  }
 0x123   : > { %8686 = vmatprep.subr.bf16.mxu1 %v12459_v12  ;;  %v12535_v12 = vld [vmem:[%s14400_s14 + $0x21c4] ss:$36 sps:$4 sm:$0xff]  }
 0x125   : > { %8646 = vmatpush1.bf16.msra.mxu0 %v12454_v13  ;;  %v12530_v13 = vld [vmem:[%s14400_s14 + $0x1d40] ss:$36 sps:$4 sm:$0xff]  }
 0x126   : > { %8687 = vmatpush1.bf16.msra.mxu1 %v12457_v14  ;;  %8647 = vmatprep.subr.bf16.mxu0 %v12462_v15  ;;  %v12533_v14 = vld [vmem:[%s14400_s14 + $0x21c0] ss:$36 sps:$4 sm:$0xff]   ;;  %v12538_v15 = vld [vmem:[%s14400_s14 + $0x1d8c] ss:$36 sps:$4 sm:$0xff]  }
 0x127   : > { %8688 = vmatprep.subr.bf16.mxu1 %v12465_v16  ;;  %v12541_v16 = vld [vmem:[%s14400_s14 + $0x220c] ss:$36 sps:$4 sm:$0xff]  }
 0x129   : > { %8648 = vmatpush1.bf16.msra.mxu0 %v12460_v18  ;;  %v12536_v18 = vld [vmem:[%s14400_s14 + $0x1d88] ss:$36 sps:$4 sm:$0xff]  }
 0x12a   : > { %8689 = vmatpush1.bf16.msra.mxu1 %v12463_v19  ;;  %8649 = vmatprep.subr.bf16.mxu0 %v12468_v21  ;;  %v12539_v19 = vld [vmem:[%s14400_s14 + $0x2208] ss:$36 sps:$4 sm:$0xff]   ;;  %v12544_v21 = vld [vmem:[%s14400_s14 + $0x1dd4] ss:$36 sps:$4 sm:$0xff]  }
 0x12b   : > { %8690 = vmatprep.subr.bf16.mxu1 %v12471_v22  ;;  %v12547_v22 = vld [vmem:[%s14400_s14 + $0x2254] ss:$36 sps:$4 sm:$0xff]  }
 0x12d   : > { %8650 = vmatpush1.bf16.msra.mxu0 %v12466_v27  ;;  %v12542_v27 = vld [vmem:[%s14400_s14 + $0x1dd0] ss:$36 sps:$4 sm:$0xff]  }
 0x12e   : > { %8691 = vmatpush1.bf16.msra.mxu1 %v12469_v28  ;;  %8651 = vmatprep.subr.bf16.mxu0 %v12474_v29  ;;  %v12545_v28 = vld [vmem:[%s14400_s14 + $0x2250] ss:$36 sps:$4 sm:$0xff]   ;;  %v12550_v29 = vld [vmem:[%s14400_s14 + $0x1e1c] ss:$36 sps:$4 sm:$0xff]  }
 0x12f   : > { %8692 = vmatprep.subr.bf16.mxu1 %v12477_v30  ;;  %v12553_v30 = vld [vmem:[%s14400_s14 + $0x229c] ss:$36 sps:$4 sm:$0xff]  }
 0x131   : > { %8652 = vmatpush1.bf16.msra.mxu0 %v12472_v31  ;;  %v12548_v31 = vld [vmem:[%s14400_s14 + $0x1e18] ss:$36 sps:$4 sm:$0xff]  }
 0x132   : > { %8693 = vmatpush1.bf16.msra.mxu1 %v12475_v32  ;;  %8703 = vmatprep.subr.bf16.mxu0 %v12483_v33  ;;  %v12551_v32 = vld [vmem:[%s14400_s14 + $0x2298] ss:$36 sps:$4 sm:$0xff]   ;;  %v12556_v33 = vld [vmem:[%s14400_s14 + $0x1e64] ss:$36 sps:$4 sm:$0xff]  }
 0x133   : > { %8744 = vmatprep.subr.bf16.mxu1 %v12486_v34  ;;  %v12559_v34 = vld [vmem:[%s14400_s14 + $0x22e4] ss:$36 sps:$4 sm:$0xff]  }
 0x134   : > { %8654 = vmatmul.mubr.bf16.vlgmr.msra.gmra.mrb[8].mxu0 %v14672_v39 }
 0x135   : > { %8695 = vmatmul.mubr.bf16.vlgmr.msra.gmra.mrb[8].mxu1 %v14676_v40  ;;  %8704 = vmatpush1.bf16.msra.mxu0 %v12481_v35  ;;  %v12554_v35 = vld [vmem:[%s14400_s14 + $0x1e60] ss:$36 sps:$4 sm:$0xff]  }
 0x136   : > { %8745 = vmatpush1.bf16.msra.mxu1 %v12484_v36  ;;  %8705 = vmatprep.subr.bf16.mxu0 %v12490_v43  ;;  %v12557_v36 = vld [vmem:[%s14400_s14 + $0x22e0] ss:$36 sps:$4 sm:$0xff]   ;;  %v12562_v43 = vld [vmem:[%s14400_s14 + $0x1eac] ss:$36 sps:$4 sm:$0xff]  }
 0x137   : > { %8746 = vmatprep.subr.bf16.mxu1 %v12493_v44  ;;  %8735 = vmatprep.mubr.bf16.mxu0 %v14688_v23  ;;  %v12565_v44 = vld [vmem:[%s14400_s14 + $0x232c] ss:$36 sps:$4 sm:$0xff]  }
 0x138   : > { %8776 = vmatprep.mubr.bf16.mxu1 %v14692_v24 }
 0x139   : > { %8706 = vmatpush1.bf16.msra.mxu0 %v12488_v45  ;;  %v12560_v45 = vld [vmem:[%s14400_s14 + $0x1ea8] ss:$36 sps:$4 sm:$0xff]  }
 0x13a   : > { %8747 = vmatpush1.bf16.msra.mxu1 %v12491_v46  ;;  %8707 = vmatprep.subr.bf16.mxu0 %v12496_v47  ;;  %v12563_v46 = vld [vmem:[%s14400_s14 + $0x2328] ss:$36 sps:$4 sm:$0xff]   ;;  %v12568_v47 = vld [vmem:[%s14400_s14 + $0x1ef4] ss:$36 sps:$4 sm:$0xff]  }
 0x13b   : > { %8748 = vmatprep.subr.bf16.mxu1 %v12499_v49  ;;  %v12571_v49 = vld [vmem:[%s14400_s14 + $0x2374] ss:$36 sps:$4 sm:$0xff]  }
 0x13d   : > { %8708 = vmatpush1.bf16.msra.mxu0 %v12494_v50  ;;  %v12566_v50 = vld [vmem:[%s14400_s14 + $0x1ef0] ss:$36 sps:$4 sm:$0xff]  }
 0x13e   : > { %8749 = vmatpush1.bf16.msra.mxu1 %v12497_v51  ;;  %8709 = vmatprep.subr.bf16.mxu0 %v12502_v53  ;;  %v12569_v51 = vld [vmem:[%s14400_s14 + $0x2370] ss:$36 sps:$4 sm:$0xff]   ;;  %v12574_v53 = vld [vmem:[%s14400_s14 + $0x1f3c] ss:$36 sps:$4 sm:$0xff]  }
 0x13f   : > { %8750 = vmatprep.subr.bf16.mxu1 %v12505_v54  ;;  %v12577_v54 = vld [vmem:[%s14400_s14 + $0x23bc] ss:$36 sps:$4 sm:$0xff]  }
 0x141   : > { %8710 = vmatpush1.bf16.msra.mxu0 %v12500_v55  ;;  %v12572_v55 = vld [vmem:[%s14400_s14 + $0x1f38] ss:$36 sps:$4 sm:$0xff]  }
 0x142   : > { %8751 = vmatpush1.bf16.msra.mxu1 %v12503_v56  ;;  %8711 = vmatprep.subr.bf16.mxu0 %v12508_v57  ;;  %v12575_v56 = vld [vmem:[%s14400_s14 + $0x23b8] ss:$36 sps:$4 sm:$0xff]   ;;  %v12583_v57 = vld [vmem:[%s14400_s14 + $0x2404] ss:$36 sps:$4 sm:$0xff]  }
 0x143   : > { %8752 = vmatprep.subr.bf16.mxu1 %v12511_v58  ;;  %v12586_v58 = vld [vmem:[%s14400_s14 + $0xc] ss:$36 sps:$4 sm:$0xff]  }
 0x145   : > { %8712 = vmatpush1.bf16.msra.mxu0 %v12506_v59  ;;  %v12581_v59 = vld [vmem:[%s14400_s14 + $0x2400] ss:$36 sps:$4 sm:$0xff]  }
 0x146   : > { %8753 = vmatpush1.bf16.msra.mxu1 %v12509_v60  ;;  %8713 = vmatprep.subr.bf16.mxu0 %v12514_v61  ;;  %v14761_v60 = vcombine.low %v14679_v41, %v14679_v41  ;;  %v14765_v61 = vcombine.low %v14682_v42, %v14682_v42  ;;  %v12588_v42 = vld [vmem:[%s14400_s14 + $0x2448] ss:$36 sps:$4 sm:$0xff]  }
 0x147   : > { %8754 = vmatprep.subr.bf16.mxu1 %v12517_v62  ;;  %v14768_v62 = vld [vmem:[%s14415_s11 + $0x40] sm:$0xff] }
 0x148   : > { %v14775_v41 = vcombine.high %v14768_v62, %v14768_v62 }
 0x149   : > { %8714 = vmatpush1.bf16.msra.mxu0 %v12512_v63  ;;  %v12584_v63 = vld [vmem:[%s14400_s14 + $0x8] ss:$36 sps:$4 sm:$0xff]  }
 0x14a   : > { %8755 = vmatpush1.bf16.msra.mxu1 %v12515_v0  ;;  %8715 = vmatprep.subr.bf16.mxu0 %v12520_v1  ;;  %v12590_v0 = vld [vmem:[%s14400_s14 + $0x244c] ss:$36 sps:$4 sm:$0xff]   ;;  %v12593_v1 = vld [vmem:[%s14400_s14 + $0x54] ss:$36 sps:$4 sm:$0xff]  }
 0x14b   : > { %8756 = vmatprep.subr.bf16.mxu1 %v12523_v2  ;;  %v12591_v2 = vld [vmem:[%s14400_s14 + $0x50] ss:$36 sps:$4 sm:$0xff]  }
 0x14d   : > { %8716 = vmatpush1.bf16.msra.mxu0 %v12518_v3  ;;  %v12596_v3 = vld [vmem:[%s14400_s14 + $0x2494] ss:$36 sps:$4 sm:$0xff]  }
 0x14e   : > { %8757 = vmatpush1.bf16.msra.mxu1 %v12521_v4  ;;  %8717 = vmatprep.subr.bf16.mxu0 %v12526_v5  ;;  %v12599_v4 = vld [vmem:[%s14400_s14 + $0x9c] ss:$36 sps:$4 sm:$0xff]   ;;  %v12594_v5 = vld [vmem:[%s14400_s14 + $0x2490] ss:$36 sps:$4 sm:$0xff]  }
 0x14f   : > { %8758 = vmatprep.subr.bf16.mxu1 %v12529_v6  ;;  %v12597_v6 = vld [vmem:[%s14400_s14 + $0x98] ss:$36 sps:$4 sm:$0xff]  }
 0x151   : > { %8718 = vmatpush1.bf16.msra.mxu0 %v12524_v9  ;;  %v12602_v9 = vld [vmem:[%s14400_s14 + $0x24dc] ss:$36 sps:$4 sm:$0xff]  }
 0x152   : > { %8759 = vmatpush1.bf16.msra.mxu1 %v12527_v10  ;;  %8719 = vmatprep.subr.bf16.mxu0 %v12532_v11  ;;  %v12605_v10 = vld [vmem:[%s14400_s14 + $0xe4] ss:$36 sps:$4 sm:$0xff]   ;;  %v12600_v11 = vld [vmem:[%s14400_s14 + $0x24d8] ss:$36 sps:$4 sm:$0xff]  }
 0x153   : > { %8760 = vmatprep.subr.bf16.mxu1 %v12535_v12  ;;  %v12603_v12 = vld [vmem:[%s14400_s14 + $0xe0] ss:$36 sps:$4 sm:$0xff]  }
 0x155   : > { %8720 = vmatpush1.bf16.msra.mxu0 %v12530_v13  ;;  %v12608_v13 = vld [vmem:[%s14400_s14 + $0x2524] ss:$36 sps:$4 sm:$0xff]  }
 0x156   : > { %8761 = vmatpush1.bf16.msra.mxu1 %v12533_v14  ;;  %8721 = vmatprep.subr.bf16.mxu0 %v12538_v15  ;;  %v12611_v14 = vld [vmem:[%s14400_s14 + $0x12c] ss:$36 sps:$4 sm:$0xff]   ;;  %v12606_v15 = vld [vmem:[%s14400_s14 + $0x2520] ss:$36 sps:$4 sm:$0xff]  }
 0x157   : > { %8762 = vmatprep.subr.bf16.mxu1 %v12541_v16  ;;  %v12609_v16 = vld [vmem:[%s14400_s14 + $0x128] ss:$36 sps:$4 sm:$0xff]  }
 0x159   : > { %8722 = vmatpush1.bf16.msra.mxu0 %v12536_v18  ;;  %v12614_v18 = vld [vmem:[%s14400_s14 + $0x256c] ss:$36 sps:$4 sm:$0xff]  }
 0x15a   : > { %8763 = vmatpush1.bf16.msra.mxu1 %v12539_v19  ;;  %8723 = vmatprep.subr.bf16.mxu0 %v12544_v21  ;;  %v12617_v19 = vld [vmem:[%s14400_s14 + $0x174] ss:$36 sps:$4 sm:$0xff]   ;;  %v12612_v21 = vld [vmem:[%s14400_s14 + $0x2568] ss:$36 sps:$4 sm:$0xff]  }
 0x15b   : > { %8764 = vmatprep.subr.bf16.mxu1 %v12547_v22  ;;  %v12615_v22 = vld [vmem:[%s14400_s14 + $0x170] ss:$36 sps:$4 sm:$0xff]  }
 0x15d   : > { %8724 = vmatpush1.bf16.msra.mxu0 %v12542_v27  ;;  %v12620_v27 = vld [vmem:[%s14400_s14 + $0x25b4] ss:$36 sps:$4 sm:$0xff]  }
 0x15e   : > { %8765 = vmatpush1.bf16.msra.mxu1 %v12545_v28  ;;  %8725 = vmatprep.subr.bf16.mxu0 %v12550_v29  ;;  %v12623_v28 = vld [vmem:[%s14400_s14 + $0x1bc] ss:$36 sps:$4 sm:$0xff]  }
 0x15f   : > { %8766 = vmatprep.subr.bf16.mxu1 %v12553_v30 }
 0x161   : > { %8726 = vmatpush1.bf16.msra.mxu0 %v12548_v31  ;;  %v12618_v31 = vld [vmem:[%s14400_s14 + $0x25b0] ss:$36 sps:$4 sm:$0xff]  }
 0x162   : > { %8767 = vmatpush1.bf16.msra.mxu1 %v12551_v32  ;;  %8727 = vmatprep.subr.bf16.mxu0 %v12556_v33  ;;  %v12621_v32 = vld [vmem:[%s14400_s14 + $0x1b8] ss:$36 sps:$4 sm:$0xff]  }
 0x163   : > { %8768 = vmatprep.subr.bf16.mxu1 %v12559_v34 }
 0x165   : > { %8728 = vmatpush1.bf16.msra.mxu0 %v12554_v35 }
 0x166   : > { %8769 = vmatpush1.bf16.msra.mxu1 %v12557_v36  ;;  %8729 = vmatprep.subr.bf16.mxu0 %v12562_v43 }
 0x167   : > { %8770 = vmatprep.subr.bf16.mxu1 %v12565_v44 }
 0x169   : > { %8730 = vmatpush1.bf16.msra.mxu0 %v12560_v45 }
 0x16a   : > { %8771 = vmatpush1.bf16.msra.mxu1 %v12563_v46  ;;  %8731 = vmatprep.subr.bf16.mxu0 %v12568_v47  ;;  %v12626_v46 = vld [vmem:[%s14400_s14 + $0x25fc] ss:$36 sps:$4 sm:$0xff]   ;;  %v12629_v47 = vld [vmem:[%s14400_s14 + $0x204] ss:$36 sps:$4 sm:$0xff]  }
 0x16b   : > { %8772 = vmatprep.subr.bf16.mxu1 %v12571_v49 }
 0x16d   : > { %8732 = vmatpush1.bf16.msra.mxu0 %v12566_v50  ;;  %v12624_v50 = vld [vmem:[%s14400_s14 + $0x25f8] ss:$36 sps:$4 sm:$0xff]  }
 0x16e   : > { %8773 = vmatpush1.bf16.msra.mxu1 %v12569_v51  ;;  %8733 = vmatprep.subr.bf16.mxu0 %v12574_v53  ;;  %v12627_v51 = vld [vmem:[%s14400_s14 + $0x200] ss:$36 sps:$4 sm:$0xff]  }
 0x16f   : > { %8774 = vmatprep.subr.bf16.mxu1 %v12577_v54  ;;  %v12632_v53 = vld [vmem:[%s14400_s14 + $0x2644] ss:$36 sps:$4 sm:$0xff]   ;;  %v12635_v54 = vld [vmem:[%s14400_s14 + $0x24c] ss:$36 sps:$4 sm:$0xff]  }
 0x171   : > { %8734 = vmatpush1.bf16.msra.mxu0 %v12572_v55  ;;  %v12630_v55 = vld [vmem:[%s14400_s14 + $0x2640] ss:$36 sps:$4 sm:$0xff]  }
 0x172   : > { %8775 = vmatpush1.bf16.msra.mxu1 %v12575_v56  ;;  %8785 = vmatprep.subr.bf16.mxu0 %v12583_v57  ;;  %v12633_v56 = vld [vmem:[%s14400_s14 + $0x248] ss:$36 sps:$4 sm:$0xff]  }
 0x173   : > { %8826 = vmatprep.subr.bf16.mxu1 %v12586_v58  ;;  %v12638_v57 = vld [vmem:[%s14400_s14 + $0x268c] ss:$36 sps:$4 sm:$0xff]   ;;  %v12641_v58 = vld [vmem:[%s14400_s14 + $0x294] ss:$36 sps:$4 sm:$0xff]  }
 0x174   : > { %8736 = vmatmul.mubr.bf16.vlgmr.msra.gmra.mrb[12].mxu0 %v14761_v60 }
 0x175   : > { %8777 = vmatmul.mubr.bf16.vlgmr.msra.gmra.mrb[12].mxu1 %v14765_v61  ;;  %8786 = vmatpush1.bf16.msra.mxu0 %v12581_v59  ;;  %v12636_v59 = vld [vmem:[%s14400_s14 + $0x2688] ss:$36 sps:$4 sm:$0xff]  }
 0x176   : > { %8827 = vmatpush1.bf16.msra.mxu1 %v12584_v63  ;;  %8787 = vmatprep.subr.bf16.mxu0 %v12590_v0  ;;  %v12639_v63 = vld [vmem:[%s14400_s14 + $0x290] ss:$36 sps:$4 sm:$0xff]  }
 0x177   : > { %8828 = vmatprep.subr.bf16.mxu1 %v12593_v1  ;;  %8817 = vmatprep.mubr.bf16.mxu0 %v14775_v41  ;;  %v12644_v0 = vld [vmem:[%s14400_s14 + $0x26d4] ss:$36 sps:$4 sm:$0xff]   ;;  %v12647_v1 = vld [vmem:[%s14400_s14 + $0x2dc] ss:$36 sps:$4 sm:$0xff]  }
 0x178   : > { %8858 = vmatprep.mubr.bf16.mxu1 %v14465_v48 }
 0x179   : > { %8788 = vmatpush1.bf16.msra.mxu0 %v12588_v42  ;;  %v12642_v42 = vld [vmem:[%s14400_s14 + $0x26d0] ss:$36 sps:$4 sm:$0xff]  }
 0x17a   : > { %8829 = vmatpush1.bf16.msra.mxu1 %v12591_v2  ;;  %8789 = vmatprep.subr.bf16.mxu0 %v12596_v3  ;;  %v12645_v2 = vld [vmem:[%s14400_s14 + $0x2d8] ss:$36 sps:$4 sm:$0xff]  }
 0x17b   : > { %8830 = vmatprep.subr.bf16.mxu1 %v12599_v4  ;;  %v12650_v3 = vld [vmem:[%s14400_s14 + $0x271c] ss:$36 sps:$4 sm:$0xff]   ;;  %v12653_v4 = vld [vmem:[%s14400_s14 + $0x324] ss:$36 sps:$4 sm:$0xff]  }
 0x17d   : > { %8790 = vmatpush1.bf16.msra.mxu0 %v12594_v5  ;;  %v12648_v5 = vld [vmem:[%s14400_s14 + $0x2718] ss:$36 sps:$4 sm:$0xff]  }
 0x17e   : > { %8831 = vmatpush1.bf16.msra.mxu1 %v12597_v6  ;;  %8791 = vmatprep.subr.bf16.mxu0 %v12602_v9  ;;  %v12651_v6 = vld [vmem:[%s14400_s14 + $0x320] ss:$36 sps:$4 sm:$0xff]  }
 0x17f   : > { %8832 = vmatprep.subr.bf16.mxu1 %v12605_v10  ;;  %v12656_v9 = vld [vmem:[%s14400_s14 + $0x2764] ss:$36 sps:$4 sm:$0xff]   ;;  %v12659_v10 = vld [vmem:[%s14400_s14 + $0x36c] ss:$36 sps:$4 sm:$0xff]  }
 0x181   : > { %8792 = vmatpush1.bf16.msra.mxu0 %v12600_v11  ;;  %v12654_v11 = vld [vmem:[%s14400_s14 + $0x2760] ss:$36 sps:$4 sm:$0xff]  }
 0x182   : > { %8833 = vmatpush1.bf16.msra.mxu1 %v12603_v12  ;;  %8793 = vmatprep.subr.bf16.mxu0 %v12608_v13  ;;  %v12657_v12 = vld [vmem:[%s14400_s14 + $0x368] ss:$36 sps:$4 sm:$0xff]  }
 0x183   : > { %8834 = vmatprep.subr.bf16.mxu1 %v12611_v14  ;;  %v12662_v13 = vld [vmem:[%s14400_s14 + $0x27ac] ss:$36 sps:$4 sm:$0xff]   ;;  %v12665_v14 = vld [vmem:[%s14400_s14 + $0x3b4] ss:$36 sps:$4 sm:$0xff]  }
 0x185   : > { %8794 = vmatpush1.bf16.msra.mxu0 %v12606_v15  ;;  %v12660_v15 = vld [vmem:[%s14400_s14 + $0x27a8] ss:$36 sps:$4 sm:$0xff]  }
 0x186   : > { %8835 = vmatpush1.bf16.msra.mxu1 %v12609_v16  ;;  %8795 = vmatprep.subr.bf16.mxu0 %v12614_v18  ;;  %v12663_v16 = vld [vmem:[%s14400_s14 + $0x3b0] ss:$36 sps:$4 sm:$0xff]  }
 0x187   : > { %8836 = vmatprep.subr.bf16.mxu1 %v12617_v19  ;;  %v8491_v29 = vpop.f32.mrb[0].mxu0  ;;  %v12668_v18 = vld [vmem:[%s14400_s14 + $0x27f4] ss:$36 sps:$4 sm:$0xff]   ;;  %v12671_v19 = vld [vmem:[%s14400_s14 + $0x3fc] ss:$36 sps:$4 sm:$0xff]  }
 0x188   : > { %v8532_v30 = vpop.f32.mrb[0].mxu1  ;;  %v8493_v34 = vpop.f32.mrb[1].mxu0 }
 0x189   : > { %v14803_v33 = vadd.f32 %v8532_v30, %v8491_v29  ;;  %v8534_v35 = vpop.f32.mrb[1].mxu1  ;;  %v8495_v43 = vpop.f32.mrb[2].mxu0  ;;  %8796 = vmatpush1.bf16.msra.mxu0 %v12612_v21  ;;  %v12666_v21 = vld [vmem:[%s14400_s14 + $0x27f0] ss:$36 sps:$4 sm:$0xff]   ;;  %v12672_v29 = vld [vmem:[%s14400_s14 + $0x2838] ss:$36 sps:$4 sm:$0xff]  }
 0x18a   : > { %v14805_v36 = vadd.f32 %v8534_v35, %v8493_v34  ;;  %8837 = vmatpush1.bf16.msra.mxu1 %v12615_v22  ;;  %v8536_v44 = vpop.f32.mrb[2].mxu1  ;;  %v8496_v45 = vpop.f32.mrb[3].mxu0  ;;  %8797 = vmatprep.subr.bf16.mxu0 %v12620_v27  ;;  %v12669_v22 = vld [vmem:[%s14400_s14 + $0x3f8] ss:$36 sps:$4 sm:$0xff]   ;;  %v12675_v30 = vld [vmem:[%s14400_s14 + $0x440] ss:$36 sps:$4 sm:$0xff]   ;;  %v14849_v43 = vcombine.low %v14768_v62, %v14768_v62 }
 0x18b   : > { %8838 = vmatprep.subr.bf16.mxu1 %v12623_v28  ;;  %v8537_v49 = vpop.f32.mrb[3].mxu1  ;;  %v12674_v27 = vld [vmem:[%s14400_s14 + $0x283c] ss:$36 sps:$4 sm:$0xff]   ;;  %v12677_v28 = vld [vmem:[%s14400_s14 + $0x444] ss:$36 sps:$4 sm:$0xff]  }
 0x18c   : > { %v12680_v34 = vld [vmem:[%s14400_s14 + $0x488] ss:$36 sps:$4 sm:$0xff]   ;;  %v12688_v44 = vld [vmem:[%s14400_s14 + $0x4d4] ss:$36 sps:$4 sm:$0xff]   ;;  %v12697_v49 = vld [vmem:[%s14400_s14 + $0x99c] ss:$36 sps:$4 sm:$0xff]  }
 0x18d   : > { %8798 = vmatpush1.bf16.msra.mxu0 %v12618_v31  ;;  %v12682_v31 = vld [vmem:[%s14400_s14 + $0x48c] ss:$36 sps:$4 sm:$0xff]   ;;  %v12691_v45 = vld [vmem:[%s14400_s14 + $0x954] ss:$36 sps:$4 sm:$0xff]  }
 0x18e   : > { %8839 = vmatpush1.bf16.msra.mxu1 %v12621_v32  ;;  %8799 = vmatprep.subr.bf16.mxu0 %v12626_v46  ;;  %v12685_v32 = vld [vmem:[%s14400_s14 + $0x90c] ss:$36 sps:$4 sm:$0xff]  }
 0x18f   : > { %8840 = vmatprep.subr.bf16.mxu1 %v12629_v47  ;;  %v12683_v35 = vld [vmem:[%s14400_s14 + $0x908] ss:$36 sps:$4 sm:$0xff]   ;;  %v12686_v46 = vld [vmem:[%s14400_s14 + $0x4d0] ss:$36 sps:$4 sm:$0xff]   ;;  %v12694_v47 = vld [vmem:[%s14400_s14 + $0x51c] ss:$36 sps:$4 sm:$0xff]  }
 0x190   : > { %v12689_v62 = vld [vmem:[%s14400_s14 + $0x950] ss:$36 sps:$4 sm:$0xff]  }
 0x191   : > { %8800 = vmatpush1.bf16.msra.mxu0 %v12624_v50  ;;  %v12692_v50 = vld [vmem:[%s14400_s14 + $0x518] ss:$36 sps:$4 sm:$0xff]  }
 0x192   : > { %8841 = vmatpush1.bf16.msra.mxu1 %v12627_v51  ;;  %8801 = vmatprep.subr.bf16.mxu0 %v12632_v53  ;;  %v12695_v51 = vld [vmem:[%s14400_s14 + $0x998] ss:$36 sps:$4 sm:$0xff]   ;;  %v12700_v53 = vld [vmem:[%s14400_s14 + $0x564] ss:$36 sps:$4 sm:$0xff]  }
 0x193   : > { %8842 = vmatprep.subr.bf16.mxu1 %v12635_v54  ;;  %v12703_v54 = vld [vmem:[%s14400_s14 + $0x9e4] ss:$36 sps:$4 sm:$0xff]  }
 0x195   : > { %8802 = vmatpush1.bf16.msra.mxu0 %v12630_v55  ;;  %v12698_v55 = vld [vmem:[%s14400_s14 + $0x560] ss:$36 sps:$4 sm:$0xff]  }
 0x196   : > { %8843 = vmatpush1.bf16.msra.mxu1 %v12633_v56  ;;  %8803 = vmatprep.subr.bf16.mxu0 %v12638_v57  ;;  %v12701_v56 = vld [vmem:[%s14400_s14 + $0x9e0] ss:$36 sps:$4 sm:$0xff]   ;;  %v12706_v57 = vld [vmem:[%s14400_s14 + $0x5ac] ss:$36 sps:$4 sm:$0xff]  }
 0x197   : > { %8844 = vmatprep.subr.bf16.mxu1 %v12641_v58  ;;  %v12709_v58 = vld [vmem:[%s14400_s14 + $0xa2c] ss:$36 sps:$4 sm:$0xff]  }
 0x199   : > { %8804 = vmatpush1.bf16.msra.mxu0 %v12636_v59  ;;  %v12704_v59 = vld [vmem:[%s14400_s14 + $0x5a8] ss:$36 sps:$4 sm:$0xff]  }
 0x19a   : > { %8845 = vmatpush1.bf16.msra.mxu1 %v12639_v63  ;;  %8805 = vmatprep.subr.bf16.mxu0 %v12644_v0  ;;  %v12707_v63 = vld [vmem:[%s14400_s14 + $0xa28] ss:$36 sps:$4 sm:$0xff]   ;;  %v12712_v0 = vld [vmem:[%s14400_s14 + $0x5f4] ss:$36 sps:$4 sm:$0xff]  }
 0x19b   : > { %8846 = vmatprep.subr.bf16.mxu1 %v12647_v1  ;;  %v12715_v1 = vld [vmem:[%s14400_s14 + $0xa74] ss:$36 sps:$4 sm:$0xff]  }
 0x19d   : > { %8806 = vmatpush1.bf16.msra.mxu0 %v12642_v42  ;;  %v12710_v42 = vld [vmem:[%s14400_s14 + $0x5f0] ss:$36 sps:$4 sm:$0xff]  }
 0x19e   : > { %8847 = vmatpush1.bf16.msra.mxu1 %v12645_v2  ;;  %8807 = vmatprep.subr.bf16.mxu0 %v12650_v3  ;;  %v12713_v2 = vld [vmem:[%s14400_s14 + $0xa70] ss:$36 sps:$4 sm:$0xff]   ;;  %v12718_v3 = vld [vmem:[%s14400_s14 + $0x63c] ss:$36 sps:$4 sm:$0xff]  }
 0x19f   : > { %8848 = vmatprep.subr.bf16.mxu1 %v12653_v4  ;;  %v12721_v4 = vld [vmem:[%s14400_s14 + $0xabc] ss:$36 sps:$4 sm:$0xff]  }
 0x1a1   : > { %8808 = vmatpush1.bf16.msra.mxu0 %v12648_v5 }
 0x1a2   : > { %8849 = vmatpush1.bf16.msra.mxu1 %v12651_v6  ;;  %8809 = vmatprep.subr.bf16.mxu0 %v12656_v9  ;;  %v12716_v9 = vld [vmem:[%s14400_s14 + $0x638] ss:$36 sps:$4 sm:$0xff]  }
 0x1a3   : > { %8850 = vmatprep.subr.bf16.mxu1 %v12659_v10  ;;  %v12719_v10 = vld [vmem:[%s14400_s14 + $0xab8] ss:$36 sps:$4 sm:$0xff]  }
 0x1a5   : > { %8810 = vmatpush1.bf16.msra.mxu0 %v12654_v11 }
 0x1a6   : > { %8851 = vmatpush1.bf16.msra.mxu1 %v12657_v12  ;;  %8811 = vmatprep.subr.bf16.mxu0 %v12662_v13 }
 0x1a7   : > { %8852 = vmatprep.subr.bf16.mxu1 %v12665_v14 }
 0x1a9   : > { %8812 = vmatpush1.bf16.msra.mxu0 %v12660_v15 }
 0x1aa   : > { %8853 = vmatpush1.bf16.msra.mxu1 %v12663_v16  ;;  %8813 = vmatprep.subr.bf16.mxu0 %v12668_v18 }
 0x1ab   : > { %8854 = vmatprep.subr.bf16.mxu1 %v12671_v19 }
 0x1ad   : > { %8814 = vmatpush1.bf16.msra.mxu0 %v12666_v21  ;;  %v12727_v21 = vld [vmem:[%s14400_s14 + $0xb04] ss:$36 sps:$4 sm:$0xff]  }
 0x1ae   : > { %8855 = vmatpush1.bf16.msra.mxu1 %v12669_v22  ;;  %8815 = vmatprep.subr.bf16.mxu0 %v12674_v27 }
 0x1af   : > { %8856 = vmatprep.subr.bf16.mxu1 %v12677_v28  ;;  %v12725_v28 = vld [vmem:[%s14400_s14 + $0xb00] ss:$36 sps:$4 sm:$0xff]  }
 0x1b1   : > { %8816 = vmatpush1.bf16.msra.mxu0 %v12672_v29  ;;  %v12730_v29 = vld [vmem:[%s14400_s14 + $0x6cc] ss:$36 sps:$4 sm:$0xff]  }
 0x1b2   : > { %8857 = vmatpush1.bf16.msra.mxu1 %v12675_v30  ;;  %8867 = vmatprep.subr.bf16.mxu0 %v12682_v31  ;;  %v12733_v30 = vld [vmem:[%s14400_s14 + $0xb4c] ss:$36 sps:$4 sm:$0xff]  }
 0x1b3   : > { %8908 = vmatprep.subr.bf16.mxu1 %v12685_v32  ;;  %v12728_v31 = vld [vmem:[%s14400_s14 + $0x6c8] ss:$36 sps:$4 sm:$0xff]  }
 0x1b4   : > { %8818 = vmatmul.mubr.bf16.vlgmr.msra.gmra.mrb[16].mxu0 %v14849_v43  ;;  %v12731_v32 = vld [vmem:[%s14400_s14 + $0xb48] ss:$36 sps:$4 sm:$0xff]  }
 0x1b5   : > { %8859 = vmatmul.mubr.bf16.vlgmr.msra.gmra.mrb[16].mxu1 %v14492_v7  ;;  %8868 = vmatpush1.bf16.msra.mxu0 %v12680_v34  ;;  %v12736_v34 = vld [vmem:[%s14400_s14 + $0x714] ss:$36 sps:$4 sm:$0xff]  }
 0x1b6   : > { %8909 = vmatpush1.bf16.msra.mxu1 %v12683_v35  ;;  %8869 = vmatprep.subr.bf16.mxu0 %v12688_v44  ;;  %v12739_v35 = vld [vmem:[%s14400_s14 + $0xb94] ss:$36 sps:$4 sm:$0xff]  }
 0x1b7   : > { %8910 = vmatprep.subr.bf16.mxu1 %v12691_v45  ;;  %8899 = vmatprep.mubr.bf16.mxu0 %v14470_v52  ;;  %v12734_v44 = vld [vmem:[%s14400_s14 + $0x710] ss:$36 sps:$4 sm:$0xff]  }
 0x1b8   : > { %8940 = vmatprep.mubr.bf16.mxu1 %v14532_v37  ;;  %v12737_v45 = vld [vmem:[%s14400_s14 + $0xb90] ss:$36 sps:$4 sm:$0xff]  }
 0x1b9   : > { %8870 = vmatpush1.bf16.msra.mxu0 %v12686_v46  ;;  %v12742_v46 = vld [vmem:[%s14400_s14 + $0x75c] ss:$36 sps:$4 sm:$0xff]  }
 0x1ba   : > { %8911 = vmatpush1.bf16.msra.mxu1 %v12689_v62  ;;  %8871 = vmatprep.subr.bf16.mxu0 %v12694_v47  ;;  %v12745_v62 = vld [vmem:[%s14400_s14 + $0xbdc] ss:$36 sps:$4 sm:$0xff]  }
 0x1bb   : > { %8912 = vmatprep.subr.bf16.mxu1 %v12697_v49  ;;  %v12740_v47 = vld [vmem:[%s14400_s14 + $0x758] ss:$36 sps:$4 sm:$0xff]  }
 0x1bc   : > { %v12743_v49 = vld [vmem:[%s14400_s14 + $0xbd8] ss:$36 sps:$4 sm:$0xff]  }
 0x1bd   : > { %8872 = vmatpush1.bf16.msra.mxu0 %v12692_v50  ;;  %v12748_v50 = vld [vmem:[%s14400_s14 + $0x7a4] ss:$36 sps:$4 sm:$0xff]  }
 0x1be   : > { %8913 = vmatpush1.bf16.msra.mxu1 %v12695_v51  ;;  %8873 = vmatprep.subr.bf16.mxu0 %v12700_v53  ;;  %v12751_v51 = vld [vmem:[%s14400_s14 + $0xc24] ss:$36 sps:$4 sm:$0xff]  }
 0x1bf   : > { %8914 = vmatprep.subr.bf16.mxu1 %v12703_v54  ;;  %v12746_v53 = vld [vmem:[%s14400_s14 + $0x7a0] ss:$36 sps:$4 sm:$0xff]  }
 0x1c0   : > { %v12749_v54 = vld [vmem:[%s14400_s14 + $0xc20] ss:$36 sps:$4 sm:$0xff]  }
 0x1c1   : > { %8874 = vmatpush1.bf16.msra.mxu0 %v12698_v55  ;;  %v12754_v55 = vld [vmem:[%s14400_s14 + $0x7ec] ss:$36 sps:$4 sm:$0xff]  }
 0x1c2   : > { %8915 = vmatpush1.bf16.msra.mxu1 %v12701_v56  ;;  %8875 = vmatprep.subr.bf16.mxu0 %v12706_v57  ;;  %v12757_v56 = vld [vmem:[%s14400_s14 + $0xc6c] ss:$36 sps:$4 sm:$0xff]  }
 0x1c3   : > { %8916 = vmatprep.subr.bf16.mxu1 %v12709_v58  ;;  %v12752_v57 = vld [vmem:[%s14400_s14 + $0x7e8] ss:$36 sps:$4 sm:$0xff]  }
 0x1c4   : > { %v12755_v58 = vld [vmem:[%s14400_s14 + $0xc68] ss:$36 sps:$4 sm:$0xff]  }
 0x1c5   : > { %8876 = vmatpush1.bf16.msra.mxu0 %v12704_v59  ;;  %v12760_v59 = vld [vmem:[%s14400_s14 + $0x834] ss:$36 sps:$4 sm:$0xff]  }
 0x1c6   : > { %8917 = vmatpush1.bf16.msra.mxu1 %v12707_v63  ;;  %8877 = vmatprep.subr.bf16.mxu0 %v12712_v0  ;;  %v12763_v63 = vld [vmem:[%s14400_s14 + $0xcb4] ss:$36 sps:$4 sm:$0xff]  }
 0x1c7   : > { %8918 = vmatprep.subr.bf16.mxu1 %v12715_v1  ;;  %v8573_v5 = vpop.f32.mrb[4].mxu0  ;;  %v12758_v0 = vld [vmem:[%s14400_s14 + $0x830] ss:$36 sps:$4 sm:$0xff]  }
 0x1c8   : > { %v8614_v6 = vpop.f32.mrb[4].mxu1  ;;  %v8574_v11 = vadd.f32 %v8573_v5, %v14803_v33  ;;  %v8575_v12 = vpop.f32.mrb[5].mxu0  ;;  %v12724_v33 = vld [vmem:[%s14400_s14 + $0x684] ss:$36 sps:$4 sm:$0xff]   ;;  %v12761_v1 = vld [vmem:[%s14400_s14 + $0xcb0] ss:$36 sps:$4 sm:$0xff]  }
 0x1c9   : > { %v8616_v13 = vpop.f32.mrb[5].mxu1  ;;  %v8576_v14 = vadd.f32 %v8575_v12, %v14805_v36  ;;  %v8577_v15 = vpop.f32.mrb[6].mxu0  ;;  %8878 = vmatpush1.bf16.msra.mxu0 %v12710_v42  ;;  %v12722_v36 = vld [vmem:[%s14400_s14 + $0x680] ss:$36 sps:$4 sm:$0xff]   ;;  %v12781_v12 = vld [vmem:[%s14400_s14 + $0x120c] ss:$36 sps:$4 sm:$0xff]  }
 0x1ca   : > { %8919 = vmatpush1.bf16.msra.mxu1 %v12713_v2  ;;  %v8618_v16 = vpop.f32.mrb[6].mxu1  ;;  %v14881_v18 = vadd.f32 %v8614_v6, %v8574_v11  ;;  %v8578_v19 = vpop.f32.mrb[7].mxu0  ;;  %8879 = vmatprep.subr.bf16.mxu0 %v12718_v3  ;;  %v12766_v42 = vld [vmem:[%s14400_s14 + $0x87c] ss:$36 sps:$4 sm:$0xff]   ;;  %v12772_v5 = vld [vmem:[%s14400_s14 + $0x8c4] ss:$36 sps:$4 sm:$0xff]  }
 0x1cb   : > { %8920 = vmatprep.subr.bf16.mxu1 %v12721_v4  ;;  %v8619_v22 = vpop.f32.mrb[7].mxu1  ;;  %v14885_v27 = vadd.f32 %v8616_v13, %v8576_v14  ;;  %v12769_v2 = vld [vmem:[%s14400_s14 + $0xcfc] ss:$36 sps:$4 sm:$0xff]   ;;  %v12775_v6 = vld [vmem:[%s14400_s14 + $0xd44] ss:$36 sps:$4 sm:$0xff]  }
 0x1cc   : > { %v12764_v3 = vld [vmem:[%s14400_s14 + $0x878] ss:$36 sps:$4 sm:$0xff]   ;;  %v12778_v11 = vld [vmem:[%s14400_s14 + $0xd8c] ss:$36 sps:$4 sm:$0xff]  }
 0x1cd   : > { %8880 = vmatpush1.bf16.msra.mxu0 %v12716_v9  ;;  %v12767_v4 = vld [vmem:[%s14400_s14 + $0xcf8] ss:$36 sps:$4 sm:$0xff]   ;;  %v12770_v9 = vld [vmem:[%s14400_s14 + $0x8c0] ss:$36 sps:$4 sm:$0xff]   ;;  %v12776_v13 = vld [vmem:[%s14400_s14 + $0xd88] ss:$36 sps:$4 sm:$0xff]  }
 0x1ce   : > { %8921 = vmatpush1.bf16.msra.mxu1 %v12719_v10  ;;  %8881 = vmatprep.subr.bf16.mxu0 %v12724_v33  ;;  %v12773_v10 = vld [vmem:[%s14400_s14 + $0xd40] ss:$36 sps:$4 sm:$0xff]   ;;  %v12779_v14 = vld [vmem:[%s14400_s14 + $0x1208] ss:$36 sps:$4 sm:$0xff]   ;;  %v12784_v15 = vld [vmem:[%s14400_s14 + $0xdd4] ss:$36 sps:$4 sm:$0xff]  }
 0x1cf   : > { %8922 = vmatprep.subr.bf16.mxu1 %v12727_v21  ;;  %v12787_v16 = vld [vmem:[%s14400_s14 + $0x1254] ss:$36 sps:$4 sm:$0xff]   ;;  %v12790_v21 = vld [vmem:[%s14400_s14 + $0xe1c] ss:$36 sps:$4 sm:$0xff]  }
 0x1d0   : > { %v12782_v19 = vld [vmem:[%s14400_s14 + $0xdd0] ss:$36 sps:$4 sm:$0xff]   ;;  %v12793_v22 = vld [vmem:[%s14400_s14 + $0x129c] ss:$36 sps:$4 sm:$0xff]  }
 0x1d1   : > { %8882 = vmatpush1.bf16.msra.mxu0 %v12722_v36  ;;  %v12785_v33 = vld [vmem:[%s14400_s14 + $0x1250] ss:$36 sps:$4 sm:$0xff]   ;;  %v12788_v36 = vld [vmem:[%s14400_s14 + $0xe18] ss:$36 sps:$4 sm:$0xff]  }
 0x1d2   : > { %8923 = vmatpush1.bf16.msra.mxu1 %v12725_v28  ;;  %8883 = vmatprep.subr.bf16.mxu0 %v12730_v29  ;;  %v12791_v28 = vld [vmem:[%s14400_s14 + $0x1298] ss:$36 sps:$4 sm:$0xff]   ;;  %v12796_v29 = vld [vmem:[%s14400_s14 + $0xe64] ss:$36 sps:$4 sm:$0xff]  }
 0x1d3   : > { %8924 = vmatprep.subr.bf16.mxu1 %v12733_v30  ;;  %v12799_v30 = vld [vmem:[%s14400_s14 + $0x12e4] ss:$36 sps:$4 sm:$0xff]  }
 0x1d5   : > { %8884 = vmatpush1.bf16.msra.mxu0 %v12728_v31  ;;  %v12794_v31 = vld [vmem:[%s14400_s14 + $0xe60] ss:$36 sps:$4 sm:$0xff]  }
 0x1d6   : > { %8925 = vmatpush1.bf16.msra.mxu1 %v12731_v32  ;;  %8885 = vmatprep.subr.bf16.mxu0 %v12736_v34  ;;  %v12797_v32 = vld [vmem:[%s14400_s14 + $0x12e0] ss:$36 sps:$4 sm:$0xff]   ;;  %v12802_v34 = vld [vmem:[%s14400_s14 + $0xeac] ss:$36 sps:$4 sm:$0xff]  }
 0x1d7   : > { %8926 = vmatprep.subr.bf16.mxu1 %v12739_v35  ;;  %v12805_v35 = vld [vmem:[%s14400_s14 + $0x132c] ss:$36 sps:$4 sm:$0xff]  }
 0x1d9   : > { %8886 = vmatpush1.bf16.msra.mxu0 %v12734_v44  ;;  %v12800_v44 = vld [vmem:[%s14400_s14 + $0xea8] ss:$36 sps:$4 sm:$0xff]  }
 0x1da   : > { %8927 = vmatpush1.bf16.msra.mxu1 %v12737_v45  ;;  %8887 = vmatprep.subr.bf16.mxu0 %v12742_v46  ;;  %v12803_v45 = vld [vmem:[%s14400_s14 + $0x1328] ss:$36 sps:$4 sm:$0xff]   ;;  %v12808_v46 = vld [vmem:[%s14400_s14 + $0xef4] ss:$36 sps:$4 sm:$0xff]  }
 0x1db   : > { %8928 = vmatprep.subr.bf16.mxu1 %v12745_v62  ;;  %v12811_v62 = vld [vmem:[%s14400_s14 + $0x1374] ss:$36 sps:$4 sm:$0xff]  }
 0x1dd   : > { %8888 = vmatpush1.bf16.msra.mxu0 %v12740_v47  ;;  %v12806_v47 = vld [vmem:[%s14400_s14 + $0xef0] ss:$36 sps:$4 sm:$0xff]  }
 0x1de   : > { %8929 = vmatpush1.bf16.msra.mxu1 %v12743_v49  ;;  %8889 = vmatprep.subr.bf16.mxu0 %v12748_v50  ;;  %v12809_v49 = vld [vmem:[%s14400_s14 + $0x1370] ss:$36 sps:$4 sm:$0xff]   ;;  %v12814_v50 = vld [vmem:[%s14400_s14 + $0xf3c] ss:$36 sps:$4 sm:$0xff]  }
 0x1df   : > { %8930 = vmatprep.subr.bf16.mxu1 %v12751_v51  ;;  %v12817_v51 = vld [vmem:[%s14400_s14 + $0x13bc] ss:$36 sps:$4 sm:$0xff]  }
 0x1e1   : > { %8890 = vmatpush1.bf16.msra.mxu0 %v12746_v53 }
 0x1e2   : > { %8931 = vmatpush1.bf16.msra.mxu1 %v12749_v54  ;;  %8891 = vmatprep.subr.bf16.mxu0 %v12754_v55  ;;  %v12812_v55 = vld [vmem:[%s14400_s14 + $0xf38] ss:$36 sps:$4 sm:$0xff]  }
 0x1e3   : > { %8932 = vmatprep.subr.bf16.mxu1 %v12757_v56  ;;  %v12815_v56 = vld [vmem:[%s14400_s14 + $0x13b8] ss:$36 sps:$4 sm:$0xff]  }
 0x1e5   : > { %8892 = vmatpush1.bf16.msra.mxu0 %v12752_v57 }
 0x1e6   : > { %8933 = vmatpush1.bf16.msra.mxu1 %v12755_v58  ;;  %8893 = vmatprep.subr.bf16.mxu0 %v12760_v59 }
 0x1e7   : > { %8934 = vmatprep.subr.bf16.mxu1 %v12763_v63  ;;  %v12820_v63 = vld [vmem:[%s14400_s14 + $0xf84] ss:$36 sps:$4 sm:$0xff]  }
 0x1e9   : > { %8894 = vmatpush1.bf16.msra.mxu0 %v12758_v0 }
 0x1ea   : > { %8935 = vmatpush1.bf16.msra.mxu1 %v12761_v1  ;;  %8895 = vmatprep.subr.bf16.mxu0 %v12766_v42 }
 0x1eb   : > { %8936 = vmatprep.subr.bf16.mxu1 %v12769_v2 }
 0x1ed   : > { %8896 = vmatpush1.bf16.msra.mxu0 %v12764_v3 }
 0x1ee   : > { %8937 = vmatpush1.bf16.msra.mxu1 %v12767_v4  ;;  %8897 = vmatprep.subr.bf16.mxu0 %v12772_v5 }
 0x1ef   : > { %8938 = vmatprep.subr.bf16.mxu1 %v12775_v6  ;;  %v12821_v6 = vld [vmem:[%s14400_s14 + $0x1400] ss:$36 sps:$4 sm:$0xff]  }
 0x1f1   : > { %8898 = vmatpush1.bf16.msra.mxu0 %v12770_v9  ;;  %v12826_v9 = vld [vmem:[%s14400_s14 + $0xfcc] ss:$36 sps:$4 sm:$0xff]  }
 0x1f2   : > { %8939 = vmatpush1.bf16.msra.mxu1 %v12773_v10  ;;  %8949 = vmatprep.subr.bf16.mxu0 %v12778_v11  ;;  %v12829_v10 = vld [vmem:[%s14400_s14 + $0x144c] ss:$36 sps:$4 sm:$0xff]  }
 0x1f3   : > { %8990 = vmatprep.subr.bf16.mxu1 %v12781_v12  ;;  %v12824_v11 = vld [vmem:[%s14400_s14 + $0xfc8] ss:$36 sps:$4 sm:$0xff]  }
 0x1f4   : > { %8900 = vmatmul.mubr.bf16.vlgmr.msra.gmra.mrb[20].mxu0 %v14494_v8  ;;  %v12827_v12 = vld [vmem:[%s14400_s14 + $0x1448] ss:$36 sps:$4 sm:$0xff]  }
 0x1f5   : > { %8941 = vmatmul.mubr.bf16.vlgmr.msra.gmra.mrb[20].mxu1 %v14580_v17  ;;  %8950 = vmatpush1.bf16.msra.mxu0 %v12776_v13  ;;  %v12832_v13 = vld [vmem:[%s14400_s14 + $0x1014] ss:$36 sps:$4 sm:$0xff]  }
 0x1f6   : > { %8991 = vmatpush1.bf16.msra.mxu1 %v12779_v14  ;;  %8951 = vmatprep.subr.bf16.mxu0 %v12784_v15  ;;  %v12835_v14 = vld [vmem:[%s14400_s14 + $0x1494] ss:$36 sps:$4 sm:$0xff]  }
 0x1f7   : > { %8992 = vmatprep.subr.bf16.mxu1 %v12787_v16  ;;  %8981 = vmatprep.mubr.bf16.mxu0 %v14536_v38  ;;  %v12830_v15 = vld [vmem:[%s14400_s14 + $0x1010] ss:$36 sps:$4 sm:$0xff]  }
 0x1f8   : > { %9022 = vmatprep.mubr.bf16.mxu1 %v14598_v25  ;;  %v12833_v16 = vld [vmem:[%s14400_s14 + $0x1490] ss:$36 sps:$4 sm:$0xff]  }
 0x1f9   : > { %8952 = vmatpush1.bf16.msra.mxu0 %v12782_v19  ;;  %v12838_v19 = vld [vmem:[%s14400_s14 + $0x105c] ss:$36 sps:$4 sm:$0xff]  }
 0x1fa   : > { %8993 = vmatpush1.bf16.msra.mxu1 %v12785_v33  ;;  %8953 = vmatprep.subr.bf16.mxu0 %v12790_v21  ;;  %v12841_v33 = vld [vmem:[%s14400_s14 + $0x14dc] ss:$36 sps:$4 sm:$0xff]  }
 0x1fb   : > { %8994 = vmatprep.subr.bf16.mxu1 %v12793_v22  ;;  %v12836_v21 = vld [vmem:[%s14400_s14 + $0x1058] ss:$36 sps:$4 sm:$0xff]  }
 0x1fc   : > { %v12839_v22 = vld [vmem:[%s14400_s14 + $0x14d8] ss:$36 sps:$4 sm:$0xff]  }
 0x1fd   : > { %8954 = vmatpush1.bf16.msra.mxu0 %v12788_v36  ;;  %v12844_v36 = vld [vmem:[%s14400_s14 + $0x10a4] ss:$36 sps:$4 sm:$0xff]  }
 0x1fe   : > { %8995 = vmatpush1.bf16.msra.mxu1 %v12791_v28  ;;  %8955 = vmatprep.subr.bf16.mxu0 %v12796_v29  ;;  %v12847_v28 = vld [vmem:[%s14400_s14 + $0x1524] ss:$36 sps:$4 sm:$0xff]  }
 0x1ff   : > { %8996 = vmatprep.subr.bf16.mxu1 %v12799_v30  ;;  %v12842_v29 = vld [vmem:[%s14400_s14 + $0x10a0] ss:$36 sps:$4 sm:$0xff]  }
 0x200   : > { %v12845_v30 = vld [vmem:[%s14400_s14 + $0x1520] ss:$36 sps:$4 sm:$0xff]  }
 0x201   : > { %8956 = vmatpush1.bf16.msra.mxu0 %v12794_v31  ;;  %v12850_v31 = vld [vmem:[%s14400_s14 + $0x10ec] ss:$36 sps:$4 sm:$0xff]  }
 0x202   : > { %8997 = vmatpush1.bf16.msra.mxu1 %v12797_v32  ;;  %8957 = vmatprep.subr.bf16.mxu0 %v12802_v34  ;;  %v12853_v32 = vld [vmem:[%s14400_s14 + $0x156c] ss:$36 sps:$4 sm:$0xff]  }
 0x203   : > { %8998 = vmatprep.subr.bf16.mxu1 %v12805_v35  ;;  %v12848_v34 = vld [vmem:[%s14400_s14 + $0x10e8] ss:$36 sps:$4 sm:$0xff]  }
 0x204   : > { %v12851_v35 = vld [vmem:[%s14400_s14 + $0x1568] ss:$36 sps:$4 sm:$0xff]  }
 0x205   : > { %8958 = vmatpush1.bf16.msra.mxu0 %v12800_v44  ;;  %v12856_v44 = vld [vmem:[%s14400_s14 + $0x1134] ss:$36 sps:$4 sm:$0xff]  }
 0x206   : > { %8999 = vmatpush1.bf16.msra.mxu1 %v12803_v45  ;;  %8959 = vmatprep.subr.bf16.mxu0 %v12808_v46  ;;  %v12859_v45 = vld [vmem:[%s14400_s14 + $0x15b4] ss:$36 sps:$4 sm:$0xff]  }
 0x207   : > { %9000 = vmatprep.subr.bf16.mxu1 %v12811_v62  ;;  %v8655_v53 = vpop.f32.mrb[8].mxu0  ;;  %v12854_v46 = vld [vmem:[%s14400_s14 + $0x1130] ss:$36 sps:$4 sm:$0xff]  }
 0x208   : > { %v8696_v54 = vpop.f32.mrb[8].mxu1  ;;  %v8656_v57 = vadd.f32 %v8655_v53, %v14881_v18  ;;  %v8657_v58 = vpop.f32.mrb[9].mxu0  ;;  %v12823_v18 = vld [vmem:[%s14400_s14 + $0x1404] ss:$36 sps:$4 sm:$0xff]   ;;  %v12857_v62 = vld [vmem:[%s14400_s14 + $0x15b0] ss:$36 sps:$4 sm:$0xff]  }
 0x209   : > { %v8698_v59 = vpop.f32.mrb[9].mxu1  ;;  %v8658_v0 = vadd.f32 %v8657_v58, %v14885_v27  ;;  %v8659_v1 = vpop.f32.mrb[10].mxu0  ;;  %8960 = vmatpush1.bf16.msra.mxu0 %v12806_v47  ;;  %v12818_v27 = vld [vmem:[%s14400_s14 + $0xf80] ss:$36 sps:$4 sm:$0xff]   ;;  %v12877_v58 = vld [vmem:[%s14400_s14 + $0x1b0c] ss:$36 sps:$4 sm:$0xff]  }
 0x20a   : > { %9001 = vmatpush1.bf16.msra.mxu1 %v12809_v49  ;;  %v8700_v42 = vpop.f32.mrb[10].mxu1  ;;  %v14956_v2 = vadd.f32 %v8696_v54, %v8656_v57  ;;  %v8660_v3 = vpop.f32.mrb[11].mxu0  ;;  %8961 = vmatprep.subr.bf16.mxu0 %v12814_v50  ;;  %v12862_v47 = vld [vmem:[%s14400_s14 + $0x117c] ss:$36 sps:$4 sm:$0xff]   ;;  %v12868_v53 = vld [vmem:[%s14400_s14 + $0x11c4] ss:$36 sps:$4 sm:$0xff]  }
 0x20b   : > { %9002 = vmatprep.subr.bf16.mxu1 %v12817_v51  ;;  %v8701_v4 = vpop.f32.mrb[11].mxu1  ;;  %v14959_v5 = vadd.f32 %v8698_v59, %v8658_v0  ;;  %v12865_v49 = vld [vmem:[%s14400_s14 + $0x15fc] ss:$36 sps:$4 sm:$0xff]   ;;  %v12871_v54 = vld [vmem:[%s14400_s14 + $0x1644] ss:$36 sps:$4 sm:$0xff]  }
 0x20c   : > { %v12860_v50 = vld [vmem:[%s14400_s14 + $0x1178] ss:$36 sps:$4 sm:$0xff]   ;;  %v12874_v57 = vld [vmem:[%s14400_s14 + $0x168c] ss:$36 sps:$4 sm:$0xff]  }
 0x20d   : > { %8962 = vmatpush1.bf16.msra.mxu0 %v12812_v55  ;;  %v12863_v51 = vld [vmem:[%s14400_s14 + $0x15f8] ss:$36 sps:$4 sm:$0xff]   ;;  %v12866_v55 = vld [vmem:[%s14400_s14 + $0x11c0] ss:$36 sps:$4 sm:$0xff]   ;;  %v12872_v59 = vld [vmem:[%s14400_s14 + $0x1688] ss:$36 sps:$4 sm:$0xff]  }
 0x20e   : > { %9003 = vmatpush1.bf16.msra.mxu1 %v12815_v56  ;;  %8963 = vmatprep.subr.bf16.mxu0 %v12820_v63  ;;  %v12869_v56 = vld [vmem:[%s14400_s14 + $0x1640] ss:$36 sps:$4 sm:$0xff]   ;;  %v12875_v63 = vld [vmem:[%s14400_s14 + $0x1b08] ss:$36 sps:$4 sm:$0xff]   ;;  %v12880_v0 = vld [vmem:[%s14400_s14 + $0x16d4] ss:$36 sps:$4 sm:$0xff]  }
 0x20f   : > { %9004 = vmatprep.subr.bf16.mxu1 %v12823_v18  ;;  %v12883_v1 = vld [vmem:[%s14400_s14 + $0x1b54] ss:$36 sps:$4 sm:$0xff]   ;;  %v12886_v18 = vld [vmem:[%s14400_s14 + $0x171c] ss:$36 sps:$4 sm:$0xff]  }
 0x210   : > { %v12878_v42 = vld [vmem:[%s14400_s14 + $0x16d0] ss:$36 sps:$4 sm:$0xff]   ;;  %v12889_v4 = vld [vmem:[%s14400_s14 + $0x1b9c] ss:$36 sps:$4 sm:$0xff]  }
 0x211   : > { %8964 = vmatpush1.bf16.msra.mxu0 %v12818_v27  ;;  %v12881_v3 = vld [vmem:[%s14400_s14 + $0x1b50] ss:$36 sps:$4 sm:$0xff]   ;;  %v12884_v27 = vld [vmem:[%s14400_s14 + $0x1718] ss:$36 sps:$4 sm:$0xff]  }
 0x212   : > { %9005 = vmatpush1.bf16.msra.mxu1 %v12821_v6  ;;  %8965 = vmatprep.subr.bf16.mxu0 %v12826_v9  ;;  %v12887_v6 = vld [vmem:[%s14400_s14 + $0x1b98] ss:$36 sps:$4 sm:$0xff]   ;;  %v12892_v9 = vld [vmem:[%s14400_s14 + $0x1764] ss:$36 sps:$4 sm:$0xff]  }
 0x213   : > { %9006 = vmatprep.subr.bf16.mxu1 %v12829_v10  ;;  %v12895_v10 = vld [vmem:[%s14400_s14 + $0x1be4] ss:$36 sps:$4 sm:$0xff]  }
 0x215   : > { %8966 = vmatpush1.bf16.msra.mxu0 %v12824_v11  ;;  %v12890_v11 = vld [vmem:[%s14400_s14 + $0x1760] ss:$36 sps:$4 sm:$0xff]  }
 0x216   : > { %9007 = vmatpush1.bf16.msra.mxu1 %v12827_v12  ;;  %8967 = vmatprep.subr.bf16.mxu0 %v12832_v13  ;;  %v12893_v12 = vld [vmem:[%s14400_s14 + $0x1be0] ss:$36 sps:$4 sm:$0xff]   ;;  %v12898_v13 = vld [vmem:[%s14400_s14 + $0x17ac] ss:$36 sps:$4 sm:$0xff]  }
 0x217   : > { %9008 = vmatprep.subr.bf16.mxu1 %v12835_v14  ;;  %v12901_v14 = vld [vmem:[%s14400_s14 + $0x1c2c] ss:$36 sps:$4 sm:$0xff]  }
 0x219   : > { %8968 = vmatpush1.bf16.msra.mxu0 %v12830_v15  ;;  %v12896_v15 = vld [vmem:[%s14400_s14 + $0x17a8] ss:$36 sps:$4 sm:$0xff]  }
 0x21a   : > { %9009 = vmatpush1.bf16.msra.mxu1 %v12833_v16  ;;  %8969 = vmatprep.subr.bf16.mxu0 %v12838_v19  ;;  %v12899_v16 = vld [vmem:[%s14400_s14 + $0x1c28] ss:$36 sps:$4 sm:$0xff]   ;;  %v12904_v19 = vld [vmem:[%s14400_s14 + $0x17f4] ss:$36 sps:$4 sm:$0xff]  }
 0x21b   : > { %9010 = vmatprep.subr.bf16.mxu1 %v12841_v33  ;;  %v12907_v33 = vld [vmem:[%s14400_s14 + $0x1c74] ss:$36 sps:$4 sm:$0xff]  }
 0x21d   : > { %8970 = vmatpush1.bf16.msra.mxu0 %v12836_v21  ;;  %v12902_v21 = vld [vmem:[%s14400_s14 + $0x17f0] ss:$36 sps:$4 sm:$0xff]  }
 0x21e   : > { %9011 = vmatpush1.bf16.msra.mxu1 %v12839_v22  ;;  %8971 = vmatprep.subr.bf16.mxu0 %v12844_v36  ;;  %v12905_v22 = vld [vmem:[%s14400_s14 + $0x1c70] ss:$36 sps:$4 sm:$0xff]   ;;  %v12910_v36 = vld [vmem:[%s14400_s14 + $0x183c] ss:$36 sps:$4 sm:$0xff]  }
 0x21f   : > { %9012 = vmatprep.subr.bf16.mxu1 %v12847_v28  ;;  %v12913_v28 = vld [vmem:[%s14400_s14 + $0x1cbc] ss:$36 sps:$4 sm:$0xff]  }
 0x221   : > { %8972 = vmatpush1.bf16.msra.mxu0 %v12842_v29 }
 0x222   : > { %9013 = vmatpush1.bf16.msra.mxu1 %v12845_v30  ;;  %8973 = vmatprep.subr.bf16.mxu0 %v12850_v31  ;;  %v12908_v31 = vld [vmem:[%s14400_s14 + $0x1838] ss:$36 sps:$4 sm:$0xff]  }
 0x223   : > { %9014 = vmatprep.subr.bf16.mxu1 %v12853_v32  ;;  %v12911_v32 = vld [vmem:[%s14400_s14 + $0x1cb8] ss:$36 sps:$4 sm:$0xff]  }
 0x225   : > { %8974 = vmatpush1.bf16.msra.mxu0 %v12848_v34 }
 0x226   : > { %9015 = vmatpush1.bf16.msra.mxu1 %v12851_v35  ;;  %8975 = vmatprep.subr.bf16.mxu0 %v12856_v44 }
 0x227   : > { %9016 = vmatprep.subr.bf16.mxu1 %v12859_v45 }
 0x229   : > { %8976 = vmatpush1.bf16.msra.mxu0 %v12854_v46 }
 0x22a   : > { %9017 = vmatpush1.bf16.msra.mxu1 %v12857_v62  ;;  %8977 = vmatprep.subr.bf16.mxu0 %v12862_v47 }
 0x22b   : > { %9018 = vmatprep.subr.bf16.mxu1 %v12865_v49 }
 0x22d   : > { %8978 = vmatpush1.bf16.msra.mxu0 %v12860_v50  ;;  %v12919_v50 = vld [vmem:[%s14400_s14 + $0x1d04] ss:$36 sps:$4 sm:$0xff]  }
 0x22e   : > { %9019 = vmatpush1.bf16.msra.mxu1 %v12863_v51  ;;  %8979 = vmatprep.subr.bf16.mxu0 %v12868_v53 }
 0x22f   : > { %9020 = vmatprep.subr.bf16.mxu1 %v12871_v54  ;;  %v12917_v54 = vld [vmem:[%s14400_s14 + $0x1d00] ss:$36 sps:$4 sm:$0xff]  }
 0x231   : > { %8980 = vmatpush1.bf16.msra.mxu0 %v12866_v55  ;;  %v12922_v55 = vld [vmem:[%s14400_s14 + $0x18cc] ss:$36 sps:$4 sm:$0xff]  }
 0x232   : > { %9021 = vmatpush1.bf16.msra.mxu1 %v12869_v56  ;;  %9031 = vmatprep.subr.bf16.mxu0 %v12874_v57  ;;  %v12925_v56 = vld [vmem:[%s14400_s14 + $0x1d4c] ss:$36 sps:$4 sm:$0xff]  }
 0x233   : > { %9072 = vmatprep.subr.bf16.mxu1 %v12877_v58  ;;  %v12920_v57 = vld [vmem:[%s14400_s14 + $0x18c8] ss:$36 sps:$4 sm:$0xff]  }
 0x234   : > { %8982 = vmatmul.mubr.bf16.vlgmr.msra.gmra.mrb[24].mxu0 %v14586_v20  ;;  %v12923_v58 = vld [vmem:[%s14400_s14 + $0x1d48] ss:$36 sps:$4 sm:$0xff]  }
 0x235   : > { %9023 = vmatmul.mubr.bf16.vlgmr.msra.gmra.mrb[24].mxu1 %v14672_v39  ;;  %9032 = vmatpush1.bf16.msra.mxu0 %v12872_v59  ;;  %v12928_v59 = vld [vmem:[%s14400_s14 + $0x1914] ss:$36 sps:$4 sm:$0xff]  }
 0x236   : > { %9073 = vmatpush1.bf16.msra.mxu1 %v12875_v63  ;;  %9033 = vmatprep.subr.bf16.mxu0 %v12880_v0  ;;  %v12931_v63 = vld [vmem:[%s14400_s14 + $0x1d94] ss:$36 sps:$4 sm:$0xff]  }
 0x237   : > { %9074 = vmatprep.subr.bf16.mxu1 %v12883_v1  ;;  %9063 = vmatprep.mubr.bf16.mxu0 %v14602_v26  ;;  %v12926_v0 = vld [vmem:[%s14400_s14 + $0x1910] ss:$36 sps:$4 sm:$0xff]  }
 0x238   : > { %9104 = vmatprep.mubr.bf16.mxu1 %v14688_v23  ;;  %v12929_v1 = vld [vmem:[%s14400_s14 + $0x1d90] ss:$36 sps:$4 sm:$0xff]  }
 0x239   : > { %9034 = vmatpush1.bf16.msra.mxu0 %v12878_v42  ;;  %v12934_v42 = vld [vmem:[%s14400_s14 + $0x195c] ss:$36 sps:$4 sm:$0xff]  }
 0x23a   : > { %9075 = vmatpush1.bf16.msra.mxu1 %v12881_v3  ;;  %9035 = vmatprep.subr.bf16.mxu0 %v12886_v18  ;;  %v12937_v3 = vld [vmem:[%s14400_s14 + $0x1ddc] ss:$36 sps:$4 sm:$0xff]  }
 0x23b   : > { %9076 = vmatprep.subr.bf16.mxu1 %v12889_v4  ;;  %v12932_v18 = vld [vmem:[%s14400_s14 + $0x1958] ss:$36 sps:$4 sm:$0xff]  }
 0x23c   : > { %v12935_v4 = vld [vmem:[%s14400_s14 + $0x1dd8] ss:$36 sps:$4 sm:$0xff]  }
 0x23d   : > { %9036 = vmatpush1.bf16.msra.mxu0 %v12884_v27  ;;  %v12940_v27 = vld [vmem:[%s14400_s14 + $0x19a4] ss:$36 sps:$4 sm:$0xff]  }
 0x23e   : > { %9077 = vmatpush1.bf16.msra.mxu1 %v12887_v6  ;;  %9037 = vmatprep.subr.bf16.mxu0 %v12892_v9  ;;  %v12943_v6 = vld [vmem:[%s14400_s14 + $0x1e24] ss:$36 sps:$4 sm:$0xff]  }
 0x23f   : > { %9078 = vmatprep.subr.bf16.mxu1 %v12895_v10  ;;  %v12938_v9 = vld [vmem:[%s14400_s14 + $0x19a0] ss:$36 sps:$4 sm:$0xff]  }
 0x240   : > { %v12941_v10 = vld [vmem:[%s14400_s14 + $0x1e20] ss:$36 sps:$4 sm:$0xff]  }
 0x241   : > { %9038 = vmatpush1.bf16.msra.mxu0 %v12890_v11  ;;  %v12946_v11 = vld [vmem:[%s14400_s14 + $0x19ec] ss:$36 sps:$4 sm:$0xff]  }
 0x242   : > { %9079 = vmatpush1.bf16.msra.mxu1 %v12893_v12  ;;  %9039 = vmatprep.subr.bf16.mxu0 %v12898_v13  ;;  %v12949_v12 = vld [vmem:[%s14400_s14 + $0x1e6c] ss:$36 sps:$4 sm:$0xff]  }
 0x243   : > { %9080 = vmatprep.subr.bf16.mxu1 %v12901_v14  ;;  %v12944_v13 = vld [vmem:[%s14400_s14 + $0x19e8] ss:$36 sps:$4 sm:$0xff]  }
 0x244   : > { %v12947_v14 = vld [vmem:[%s14400_s14 + $0x1e68] ss:$36 sps:$4 sm:$0xff]  }
 0x245   : > { %9040 = vmatpush1.bf16.msra.mxu0 %v12896_v15  ;;  %v12952_v15 = vld [vmem:[%s14400_s14 + $0x1a34] ss:$36 sps:$4 sm:$0xff]  }
 0x246   : > { %9081 = vmatpush1.bf16.msra.mxu1 %v12899_v16  ;;  %9041 = vmatprep.subr.bf16.mxu0 %v12904_v19  ;;  %v12955_v16 = vld [vmem:[%s14400_s14 + $0x1eb4] ss:$36 sps:$4 sm:$0xff]  }
 0x247   : > { %9082 = vmatprep.subr.bf16.mxu1 %v12907_v33  ;;  %v8737_v29 = vpop.f32.mrb[12].mxu0  ;;  %v12950_v19 = vld [vmem:[%s14400_s14 + $0x1a30] ss:$36 sps:$4 sm:$0xff]  }
 0x248   : > { %v8778_v30 = vpop.f32.mrb[12].mxu1  ;;  %v8738_v34 = vadd.f32 %v8737_v29, %v14956_v2  ;;  %v8739_v35 = vpop.f32.mrb[13].mxu0  ;;  %v12916_v2 = vld [vmem:[%s14400_s14 + $0x1884] ss:$36 sps:$4 sm:$0xff]   ;;  %v12953_v33 = vld [vmem:[%s14400_s14 + $0x1eb0] ss:$36 sps:$4 sm:$0xff]  }
 0x249   : > { %v8780_v44 = vpop.f32.mrb[13].mxu1  ;;  %v8740_v45 = vadd.f32 %v8739_v35, %v14959_v5  ;;  %v8741_v46 = vpop.f32.mrb[14].mxu0  ;;  %9042 = vmatpush1.bf16.msra.mxu0 %v12902_v21  ;;  %v12914_v5 = vld [vmem:[%s14400_s14 + $0x1880] ss:$36 sps:$4 sm:$0xff]   ;;  %v12973_v35 = vld [vmem:[%s14400_s14 + $0x240c] ss:$36 sps:$4 sm:$0xff]  }
 0x24a   : > { %9083 = vmatpush1.bf16.msra.mxu1 %v12905_v22  ;;  %v8782_v62 = vpop.f32.mrb[14].mxu1  ;;  %v15029_v47 = vadd.f32 %v8778_v30, %v8738_v34  ;;  %v8742_v49 = vpop.f32.mrb[15].mxu0  ;;  %9043 = vmatprep.subr.bf16.mxu0 %v12910_v36  ;;  %v12958_v21 = vld [vmem:[%s14400_s14 + $0x1a7c] ss:$36 sps:$4 sm:$0xff]   ;;  %v12964_v29 = vld [vmem:[%s14400_s14 + $0x1ac4] ss:$36 sps:$4 sm:$0xff]  }
 0x24b   : > { %9084 = vmatprep.subr.bf16.mxu1 %v12913_v28  ;;  %v8783_v51 = vpop.f32.mrb[15].mxu1  ;;  %v15033_v53 = vadd.f32 %v8780_v44, %v8740_v45  ;;  %v12961_v22 = vld [vmem:[%s14400_s14 + $0x1efc] ss:$36 sps:$4 sm:$0xff]   ;;  %v12967_v30 = vld [vmem:[%s14400_s14 + $0x1f44] ss:$36 sps:$4 sm:$0xff]  }
 0x24c   : > { %v12956_v36 = vld [vmem:[%s14400_s14 + $0x1a78] ss:$36 sps:$4 sm:$0xff]   ;;  %v12970_v34 = vld [vmem:[%s14400_s14 + $0x1f8c] ss:$36 sps:$4 sm:$0xff]  }
 0x24d   : > { %9044 = vmatpush1.bf16.msra.mxu0 %v12908_v31  ;;  %v12959_v28 = vld [vmem:[%s14400_s14 + $0x1ef8] ss:$36 sps:$4 sm:$0xff]   ;;  %v12962_v31 = vld [vmem:[%s14400_s14 + $0x1ac0] ss:$36 sps:$4 sm:$0xff]   ;;  %v12968_v44 = vld [vmem:[%s14400_s14 + $0x1f88] ss:$36 sps:$4 sm:$0xff]  }
 0x24e   : > { %9085 = vmatpush1.bf16.msra.mxu1 %v12911_v32  ;;  %9045 = vmatprep.subr.bf16.mxu0 %v12916_v2  ;;  %v12965_v32 = vld [vmem:[%s14400_s14 + $0x1f40] ss:$36 sps:$4 sm:$0xff]   ;;  %v12971_v45 = vld [vmem:[%s14400_s14 + $0x2408] ss:$36 sps:$4 sm:$0xff]   ;;  %v12976_v46 = vld [vmem:[%s14400_s14 + $0x1fd4] ss:$36 sps:$4 sm:$0xff]  }
 0x24f   : > { %9086 = vmatprep.subr.bf16.mxu1 %v12919_v50  ;;  %v12979_v62 = vld [vmem:[%s14400_s14 + $0x2454] ss:$36 sps:$4 sm:$0xff]   ;;  %v12982_v50 = vld [vmem:[%s14400_s14 + $0x201c] ss:$36 sps:$4 sm:$0xff]  }
 0x250   : > { %v12974_v49 = vld [vmem:[%s14400_s14 + $0x1fd0] ss:$36 sps:$4 sm:$0xff]   ;;  %v12985_v51 = vld [vmem:[%s14400_s14 + $0x249c] ss:$36 sps:$4 sm:$0xff]  }
 0x251   : > { %9046 = vmatpush1.bf16.msra.mxu0 %v12914_v5  ;;  %v12977_v2 = vld [vmem:[%s14400_s14 + $0x2450] ss:$36 sps:$4 sm:$0xff]   ;;  %v12980_v5 = vld [vmem:[%s14400_s14 + $0x2018] ss:$36 sps:$4 sm:$0xff]  }
 0x252   : > { %9087 = vmatpush1.bf16.msra.mxu1 %v12917_v54  ;;  %9047 = vmatprep.subr.bf16.mxu0 %v12922_v55  ;;  %v12983_v54 = vld [vmem:[%s14400_s14 + $0x2498] ss:$36 sps:$4 sm:$0xff]   ;;  %v12988_v55 = vld [vmem:[%s14400_s14 + $0x2064] ss:$36 sps:$4 sm:$0xff]  }
 0x253   : > { %9088 = vmatprep.subr.bf16.mxu1 %v12925_v56  ;;  %v12991_v56 = vld [vmem:[%s14400_s14 + $0x24e4] ss:$36 sps:$4 sm:$0xff]  }
 0x255   : > { %9048 = vmatpush1.bf16.msra.mxu0 %v12920_v57  ;;  %v12986_v57 = vld [vmem:[%s14400_s14 + $0x2060] ss:$36 sps:$4 sm:$0xff]  }
 0x256   : > { %9089 = vmatpush1.bf16.msra.mxu1 %v12923_v58  ;;  %9049 = vmatprep.subr.bf16.mxu0 %v12928_v59  ;;  %v12989_v58 = vld [vmem:[%s14400_s14 + $0x24e0] ss:$36 sps:$4 sm:$0xff]   ;;  %v12994_v59 = vld [vmem:[%s14400_s14 + $0x20ac] ss:$36 sps:$4 sm:$0xff]  }
 0x257   : > { %9090 = vmatprep.subr.bf16.mxu1 %v12931_v63  ;;  %v12997_v63 = vld [vmem:[%s14400_s14 + $0x252c] ss:$36 sps:$4 sm:$0xff]  }
 0x259   : > { %9050 = vmatpush1.bf16.msra.mxu0 %v12926_v0  ;;  %v12992_v0 = vld [vmem:[%s14400_s14 + $0x20a8] ss:$36 sps:$4 sm:$0xff]  }
 0x25a   : > { %9091 = vmatpush1.bf16.msra.mxu1 %v12929_v1  ;;  %9051 = vmatprep.subr.bf16.mxu0 %v12934_v42  ;;  %v12995_v1 = vld [vmem:[%s14400_s14 + $0x2528] ss:$36 sps:$4 sm:$0xff]   ;;  %v13000_v42 = vld [vmem:[%s14400_s14 + $0x20f4] ss:$36 sps:$4 sm:$0xff]  }
 0x25b   : > { %9092 = vmatprep.subr.bf16.mxu1 %v12937_v3  ;;  %v13003_v3 = vld [vmem:[%s14400_s14 + $0x2574] ss:$36 sps:$4 sm:$0xff]  }
 0x25d   : > { %9052 = vmatpush1.bf16.msra.mxu0 %v12932_v18  ;;  %v12998_v18 = vld [vmem:[%s14400_s14 + $0x20f0] ss:$36 sps:$4 sm:$0xff]  }
 0x25e   : > { %9093 = vmatpush1.bf16.msra.mxu1 %v12935_v4  ;;  %9053 = vmatprep.subr.bf16.mxu0 %v12940_v27  ;;  %v13001_v4 = vld [vmem:[%s14400_s14 + $0x2570] ss:$36 sps:$4 sm:$0xff]   ;;  %v312_v27 = vld [vmem:[#allocation2] sm:$0xff] }
 0x25f   : > { %9094 = vmatprep.subr.bf16.mxu1 %v12943_v6  ;;  %v313_v6 = vld [vmem:[#allocation2 + $0x8] sm:$0xff] }
 0x261   : > { %9054 = vmatpush1.bf16.msra.mxu0 %v12938_v9  ;;  %v13006_v9 = vld [vmem:[%s14400_s14 + $0x213c] ss:$36 sps:$4 sm:$0xff]  }
 0x262   : > { %9095 = vmatpush1.bf16.msra.mxu1 %v12941_v10  ;;  %9055 = vmatprep.subr.bf16.mxu0 %v12946_v11  ;;  %v13009_v10 = vld [vmem:[%s14400_s14 + $0x25bc] ss:$36 sps:$4 sm:$0xff]  }
 0x263   : > { %9096 = vmatprep.subr.bf16.mxu1 %v12949_v12  ;;  %v13004_v12 = vld [vmem:[%s14400_s14 + $0x2138] ss:$36 sps:$4 sm:$0xff]  }
 0x265   : > { %9056 = vmatpush1.bf16.msra.mxu0 %v12944_v13  ;;  %v13007_v13 = vld [vmem:[%s14400_s14 + $0x25b8] ss:$36 sps:$4 sm:$0xff]  }
 0x266   : > { %9097 = vmatpush1.bf16.msra.mxu1 %v12947_v14  ;;  %9057 = vmatprep.subr.bf16.mxu0 %v12952_v15 }
 0x267   : > { %9098 = vmatprep.subr.bf16.mxu1 %v12955_v16 }
 0x269   : > { %9058 = vmatpush1.bf16.msra.mxu0 %v12950_v19 }
 0x26a   : > { %9099 = vmatpush1.bf16.msra.mxu1 %v12953_v33  ;;  %9059 = vmatprep.subr.bf16.mxu0 %v12958_v21 }
 0x26b   : > { %9100 = vmatprep.subr.bf16.mxu1 %v12961_v22 }
 0x26d   : > { %9060 = vmatpush1.bf16.msra.mxu0 %v12956_v36 }
 0x26e   : > { %9101 = vmatpush1.bf16.msra.mxu1 %v12959_v28  ;;  %9061 = vmatprep.subr.bf16.mxu0 %v12964_v29  ;;  %v13012_v29 = vld [vmem:[%s14400_s14 + $0x2184] ss:$36 sps:$4 sm:$0xff]  }
 0x26f   : > { %9102 = vmatprep.subr.bf16.mxu1 %v12967_v30 }
 0x271   : > { %9062 = vmatpush1.bf16.msra.mxu0 %v12962_v31 }
 0x272   : > { %9103 = vmatpush1.bf16.msra.mxu1 %v12965_v32  ;;  %9113 = vmatprep.subr.bf16.mxu0 %v12970_v34  ;;  %v13013_v32 = vld [vmem:[%s14400_s14 + $0x2600] ss:$36 sps:$4 sm:$0xff]   ;;  %v13018_v34 = vld [vmem:[%s14400_s14 + $0x21cc] ss:$36 sps:$4 sm:$0xff]  }
 0x273   : > { %9154 = vmatprep.subr.bf16.mxu1 %v12973_v35  ;;  %v13021_v35 = vld [vmem:[%s14400_s14 + $0x264c] ss:$36 sps:$4 sm:$0xff]  }
 0x274   : > { %9064 = vmatmul.mubr.bf16.vlgmr.msra.gmra.mrb[28].mxu0 %v14676_v40 }
 0x275   : > { %9105 = vmatmul.mubr.bf16.vlgmr.msra.gmra.mrb[28].mxu1 %v14761_v60  ;;  %9114 = vmatpush1.bf16.msra.mxu0 %v12968_v44  ;;  %v13016_v44 = vld [vmem:[%s14400_s14 + $0x21c8] ss:$36 sps:$4 sm:$0xff]  }
 0x276   : > { %9155 = vmatpush1.bf16.msra.mxu1 %v12971_v45  ;;  %9115 = vmatprep.subr.bf16.mxu0 %v12976_v46  ;;  %v13019_v45 = vld [vmem:[%s14400_s14 + $0x2648] ss:$36 sps:$4 sm:$0xff]   ;;  %v13024_v46 = vld [vmem:[%s14400_s14 + $0x2214] ss:$36 sps:$4 sm:$0xff]  }
 0x277   : > { %9156 = vmatprep.subr.bf16.mxu1 %v12979_v62  ;;  %9145 = vmatprep.mubr.bf16.mxu0 %v14692_v24  ;;  %v13027_v62 = vld [vmem:[%s14400_s14 + $0x2694] ss:$36 sps:$4 sm:$0xff]  }
 0x278   : > { %9186 = vmatprep.mubr.bf16.mxu1 %v14775_v41 }
 0x279   : > { %9116 = vmatpush1.bf16.msra.mxu0 %v12974_v49  ;;  %v13022_v49 = vld [vmem:[%s14400_s14 + $0x2210] ss:$36 sps:$4 sm:$0xff]  }
 0x27a   : > { %9157 = vmatpush1.bf16.msra.mxu1 %v12977_v2  ;;  %9117 = vmatprep.subr.bf16.mxu0 %v12982_v50  ;;  %v13025_v2 = vld [vmem:[%s14400_s14 + $0x2690] ss:$36 sps:$4 sm:$0xff]   ;;  %v13030_v50 = vld [vmem:[%s14400_s14 + $0x225c] ss:$36 sps:$4 sm:$0xff]  }
 0x27b   : > { %9158 = vmatprep.subr.bf16.mxu1 %v12985_v51  ;;  %v13033_v51 = vld [vmem:[%s14400_s14 + $0x26dc] ss:$36 sps:$4 sm:$0xff]  }
 0x27d   : > { %9118 = vmatpush1.bf16.msra.mxu0 %v12980_v5  ;;  %v13028_v5 = vld [vmem:[%s14400_s14 + $0x2258] ss:$36 sps:$4 sm:$0xff]  }
 0x27e   : > { %9159 = vmatpush1.bf16.msra.mxu1 %v12983_v54  ;;  %9119 = vmatprep.subr.bf16.mxu0 %v12988_v55  ;;  %v13031_v54 = vld [vmem:[%s14400_s14 + $0x26d8] ss:$36 sps:$4 sm:$0xff]   ;;  %v13036_v55 = vld [vmem:[%s14400_s14 + $0x22a4] ss:$36 sps:$4 sm:$0xff]  }
 0x27f   : > { %9160 = vmatprep.subr.bf16.mxu1 %v12991_v56  ;;  %v13039_v56 = vld [vmem:[%s14400_s14 + $0x2724] ss:$36 sps:$4 sm:$0xff]  }
 0x281   : > { %9120 = vmatpush1.bf16.msra.mxu0 %v12986_v57  ;;  %v13034_v57 = vld [vmem:[%s14400_s14 + $0x22a0] ss:$36 sps:$4 sm:$0xff]  }
 0x282   : > { %9161 = vmatpush1.bf16.msra.mxu1 %v12989_v58  ;;  %9121 = vmatprep.subr.bf16.mxu0 %v12994_v59  ;;  %v13037_v58 = vld [vmem:[%s14400_s14 + $0x2720] ss:$36 sps:$4 sm:$0xff]   ;;  %v13042_v59 = vld [vmem:[%s14400_s14 + $0x22ec] ss:$36 sps:$4 sm:$0xff]  }
 0x283   : > { %9162 = vmatprep.subr.bf16.mxu1 %v12997_v63  ;;  %v13045_v63 = vld [vmem:[%s14400_s14 + $0x276c] ss:$36 sps:$4 sm:$0xff]  }
 0x285   : > { %9122 = vmatpush1.bf16.msra.mxu0 %v12992_v0  ;;  %v13040_v0 = vld [vmem:[%s14400_s14 + $0x22e8] ss:$36 sps:$4 sm:$0xff]  }
 0x286   : > { %9163 = vmatpush1.bf16.msra.mxu1 %v12995_v1  ;;  %9123 = vmatprep.subr.bf16.mxu0 %v13000_v42  ;;  %v13043_v1 = vld [vmem:[%s14400_s14 + $0x2768] ss:$36 sps:$4 sm:$0xff]   ;;  %v13048_v42 = vld [vmem:[%s14400_s14 + $0x2334] ss:$36 sps:$4 sm:$0xff]  }
 0x287   : > { %9164 = vmatprep.subr.bf16.mxu1 %v13003_v3  ;;  %v8819_v11 = vpop.f32.mrb[16].mxu0  ;;  %v13051_v3 = vld [vmem:[%s14400_s14 + $0x27b4] ss:$36 sps:$4 sm:$0xff]  }
 0x288   : > { %v15101_v14 = vpop.f32.mrb[16].mxu1  ;;  %v8820_v15 = vadd.f32 %v8819_v11, %v15029_v47  ;;  %v8821_v16 = vpop.f32.mrb[17].mxu0  ;;  %v13015_v47 = vld [vmem:[%s14400_s14 + $0x2604] ss:$36 sps:$4 sm:$0xff]  }
 0x289   : > { %v15104_v19 = vpop.f32.mrb[17].mxu1  ;;  %v8822_v33 = vadd.f32 %v8821_v16, %v15033_v53  ;;  %v8823_v21 = vpop.f32.mrb[18].mxu0  ;;  %9124 = vmatpush1.bf16.msra.mxu0 %v12998_v18  ;;  %v13010_v53 = vld [vmem:[%s14400_s14 + $0x2180] ss:$36 sps:$4 sm:$0xff]   ;;  %v13046_v18 = vld [vmem:[%s14400_s14 + $0x2330] ss:$36 sps:$4 sm:$0xff]  }
 0x28a   : > { %9165 = vmatpush1.bf16.msra.mxu1 %v13001_v4  ;;  %v8864_v22 = vpop.f32.mrb[18].mxu1  ;;  %v10293_v36 = vadd.f32 %v8820_v15, %v312_v27  ;;  %v8824_v28 = vpop.f32.mrb[19].mxu0  ;;  %9125 = vmatprep.subr.bf16.mxu0 %v13006_v9  ;;  %v13049_v4 = vld [vmem:[%s14400_s14 + $0x27b0] ss:$36 sps:$4 sm:$0xff]   ;;  %v13054_v27 = vld [vmem:[%s14400_s14 + $0x237c] ss:$36 sps:$4 sm:$0xff]  }
 0x28b   : > { %9166 = vmatprep.subr.bf16.mxu1 %v13009_v10  ;;  %v8865_v30 = vpop.f32.mrb[19].mxu1  ;;  %v10294_v31 = vadd.f32 %v8822_v33, %v313_v6  ;;  %v13057_v6 = vld [vmem:[%s14400_s14 + $0x27fc] ss:$36 sps:$4 sm:$0xff]   ;;  %v13060_v11 = vld [vmem:[%s14400_s14 + $0x23c4] ss:$36 sps:$4 sm:$0xff]  }
 0x28c   : > { %10302 = vst [vmem:[#allocation2] sm:$0xff] %v10293_v36  ;;  %v13052_v9 = vld [vmem:[%s14400_s14 + $0x2378] ss:$36 sps:$4 sm:$0xff]   ;;  %v13061_v15 = vld [vmem:[%s14400_s14 + $0x2840] ss:$36 sps:$4 sm:$0xff]  }
 0x28d   : > { %10303 = vst [vmem:[#allocation2 + $0x8] sm:$0xff] %v10294_v31  ;;  %9126 = vmatpush1.bf16.msra.mxu0 %v13004_v12  ;;  %v13055_v10 = vld [vmem:[%s14400_s14 + $0x27f8] ss:$36 sps:$4 sm:$0xff]   ;;  %v13063_v12 = vld [vmem:[%s14400_s14 + $0x2844] ss:$36 sps:$4 sm:$0xff]  }
 0x28e   : > { %9167 = vmatpush1.bf16.msra.mxu1 %v13007_v13  ;;  %9127 = vmatprep.subr.bf16.mxu0 %v13012_v29  ;;  %v13058_v13 = vld [vmem:[%s14400_s14 + $0x23c0] ss:$36 sps:$4 sm:$0xff]   ;;  %v13066_v16 = vld [vmem:[%s14400_s14 + $0x14] ss:$36 sps:$4 sm:$0xff]  }
 0x28f   : > { %9168 = vmatprep.subr.bf16.mxu1 %v13015_v47  ;;  %v13069_v33 = vld [vmem:[%s14400_s14 + $0x494] ss:$36 sps:$4 sm:$0xff]   ;;  %v13072_v36 = vld [vmem:[%s14400_s14 + $0x5c] ss:$36 sps:$4 sm:$0xff]   ;;  %v13078_v30 = vld [vmem:[%s14400_s14 + $0xa4] ss:$36 sps:$4 sm:$0xff]  }
 0x290   : > { %v13064_v21 = vld [vmem:[%s14400_s14 + $0x10] ss:$36 sps:$4 sm:$0xff]   ;;  %v13075_v28 = vld [vmem:[%s14400_s14 + $0x4dc] ss:$36 sps:$4 sm:$0xff]   ;;  %v13081_v31 = vld [vmem:[%s14400_s14 + $0x524] ss:$36 sps:$4 sm:$0xff]  }
 0x291   : > { %9128 = vmatpush1.bf16.msra.mxu0 %v13010_v53  ;;  %v13067_v22 = vld [vmem:[%s14400_s14 + $0x490] ss:$36 sps:$4 sm:$0xff]   ;;  %v13070_v29 = vld [vmem:[%s14400_s14 + $0x58] ss:$36 sps:$4 sm:$0xff]   ;;  %v13076_v53 = vld [vmem:[%s14400_s14 + $0xa0] ss:$36 sps:$4 sm:$0xff]  }
 0x292   : > { %9169 = vmatpush1.bf16.msra.mxu1 %v13013_v32  ;;  %9129 = vmatprep.subr.bf16.mxu0 %v13018_v34  ;;  %v13073_v47 = vld [vmem:[%s14400_s14 + $0x4d8] ss:$36 sps:$4 sm:$0xff]   ;;  %v13079_v32 = vld [vmem:[%s14400_s14 + $0x520] ss:$36 sps:$4 sm:$0xff]   ;;  %v13084_v34 = vld [vmem:[%s14400_s14 + $0xec] ss:$36 sps:$4 sm:$0xff]  }
 0x293   : > { %9170 = vmatprep.subr.bf16.mxu1 %v13021_v35  ;;  %v13087_v35 = vld [vmem:[%s14400_s14 + $0x56c] ss:$36 sps:$4 sm:$0xff]  }
 0x295   : > { %9130 = vmatpush1.bf16.msra.mxu0 %v13016_v44  ;;  %v13082_v44 = vld [vmem:[%s14400_s14 + $0xe8] ss:$36 sps:$4 sm:$0xff]  }
 0x296   : > { %9171 = vmatpush1.bf16.msra.mxu1 %v13019_v45  ;;  %9131 = vmatprep.subr.bf16.mxu0 %v13024_v46  ;;  %v13085_v45 = vld [vmem:[%s14400_s14 + $0x568] ss:$36 sps:$4 sm:$0xff]   ;;  %v13090_v46 = vld [vmem:[%s14400_s14 + $0x134] ss:$36 sps:$4 sm:$0xff]  }
 0x297   : > { %9172 = vmatprep.subr.bf16.mxu1 %v13027_v62  ;;  %v13093_v62 = vld [vmem:[%s14400_s14 + $0x5b4] ss:$36 sps:$4 sm:$0xff]  }
 0x299   : > { %9132 = vmatpush1.bf16.msra.mxu0 %v13022_v49  ;;  %v13088_v49 = vld [vmem:[%s14400_s14 + $0x130] ss:$36 sps:$4 sm:$0xff]  }
 0x29a   : > { %9173 = vmatpush1.bf16.msra.mxu1 %v13025_v2  ;;  %9133 = vmatprep.subr.bf16.mxu0 %v13030_v50  ;;  %v13091_v2 = vld [vmem:[%s14400_s14 + $0x5b0] ss:$36 sps:$4 sm:$0xff]   ;;  %v13096_v50 = vld [vmem:[%s14400_s14 + $0x17c] ss:$36 sps:$4 sm:$0xff]  }
 0x29b   : > { %9174 = vmatprep.subr.bf16.mxu1 %v13033_v51  ;;  %v13099_v51 = vld [vmem:[%s14400_s14 + $0x5fc] ss:$36 sps:$4 sm:$0xff]  }
 0x29d   : > { %9134 = vmatpush1.bf16.msra.mxu0 %v13028_v5  ;;  %v13094_v5 = vld [vmem:[%s14400_s14 + $0x178] ss:$36 sps:$4 sm:$0xff]  }
 0x29e   : > { %9175 = vmatpush1.bf16.msra.mxu1 %v13031_v54  ;;  %9135 = vmatprep.subr.bf16.mxu0 %v13036_v55  ;;  %v13097_v54 = vld [vmem:[%s14400_s14 + $0x5f8] ss:$36 sps:$4 sm:$0xff]   ;;  %v13102_v55 = vld [vmem:[%s14400_s14 + $0x1c4] ss:$36 sps:$4 sm:$0xff]  }
 0x29f   : > { %9176 = vmatprep.subr.bf16.mxu1 %v13039_v56  ;;  %v13105_v56 = vld [vmem:[%s14400_s14 + $0x644] ss:$36 sps:$4 sm:$0xff]  }
 0x2a1   : > { %9136 = vmatpush1.bf16.msra.mxu0 %v13034_v57 }
 0x2a2   : > { %9177 = vmatpush1.bf16.msra.mxu1 %v13037_v58  ;;  %9137 = vmatprep.subr.bf16.mxu0 %v13042_v59  ;;  %v13100_v59 = vld [vmem:[%s14400_s14 + $0x1c0] ss:$36 sps:$4 sm:$0xff]  }
 0x2a3   : > { %9178 = vmatprep.subr.bf16.mxu1 %v13045_v63  ;;  %v13103_v63 = vld [vmem:[%s14400_s14 + $0x640] ss:$36 sps:$4 sm:$0xff]  }
 0x2a5   : > { %9138 = vmatpush1.bf16.msra.mxu0 %v13040_v0 }
 0x2a6   : > { %9179 = vmatpush1.bf16.msra.mxu1 %v13043_v1  ;;  %9139 = vmatprep.subr.bf16.mxu0 %v13048_v42 }
 0x2a7   : > { %9180 = vmatprep.subr.bf16.mxu1 %v13051_v3 }
 0x2a9   : > { %9140 = vmatpush1.bf16.msra.mxu0 %v13046_v18 }
 0x2aa   : > { %9181 = vmatpush1.bf16.msra.mxu1 %v13049_v4  ;;  %9141 = vmatprep.subr.bf16.mxu0 %v13054_v27 }
 0x2ab   : > { %9182 = vmatprep.subr.bf16.mxu1 %v13057_v6 }
 0x2ad   : > { %9142 = vmatpush1.bf16.msra.mxu0 %v13052_v9  ;;  %v13111_v9 = vld [vmem:[%s14400_s14 + $0x68c] ss:$36 sps:$4 sm:$0xff]  }
 0x2ae   : > { %9183 = vmatpush1.bf16.msra.mxu1 %v13055_v10  ;;  %9143 = vmatprep.subr.bf16.mxu0 %v13060_v11 }
 0x2af   : > { %9184 = vmatprep.subr.bf16.mxu1 %v13063_v12  ;;  %v13109_v12 = vld [vmem:[%s14400_s14 + $0x688] ss:$36 sps:$4 sm:$0xff]  }
 0x2b1   : > { %9144 = vmatpush1.bf16.msra.mxu0 %v13058_v13  ;;  %v13114_v13 = vld [vmem:[%s14400_s14 + $0x254] ss:$36 sps:$4 sm:$0xff]  }
 0x2b2   : > { %9185 = vmatpush1.bf16.msra.mxu1 %v13061_v15  ;;  %9195 = vmatprep.subr.bf16.mxu0 %v13066_v16  ;;  %v13117_v15 = vld [vmem:[%s14400_s14 + $0x6d4] ss:$36 sps:$4 sm:$0xff]  }
 0x2b3   : > { %9236 = vmatprep.subr.bf16.mxu1 %v13069_v33  ;;  %v13112_v16 = vld [vmem:[%s14400_s14 + $0x250] ss:$36 sps:$4 sm:$0xff]  }
 0x2b4   : > { %9146 = vmatmul.mubr.bf16.vlgmr.msra.gmra.mrb[32].mxu0 %v14765_v61  ;;  %v13115_v33 = vld [vmem:[%s14400_s14 + $0x6d0] ss:$36 sps:$4 sm:$0xff]  }
 0x2b5   : > { %9187 = vmatmul.mubr.bf16.vlgmr.msra.gmra.mrb[32].mxu1 %v14849_v43  ;;  %9196 = vmatpush1.bf16.msra.mxu0 %v13064_v21  ;;  %v13120_v21 = vld [vmem:[%s14400_s14 + $0x29c] ss:$36 sps:$4 sm:$0xff]  }
 0x2b6   : > { %9237 = vmatpush1.bf16.msra.mxu1 %v13067_v22  ;;  %9197 = vmatprep.subr.bf16.mxu0 %v13072_v36  ;;  %v13123_v22 = vld [vmem:[%s14400_s14 + $0x71c] ss:$36 sps:$4 sm:$0xff]  }
 0x2b7   : > { %9238 = vmatprep.subr.bf16.mxu1 %v13075_v28  ;;  %9227 = vmatprep.mubr.bf16.mxu0 %v14465_v48  ;;  %v13118_v36 = vld [vmem:[%s14400_s14 + $0x298] ss:$36 sps:$4 sm:$0xff]  }
 0x2b8   : > { %9268 = vmatprep.mubr.bf16.mxu1 %v14470_v52  ;;  %v13121_v28 = vld [vmem:[%s14400_s14 + $0x718] ss:$36 sps:$4 sm:$0xff]  }
 0x2b9   : > { %9198 = vmatpush1.bf16.msra.mxu0 %v13070_v29  ;;  %v13126_v29 = vld [vmem:[%s14400_s14 + $0x2e4] ss:$36 sps:$4 sm:$0xff]  }
 0x2ba   : > { %9239 = vmatpush1.bf16.msra.mxu1 %v13073_v47  ;;  %9199 = vmatprep.subr.bf16.mxu0 %v13078_v30  ;;  %v13129_v47 = vld [vmem:[%s14400_s14 + $0x764] ss:$36 sps:$4 sm:$0xff]  }
 0x2bb   : > { %9240 = vmatprep.subr.bf16.mxu1 %v13081_v31  ;;  %v13124_v30 = vld [vmem:[%s14400_s14 + $0x2e0] ss:$36 sps:$4 sm:$0xff]  }
 0x2bc   : > { %v13127_v31 = vld [vmem:[%s14400_s14 + $0x760] ss:$36 sps:$4 sm:$0xff]  }
 0x2bd   : > { %9200 = vmatpush1.bf16.msra.mxu0 %v13076_v53  ;;  %v13132_v53 = vld [vmem:[%s14400_s14 + $0x32c] ss:$36 sps:$4 sm:$0xff]  }
 0x2be   : > { %9241 = vmatpush1.bf16.msra.mxu1 %v13079_v32  ;;  %9201 = vmatprep.subr.bf16.mxu0 %v13084_v34  ;;  %v13135_v32 = vld [vmem:[%s14400_s14 + $0x7ac] ss:$36 sps:$4 sm:$0xff]  }
 0x2bf   : > { %9242 = vmatprep.subr.bf16.mxu1 %v13087_v35  ;;  %v13130_v34 = vld [vmem:[%s14400_s14 + $0x328] ss:$36 sps:$4 sm:$0xff]  }
 0x2c0   : > { %v13133_v35 = vld [vmem:[%s14400_s14 + $0x7a8] ss:$36 sps:$4 sm:$0xff]  }
 0x2c1   : > { %9202 = vmatpush1.bf16.msra.mxu0 %v13082_v44  ;;  %v13138_v44 = vld [vmem:[%s14400_s14 + $0x374] ss:$36 sps:$4 sm:$0xff]  }
 0x2c2   : > { %9243 = vmatpush1.bf16.msra.mxu1 %v13085_v45  ;;  %9203 = vmatprep.subr.bf16.mxu0 %v13090_v46  ;;  %v13141_v45 = vld [vmem:[%s14400_s14 + $0x7f4] ss:$36 sps:$4 sm:$0xff]  }
 0x2c3   : > { %9244 = vmatprep.subr.bf16.mxu1 %v13093_v62  ;;  %v13136_v46 = vld [vmem:[%s14400_s14 + $0x370] ss:$36 sps:$4 sm:$0xff]  }
 0x2c4   : > { %v13139_v62 = vld [vmem:[%s14400_s14 + $0x7f0] ss:$36 sps:$4 sm:$0xff]  }
 0x2c5   : > { %9204 = vmatpush1.bf16.msra.mxu0 %v13088_v49  ;;  %v13144_v49 = vld [vmem:[%s14400_s14 + $0x3bc] ss:$36 sps:$4 sm:$0xff]  }
 0x2c6   : > { %9245 = vmatpush1.bf16.msra.mxu1 %v13091_v2  ;;  %9205 = vmatprep.subr.bf16.mxu0 %v13096_v50  ;;  %v13147_v2 = vld [vmem:[%s14400_s14 + $0x83c] ss:$36 sps:$4 sm:$0xff]  }
 0x2c7   : > { %9246 = vmatprep.subr.bf16.mxu1 %v13099_v51  ;;  %v8901_v57 = vpop.f32.mrb[20].mxu0  ;;  %v13142_v50 = vld [vmem:[%s14400_s14 + $0x3b8] ss:$36 sps:$4 sm:$0xff]  }
 0x2c8   : > { %v8942_v58 = vpop.f32.mrb[20].mxu1  ;;  %v8902_v0 = vadd.f32 %v8901_v57, %v15101_v14  ;;  %v8903_v1 = vpop.f32.mrb[21].mxu0  ;;  %v13108_v14 = vld [vmem:[%s14400_s14 + $0x20c] ss:$36 sps:$4 sm:$0xff]   ;;  %v13145_v51 = vld [vmem:[%s14400_s14 + $0x838] ss:$36 sps:$4 sm:$0xff]  }
 0x2c9   : > { %v8944_v42 = vpop.f32.mrb[21].mxu1  ;;  %v8904_v3 = vadd.f32 %v8903_v1, %v15104_v19  ;;  %v8905_v18 = vpop.f32.mrb[22].mxu0  ;;  %9206 = vmatpush1.bf16.msra.mxu0 %v13094_v5  ;;  %v13106_v19 = vld [vmem:[%s14400_s14 + $0x208] ss:$36 sps:$4 sm:$0xff]   ;;  %v13165_v1 = vld [vmem:[%s14400_s14 + $0xd94] ss:$36 sps:$4 sm:$0xff]  }
 0x2ca   : > { %9247 = vmatpush1.bf16.msra.mxu1 %v13097_v54  ;;  %v8946_v4 = vpop.f32.mrb[22].mxu1  ;;  %v15177_v27 = vadd.f32 %v8942_v58, %v8902_v0  ;;  %v8906_v6 = vpop.f32.mrb[23].mxu0  ;;  %9207 = vmatprep.subr.bf16.mxu0 %v13102_v55  ;;  %v13150_v5 = vld [vmem:[%s14400_s14 + $0x404] ss:$36 sps:$4 sm:$0xff]   ;;  %v13156_v57 = vld [vmem:[%s14400_s14 + $0x44c] ss:$36 sps:$4 sm:$0xff]  }
 0x2cb   : > { %9248 = vmatprep.subr.bf16.mxu1 %v13105_v56  ;;  %v8947_v10 = vpop.f32.mrb[23].mxu1  ;;  %v15181_v11 = vadd.f32 %v8944_v42, %v8904_v3  ;;  %v13153_v54 = vld [vmem:[%s14400_s14 + $0x884] ss:$36 sps:$4 sm:$0xff]   ;;  %v13159_v58 = vld [vmem:[%s14400_s14 + $0x8cc] ss:$36 sps:$4 sm:$0xff]  }
 0x2cc   : > { %v13148_v55 = vld [vmem:[%s14400_s14 + $0x400] ss:$36 sps:$4 sm:$0xff]   ;;  %v13162_v0 = vld [vmem:[%s14400_s14 + $0x914] ss:$36 sps:$4 sm:$0xff]  }
 0x2cd   : > { %9208 = vmatpush1.bf16.msra.mxu0 %v13100_v59  ;;  %v13151_v56 = vld [vmem:[%s14400_s14 + $0x880] ss:$36 sps:$4 sm:$0xff]   ;;  %v13154_v59 = vld [vmem:[%s14400_s14 + $0x448] ss:$36 sps:$4 sm:$0xff]   ;;  %v13160_v42 = vld [vmem:[%s14400_s14 + $0x910] ss:$36 sps:$4 sm:$0xff]  }
 0x2ce   : > { %9249 = vmatpush1.bf16.msra.mxu1 %v13103_v63  ;;  %9209 = vmatprep.subr.bf16.mxu0 %v13108_v14  ;;  %v13157_v63 = vld [vmem:[%s14400_s14 + $0x8c8] ss:$36 sps:$4 sm:$0xff]   ;;  %v13163_v3 = vld [vmem:[%s14400_s14 + $0xd90] ss:$36 sps:$4 sm:$0xff]   ;;  %v13168_v18 = vld [vmem:[%s14400_s14 + $0x95c] ss:$36 sps:$4 sm:$0xff]  }
 0x2cf   : > { %9250 = vmatprep.subr.bf16.mxu1 %v13111_v9  ;;  %v13171_v4 = vld [vmem:[%s14400_s14 + $0xddc] ss:$36 sps:$4 sm:$0xff]   ;;  %v13174_v9 = vld [vmem:[%s14400_s14 + $0x9a4] ss:$36 sps:$4 sm:$0xff]  }
 0x2d0   : > { %v13166_v6 = vld [vmem:[%s14400_s14 + $0x958] ss:$36 sps:$4 sm:$0xff]   ;;  %v13177_v10 = vld [vmem:[%s14400_s14 + $0xe24] ss:$36 sps:$4 sm:$0xff]  }
 0x2d1   : > { %9210 = vmatpush1.bf16.msra.mxu0 %v13106_v19  ;;  %v13169_v14 = vld [vmem:[%s14400_s14 + $0xdd8] ss:$36 sps:$4 sm:$0xff]   ;;  %v13172_v19 = vld [vmem:[%s14400_s14 + $0x9a0] ss:$36 sps:$4 sm:$0xff]  }
 0x2d2   : > { %9251 = vmatpush1.bf16.msra.mxu1 %v13109_v12  ;;  %9211 = vmatprep.subr.bf16.mxu0 %v13114_v13  ;;  %v13175_v12 = vld [vmem:[%s14400_s14 + $0xe20] ss:$36 sps:$4 sm:$0xff]   ;;  %v13180_v13 = vld [vmem:[%s14400_s14 + $0x9ec] ss:$36 sps:$4 sm:$0xff]  }
 0x2d3   : > { %9252 = vmatprep.subr.bf16.mxu1 %v13117_v15  ;;  %v13183_v15 = vld [vmem:[%s14400_s14 + $0xe6c] ss:$36 sps:$4 sm:$0xff]  }
 0x2d5   : > { %9212 = vmatpush1.bf16.msra.mxu0 %v13112_v16  ;;  %v13178_v16 = vld [vmem:[%s14400_s14 + $0x9e8] ss:$36 sps:$4 sm:$0xff]  }
 0x2d6   : > { %9253 = vmatpush1.bf16.msra.mxu1 %v13115_v33  ;;  %9213 = vmatprep.subr.bf16.mxu0 %v13120_v21  ;;  %v13181_v33 = vld [vmem:[%s14400_s14 + $0xe68] ss:$36 sps:$4 sm:$0xff]   ;;  %v13186_v21 = vld [vmem:[%s14400_s14 + $0xa34] ss:$36 sps:$4 sm:$0xff]  }
 0x2d7   : > { %9254 = vmatprep.subr.bf16.mxu1 %v13123_v22  ;;  %v13189_v22 = vld [vmem:[%s14400_s14 + $0xeb4] ss:$36 sps:$4 sm:$0xff]  }
 0x2d9   : > { %9214 = vmatpush1.bf16.msra.mxu0 %v13118_v36  ;;  %v13184_v36 = vld [vmem:[%s14400_s14 + $0xa30] ss:$36 sps:$4 sm:$0xff]  }
 0x2da   : > { %9255 = vmatpush1.bf16.msra.mxu1 %v13121_v28  ;;  %9215 = vmatprep.subr.bf16.mxu0 %v13126_v29  ;;  %v13187_v28 = vld [vmem:[%s14400_s14 + $0xeb0] ss:$36 sps:$4 sm:$0xff]   ;;  %v13192_v29 = vld [vmem:[%s14400_s14 + $0xa7c] ss:$36 sps:$4 sm:$0xff]  }
 0x2db   : > { %9256 = vmatprep.subr.bf16.mxu1 %v13129_v47  ;;  %v13195_v47 = vld [vmem:[%s14400_s14 + $0xefc] ss:$36 sps:$4 sm:$0xff]  }
 0x2dd   : > { %9216 = vmatpush1.bf16.msra.mxu0 %v13124_v30  ;;  %v13190_v30 = vld [vmem:[%s14400_s14 + $0xa78] ss:$36 sps:$4 sm:$0xff]  }
 0x2de   : > { %9257 = vmatpush1.bf16.msra.mxu1 %v13127_v31  ;;  %9217 = vmatprep.subr.bf16.mxu0 %v13132_v53  ;;  %v13193_v31 = vld [vmem:[%s14400_s14 + $0xef8] ss:$36 sps:$4 sm:$0xff]   ;;  %v13198_v53 = vld [vmem:[%s14400_s14 + $0xac4] ss:$36 sps:$4 sm:$0xff]  }
 0x2df   : > { %9258 = vmatprep.subr.bf16.mxu1 %v13135_v32  ;;  %v13201_v32 = vld [vmem:[%s14400_s14 + $0xf44] ss:$36 sps:$4 sm:$0xff]  }
 0x2e1   : > { %9218 = vmatpush1.bf16.msra.mxu0 %v13130_v34 }
 0x2e2   : > { %9259 = vmatpush1.bf16.msra.mxu1 %v13133_v35  ;;  %9219 = vmatprep.subr.bf16.mxu0 %v13138_v44  ;;  %v13196_v44 = vld [vmem:[%s14400_s14 + $0xac0] ss:$36 sps:$4 sm:$0xff]  }
 0x2e3   : > { %9260 = vmatprep.subr.bf16.mxu1 %v13141_v45 }
 0x2e5   : > { %9220 = vmatpush1.bf16.msra.mxu0 %v13136_v46 }
 0x2e6   : > { %9261 = vmatpush1.bf16.msra.mxu1 %v13139_v62  ;;  %9221 = vmatprep.subr.bf16.mxu0 %v13144_v49 }
 0x2e7   : > { %9262 = vmatprep.subr.bf16.mxu1 %v13147_v2 }
 0x2e9   : > { %9222 = vmatpush1.bf16.msra.mxu0 %v13142_v50  ;;  %v13199_v50 = vld [vmem:[%s14400_s14 + $0xf40] ss:$36 sps:$4 sm:$0xff]  }
 0x2ea   : > { %9263 = vmatpush1.bf16.msra.mxu1 %v13145_v51  ;;  %9223 = vmatprep.subr.bf16.mxu0 %v13150_v5 }
 0x2eb   : > { %9264 = vmatprep.subr.bf16.mxu1 %v13153_v54 }
 0x2ed   : > { %9224 = vmatpush1.bf16.msra.mxu0 %v13148_v55  ;;  %v13207_v55 = vld [vmem:[%s14400_s14 + $0xf8c] ss:$36 sps:$4 sm:$0xff]  }
 0x2ee   : > { %9265 = vmatpush1.bf16.msra.mxu1 %v13151_v56  ;;  %9225 = vmatprep.subr.bf16.mxu0 %v13156_v57 }
 0x2ef   : > { %9266 = vmatprep.subr.bf16.mxu1 %v13159_v58  ;;  %v13205_v58 = vld [vmem:[%s14400_s14 + $0xf88] ss:$36 sps:$4 sm:$0xff]  }
 0x2f1   : > { %9226 = vmatpush1.bf16.msra.mxu0 %v13154_v59  ;;  %v13210_v59 = vld [vmem:[%s14400_s14 + $0xb54] ss:$36 sps:$4 sm:$0xff]  }
 0x2f2   : > { %9267 = vmatpush1.bf16.msra.mxu1 %v13157_v63  ;;  %9277 = vmatprep.subr.bf16.mxu0 %v13162_v0  ;;  %v13213_v63 = vld [vmem:[%s14400_s14 + $0xfd4] ss:$36 sps:$4 sm:$0xff]  }
 0x2f3   : > { %9318 = vmatprep.subr.bf16.mxu1 %v13165_v1  ;;  %v13208_v0 = vld [vmem:[%s14400_s14 + $0xb50] ss:$36 sps:$4 sm:$0xff]  }
 0x2f4   : > { %9228 = vmatmul.mubr.bf16.vlgmr.msra.gmra.mrb[36].mxu0 %v14492_v7  ;;  %v13211_v1 = vld [vmem:[%s14400_s14 + $0xfd0] ss:$36 sps:$4 sm:$0xff]  }
 0x2f5   : > { %9269 = vmatmul.mubr.bf16.vlgmr.msra.gmra.mrb[36].mxu1 %v14494_v8  ;;  %9278 = vmatpush1.bf16.msra.mxu0 %v13160_v42  ;;  %v13216_v42 = vld [vmem:[%s14400_s14 + $0xb9c] ss:$36 sps:$4 sm:$0xff]  }
 0x2f6   : > { %9319 = vmatpush1.bf16.msra.mxu1 %v13163_v3  ;;  %9279 = vmatprep.subr.bf16.mxu0 %v13168_v18  ;;  %v13219_v3 = vld [vmem:[%s14400_s14 + $0x101c] ss:$36 sps:$4 sm:$0xff]  }
 0x2f7   : > { %9320 = vmatprep.subr.bf16.mxu1 %v13171_v4  ;;  %9309 = vmatprep.mubr.bf16.mxu0 %v14532_v37  ;;  %v13214_v18 = vld [vmem:[%s14400_s14 + $0xb98] ss:$36 sps:$4 sm:$0xff]  }
 0x2f8   : > { %9350 = vmatprep.mubr.bf16.mxu1 %v14536_v38  ;;  %v13217_v4 = vld [vmem:[%s14400_s14 + $0x1018] ss:$36 sps:$4 sm:$0xff]  }
 0x2f9   : > { %9280 = vmatpush1.bf16.msra.mxu0 %v13166_v6  ;;  %v13222_v6 = vld [vmem:[%s14400_s14 + $0xbe4] ss:$36 sps:$4 sm:$0xff]  }
 0x2fa   : > { %9321 = vmatpush1.bf16.msra.mxu1 %v13169_v14  ;;  %9281 = vmatprep.subr.bf16.mxu0 %v13174_v9  ;;  %v13225_v14 = vld [vmem:[%s14400_s14 + $0x1064] ss:$36 sps:$4 sm:$0xff]  }
 0x2fb   : > { %9322 = vmatprep.subr.bf16.mxu1 %v13177_v10  ;;  %v13220_v9 = vld [vmem:[%s14400_s14 + $0xbe0] ss:$36 sps:$4 sm:$0xff]  }
 0x2fc   : > { %v13223_v10 = vld [vmem:[%s14400_s14 + $0x1060] ss:$36 sps:$4 sm:$0xff]  }
 0x2fd   : > { %9282 = vmatpush1.bf16.msra.mxu0 %v13172_v19  ;;  %v13228_v19 = vld [vmem:[%s14400_s14 + $0xc2c] ss:$36 sps:$4 sm:$0xff]  }
 0x2fe   : > { %9323 = vmatpush1.bf16.msra.mxu1 %v13175_v12  ;;  %9283 = vmatprep.subr.bf16.mxu0 %v13180_v13  ;;  %v13231_v12 = vld [vmem:[%s14400_s14 + $0x10ac] ss:$36 sps:$4 sm:$0xff]  }
 0x2ff   : > { %9324 = vmatprep.subr.bf16.mxu1 %v13183_v15  ;;  %v13226_v13 = vld [vmem:[%s14400_s14 + $0xc28] ss:$36 sps:$4 sm:$0xff]  }
 0x300   : > { %v13229_v15 = vld [vmem:[%s14400_s14 + $0x10a8] ss:$36 sps:$4 sm:$0xff]  }
 0x301   : > { %9284 = vmatpush1.bf16.msra.mxu0 %v13178_v16  ;;  %v13234_v16 = vld [vmem:[%s14400_s14 + $0xc74] ss:$36 sps:$4 sm:$0xff]  }
 0x302   : > { %9325 = vmatpush1.bf16.msra.mxu1 %v13181_v33  ;;  %9285 = vmatprep.subr.bf16.mxu0 %v13186_v21  ;;  %v13237_v33 = vld [vmem:[%s14400_s14 + $0x10f4] ss:$36 sps:$4 sm:$0xff]  }
 0x303   : > { %9326 = vmatprep.subr.bf16.mxu1 %v13189_v22  ;;  %v13232_v21 = vld [vmem:[%s14400_s14 + $0xc70] ss:$36 sps:$4 sm:$0xff]  }
 0x304   : > { %v13235_v22 = vld [vmem:[%s14400_s14 + $0x10f0] ss:$36 sps:$4 sm:$0xff]  }
 0x305   : > { %9286 = vmatpush1.bf16.msra.mxu0 %v13184_v36  ;;  %v13240_v36 = vld [vmem:[%s14400_s14 + $0xcbc] ss:$36 sps:$4 sm:$0xff]  }
 0x306   : > { %9327 = vmatpush1.bf16.msra.mxu1 %v13187_v28  ;;  %9287 = vmatprep.subr.bf16.mxu0 %v13192_v29  ;;  %v13243_v28 = vld [vmem:[%s14400_s14 + $0x113c] ss:$36 sps:$4 sm:$0xff]  }
 0x307   : > { %9328 = vmatprep.subr.bf16.mxu1 %v13195_v47  ;;  %v8983_v34 = vpop.f32.mrb[24].mxu0  ;;  %v13238_v29 = vld [vmem:[%s14400_s14 + $0xcb8] ss:$36 sps:$4 sm:$0xff]  }
 0x308   : > { %v9024_v35 = vpop.f32.mrb[24].mxu1  ;;  %v8984_v45 = vadd.f32 %v8983_v34, %v15177_v27  ;;  %v8985_v46 = vpop.f32.mrb[25].mxu0  ;;  %v13204_v27 = vld [vmem:[%s14400_s14 + $0xb0c] ss:$36 sps:$4 sm:$0xff]   ;;  %v13241_v47 = vld [vmem:[%s14400_s14 + $0x1138] ss:$36 sps:$4 sm:$0xff]  }
 0x309   : > { %v9026_v62 = vpop.f32.mrb[25].mxu1  ;;  %v8986_v49 = vadd.f32 %v8985_v46, %v15181_v11  ;;  %v8987_v2 = vpop.f32.mrb[26].mxu0  ;;  %9288 = vmatpush1.bf16.msra.mxu0 %v13190_v30  ;;  %v13202_v11 = vld [vmem:[%s14400_s14 + $0xb08] ss:$36 sps:$4 sm:$0xff]   ;;  %v13258_v46 = vld [vmem:[%s14400_s14 + $0x1214] ss:$36 sps:$4 sm:$0xff]  }
 0x30a   : > { %9329 = vmatpush1.bf16.msra.mxu1 %v13193_v31  ;;  %v9028_v51 = vpop.f32.mrb[26].mxu1  ;;  %v15251_v5 = vadd.f32 %v9024_v35, %v8984_v45  ;;  %v8988_v54 = vpop.f32.mrb[27].mxu0  ;;  %9289 = vmatprep.subr.bf16.mxu0 %v13198_v53  ;;  %v13246_v30 = vld [vmem:[%s14400_s14 + $0xd04] ss:$36 sps:$4 sm:$0xff]   ;;  %v13252_v34 = vld [vmem:[%s14400_s14 + $0xd4c] ss:$36 sps:$4 sm:$0xff]  }
 0x30b   : > { %9330 = vmatprep.subr.bf16.mxu1 %v13201_v32  ;;  %v9029_v56 = vpop.f32.mrb[27].mxu1  ;;  %v15255_v57 = vadd.f32 %v9026_v62, %v8986_v49  ;;  %v13249_v31 = vld [vmem:[%s14400_s14 + $0x1184] ss:$36 sps:$4 sm:$0xff]   ;;  %v13255_v35 = vld [vmem:[%s14400_s14 + $0x11cc] ss:$36 sps:$4 sm:$0xff]  }
 0x30c   : > { %v13244_v53 = vld [vmem:[%s14400_s14 + $0xd00] ss:$36 sps:$4 sm:$0xff]   ;;  %v13253_v45 = vld [vmem:[%s14400_s14 + $0x11c8] ss:$36 sps:$4 sm:$0xff]   ;;  %v13261_v62 = vld [vmem:[%s14400_s14 + $0x1694] ss:$36 sps:$4 sm:$0xff]  }
 0x30d   : > { %9290 = vmatpush1.bf16.msra.mxu0 %v13196_v44  ;;  %v13247_v32 = vld [vmem:[%s14400_s14 + $0x1180] ss:$36 sps:$4 sm:$0xff]   ;;  %v13250_v44 = vld [vmem:[%s14400_s14 + $0xd48] ss:$36 sps:$4 sm:$0xff]   ;;  %v13256_v49 = vld [vmem:[%s14400_s14 + $0x1210] ss:$36 sps:$4 sm:$0xff]  }
 0x30e   : > { %9331 = vmatpush1.bf16.msra.mxu1 %v13199_v50  ;;  %9291 = vmatprep.subr.bf16.mxu0 %v13204_v27  ;;  %v13259_v2 = vld [vmem:[%s14400_s14 + $0x1690] ss:$36 sps:$4 sm:$0xff]   ;;  %v13264_v50 = vld [vmem:[%s14400_s14 + $0x125c] ss:$36 sps:$4 sm:$0xff]   ;;  %v13273_v56 = vld [vmem:[%s14400_s14 + $0x1724] ss:$36 sps:$4 sm:$0xff]  }
 0x30f   : > { %9332 = vmatprep.subr.bf16.mxu1 %v13207_v55  ;;  %v13267_v51 = vld [vmem:[%s14400_s14 + $0x16dc] ss:$36 sps:$4 sm:$0xff]   ;;  %v13270_v55 = vld [vmem:[%s14400_s14 + $0x12a4] ss:$36 sps:$4 sm:$0xff]  }
 0x310   : > { %v13262_v54 = vld [vmem:[%s14400_s14 + $0x1258] ss:$36 sps:$4 sm:$0xff]  }
 0x311   : > { %9292 = vmatpush1.bf16.msra.mxu0 %v13202_v11  ;;  %v13265_v27 = vld [vmem:[%s14400_s14 + $0x16d8] ss:$36 sps:$4 sm:$0xff]   ;;  %v13268_v11 = vld [vmem:[%s14400_s14 + $0x12a0] ss:$36 sps:$4 sm:$0xff]  }
 0x312   : > { %9333 = vmatpush1.bf16.msra.mxu1 %v13205_v58  ;;  %9293 = vmatprep.subr.bf16.mxu0 %v13210_v59  ;;  %v13271_v58 = vld [vmem:[%s14400_s14 + $0x1720] ss:$36 sps:$4 sm:$0xff]   ;;  %v13276_v59 = vld [vmem:[%s14400_s14 + $0x12ec] ss:$36 sps:$4 sm:$0xff]  }
 0x313   : > { %9334 = vmatprep.subr.bf16.mxu1 %v13213_v63  ;;  %v13279_v63 = vld [vmem:[%s14400_s14 + $0x176c] ss:$36 sps:$4 sm:$0xff]  }
 0x315   : > { %9294 = vmatpush1.bf16.msra.mxu0 %v13208_v0  ;;  %v13274_v0 = vld [vmem:[%s14400_s14 + $0x12e8] ss:$36 sps:$4 sm:$0xff]  }
 0x316   : > { %9335 = vmatpush1.bf16.msra.mxu1 %v13211_v1  ;;  %9295 = vmatprep.subr.bf16.mxu0 %v13216_v42  ;;  %v13277_v1 = vld [vmem:[%s14400_s14 + $0x1768] ss:$36 sps:$4 sm:$0xff]   ;;  %v13282_v42 = vld [vmem:[%s14400_s14 + $0x1334] ss:$36 sps:$4 sm:$0xff]  }
 0x317   : > { %9336 = vmatprep.subr.bf16.mxu1 %v13219_v3  ;;  %v13285_v3 = vld [vmem:[%s14400_s14 + $0x17b4] ss:$36 sps:$4 sm:$0xff]  }
 0x319   : > { %9296 = vmatpush1.bf16.msra.mxu0 %v13214_v18  ;;  %v13280_v18 = vld [vmem:[%s14400_s14 + $0x1330] ss:$36 sps:$4 sm:$0xff]  }
 0x31a   : > { %9337 = vmatpush1.bf16.msra.mxu1 %v13217_v4  ;;  %9297 = vmatprep.subr.bf16.mxu0 %v13222_v6  ;;  %v13283_v4 = vld [vmem:[%s14400_s14 + $0x17b0] ss:$36 sps:$4 sm:$0xff]   ;;  %v13288_v6 = vld [vmem:[%s14400_s14 + $0x137c] ss:$36 sps:$4 sm:$0xff]  }
 0x31b   : > { %9338 = vmatprep.subr.bf16.mxu1 %v13225_v14  ;;  %v13291_v14 = vld [vmem:[%s14400_s14 + $0x17fc] ss:$36 sps:$4 sm:$0xff]  }
 0x31d   : > { %9298 = vmatpush1.bf16.msra.mxu0 %v13220_v9  ;;  %v13286_v9 = vld [vmem:[%s14400_s14 + $0x1378] ss:$36 sps:$4 sm:$0xff]  }
 0x31e   : > { %9339 = vmatpush1.bf16.msra.mxu1 %v13223_v10  ;;  %9299 = vmatprep.subr.bf16.mxu0 %v13228_v19  ;;  %v13289_v10 = vld [vmem:[%s14400_s14 + $0x17f8] ss:$36 sps:$4 sm:$0xff]   ;;  %v13294_v19 = vld [vmem:[%s14400_s14 + $0x13c4] ss:$36 sps:$4 sm:$0xff]  }
 0x31f   : > { %9340 = vmatprep.subr.bf16.mxu1 %v13231_v12  ;;  %v13297_v12 = vld [vmem:[%s14400_s14 + $0x1844] ss:$36 sps:$4 sm:$0xff]  }
 0x321   : > { %9300 = vmatpush1.bf16.msra.mxu0 %v13226_v13 }
 0x322   : > { %9341 = vmatpush1.bf16.msra.mxu1 %v13229_v15  ;;  %9301 = vmatprep.subr.bf16.mxu0 %v13234_v16  ;;  %v13292_v16 = vld [vmem:[%s14400_s14 + $0x13c0] ss:$36 sps:$4 sm:$0xff]  }
 0x323   : > { %9342 = vmatprep.subr.bf16.mxu1 %v13237_v33  ;;  %v13295_v33 = vld [vmem:[%s14400_s14 + $0x1840] ss:$36 sps:$4 sm:$0xff]  }
 0x325   : > { %9302 = vmatpush1.bf16.msra.mxu0 %v13232_v21 }
 0x326   : > { %9343 = vmatpush1.bf16.msra.mxu1 %v13235_v22  ;;  %9303 = vmatprep.subr.bf16.mxu0 %v13240_v36 }
 0x327   : > { %9344 = vmatprep.subr.bf16.mxu1 %v13243_v28 }
 0x329   : > { %9304 = vmatpush1.bf16.msra.mxu0 %v13238_v29 }
 0x32a   : > { %9345 = vmatpush1.bf16.msra.mxu1 %v13241_v47  ;;  %9305 = vmatprep.subr.bf16.mxu0 %v13246_v30 }
 0x32b   : > { %9346 = vmatprep.subr.bf16.mxu1 %v13249_v31 }
 0x32d   : > { %9306 = vmatpush1.bf16.msra.mxu0 %v13244_v53  ;;  %v13303_v53 = vld [vmem:[%s14400_s14 + $0x188c] ss:$36 sps:$4 sm:$0xff]  }
 0x32e   : > { %9347 = vmatpush1.bf16.msra.mxu1 %v13247_v32  ;;  %9307 = vmatprep.subr.bf16.mxu0 %v13252_v34 }
 0x32f   : > { %9348 = vmatprep.subr.bf16.mxu1 %v13255_v35  ;;  %v13301_v35 = vld [vmem:[%s14400_s14 + $0x1888] ss:$36 sps:$4 sm:$0xff]  }
 0x331   : > { %9308 = vmatpush1.bf16.msra.mxu0 %v13250_v44  ;;  %v13306_v44 = vld [vmem:[%s14400_s14 + $0x1454] ss:$36 sps:$4 sm:$0xff]  }
 0x332   : > { %9349 = vmatpush1.bf16.msra.mxu1 %v13253_v45  ;;  %9359 = vmatprep.subr.bf16.mxu0 %v13258_v46  ;;  %v13309_v45 = vld [vmem:[%s14400_s14 + $0x18d4] ss:$36 sps:$4 sm:$0xff]  }
 0x333   : > { %9400 = vmatprep.subr.bf16.mxu1 %v13261_v62  ;;  %v13304_v46 = vld [vmem:[%s14400_s14 + $0x1450] ss:$36 sps:$4 sm:$0xff]  }
 0x334   : > { %9310 = vmatmul.mubr.bf16.vlgmr.msra.gmra.mrb[40].mxu0 %v14580_v17  ;;  %v13307_v62 = vld [vmem:[%s14400_s14 + $0x18d0] ss:$36 sps:$4 sm:$0xff]  }
 0x335   : > { %9351 = vmatmul.mubr.bf16.vlgmr.msra.gmra.mrb[40].mxu1 %v14586_v20  ;;  %9360 = vmatpush1.bf16.msra.mxu0 %v13256_v49  ;;  %v13312_v49 = vld [vmem:[%s14400_s14 + $0x149c] ss:$36 sps:$4 sm:$0xff]  }
 0x336   : > { %9401 = vmatpush1.bf16.msra.mxu1 %v13259_v2  ;;  %9361 = vmatprep.subr.bf16.mxu0 %v13264_v50  ;;  %v13315_v2 = vld [vmem:[%s14400_s14 + $0x191c] ss:$36 sps:$4 sm:$0xff]  }
 0x337   : > { %9402 = vmatprep.subr.bf16.mxu1 %v13267_v51  ;;  %9391 = vmatprep.mubr.bf16.mxu0 %v14598_v25  ;;  %v13310_v50 = vld [vmem:[%s14400_s14 + $0x1498] ss:$36 sps:$4 sm:$0xff]  }
 0x338   : > { %9432 = vmatprep.mubr.bf16.mxu1 %v14602_v26  ;;  %v13313_v51 = vld [vmem:[%s14400_s14 + $0x1918] ss:$36 sps:$4 sm:$0xff]  }
 0x339   : > { %9362 = vmatpush1.bf16.msra.mxu0 %v13262_v54  ;;  %v13318_v54 = vld [vmem:[%s14400_s14 + $0x14e4] ss:$36 sps:$4 sm:$0xff]  }
 0x33a   : > { %9403 = vmatpush1.bf16.msra.mxu1 %v13265_v27  ;;  %9363 = vmatprep.subr.bf16.mxu0 %v13270_v55  ;;  %v13321_v27 = vld [vmem:[%s14400_s14 + $0x1964] ss:$36 sps:$4 sm:$0xff]  }
 0x33b   : > { %9404 = vmatprep.subr.bf16.mxu1 %v13273_v56  ;;  %v13316_v55 = vld [vmem:[%s14400_s14 + $0x14e0] ss:$36 sps:$4 sm:$0xff]  }
 0x33c   : > { %v13319_v56 = vld [vmem:[%s14400_s14 + $0x1960] ss:$36 sps:$4 sm:$0xff]  }
 0x33d   : > { %9364 = vmatpush1.bf16.msra.mxu0 %v13268_v11  ;;  %v13324_v11 = vld [vmem:[%s14400_s14 + $0x152c] ss:$36 sps:$4 sm:$0xff]  }
 0x33e   : > { %9405 = vmatpush1.bf16.msra.mxu1 %v13271_v58  ;;  %9365 = vmatprep.subr.bf16.mxu0 %v13276_v59  ;;  %v13327_v58 = vld [vmem:[%s14400_s14 + $0x19ac] ss:$36 sps:$4 sm:$0xff]  }
 0x33f   : > { %9406 = vmatprep.subr.bf16.mxu1 %v13279_v63  ;;  %v13322_v59 = vld [vmem:[%s14400_s14 + $0x1528] ss:$36 sps:$4 sm:$0xff]  }
 0x340   : > { %v13325_v63 = vld [vmem:[%s14400_s14 + $0x19a8] ss:$36 sps:$4 sm:$0xff]  }
 0x341   : > { %9366 = vmatpush1.bf16.msra.mxu0 %v13274_v0  ;;  %v13330_v0 = vld [vmem:[%s14400_s14 + $0x1574] ss:$36 sps:$4 sm:$0xff]  }
 0x342   : > { %9407 = vmatpush1.bf16.msra.mxu1 %v13277_v1  ;;  %9367 = vmatprep.subr.bf16.mxu0 %v13282_v42  ;;  %v13333_v1 = vld [vmem:[%s14400_s14 + $0x19f4] ss:$36 sps:$4 sm:$0xff]  }
 0x343   : > { %9408 = vmatprep.subr.bf16.mxu1 %v13285_v3  ;;  %v13328_v42 = vld [vmem:[%s14400_s14 + $0x1570] ss:$36 sps:$4 sm:$0xff]  }
 0x344   : > { %v13331_v3 = vld [vmem:[%s14400_s14 + $0x19f0] ss:$36 sps:$4 sm:$0xff]  }
 0x345   : > { %9368 = vmatpush1.bf16.msra.mxu0 %v13280_v18  ;;  %v13336_v18 = vld [vmem:[%s14400_s14 + $0x15bc] ss:$36 sps:$4 sm:$0xff]  }
 0x346   : > { %9409 = vmatpush1.bf16.msra.mxu1 %v13283_v4  ;;  %9369 = vmatprep.subr.bf16.mxu0 %v13288_v6  ;;  %v13339_v4 = vld [vmem:[%s14400_s14 + $0x1a3c] ss:$36 sps:$4 sm:$0xff]  }
 0x347   : > { %9410 = vmatprep.subr.bf16.mxu1 %v13291_v14  ;;  %v9065_v13 = vpop.f32.mrb[28].mxu0  ;;  %v13334_v6 = vld [vmem:[%s14400_s14 + $0x15b8] ss:$36 sps:$4 sm:$0xff]  }
 0x348   : > { %v9106_v15 = vpop.f32.mrb[28].mxu1  ;;  %v9066_v21 = vadd.f32 %v9065_v13, %v15251_v5  ;;  %v9067_v22 = vpop.f32.mrb[29].mxu0  ;;  %v13300_v5 = vld [vmem:[%s14400_s14 + $0x140c] ss:$36 sps:$4 sm:$0xff]   ;;  %v13337_v14 = vld [vmem:[%s14400_s14 + $0x1a38] ss:$36 sps:$4 sm:$0xff]  }
 0x349   : > { %v9108_v36 = vpop.f32.mrb[29].mxu1  ;;  %v9068_v28 = vadd.f32 %v9067_v22, %v15255_v57  ;;  %v9069_v29 = vpop.f32.mrb[30].mxu0  ;;  %9370 = vmatpush1.bf16.msra.mxu0 %v13286_v9  ;;  %v13298_v57 = vld [vmem:[%s14400_s14 + $0x1408] ss:$36 sps:$4 sm:$0xff]   ;;  %v13357_v22 = vld [vmem:[%s14400_s14 + $0x1f94] ss:$36 sps:$4 sm:$0xff]  }
 0x34a   : > { %9411 = vmatpush1.bf16.msra.mxu1 %v13289_v10  ;;  %v9110_v47 = vpop.f32.mrb[30].mxu1  ;;  %v15325_v30 = vadd.f32 %v9106_v15, %v9066_v21  ;;  %v9070_v31 = vpop.f32.mrb[31].mxu0  ;;  %9371 = vmatprep.subr.bf16.mxu0 %v13294_v19  ;;  %v13342_v9 = vld [vmem:[%s14400_s14 + $0x1604] ss:$36 sps:$4 sm:$0xff]   ;;  %v13348_v13 = vld [vmem:[%s14400_s14 + $0x164c] ss:$36 sps:$4 sm:$0xff]  }
 0x34b   : > { %9412 = vmatprep.subr.bf16.mxu1 %v13297_v12  ;;  %v9111_v32 = vpop.f32.mrb[31].mxu1  ;;  %v15329_v34 = vadd.f32 %v9108_v36, %v9068_v28  ;;  %v13345_v10 = vld [vmem:[%s14400_s14 + $0x1a84] ss:$36 sps:$4 sm:$0xff]   ;;  %v13351_v15 = vld [vmem:[%s14400_s14 + $0x1acc] ss:$36 sps:$4 sm:$0xff]  }
 0x34c   : > { %v13340_v19 = vld [vmem:[%s14400_s14 + $0x1600] ss:$36 sps:$4 sm:$0xff]   ;;  %v13354_v21 = vld [vmem:[%s14400_s14 + $0x1b14] ss:$36 sps:$4 sm:$0xff]  }
 0x34d   : > { %9372 = vmatpush1.bf16.msra.mxu0 %v13292_v16  ;;  %v13343_v12 = vld [vmem:[%s14400_s14 + $0x1a80] ss:$36 sps:$4 sm:$0xff]   ;;  %v13346_v16 = vld [vmem:[%s14400_s14 + $0x1648] ss:$36 sps:$4 sm:$0xff]   ;;  %v13352_v36 = vld [vmem:[%s14400_s14 + $0x1b10] ss:$36 sps:$4 sm:$0xff]  }
 0x34e   : > { %9413 = vmatpush1.bf16.msra.mxu1 %v13295_v33  ;;  %9373 = vmatprep.subr.bf16.mxu0 %v13300_v5  ;;  %v13349_v33 = vld [vmem:[%s14400_s14 + $0x1ac8] ss:$36 sps:$4 sm:$0xff]   ;;  %v13355_v28 = vld [vmem:[%s14400_s14 + $0x1f90] ss:$36 sps:$4 sm:$0xff]   ;;  %v13360_v29 = vld [vmem:[%s14400_s14 + $0x1b5c] ss:$36 sps:$4 sm:$0xff]  }
 0x34f   : > { %9414 = vmatprep.subr.bf16.mxu1 %v13303_v53  ;;  %v13363_v47 = vld [vmem:[%s14400_s14 + $0x1fdc] ss:$36 sps:$4 sm:$0xff]   ;;  %v13366_v53 = vld [vmem:[%s14400_s14 + $0x1ba4] ss:$36 sps:$4 sm:$0xff]  }
 0x350   : > { %v13358_v31 = vld [vmem:[%s14400_s14 + $0x1b58] ss:$36 sps:$4 sm:$0xff]   ;;  %v13369_v32 = vld [vmem:[%s14400_s14 + $0x2024] ss:$36 sps:$4 sm:$0xff]  }
 0x351   : > { %9374 = vmatpush1.bf16.msra.mxu0 %v13298_v57  ;;  %v13361_v5 = vld [vmem:[%s14400_s14 + $0x1fd8] ss:$36 sps:$4 sm:$0xff]   ;;  %v13364_v57 = vld [vmem:[%s14400_s14 + $0x1ba0] ss:$36 sps:$4 sm:$0xff]  }
 0x352   : > { %9415 = vmatpush1.bf16.msra.mxu1 %v13301_v35  ;;  %9375 = vmatprep.subr.bf16.mxu0 %v13306_v44  ;;  %v13367_v35 = vld [vmem:[%s14400_s14 + $0x2020] ss:$36 sps:$4 sm:$0xff]   ;;  %v13372_v44 = vld [vmem:[%s14400_s14 + $0x1bec] ss:$36 sps:$4 sm:$0xff]  }
 0x353   : > { %9416 = vmatprep.subr.bf16.mxu1 %v13309_v45  ;;  %v13375_v45 = vld [vmem:[%s14400_s14 + $0x206c] ss:$36 sps:$4 sm:$0xff]  }
 0x355   : > { %9376 = vmatpush1.bf16.msra.mxu0 %v13304_v46  ;;  %v13370_v46 = vld [vmem:[%s14400_s14 + $0x1be8] ss:$36 sps:$4 sm:$0xff]  }
 0x356   : > { %9417 = vmatpush1.bf16.msra.mxu1 %v13307_v62  ;;  %9377 = vmatprep.subr.bf16.mxu0 %v13312_v49  ;;  %v13373_v62 = vld [vmem:[%s14400_s14 + $0x2068] ss:$36 sps:$4 sm:$0xff]   ;;  %v13378_v49 = vld [vmem:[%s14400_s14 + $0x1c34] ss:$36 sps:$4 sm:$0xff]  }
 0x357   : > { %9418 = vmatprep.subr.bf16.mxu1 %v13315_v2  ;;  %v13381_v2 = vld [vmem:[%s14400_s14 + $0x20b4] ss:$36 sps:$4 sm:$0xff]  }
 0x359   : > { %9378 = vmatpush1.bf16.msra.mxu0 %v13310_v50  ;;  %v13376_v50 = vld [vmem:[%s14400_s14 + $0x1c30] ss:$36 sps:$4 sm:$0xff]  }
 0x35a   : > { %9419 = vmatpush1.bf16.msra.mxu1 %v13313_v51  ;;  %9379 = vmatprep.subr.bf16.mxu0 %v13318_v54  ;;  %v13379_v51 = vld [vmem:[%s14400_s14 + $0x20b0] ss:$36 sps:$4 sm:$0xff]   ;;  %v13384_v54 = vld [vmem:[%s14400_s14 + $0x1c7c] ss:$36 sps:$4 sm:$0xff]  }
 0x35b   : > { %9420 = vmatprep.subr.bf16.mxu1 %v13321_v27  ;;  %v13387_v27 = vld [vmem:[%s14400_s14 + $0x20fc] ss:$36 sps:$4 sm:$0xff]  }
 0x35d   : > { %9380 = vmatpush1.bf16.msra.mxu0 %v13316_v55  ;;  %v13382_v55 = vld [vmem:[%s14400_s14 + $0x1c78] ss:$36 sps:$4 sm:$0xff]  }
 0x35e   : > { %9421 = vmatpush1.bf16.msra.mxu1 %v13319_v56  ;;  %9381 = vmatprep.subr.bf16.mxu0 %v13324_v11  ;;  %v13385_v56 = vld [vmem:[%s14400_s14 + $0x20f8] ss:$36 sps:$4 sm:$0xff]   ;;  %v13390_v11 = vld [vmem:[%s14400_s14 + $0x1cc4] ss:$36 sps:$4 sm:$0xff]  }
 0x35f   : > { %9422 = vmatprep.subr.bf16.mxu1 %v13327_v58  ;;  %v13393_v58 = vld [vmem:[%s14400_s14 + $0x2144] ss:$36 sps:$4 sm:$0xff]  }
 0x361   : > { %9382 = vmatpush1.bf16.msra.mxu0 %v13322_v59 }
 0x362   : > { %9423 = vmatpush1.bf16.msra.mxu1 %v13325_v63  ;;  %9383 = vmatprep.subr.bf16.mxu0 %v13330_v0  ;;  %v314_v63 = vld [vmem:[#allocation2 + $0x10] sm:$0xff] }
 0x363   : > { %9424 = vmatprep.subr.bf16.mxu1 %v13333_v1  ;;  %v13388_v1 = vld [vmem:[%s14400_s14 + $0x1cc0] ss:$36 sps:$4 sm:$0xff]  }
 0x365   : > { %9384 = vmatpush1.bf16.msra.mxu0 %v13328_v42  ;;  %v13391_v42 = vld [vmem:[%s14400_s14 + $0x2140] ss:$36 sps:$4 sm:$0xff]  }
 0x366   : > { %9425 = vmatpush1.bf16.msra.mxu1 %v13331_v3  ;;  %9385 = vmatprep.subr.bf16.mxu0 %v13336_v18 }
 0x367   : > { %9426 = vmatprep.subr.bf16.mxu1 %v13339_v4  ;;  %v315_v4 = vld [vmem:[#allocation2 + $0x18] sm:$0xff] }
 0x369   : > { %9386 = vmatpush1.bf16.msra.mxu0 %v13334_v6 }
 0x36a   : > { %9427 = vmatpush1.bf16.msra.mxu1 %v13337_v14  ;;  %9387 = vmatprep.subr.bf16.mxu0 %v13342_v9 }
 0x36b   : > { %9428 = vmatprep.subr.bf16.mxu1 %v13345_v10 }
 0x36d   : > { %9388 = vmatpush1.bf16.msra.mxu0 %v13340_v19 }
 0x36e   : > { %9429 = vmatpush1.bf16.msra.mxu1 %v13343_v12  ;;  %9389 = vmatprep.subr.bf16.mxu0 %v13348_v13  ;;  %v13396_v13 = vld [vmem:[%s14400_s14 + $0x1d0c] ss:$36 sps:$4 sm:$0xff]  }
 0x36f   : > { %9430 = vmatprep.subr.bf16.mxu1 %v13351_v15  ;;  %v13399_v15 = vld [vmem:[%s14400_s14 + $0x218c] ss:$36 sps:$4 sm:$0xff]  }
 0x371   : > { %9390 = vmatpush1.bf16.msra.mxu0 %v13346_v16 }
 0x372   : > { %9431 = vmatpush1.bf16.msra.mxu1 %v13349_v33  ;;  %9441 = vmatprep.subr.bf16.mxu0 %v13354_v21  ;;  %v13394_v21 = vld [vmem:[%s14400_s14 + $0x1d08] ss:$36 sps:$4 sm:$0xff]  }
 0x373   : > { %9482 = vmatprep.subr.bf16.mxu1 %v13357_v22  ;;  %v13397_v22 = vld [vmem:[%s14400_s14 + $0x2188] ss:$36 sps:$4 sm:$0xff]  }
 0x374   : > { %9392 = vmatmul.mubr.bf16.vlgmr.msra.gmra.mrb[44].mxu0 %v14672_v39 }
 0x375   : > { %9433 = vmatmul.mubr.bf16.vlgmr.msra.gmra.mrb[44].mxu1 %v14676_v40  ;;  %9442 = vmatpush1.bf16.msra.mxu0 %v13352_v36  ;;  %v13402_v36 = vld [vmem:[%s14400_s14 + $0x1d54] ss:$36 sps:$4 sm:$0xff]  }
 0x376   : > { %9483 = vmatpush1.bf16.msra.mxu1 %v13355_v28  ;;  %9443 = vmatprep.subr.bf16.mxu0 %v13360_v29  ;;  %v13405_v28 = vld [vmem:[%s14400_s14 + $0x21d4] ss:$36 sps:$4 sm:$0xff]  }
 0x377   : > { %9484 = vmatprep.subr.bf16.mxu1 %v13363_v47  ;;  %9473 = vmatprep.mubr.bf16.mxu0 %v14688_v23  ;;  %v13400_v29 = vld [vmem:[%s14400_s14 + $0x1d50] ss:$36 sps:$4 sm:$0xff]  }
 0x378   : > { %9514 = vmatprep.mubr.bf16.mxu1 %v14692_v24  ;;  %v13403_v47 = vld [vmem:[%s14400_s14 + $0x21d0] ss:$36 sps:$4 sm:$0xff]  }
 0x379   : > { %9444 = vmatpush1.bf16.msra.mxu0 %v13358_v31  ;;  %v13408_v31 = vld [vmem:[%s14400_s14 + $0x1d9c] ss:$36 sps:$4 sm:$0xff]  }
 0x37a   : > { %9485 = vmatpush1.bf16.msra.mxu1 %v13361_v5  ;;  %9445 = vmatprep.subr.bf16.mxu0 %v13366_v53  ;;  %v13411_v5 = vld [vmem:[%s14400_s14 + $0x221c] ss:$36 sps:$4 sm:$0xff]  }
 0x37b   : > { %9486 = vmatprep.subr.bf16.mxu1 %v13369_v32  ;;  %v13406_v53 = vld [vmem:[%s14400_s14 + $0x1d98] ss:$36 sps:$4 sm:$0xff]  }
 0x37c   : > { %v13409_v32 = vld [vmem:[%s14400_s14 + $0x2218] ss:$36 sps:$4 sm:$0xff]  }
 0x37d   : > { %9446 = vmatpush1.bf16.msra.mxu0 %v13364_v57  ;;  %v13414_v57 = vld [vmem:[%s14400_s14 + $0x1de4] ss:$36 sps:$4 sm:$0xff]  }
 0x37e   : > { %9487 = vmatpush1.bf16.msra.mxu1 %v13367_v35  ;;  %9447 = vmatprep.subr.bf16.mxu0 %v13372_v44  ;;  %v13417_v35 = vld [vmem:[%s14400_s14 + $0x2264] ss:$36 sps:$4 sm:$0xff]  }
 0x37f   : > { %9488 = vmatprep.subr.bf16.mxu1 %v13375_v45  ;;  %v13412_v44 = vld [vmem:[%s14400_s14 + $0x1de0] ss:$36 sps:$4 sm:$0xff]  }
 0x380   : > { %v13415_v45 = vld [vmem:[%s14400_s14 + $0x2260] ss:$36 sps:$4 sm:$0xff]  }
 0x381   : > { %9448 = vmatpush1.bf16.msra.mxu0 %v13370_v46  ;;  %v13420_v46 = vld [vmem:[%s14400_s14 + $0x1e2c] ss:$36 sps:$4 sm:$0xff]  }
 0x382   : > { %9489 = vmatpush1.bf16.msra.mxu1 %v13373_v62  ;;  %9449 = vmatprep.subr.bf16.mxu0 %v13378_v49  ;;  %v13423_v62 = vld [vmem:[%s14400_s14 + $0x22ac] ss:$36 sps:$4 sm:$0xff]  }
 0x383   : > { %9490 = vmatprep.subr.bf16.mxu1 %v13381_v2  ;;  %v13418_v49 = vld [vmem:[%s14400_s14 + $0x1e28] ss:$36 sps:$4 sm:$0xff]  }
 0x384   : > { %v13421_v2 = vld [vmem:[%s14400_s14 + $0x22a8] ss:$36 sps:$4 sm:$0xff]  }
 0x385   : > { %9450 = vmatpush1.bf16.msra.mxu0 %v13376_v50  ;;  %v13426_v50 = vld [vmem:[%s14400_s14 + $0x1e74] ss:$36 sps:$4 sm:$0xff]  }
 0x386   : > { %9491 = vmatpush1.bf16.msra.mxu1 %v13379_v51  ;;  %9451 = vmatprep.subr.bf16.mxu0 %v13384_v54  ;;  %v13429_v51 = vld [vmem:[%s14400_s14 + $0x22f4] ss:$36 sps:$4 sm:$0xff]  }
 0x387   : > { %9492 = vmatprep.subr.bf16.mxu1 %v13387_v27  ;;  %v9147_v59 = vpop.f32.mrb[32].mxu0  ;;  %v13424_v54 = vld [vmem:[%s14400_s14 + $0x1e70] ss:$36 sps:$4 sm:$0xff]  }
 0x388   : > { %v9188_v0 = vpop.f32.mrb[32].mxu1  ;;  %v9148_v3 = vadd.f32 %v9147_v59, %v15325_v30  ;;  %v9149_v18 = vpop.f32.mrb[33].mxu0  ;;  %v13427_v27 = vld [vmem:[%s14400_s14 + $0x22f0] ss:$36 sps:$4 sm:$0xff]   ;;  %v13438_v59 = vld [vmem:[%s14400_s14 + $0x1f04] ss:$36 sps:$4 sm:$0xff]  }
 0x389   : > { %v9190_v6 = vpop.f32.mrb[33].mxu1  ;;  %v9150_v14 = vadd.f32 %v9149_v18, %v15329_v34  ;;  %v9151_v9 = vpop.f32.mrb[34].mxu0  ;;  %9452 = vmatpush1.bf16.msra.mxu0 %v13382_v55  ;;  %v13432_v55 = vld [vmem:[%s14400_s14 + $0x1ebc] ss:$36 sps:$4 sm:$0xff]   ;;  %v13442_v18 = vld [vmem:[%s14400_s14 + $0x1f48] ss:$36 sps:$4 sm:$0xff]  }
 0x38a   : > { %9493 = vmatpush1.bf16.msra.mxu1 %v13385_v56  ;;  %v9192_v10 = vpop.f32.mrb[34].mxu1  ;;  %v9189_v19 = vadd.f32 %v9188_v0, %v9148_v3  ;;  %v9152_v12 = vpop.f32.mrb[35].mxu0  ;;  %9453 = vmatprep.subr.bf16.mxu0 %v13390_v11  ;;  %v13435_v56 = vld [vmem:[%s14400_s14 + $0x233c] ss:$36 sps:$4 sm:$0xff]   ;;  %v13447_v3 = vld [vmem:[%s14400_s14 + $0x23cc] ss:$36 sps:$4 sm:$0xff]  }
 0x38b   : > { %9494 = vmatprep.subr.bf16.mxu1 %v13393_v58  ;;  %v9193_v30 = vpop.f32.mrb[35].mxu1  ;;  %v9191_v16 = vadd.f32 %v9190_v6, %v9150_v14  ;;  %v13430_v11 = vld [vmem:[%s14400_s14 + $0x1eb8] ss:$36 sps:$4 sm:$0xff]   ;;  %v13436_v0 = vld [vmem:[%s14400_s14 + $0x1f00] ss:$36 sps:$4 sm:$0xff]  }
 0x38c   : > { %v10295_v33 = vadd.f32 %v9189_v19, %v314_v63  ;;  %v13433_v58 = vld [vmem:[%s14400_s14 + $0x2338] ss:$36 sps:$4 sm:$0xff]   ;;  %v13441_v63 = vld [vmem:[%s14400_s14 + $0x2384] ss:$36 sps:$4 sm:$0xff]   ;;  %v13448_v9 = vld [vmem:[%s14400_s14 + $0x2410] ss:$36 sps:$4 sm:$0xff]  }
 0x38d   : > { %v10296_v34 = vadd.f32 %v9191_v16, %v315_v4  ;;  %9454 = vmatpush1.bf16.msra.mxu0 %v13388_v1  ;;  %v13439_v1 = vld [vmem:[%s14400_s14 + $0x2380] ss:$36 sps:$4 sm:$0xff]   ;;  %v13445_v4 = vld [vmem:[%s14400_s14 + $0x23c8] ss:$36 sps:$4 sm:$0xff]   ;;  %v13450_v6 = vld [vmem:[%s14400_s14 + $0x2414] ss:$36 sps:$4 sm:$0xff]  }
 0x38e   : > { %9495 = vmatpush1.bf16.msra.mxu1 %v13391_v42  ;;  %10304 = vst [vmem:[#allocation2 + $0x10] sm:$0xff] %v10295_v33  ;;  %9455 = vmatprep.subr.bf16.mxu0 %v13396_v13  ;;  %v13444_v42 = vld [vmem:[%s14400_s14 + $0x1f4c] ss:$36 sps:$4 sm:$0xff]   ;;  %v13453_v14 = vld [vmem:[%s14400_s14 + $0x1c] ss:$36 sps:$4 sm:$0xff]  }
 0x38f   : > { %9496 = vmatprep.subr.bf16.mxu1 %v13399_v15  ;;  %10305 = vst [vmem:[#allocation2 + $0x18] sm:$0xff] %v10296_v34  ;;  %v13451_v10 = vld [vmem:[%s14400_s14 + $0x18] ss:$36 sps:$4 sm:$0xff]   ;;  %v13459_v12 = vld [vmem:[%s14400_s14 + $0x64] ss:$36 sps:$4 sm:$0xff]  }
 0x390   : > { %v13456_v19 = vld [vmem:[%s14400_s14 + $0x245c] ss:$36 sps:$4 sm:$0xff]   ;;  %v13462_v30 = vld [vmem:[%s14400_s14 + $0x24a4] ss:$36 sps:$4 sm:$0xff]   ;;  %v13465_v16 = vld [vmem:[%s14400_s14 + $0xac] ss:$36 sps:$4 sm:$0xff]  }
 0x391   : > { %9456 = vmatpush1.bf16.msra.mxu0 %v13394_v21  ;;  %v13454_v13 = vld [vmem:[%s14400_s14 + $0x2458] ss:$36 sps:$4 sm:$0xff]   ;;  %v13457_v15 = vld [vmem:[%s14400_s14 + $0x60] ss:$36 sps:$4 sm:$0xff]   ;;  %v13463_v34 = vld [vmem:[%s14400_s14 + $0xa8] ss:$36 sps:$4 sm:$0xff]  }
 0x392   : > { %9497 = vmatpush1.bf16.msra.mxu1 %v13397_v22  ;;  %9457 = vmatprep.subr.bf16.mxu0 %v13402_v36  ;;  %v13460_v33 = vld [vmem:[%s14400_s14 + $0x24a0] ss:$36 sps:$4 sm:$0xff]   ;;  %v13468_v21 = vld [vmem:[%s14400_s14 + $0x24ec] ss:$36 sps:$4 sm:$0xff]   ;;  %v13471_v22 = vld [vmem:[%s14400_s14 + $0xf4] ss:$36 sps:$4 sm:$0xff]  }
 0x393   : > { %9498 = vmatprep.subr.bf16.mxu1 %v13405_v28  ;;  %v13466_v36 = vld [vmem:[%s14400_s14 + $0x24e8] ss:$36 sps:$4 sm:$0xff]   ;;  %v13469_v28 = vld [vmem:[%s14400_s14 + $0xf0] ss:$36 sps:$4 sm:$0xff]  }
 0x395   : > { %9458 = vmatpush1.bf16.msra.mxu0 %v13400_v29  ;;  %v13474_v29 = vld [vmem:[%s14400_s14 + $0x2534] ss:$36 sps:$4 sm:$0xff]  }
 0x396   : > { %9499 = vmatpush1.bf16.msra.mxu1 %v13403_v47  ;;  %9459 = vmatprep.subr.bf16.mxu0 %v13408_v31  ;;  %v13477_v47 = vld [vmem:[%s14400_s14 + $0x13c] ss:$36 sps:$4 sm:$0xff]   ;;  %v13472_v31 = vld [vmem:[%s14400_s14 + $0x2530] ss:$36 sps:$4 sm:$0xff]  }
 0x397   : > { %9500 = vmatprep.subr.bf16.mxu1 %v13411_v5  ;;  %v13475_v5 = vld [vmem:[%s14400_s14 + $0x138] ss:$36 sps:$4 sm:$0xff]  }
 0x399   : > { %9460 = vmatpush1.bf16.msra.mxu0 %v13406_v53  ;;  %v13480_v53 = vld [vmem:[%s14400_s14 + $0x257c] ss:$36 sps:$4 sm:$0xff]  }
 0x39a   : > { %9501 = vmatpush1.bf16.msra.mxu1 %v13409_v32  ;;  %9461 = vmatprep.subr.bf16.mxu0 %v13414_v57  ;;  %v13483_v32 = vld [vmem:[%s14400_s14 + $0x184] ss:$36 sps:$4 sm:$0xff]   ;;  %v13478_v57 = vld [vmem:[%s14400_s14 + $0x2578] ss:$36 sps:$4 sm:$0xff]  }
 0x39b   : > { %9502 = vmatprep.subr.bf16.mxu1 %v13417_v35  ;;  %v13481_v35 = vld [vmem:[%s14400_s14 + $0x180] ss:$36 sps:$4 sm:$0xff]  }
 0x39d   : > { %9462 = vmatpush1.bf16.msra.mxu0 %v13412_v44  ;;  %v13486_v44 = vld [vmem:[%s14400_s14 + $0x25c4] ss:$36 sps:$4 sm:$0xff]  }
 0x39e   : > { %9503 = vmatpush1.bf16.msra.mxu1 %v13415_v45  ;;  %9463 = vmatprep.subr.bf16.mxu0 %v13420_v46  ;;  %v13489_v45 = vld [vmem:[%s14400_s14 + $0x1cc] ss:$36 sps:$4 sm:$0xff]  }
 0x39f   : > { %9504 = vmatprep.subr.bf16.mxu1 %v13423_v62 }
 0x3a1   : > { %9464 = vmatpush1.bf16.msra.mxu0 %v13418_v49 }
 0x3a2   : > { %9505 = vmatpush1.bf16.msra.mxu1 %v13421_v2  ;;  %9465 = vmatprep.subr.bf16.mxu0 %v13426_v50 }
 0x3a3   : > { %9506 = vmatprep.subr.bf16.mxu1 %v13429_v51 }
 0x3a5   : > { %9466 = vmatpush1.bf16.msra.mxu0 %v13424_v54 }
 0x3a6   : > { %9507 = vmatpush1.bf16.msra.mxu1 %v13427_v27  ;;  %9467 = vmatprep.subr.bf16.mxu0 %v13432_v55  ;;  %v13484_v27 = vld [vmem:[%s14400_s14 + $0x25c0] ss:$36 sps:$4 sm:$0xff]   ;;  %v13487_v55 = vld [vmem:[%s14400_s14 + $0x1c8] ss:$36 sps:$4 sm:$0xff]  }
 0x3a7   : > { %9508 = vmatprep.subr.bf16.mxu1 %v13435_v56 }
 0x3a9   : > { %9468 = vmatpush1.bf16.msra.mxu0 %v13430_v11 }
 0x3aa   : > { %9509 = vmatpush1.bf16.msra.mxu1 %v13433_v58  ;;  %9469 = vmatprep.subr.bf16.mxu0 %v13438_v59  ;;  %v13492_v58 = vld [vmem:[%s14400_s14 + $0x260c] ss:$36 sps:$4 sm:$0xff]   ;;  %v13495_v59 = vld [vmem:[%s14400_s14 + $0x214] ss:$36 sps:$4 sm:$0xff]  }
 0x3ab   : > { %9510 = vmatprep.subr.bf16.mxu1 %v13441_v63 }
 0x3ad   : > { %9470 = vmatpush1.bf16.msra.mxu0 %v13436_v0  ;;  %v13490_v0 = vld [vmem:[%s14400_s14 + $0x2608] ss:$36 sps:$4 sm:$0xff]  }
 0x3ae   : > { %9511 = vmatpush1.bf16.msra.mxu1 %v13439_v1  ;;  %9471 = vmatprep.subr.bf16.mxu0 %v13444_v42  ;;  %v13493_v1 = vld [vmem:[%s14400_s14 + $0x210] ss:$36 sps:$4 sm:$0xff]  }
 0x3af   : > { %9512 = vmatprep.subr.bf16.mxu1 %v13447_v3  ;;  %v13498_v42 = vld [vmem:[%s14400_s14 + $0x2654] ss:$36 sps:$4 sm:$0xff]   ;;  %v13501_v3 = vld [vmem:[%s14400_s14 + $0x25c] ss:$36 sps:$4 sm:$0xff]  }
 0x3b1   : > { %9472 = vmatpush1.bf16.msra.mxu0 %v13442_v18  ;;  %v13496_v18 = vld [vmem:[%s14400_s14 + $0x2650] ss:$36 sps:$4 sm:$0xff]  }
 0x3b2   : > { %9513 = vmatpush1.bf16.msra.mxu1 %v13445_v4  ;;  %9523 = vmatprep.subr.bf16.mxu0 %v13450_v6  ;;  %v13499_v4 = vld [vmem:[%s14400_s14 + $0x258] ss:$36 sps:$4 sm:$0xff]  }
 0x3b3   : > { %9564 = vmatprep.subr.bf16.mxu1 %v13453_v14  ;;  %v13504_v6 = vld [vmem:[%s14400_s14 + $0x269c] ss:$36 sps:$4 sm:$0xff]   ;;  %v13507_v14 = vld [vmem:[%s14400_s14 + $0x2a4] ss:$36 sps:$4 sm:$0xff]  }
 0x3b4   : > { %9474 = vmatmul.mubr.bf16.vlgmr.msra.gmra.mrb[48].mxu0 %v14761_v60 }
 0x3b5   : > { %9515 = vmatmul.mubr.bf16.vlgmr.msra.gmra.mrb[48].mxu1 %v14765_v61  ;;  %9524 = vmatpush1.bf16.msra.mxu0 %v13448_v9  ;;  %v13502_v9 = vld [vmem:[%s14400_s14 + $0x2698] ss:$36 sps:$4 sm:$0xff]  }
 0x3b6   : > { %9565 = vmatpush1.bf16.msra.mxu1 %v13451_v10  ;;  %9525 = vmatprep.subr.bf16.mxu0 %v13456_v19  ;;  %v13505_v10 = vld [vmem:[%s14400_s14 + $0x2a0] ss:$36 sps:$4 sm:$0xff]  }
 0x3b7   : > { %9566 = vmatprep.subr.bf16.mxu1 %v13459_v12  ;;  %9555 = vmatprep.mubr.bf16.mxu0 %v14775_v41  ;;  %v13510_v19 = vld [vmem:[%s14400_s14 + $0x26e4] ss:$36 sps:$4 sm:$0xff]   ;;  %v13513_v12 = vld [vmem:[%s14400_s14 + $0x2ec] ss:$36 sps:$4 sm:$0xff]  }
 0x3b8   : > { %9596 = vmatprep.mubr.bf16.mxu1 %v14465_v48 }
 0x3b9   : > { %9526 = vmatpush1.bf16.msra.mxu0 %v13454_v13  ;;  %v13508_v13 = vld [vmem:[%s14400_s14 + $0x26e0] ss:$36 sps:$4 sm:$0xff]  }
 0x3ba   : > { %9567 = vmatpush1.bf16.msra.mxu1 %v13457_v15  ;;  %9527 = vmatprep.subr.bf16.mxu0 %v13462_v30  ;;  %v13511_v15 = vld [vmem:[%s14400_s14 + $0x2e8] ss:$36 sps:$4 sm:$0xff]  }
 0x3bb   : > { %9568 = vmatprep.subr.bf16.mxu1 %v13465_v16  ;;  %v13516_v30 = vld [vmem:[%s14400_s14 + $0x272c] ss:$36 sps:$4 sm:$0xff]   ;;  %v13519_v16 = vld [vmem:[%s14400_s14 + $0x334] ss:$36 sps:$4 sm:$0xff]  }
 0x3bd   : > { %9528 = vmatpush1.bf16.msra.mxu0 %v13460_v33  ;;  %v13514_v33 = vld [vmem:[%s14400_s14 + $0x2728] ss:$36 sps:$4 sm:$0xff]  }
 0x3be   : > { %9569 = vmatpush1.bf16.msra.mxu1 %v13463_v34  ;;  %9529 = vmatprep.subr.bf16.mxu0 %v13468_v21  ;;  %v13517_v34 = vld [vmem:[%s14400_s14 + $0x330] ss:$36 sps:$4 sm:$0xff]  }
 0x3bf   : > { %9570 = vmatprep.subr.bf16.mxu1 %v13471_v22  ;;  %v13522_v21 = vld [vmem:[%s14400_s14 + $0x2774] ss:$36 sps:$4 sm:$0xff]   ;;  %v13525_v22 = vld [vmem:[%s14400_s14 + $0x37c] ss:$36 sps:$4 sm:$0xff]  }
 0x3c1   : > { %9530 = vmatpush1.bf16.msra.mxu0 %v13466_v36  ;;  %v13520_v36 = vld [vmem:[%s14400_s14 + $0x2770] ss:$36 sps:$4 sm:$0xff]  }
 0x3c2   : > { %9571 = vmatpush1.bf16.msra.mxu1 %v13469_v28  ;;  %9531 = vmatprep.subr.bf16.mxu0 %v13474_v29  ;;  %v13523_v28 = vld [vmem:[%s14400_s14 + $0x378] ss:$36 sps:$4 sm:$0xff]  }
 0x3c3   : > { %9572 = vmatprep.subr.bf16.mxu1 %v13477_v47  ;;  %v13528_v29 = vld [vmem:[%s14400_s14 + $0x27bc] ss:$36 sps:$4 sm:$0xff]   ;;  %v13531_v47 = vld [vmem:[%s14400_s14 + $0x3c4] ss:$36 sps:$4 sm:$0xff]  }
 0x3c5   : > { %9532 = vmatpush1.bf16.msra.mxu0 %v13472_v31  ;;  %v13526_v31 = vld [vmem:[%s14400_s14 + $0x27b8] ss:$36 sps:$4 sm:$0xff]  }
 0x3c6   : > { %9573 = vmatpush1.bf16.msra.mxu1 %v13475_v5  ;;  %9533 = vmatprep.subr.bf16.mxu0 %v13480_v53  ;;  %v13529_v5 = vld [vmem:[%s14400_s14 + $0x3c0] ss:$36 sps:$4 sm:$0xff]  }
 0x3c7   : > { %9574 = vmatprep.subr.bf16.mxu1 %v13483_v32  ;;  %v9229_v46 = vpop.f32.mrb[36].mxu0  ;;  %v13534_v53 = vld [vmem:[%s14400_s14 + $0x2804] ss:$36 sps:$4 sm:$0xff]   ;;  %v13537_v32 = vld [vmem:[%s14400_s14 + $0x40c] ss:$36 sps:$4 sm:$0xff]  }
 0x3c8   : > { %v9270_v62 = vpop.f32.mrb[36].mxu1  ;;  %v9231_v2 = vpop.f32.mrb[37].mxu0 }
 0x3c9   : > { %v15465_v49 = vadd.f32 %v9270_v62, %v9229_v46  ;;  %v9272_v50 = vpop.f32.mrb[37].mxu1  ;;  %v9233_v54 = vpop.f32.mrb[38].mxu0  ;;  %9534 = vmatpush1.bf16.msra.mxu0 %v13478_v57  ;;  %v13532_v57 = vld [vmem:[%s14400_s14 + $0x2800] ss:$36 sps:$4 sm:$0xff]   ;;  %v13538_v46 = vld [vmem:[%s14400_s14 + $0x2848] ss:$36 sps:$4 sm:$0xff]  }
 0x3ca   : > { %v15467_v51 = vadd.f32 %v9272_v50, %v9231_v2  ;;  %9575 = vmatpush1.bf16.msra.mxu1 %v13481_v35  ;;  %v9274_v56 = vpop.f32.mrb[38].mxu1  ;;  %v9234_v11 = vpop.f32.mrb[39].mxu0  ;;  %9535 = vmatprep.subr.bf16.mxu0 %v13486_v44  ;;  %v13535_v35 = vld [vmem:[%s14400_s14 + $0x408] ss:$36 sps:$4 sm:$0xff]   ;;  %v13541_v62 = vld [vmem:[%s14400_s14 + $0x450] ss:$36 sps:$4 sm:$0xff]  }
 0x3cb   : > { %9576 = vmatprep.subr.bf16.mxu1 %v13489_v45  ;;  %v9275_v63 = vpop.f32.mrb[39].mxu1  ;;  %v13540_v44 = vld [vmem:[%s14400_s14 + $0x284c] ss:$36 sps:$4 sm:$0xff]   ;;  %v13543_v45 = vld [vmem:[%s14400_s14 + $0x454] ss:$36 sps:$4 sm:$0xff]  }
 0x3cc   : > { %v13546_v2 = vld [vmem:[%s14400_s14 + $0x49c] ss:$36 sps:$4 sm:$0xff]   ;;  %v13555_v56 = vld [vmem:[%s14400_s14 + $0x964] ss:$36 sps:$4 sm:$0xff]   ;;  %v13561_v63 = vld [vmem:[%s14400_s14 + $0x9ac] ss:$36 sps:$4 sm:$0xff]  }
 0x3cd   : > { %9536 = vmatpush1.bf16.msra.mxu0 %v13484_v27  ;;  %v13549_v50 = vld [vmem:[%s14400_s14 + $0x91c] ss:$36 sps:$4 sm:$0xff]  }
 0x3ce   : > { %9577 = vmatpush1.bf16.msra.mxu1 %v13487_v55  ;;  %9537 = vmatprep.subr.bf16.mxu0 %v13492_v58  ;;  %v13544_v54 = vld [vmem:[%s14400_s14 + $0x498] ss:$36 sps:$4 sm:$0xff]   ;;  %v13552_v55 = vld [vmem:[%s14400_s14 + $0x4e4] ss:$36 sps:$4 sm:$0xff]  }
 0x3cf   : > { %9578 = vmatprep.subr.bf16.mxu1 %v13495_v59  ;;  %v13547_v27 = vld [vmem:[%s14400_s14 + $0x918] ss:$36 sps:$4 sm:$0xff]   ;;  %v13550_v11 = vld [vmem:[%s14400_s14 + $0x4e0] ss:$36 sps:$4 sm:$0xff]   ;;  %v13558_v59 = vld [vmem:[%s14400_s14 + $0x52c] ss:$36 sps:$4 sm:$0xff]  }
 0x3d0   : > { %v13553_v58 = vld [vmem:[%s14400_s14 + $0x960] ss:$36 sps:$4 sm:$0xff]  }
 0x3d1   : > { %9538 = vmatpush1.bf16.msra.mxu0 %v13490_v0  ;;  %v13556_v0 = vld [vmem:[%s14400_s14 + $0x528] ss:$36 sps:$4 sm:$0xff]  }
 0x3d2   : > { %9579 = vmatpush1.bf16.msra.mxu1 %v13493_v1  ;;  %9539 = vmatprep.subr.bf16.mxu0 %v13498_v42  ;;  %v13559_v1 = vld [vmem:[%s14400_s14 + $0x9a8] ss:$36 sps:$4 sm:$0xff]   ;;  %v13564_v42 = vld [vmem:[%s14400_s14 + $0x574] ss:$36 sps:$4 sm:$0xff]  }
 0x3d3   : > { %9580 = vmatprep.subr.bf16.mxu1 %v13501_v3  ;;  %v13567_v3 = vld [vmem:[%s14400_s14 + $0x9f4] ss:$36 sps:$4 sm:$0xff]  }
 0x3d5   : > { %9540 = vmatpush1.bf16.msra.mxu0 %v13496_v18  ;;  %v13562_v18 = vld [vmem:[%s14400_s14 + $0x570] ss:$36 sps:$4 sm:$0xff]  }
 0x3d6   : > { %9581 = vmatpush1.bf16.msra.mxu1 %v13499_v4  ;;  %9541 = vmatprep.subr.bf16.mxu0 %v13504_v6  ;;  %v13565_v4 = vld [vmem:[%s14400_s14 + $0x9f0] ss:$36 sps:$4 sm:$0xff]   ;;  %v13570_v6 = vld [vmem:[%s14400_s14 + $0x5bc] ss:$36 sps:$4 sm:$0xff]  }
 0x3d7   : > { %9582 = vmatprep.subr.bf16.mxu1 %v13507_v14  ;;  %v13573_v14 = vld [vmem:[%s14400_s14 + $0xa3c] ss:$36 sps:$4 sm:$0xff]  }
 0x3d9   : > { %9542 = vmatpush1.bf16.msra.mxu0 %v13502_v9  ;;  %v13568_v9 = vld [vmem:[%s14400_s14 + $0x5b8] ss:$36 sps:$4 sm:$0xff]  }
 0x3da   : > { %9583 = vmatpush1.bf16.msra.mxu1 %v13505_v10  ;;  %9543 = vmatprep.subr.bf16.mxu0 %v13510_v19  ;;  %v13571_v10 = vld [vmem:[%s14400_s14 + $0xa38] ss:$36 sps:$4 sm:$0xff]   ;;  %v13576_v19 = vld [vmem:[%s14400_s14 + $0x604] ss:$36 sps:$4 sm:$0xff]  }
 0x3db   : > { %9584 = vmatprep.subr.bf16.mxu1 %v13513_v12  ;;  %v13579_v12 = vld [vmem:[%s14400_s14 + $0xa84] ss:$36 sps:$4 sm:$0xff]  }
 0x3dd   : > { %9544 = vmatpush1.bf16.msra.mxu0 %v13508_v13  ;;  %v13574_v13 = vld [vmem:[%s14400_s14 + $0x600] ss:$36 sps:$4 sm:$0xff]  }
 0x3de   : > { %9585 = vmatpush1.bf16.msra.mxu1 %v13511_v15  ;;  %9545 = vmatprep.subr.bf16.mxu0 %v13516_v30  ;;  %v13577_v15 = vld [vmem:[%s14400_s14 + $0xa80] ss:$36 sps:$4 sm:$0xff]   ;;  %v13582_v30 = vld [vmem:[%s14400_s14 + $0x64c] ss:$36 sps:$4 sm:$0xff]  }
 0x3df   : > { %9586 = vmatprep.subr.bf16.mxu1 %v13519_v16  ;;  %v13585_v16 = vld [vmem:[%s14400_s14 + $0xacc] ss:$36 sps:$4 sm:$0xff]  }
 0x3e1   : > { %9546 = vmatpush1.bf16.msra.mxu0 %v13514_v33 }
 0x3e2   : > { %9587 = vmatpush1.bf16.msra.mxu1 %v13517_v34  ;;  %9547 = vmatprep.subr.bf16.mxu0 %v13522_v21 }
 0x3e3   : > { %9588 = vmatprep.subr.bf16.mxu1 %v13525_v22 }
 0x3e5   : > { %9548 = vmatpush1.bf16.msra.mxu0 %v13520_v36 }
 0x3e6   : > { %9589 = vmatpush1.bf16.msra.mxu1 %v13523_v28  ;;  %9549 = vmatprep.subr.bf16.mxu0 %v13528_v29 }
 0x3e7   : > { %9590 = vmatprep.subr.bf16.mxu1 %v13531_v47  ;;  %v13580_v47 = vld [vmem:[%s14400_s14 + $0x648] ss:$36 sps:$4 sm:$0xff]  }
 0x3e9   : > { %9550 = vmatpush1.bf16.msra.mxu0 %v13526_v31  ;;  %v13583_v31 = vld [vmem:[%s14400_s14 + $0xac8] ss:$36 sps:$4 sm:$0xff]  }
 0x3ea   : > { %9591 = vmatpush1.bf16.msra.mxu1 %v13529_v5  ;;  %9551 = vmatprep.subr.bf16.mxu0 %v13534_v53 }
 0x3eb   : > { %9592 = vmatprep.subr.bf16.mxu1 %v13537_v32 }
 0x3ed   : > { %9552 = vmatpush1.bf16.msra.mxu0 %v13532_v57  ;;  %v13591_v57 = vld [vmem:[%s14400_s14 + $0xb14] ss:$36 sps:$4 sm:$0xff]  }
 0x3ee   : > { %9593 = vmatpush1.bf16.msra.mxu1 %v13535_v35  ;;  %9553 = vmatprep.subr.bf16.mxu0 %v13540_v44  ;;  %v13586_v44 = vld [vmem:[%s14400_s14 + $0x690] ss:$36 sps:$4 sm:$0xff]  }
 0x3ef   : > { %9594 = vmatprep.subr.bf16.mxu1 %v13543_v45  ;;  %v13589_v45 = vld [vmem:[%s14400_s14 + $0xb10] ss:$36 sps:$4 sm:$0xff]  }
 0x3f1   : > { %9554 = vmatpush1.bf16.msra.mxu0 %v13538_v46  ;;  %v13594_v46 = vld [vmem:[%s14400_s14 + $0x6dc] ss:$36 sps:$4 sm:$0xff]  }
 0x3f2   : > { %9595 = vmatpush1.bf16.msra.mxu1 %v13541_v62  ;;  %9605 = vmatprep.subr.bf16.mxu0 %v13546_v2  ;;  %v13597_v62 = vld [vmem:[%s14400_s14 + $0xb5c] ss:$36 sps:$4 sm:$0xff]  }
 0x3f3   : > { %9646 = vmatprep.subr.bf16.mxu1 %v13549_v50  ;;  %v13592_v2 = vld [vmem:[%s14400_s14 + $0x6d8] ss:$36 sps:$4 sm:$0xff]  }
 0x3f4   : > { %9556 = vmatmul.mubr.bf16.vlgmr.msra.gmra.mrb[52].mxu0 %v14849_v43  ;;  %v13595_v50 = vld [vmem:[%s14400_s14 + $0xb58] ss:$36 sps:$4 sm:$0xff]  }
 0x3f5   : > { %9597 = vmatmul.mubr.bf16.vlgmr.msra.gmra.mrb[52].mxu1 %v14492_v7  ;;  %9606 = vmatpush1.bf16.msra.mxu0 %v13544_v54  ;;  %v13600_v54 = vld [vmem:[%s14400_s14 + $0x724] ss:$36 sps:$4 sm:$0xff]  }
 0x3f6   : > { %9647 = vmatpush1.bf16.msra.mxu1 %v13547_v27  ;;  %9607 = vmatprep.subr.bf16.mxu0 %v13552_v55  ;;  %v13603_v27 = vld [vmem:[%s14400_s14 + $0xba4] ss:$36 sps:$4 sm:$0xff]  }
 0x3f7   : > { %9648 = vmatprep.subr.bf16.mxu1 %v13555_v56  ;;  %9637 = vmatprep.mubr.bf16.mxu0 %v14470_v52  ;;  %v13598_v55 = vld [vmem:[%s14400_s14 + $0x720] ss:$36 sps:$4 sm:$0xff]  }
 0x3f8   : > { %9678 = vmatprep.mubr.bf16.mxu1 %v14532_v37  ;;  %v13601_v56 = vld [vmem:[%s14400_s14 + $0xba0] ss:$36 sps:$4 sm:$0xff]  }
 0x3f9   : > { %9608 = vmatpush1.bf16.msra.mxu0 %v13550_v11  ;;  %v13606_v11 = vld [vmem:[%s14400_s14 + $0x76c] ss:$36 sps:$4 sm:$0xff]  }
 0x3fa   : > { %9649 = vmatpush1.bf16.msra.mxu1 %v13553_v58  ;;  %9609 = vmatprep.subr.bf16.mxu0 %v13558_v59  ;;  %v13609_v58 = vld [vmem:[%s14400_s14 + $0xbec] ss:$36 sps:$4 sm:$0xff]  }
 0x3fb   : > { %9650 = vmatprep.subr.bf16.mxu1 %v13561_v63  ;;  %v13604_v59 = vld [vmem:[%s14400_s14 + $0x768] ss:$36 sps:$4 sm:$0xff]  }
 0x3fc   : > { %v13607_v63 = vld [vmem:[%s14400_s14 + $0xbe8] ss:$36 sps:$4 sm:$0xff]  }
 0x3fd   : > { %9610 = vmatpush1.bf16.msra.mxu0 %v13556_v0  ;;  %v13612_v0 = vld [vmem:[%s14400_s14 + $0x7b4] ss:$36 sps:$4 sm:$0xff]  }
 0x3fe   : > { %9651 = vmatpush1.bf16.msra.mxu1 %v13559_v1  ;;  %9611 = vmatprep.subr.bf16.mxu0 %v13564_v42  ;;  %v13615_v1 = vld [vmem:[%s14400_s14 + $0xc34] ss:$36 sps:$4 sm:$0xff]  }
 0x3ff   : > { %9652 = vmatprep.subr.bf16.mxu1 %v13567_v3  ;;  %v13610_v42 = vld [vmem:[%s14400_s14 + $0x7b0] ss:$36 sps:$4 sm:$0xff]  }
 0x400   : > { %v13613_v3 = vld [vmem:[%s14400_s14 + $0xc30] ss:$36 sps:$4 sm:$0xff]  }
 0x401   : > { %9612 = vmatpush1.bf16.msra.mxu0 %v13562_v18  ;;  %v13618_v18 = vld [vmem:[%s14400_s14 + $0x7fc] ss:$36 sps:$4 sm:$0xff]  }
 0x402   : > { %9653 = vmatpush1.bf16.msra.mxu1 %v13565_v4  ;;  %9613 = vmatprep.subr.bf16.mxu0 %v13570_v6  ;;  %v13621_v4 = vld [vmem:[%s14400_s14 + $0xc7c] ss:$36 sps:$4 sm:$0xff]  }
 0x403   : > { %9654 = vmatprep.subr.bf16.mxu1 %v13573_v14  ;;  %v13616_v6 = vld [vmem:[%s14400_s14 + $0x7f8] ss:$36 sps:$4 sm:$0xff]  }
 0x404   : > { %v13619_v14 = vld [vmem:[%s14400_s14 + $0xc78] ss:$36 sps:$4 sm:$0xff]  }
 0x405   : > { %9614 = vmatpush1.bf16.msra.mxu0 %v13568_v9  ;;  %v13624_v9 = vld [vmem:[%s14400_s14 + $0x844] ss:$36 sps:$4 sm:$0xff]  }
 0x406   : > { %9655 = vmatpush1.bf16.msra.mxu1 %v13571_v10  ;;  %9615 = vmatprep.subr.bf16.mxu0 %v13576_v19  ;;  %v13627_v10 = vld [vmem:[%s14400_s14 + $0xcc4] ss:$36 sps:$4 sm:$0xff]  }
 0x407   : > { %9656 = vmatprep.subr.bf16.mxu1 %v13579_v12  ;;  %v9311_v33 = vpop.f32.mrb[40].mxu0  ;;  %v13622_v19 = vld [vmem:[%s14400_s14 + $0x840] ss:$36 sps:$4 sm:$0xff]  }
 0x408   : > { %v9352_v34 = vpop.f32.mrb[40].mxu1  ;;  %v9312_v21 = vadd.f32 %v9311_v33, %v15465_v49  ;;  %v9313_v22 = vpop.f32.mrb[41].mxu0  ;;  %v13588_v49 = vld [vmem:[%s14400_s14 + $0x694] ss:$36 sps:$4 sm:$0xff]   ;;  %v13625_v12 = vld [vmem:[%s14400_s14 + $0xcc0] ss:$36 sps:$4 sm:$0xff]  }
 0x409   : > { %v9354_v36 = vpop.f32.mrb[41].mxu1  ;;  %v9314_v28 = vadd.f32 %v9313_v22, %v15467_v51  ;;  %v9315_v29 = vpop.f32.mrb[42].mxu0  ;;  %9616 = vmatpush1.bf16.msra.mxu0 %v13574_v13  ;;  %v13630_v13 = vld [vmem:[%s14400_s14 + $0x88c] ss:$36 sps:$4 sm:$0xff]   ;;  %v13636_v33 = vld [vmem:[%s14400_s14 + $0x8d4] ss:$36 sps:$4 sm:$0xff]  }
 0x40a   : > { %9657 = vmatpush1.bf16.msra.mxu1 %v13577_v15  ;;  %v9356_v5 = vpop.f32.mrb[42].mxu1  ;;  %v15541_v53 = vadd.f32 %v9352_v34, %v9312_v21  ;;  %v9316_v32 = vpop.f32.mrb[43].mxu0  ;;  %9617 = vmatprep.subr.bf16.mxu0 %v13582_v30  ;;  %v13633_v15 = vld [vmem:[%s14400_s14 + $0xd0c] ss:$36 sps:$4 sm:$0xff]   ;;  %v13639_v34 = vld [vmem:[%s14400_s14 + $0xd54] ss:$36 sps:$4 sm:$0xff]  }
 0x40b   : > { %9658 = vmatprep.subr.bf16.mxu1 %v13585_v16  ;;  %v9357_v51 = vpop.f32.mrb[43].mxu1  ;;  %v15545_v35 = vadd.f32 %v9354_v36, %v9314_v28  ;;  %v13628_v30 = vld [vmem:[%s14400_s14 + $0x888] ss:$36 sps:$4 sm:$0xff]   ;;  %v13634_v21 = vld [vmem:[%s14400_s14 + $0x8d0] ss:$36 sps:$4 sm:$0xff]  }
 0x40c   : > { %v13631_v16 = vld [vmem:[%s14400_s14 + $0xd08] ss:$36 sps:$4 sm:$0xff]   ;;  %v13637_v22 = vld [vmem:[%s14400_s14 + $0xd50] ss:$36 sps:$4 sm:$0xff]   ;;  %v13642_v36 = vld [vmem:[%s14400_s14 + $0xd9c] ss:$36 sps:$4 sm:$0xff]  }
 0x40d   : > { %9618 = vmatpush1.bf16.msra.mxu0 %v13580_v47  ;;  %v13645_v28 = vld [vmem:[%s14400_s14 + $0x121c] ss:$36 sps:$4 sm:$0xff]   ;;  %v13651_v5 = vld [vmem:[%s14400_s14 + $0x1264] ss:$36 sps:$4 sm:$0xff]   ;;  %v13657_v51 = vld [vmem:[%s14400_s14 + $0x12ac] ss:$36 sps:$4 sm:$0xff]  }
 0x40e   : > { %9659 = vmatpush1.bf16.msra.mxu1 %v13583_v31  ;;  %9619 = vmatprep.subr.bf16.mxu0 %v13588_v49  ;;  %v13640_v29 = vld [vmem:[%s14400_s14 + $0xd98] ss:$36 sps:$4 sm:$0xff]   ;;  %v13648_v31 = vld [vmem:[%s14400_s14 + $0xde4] ss:$36 sps:$4 sm:$0xff]  }
 0x40f   : > { %9660 = vmatprep.subr.bf16.mxu1 %v13591_v57  ;;  %v13643_v47 = vld [vmem:[%s14400_s14 + $0x1218] ss:$36 sps:$4 sm:$0xff]   ;;  %v13646_v32 = vld [vmem:[%s14400_s14 + $0xde0] ss:$36 sps:$4 sm:$0xff]   ;;  %v13654_v57 = vld [vmem:[%s14400_s14 + $0xe2c] ss:$36 sps:$4 sm:$0xff]  }
 0x410   : > { %v13649_v49 = vld [vmem:[%s14400_s14 + $0x1260] ss:$36 sps:$4 sm:$0xff]  }
 0x411   : > { %9620 = vmatpush1.bf16.msra.mxu0 %v13586_v44  ;;  %v13652_v44 = vld [vmem:[%s14400_s14 + $0xe28] ss:$36 sps:$4 sm:$0xff]  }
 0x412   : > { %9661 = vmatpush1.bf16.msra.mxu1 %v13589_v45  ;;  %9621 = vmatprep.subr.bf16.mxu0 %v13594_v46  ;;  %v13655_v45 = vld [vmem:[%s14400_s14 + $0x12a8] ss:$36 sps:$4 sm:$0xff]   ;;  %v13660_v46 = vld [vmem:[%s14400_s14 + $0xe74] ss:$36 sps:$4 sm:$0xff]  }
 0x413   : > { %9662 = vmatprep.subr.bf16.mxu1 %v13597_v62  ;;  %v13663_v62 = vld [vmem:[%s14400_s14 + $0x12f4] ss:$36 sps:$4 sm:$0xff]  }
 0x415   : > { %9622 = vmatpush1.bf16.msra.mxu0 %v13592_v2  ;;  %v13658_v2 = vld [vmem:[%s14400_s14 + $0xe70] ss:$36 sps:$4 sm:$0xff]  }
 0x416   : > { %9663 = vmatpush1.bf16.msra.mxu1 %v13595_v50  ;;  %9623 = vmatprep.subr.bf16.mxu0 %v13600_v54  ;;  %v13661_v50 = vld [vmem:[%s14400_s14 + $0x12f0] ss:$36 sps:$4 sm:$0xff]   ;;  %v13666_v54 = vld [vmem:[%s14400_s14 + $0xebc] ss:$36 sps:$4 sm:$0xff]  }
 0x417   : > { %9664 = vmatprep.subr.bf16.mxu1 %v13603_v27  ;;  %v13669_v27 = vld [vmem:[%s14400_s14 + $0x133c] ss:$36 sps:$4 sm:$0xff]  }
 0x419   : > { %9624 = vmatpush1.bf16.msra.mxu0 %v13598_v55  ;;  %v13664_v55 = vld [vmem:[%s14400_s14 + $0xeb8] ss:$36 sps:$4 sm:$0xff]  }
 0x41a   : > { %9665 = vmatpush1.bf16.msra.mxu1 %v13601_v56  ;;  %9625 = vmatprep.subr.bf16.mxu0 %v13606_v11  ;;  %v13667_v56 = vld [vmem:[%s14400_s14 + $0x1338] ss:$36 sps:$4 sm:$0xff]   ;;  %v13672_v11 = vld [vmem:[%s14400_s14 + $0xf04] ss:$36 sps:$4 sm:$0xff]  }
 0x41b   : > { %9666 = vmatprep.subr.bf16.mxu1 %v13609_v58  ;;  %v13675_v58 = vld [vmem:[%s14400_s14 + $0x1384] ss:$36 sps:$4 sm:$0xff]  }
 0x41d   : > { %9626 = vmatpush1.bf16.msra.mxu0 %v13604_v59  ;;  %v13670_v59 = vld [vmem:[%s14400_s14 + $0xf00] ss:$36 sps:$4 sm:$0xff]  }
 0x41e   : > { %9667 = vmatpush1.bf16.msra.mxu1 %v13607_v63  ;;  %9627 = vmatprep.subr.bf16.mxu0 %v13612_v0  ;;  %v13673_v63 = vld [vmem:[%s14400_s14 + $0x1380] ss:$36 sps:$4 sm:$0xff]   ;;  %v13678_v0 = vld [vmem:[%s14400_s14 + $0xf4c] ss:$36 sps:$4 sm:$0xff]  }
 0x41f   : > { %9668 = vmatprep.subr.bf16.mxu1 %v13615_v1  ;;  %v13681_v1 = vld [vmem:[%s14400_s14 + $0x13cc] ss:$36 sps:$4 sm:$0xff]  }
 0x421   : > { %9628 = vmatpush1.bf16.msra.mxu0 %v13610_v42 }
 0x422   : > { %9669 = vmatpush1.bf16.msra.mxu1 %v13613_v3  ;;  %9629 = vmatprep.subr.bf16.mxu0 %v13618_v18 }
 0x423   : > { %9670 = vmatprep.subr.bf16.mxu1 %v13621_v4 }
 0x425   : > { %9630 = vmatpush1.bf16.msra.mxu0 %v13616_v6 }
 0x426   : > { %9671 = vmatpush1.bf16.msra.mxu1 %v13619_v14  ;;  %9631 = vmatprep.subr.bf16.mxu0 %v13624_v9 }
 0x427   : > { %9672 = vmatprep.subr.bf16.mxu1 %v13627_v10  ;;  %v13676_v10 = vld [vmem:[%s14400_s14 + $0xf48] ss:$36 sps:$4 sm:$0xff]  }
 0x429   : > { %9632 = vmatpush1.bf16.msra.mxu0 %v13622_v19  ;;  %v13679_v19 = vld [vmem:[%s14400_s14 + $0x13c8] ss:$36 sps:$4 sm:$0xff]  }
 0x42a   : > { %9673 = vmatpush1.bf16.msra.mxu1 %v13625_v12  ;;  %9633 = vmatprep.subr.bf16.mxu0 %v13630_v13 }
 0x42b   : > { %9674 = vmatprep.subr.bf16.mxu1 %v13633_v15 }
 0x42d   : > { %9634 = vmatpush1.bf16.msra.mxu0 %v13628_v30  ;;  %v13687_v30 = vld [vmem:[%s14400_s14 + $0x1414] ss:$36 sps:$4 sm:$0xff]  }
 0x42e   : > { %9675 = vmatpush1.bf16.msra.mxu1 %v13631_v16  ;;  %9635 = vmatprep.subr.bf16.mxu0 %v13636_v33  ;;  %v13682_v33 = vld [vmem:[%s14400_s14 + $0xf90] ss:$36 sps:$4 sm:$0xff]  }
 0x42f   : > { %9676 = vmatprep.subr.bf16.mxu1 %v13639_v34  ;;  %v13685_v34 = vld [vmem:[%s14400_s14 + $0x1410] ss:$36 sps:$4 sm:$0xff]  }
 0x431   : > { %9636 = vmatpush1.bf16.msra.mxu0 %v13634_v21  ;;  %v13690_v21 = vld [vmem:[%s14400_s14 + $0xfdc] ss:$36 sps:$4 sm:$0xff]  }
 0x432   : > { %9677 = vmatpush1.bf16.msra.mxu1 %v13637_v22  ;;  %9687 = vmatprep.subr.bf16.mxu0 %v13642_v36  ;;  %v13693_v22 = vld [vmem:[%s14400_s14 + $0x145c] ss:$36 sps:$4 sm:$0xff]  }
 0x433   : > { %9728 = vmatprep.subr.bf16.mxu1 %v13645_v28  ;;  %v13688_v36 = vld [vmem:[%s14400_s14 + $0xfd8] ss:$36 sps:$4 sm:$0xff]  }
 0x434   : > { %9638 = vmatmul.mubr.bf16.vlgmr.msra.gmra.mrb[56].mxu0 %v14494_v8  ;;  %v13691_v28 = vld [vmem:[%s14400_s14 + $0x1458] ss:$36 sps:$4 sm:$0xff]  }
 0x435   : > { %9679 = vmatmul.mubr.bf16.vlgmr.msra.gmra.mrb[56].mxu1 %v14580_v17  ;;  %9688 = vmatpush1.bf16.msra.mxu0 %v13640_v29  ;;  %v13696_v29 = vld [vmem:[%s14400_s14 + $0x1024] ss:$36 sps:$4 sm:$0xff]  }
 0x436   : > { %9729 = vmatpush1.bf16.msra.mxu1 %v13643_v47  ;;  %9689 = vmatprep.subr.bf16.mxu0 %v13648_v31  ;;  %v13699_v47 = vld [vmem:[%s14400_s14 + $0x14a4] ss:$36 sps:$4 sm:$0xff]  }
 0x437   : > { %9730 = vmatprep.subr.bf16.mxu1 %v13651_v5  ;;  %9719 = vmatprep.mubr.bf16.mxu0 %v14536_v38  ;;  %v13694_v31 = vld [vmem:[%s14400_s14 + $0x1020] ss:$36 sps:$4 sm:$0xff]  }
 0x438   : > { %9760 = vmatprep.mubr.bf16.mxu1 %v14598_v25  ;;  %v13697_v5 = vld [vmem:[%s14400_s14 + $0x14a0] ss:$36 sps:$4 sm:$0xff]  }
 0x439   : > { %9690 = vmatpush1.bf16.msra.mxu0 %v13646_v32  ;;  %v13702_v32 = vld [vmem:[%s14400_s14 + $0x106c] ss:$36 sps:$4 sm:$0xff]  }
 0x43a   : > { %9731 = vmatpush1.bf16.msra.mxu1 %v13649_v49  ;;  %9691 = vmatprep.subr.bf16.mxu0 %v13654_v57  ;;  %v13705_v49 = vld [vmem:[%s14400_s14 + $0x14ec] ss:$36 sps:$4 sm:$0xff]  }
 0x43b   : > { %9732 = vmatprep.subr.bf16.mxu1 %v13657_v51  ;;  %v13700_v57 = vld [vmem:[%s14400_s14 + $0x1068] ss:$36 sps:$4 sm:$0xff]  }
 0x43c   : > { %v13703_v51 = vld [vmem:[%s14400_s14 + $0x14e8] ss:$36 sps:$4 sm:$0xff]  }
 0x43d   : > { %9692 = vmatpush1.bf16.msra.mxu0 %v13652_v44  ;;  %v13708_v44 = vld [vmem:[%s14400_s14 + $0x10b4] ss:$36 sps:$4 sm:$0xff]  }
 0x43e   : > { %9733 = vmatpush1.bf16.msra.mxu1 %v13655_v45  ;;  %9693 = vmatprep.subr.bf16.mxu0 %v13660_v46  ;;  %v13711_v45 = vld [vmem:[%s14400_s14 + $0x1534] ss:$36 sps:$4 sm:$0xff]  }
 0x43f   : > { %9734 = vmatprep.subr.bf16.mxu1 %v13663_v62  ;;  %v13706_v46 = vld [vmem:[%s14400_s14 + $0x10b0] ss:$36 sps:$4 sm:$0xff]  }
 0x440   : > { %v13709_v62 = vld [vmem:[%s14400_s14 + $0x1530] ss:$36 sps:$4 sm:$0xff]  }
 0x441   : > { %9694 = vmatpush1.bf16.msra.mxu0 %v13658_v2  ;;  %v13714_v2 = vld [vmem:[%s14400_s14 + $0x10fc] ss:$36 sps:$4 sm:$0xff]  }
 0x442   : > { %9735 = vmatpush1.bf16.msra.mxu1 %v13661_v50  ;;  %9695 = vmatprep.subr.bf16.mxu0 %v13666_v54  ;;  %v13717_v50 = vld [vmem:[%s14400_s14 + $0x157c] ss:$36 sps:$4 sm:$0xff]  }
 0x443   : > { %9736 = vmatprep.subr.bf16.mxu1 %v13669_v27  ;;  %v13712_v54 = vld [vmem:[%s14400_s14 + $0x10f8] ss:$36 sps:$4 sm:$0xff]  }
 0x444   : > { %v13715_v27 = vld [vmem:[%s14400_s14 + $0x1578] ss:$36 sps:$4 sm:$0xff]  }
 0x445   : > { %9696 = vmatpush1.bf16.msra.mxu0 %v13664_v55  ;;  %v13720_v55 = vld [vmem:[%s14400_s14 + $0x1144] ss:$36 sps:$4 sm:$0xff]  }
 0x446   : > { %9737 = vmatpush1.bf16.msra.mxu1 %v13667_v56  ;;  %9697 = vmatprep.subr.bf16.mxu0 %v13672_v11  ;;  %v13723_v56 = vld [vmem:[%s14400_s14 + $0x15c4] ss:$36 sps:$4 sm:$0xff]  }
 0x447   : > { %9738 = vmatprep.subr.bf16.mxu1 %v13675_v58  ;;  %v9393_v42 = vpop.f32.mrb[44].mxu0  ;;  %v13718_v11 = vld [vmem:[%s14400_s14 + $0x1140] ss:$36 sps:$4 sm:$0xff]  }
 0x448   : > { %v9434_v3 = vpop.f32.mrb[44].mxu1  ;;  %v9394_v18 = vadd.f32 %v9393_v42, %v15541_v53  ;;  %v9395_v4 = vpop.f32.mrb[45].mxu0  ;;  %v13684_v53 = vld [vmem:[%s14400_s14 + $0xf94] ss:$36 sps:$4 sm:$0xff]   ;;  %v13721_v58 = vld [vmem:[%s14400_s14 + $0x15c0] ss:$36 sps:$4 sm:$0xff]  }
 0x449   : > { %v9436_v6 = vpop.f32.mrb[45].mxu1  ;;  %v9396_v14 = vadd.f32 %v9395_v4, %v15545_v35  ;;  %v9397_v9 = vpop.f32.mrb[46].mxu0  ;;  %9698 = vmatpush1.bf16.msra.mxu0 %v13670_v59  ;;  %v13726_v59 = vld [vmem:[%s14400_s14 + $0x118c] ss:$36 sps:$4 sm:$0xff]   ;;  %v13732_v42 = vld [vmem:[%s14400_s14 + $0x11d4] ss:$36 sps:$4 sm:$0xff]  }
 0x44a   : > { %9739 = vmatpush1.bf16.msra.mxu1 %v13673_v63  ;;  %v9438_v12 = vpop.f32.mrb[46].mxu1  ;;  %v15615_v13 = vadd.f32 %v9434_v3, %v9394_v18  ;;  %v9398_v15 = vpop.f32.mrb[47].mxu0  ;;  %9699 = vmatprep.subr.bf16.mxu0 %v13678_v0  ;;  %v13729_v63 = vld [vmem:[%s14400_s14 + $0x160c] ss:$36 sps:$4 sm:$0xff]   ;;  %v13735_v3 = vld [vmem:[%s14400_s14 + $0x1654] ss:$36 sps:$4 sm:$0xff]  }
 0x44b   : > { %9740 = vmatprep.subr.bf16.mxu1 %v13681_v1  ;;  %v9439_v35 = vpop.f32.mrb[47].mxu1  ;;  %v15619_v16 = vadd.f32 %v9436_v6, %v9396_v14  ;;  %v13724_v0 = vld [vmem:[%s14400_s14 + $0x1188] ss:$36 sps:$4 sm:$0xff]   ;;  %v13730_v18 = vld [vmem:[%s14400_s14 + $0x11d0] ss:$36 sps:$4 sm:$0xff]  }
 0x44c   : > { %v13727_v1 = vld [vmem:[%s14400_s14 + $0x1608] ss:$36 sps:$4 sm:$0xff]   ;;  %v13733_v4 = vld [vmem:[%s14400_s14 + $0x1650] ss:$36 sps:$4 sm:$0xff]   ;;  %v13738_v6 = vld [vmem:[%s14400_s14 + $0x169c] ss:$36 sps:$4 sm:$0xff]  }
 0x44d   : > { %9700 = vmatpush1.bf16.msra.mxu0 %v13676_v10  ;;  %v13741_v14 = vld [vmem:[%s14400_s14 + $0x1b1c] ss:$36 sps:$4 sm:$0xff]   ;;  %v13747_v12 = vld [vmem:[%s14400_s14 + $0x1b64] ss:$36 sps:$4 sm:$0xff]   ;;  %v13753_v35 = vld [vmem:[%s14400_s14 + $0x1bac] ss:$36 sps:$4 sm:$0xff]  }
 0x44e   : > { %9741 = vmatpush1.bf16.msra.mxu1 %v13679_v19  ;;  %9701 = vmatprep.subr.bf16.mxu0 %v13684_v53  ;;  %v13736_v9 = vld [vmem:[%s14400_s14 + $0x1698] ss:$36 sps:$4 sm:$0xff]   ;;  %v13744_v19 = vld [vmem:[%s14400_s14 + $0x16e4] ss:$36 sps:$4 sm:$0xff]  }
 0x44f   : > { %9742 = vmatprep.subr.bf16.mxu1 %v13687_v30  ;;  %v13739_v10 = vld [vmem:[%s14400_s14 + $0x1b18] ss:$36 sps:$4 sm:$0xff]   ;;  %v13742_v15 = vld [vmem:[%s14400_s14 + $0x16e0] ss:$36 sps:$4 sm:$0xff]   ;;  %v13750_v30 = vld [vmem:[%s14400_s14 + $0x172c] ss:$36 sps:$4 sm:$0xff]  }
 0x450   : > { %v13745_v53 = vld [vmem:[%s14400_s14 + $0x1b60] ss:$36 sps:$4 sm:$0xff]  }
 0x451   : > { %9702 = vmatpush1.bf16.msra.mxu0 %v13682_v33  ;;  %v13748_v33 = vld [vmem:[%s14400_s14 + $0x1728] ss:$36 sps:$4 sm:$0xff]  }
 0x452   : > { %9743 = vmatpush1.bf16.msra.mxu1 %v13685_v34  ;;  %9703 = vmatprep.subr.bf16.mxu0 %v13690_v21  ;;  %v13751_v34 = vld [vmem:[%s14400_s14 + $0x1ba8] ss:$36 sps:$4 sm:$0xff]   ;;  %v13756_v21 = vld [vmem:[%s14400_s14 + $0x1774] ss:$36 sps:$4 sm:$0xff]  }
 0x453   : > { %9744 = vmatprep.subr.bf16.mxu1 %v13693_v22  ;;  %v13759_v22 = vld [vmem:[%s14400_s14 + $0x1bf4] ss:$36 sps:$4 sm:$0xff]  }
 0x455   : > { %9704 = vmatpush1.bf16.msra.mxu0 %v13688_v36  ;;  %v13754_v36 = vld [vmem:[%s14400_s14 + $0x1770] ss:$36 sps:$4 sm:$0xff]  }
 0x456   : > { %9745 = vmatpush1.bf16.msra.mxu1 %v13691_v28  ;;  %9705 = vmatprep.subr.bf16.mxu0 %v13696_v29  ;;  %v13757_v28 = vld [vmem:[%s14400_s14 + $0x1bf0] ss:$36 sps:$4 sm:$0xff]   ;;  %v13762_v29 = vld [vmem:[%s14400_s14 + $0x17bc] ss:$36 sps:$4 sm:$0xff]  }
 0x457   : > { %9746 = vmatprep.subr.bf16.mxu1 %v13699_v47  ;;  %v13765_v47 = vld [vmem:[%s14400_s14 + $0x1c3c] ss:$36 sps:$4 sm:$0xff]  }
 0x459   : > { %9706 = vmatpush1.bf16.msra.mxu0 %v13694_v31  ;;  %v13760_v31 = vld [vmem:[%s14400_s14 + $0x17b8] ss:$36 sps:$4 sm:$0xff]  }
 0x45a   : > { %9747 = vmatpush1.bf16.msra.mxu1 %v13697_v5  ;;  %9707 = vmatprep.subr.bf16.mxu0 %v13702_v32  ;;  %v13763_v5 = vld [vmem:[%s14400_s14 + $0x1c38] ss:$36 sps:$4 sm:$0xff]   ;;  %v13768_v32 = vld [vmem:[%s14400_s14 + $0x1804] ss:$36 sps:$4 sm:$0xff]  }
 0x45b   : > { %9748 = vmatprep.subr.bf16.mxu1 %v13705_v49  ;;  %v13771_v49 = vld [vmem:[%s14400_s14 + $0x1c84] ss:$36 sps:$4 sm:$0xff]  }
 0x45d   : > { %9708 = vmatpush1.bf16.msra.mxu0 %v13700_v57  ;;  %v13766_v57 = vld [vmem:[%s14400_s14 + $0x1800] ss:$36 sps:$4 sm:$0xff]  }
 0x45e   : > { %9749 = vmatpush1.bf16.msra.mxu1 %v13703_v51  ;;  %9709 = vmatprep.subr.bf16.mxu0 %v13708_v44  ;;  %v13769_v51 = vld [vmem:[%s14400_s14 + $0x1c80] ss:$36 sps:$4 sm:$0xff]   ;;  %v13774_v44 = vld [vmem:[%s14400_s14 + $0x184c] ss:$36 sps:$4 sm:$0xff]  }
 0x45f   : > { %9750 = vmatprep.subr.bf16.mxu1 %v13711_v45  ;;  %v13777_v45 = vld [vmem:[%s14400_s14 + $0x1ccc] ss:$36 sps:$4 sm:$0xff]  }
 0x461   : > { %9710 = vmatpush1.bf16.msra.mxu0 %v13706_v46 }
 0x462   : > { %9751 = vmatpush1.bf16.msra.mxu1 %v13709_v62  ;;  %9711 = vmatprep.subr.bf16.mxu0 %v13714_v2 }
 0x463   : > { %9752 = vmatprep.subr.bf16.mxu1 %v13717_v50 }
 0x465   : > { %9712 = vmatpush1.bf16.msra.mxu0 %v13712_v54 }
 0x466   : > { %9753 = vmatpush1.bf16.msra.mxu1 %v13715_v27  ;;  %9713 = vmatprep.subr.bf16.mxu0 %v13720_v55 }
 0x467   : > { %9754 = vmatprep.subr.bf16.mxu1 %v13723_v56  ;;  %v13772_v56 = vld [vmem:[%s14400_s14 + $0x1848] ss:$36 sps:$4 sm:$0xff]  }
 0x469   : > { %9714 = vmatpush1.bf16.msra.mxu0 %v13718_v11  ;;  %v13775_v11 = vld [vmem:[%s14400_s14 + $0x1cc8] ss:$36 sps:$4 sm:$0xff]  }
 0x46a   : > { %9755 = vmatpush1.bf16.msra.mxu1 %v13721_v58  ;;  %9715 = vmatprep.subr.bf16.mxu0 %v13726_v59 }
 0x46b   : > { %9756 = vmatprep.subr.bf16.mxu1 %v13729_v63 }
 0x46d   : > { %9716 = vmatpush1.bf16.msra.mxu0 %v13724_v0  ;;  %v13783_v0 = vld [vmem:[%s14400_s14 + $0x1d14] ss:$36 sps:$4 sm:$0xff]  }
 0x46e   : > { %9757 = vmatpush1.bf16.msra.mxu1 %v13727_v1  ;;  %9717 = vmatprep.subr.bf16.mxu0 %v13732_v42  ;;  %v13778_v42 = vld [vmem:[%s14400_s14 + $0x1890] ss:$36 sps:$4 sm:$0xff]  }
 0x46f   : > { %9758 = vmatprep.subr.bf16.mxu1 %v13735_v3  ;;  %v13781_v3 = vld [vmem:[%s14400_s14 + $0x1d10] ss:$36 sps:$4 sm:$0xff]  }
 0x471   : > { %9718 = vmatpush1.bf16.msra.mxu0 %v13730_v18  ;;  %v13786_v18 = vld [vmem:[%s14400_s14 + $0x18dc] ss:$36 sps:$4 sm:$0xff]  }
 0x472   : > { %9759 = vmatpush1.bf16.msra.mxu1 %v13733_v4  ;;  %9769 = vmatprep.subr.bf16.mxu0 %v13738_v6  ;;  %v13789_v4 = vld [vmem:[%s14400_s14 + $0x1d5c] ss:$36 sps:$4 sm:$0xff]  }
 0x473   : > { %9810 = vmatprep.subr.bf16.mxu1 %v13741_v14  ;;  %v13784_v6 = vld [vmem:[%s14400_s14 + $0x18d8] ss:$36 sps:$4 sm:$0xff]  }
 0x474   : > { %9720 = vmatmul.mubr.bf16.vlgmr.msra.gmra.mrb[60].mxu0 %v14586_v20  ;;  %v13787_v14 = vld [vmem:[%s14400_s14 + $0x1d58] ss:$36 sps:$4 sm:$0xff]  }
 0x475   : > { %9761 = vmatmul.mubr.bf16.vlgmr.msra.gmra.mrb[60].mxu1 %v14672_v39  ;;  %9770 = vmatpush1.bf16.msra.mxu0 %v13736_v9  ;;  %v13792_v9 = vld [vmem:[%s14400_s14 + $0x1924] ss:$36 sps:$4 sm:$0xff]  }
 0x476   : > { %9811 = vmatpush1.bf16.msra.mxu1 %v13739_v10  ;;  %9771 = vmatprep.subr.bf16.mxu0 %v13744_v19  ;;  %v13795_v10 = vld [vmem:[%s14400_s14 + $0x1da4] ss:$36 sps:$4 sm:$0xff]  }
 0x477   : > { %9812 = vmatprep.subr.bf16.mxu1 %v13747_v12  ;;  %9801 = vmatprep.mubr.bf16.mxu0 %v14602_v26  ;;  %v13790_v19 = vld [vmem:[%s14400_s14 + $0x1920] ss:$36 sps:$4 sm:$0xff]  }
 0x478   : > { %9842 = vmatprep.mubr.bf16.mxu1 %v14688_v23  ;;  %v13793_v12 = vld [vmem:[%s14400_s14 + $0x1da0] ss:$36 sps:$4 sm:$0xff]  }
 0x479   : > { %9772 = vmatpush1.bf16.msra.mxu0 %v13742_v15  ;;  %v13798_v15 = vld [vmem:[%s14400_s14 + $0x196c] ss:$36 sps:$4 sm:$0xff]  }
 0x47a   : > { %9813 = vmatpush1.bf16.msra.mxu1 %v13745_v53  ;;  %9773 = vmatprep.subr.bf16.mxu0 %v13750_v30  ;;  %v13801_v53 = vld [vmem:[%s14400_s14 + $0x1dec] ss:$36 sps:$4 sm:$0xff]  }
 0x47b   : > { %9814 = vmatprep.subr.bf16.mxu1 %v13753_v35  ;;  %v13796_v30 = vld [vmem:[%s14400_s14 + $0x1968] ss:$36 sps:$4 sm:$0xff]  }
 0x47c   : > { %v13799_v35 = vld [vmem:[%s14400_s14 + $0x1de8] ss:$36 sps:$4 sm:$0xff]  }
 0x47d   : > { %9774 = vmatpush1.bf16.msra.mxu0 %v13748_v33  ;;  %v13804_v33 = vld [vmem:[%s14400_s14 + $0x19b4] ss:$36 sps:$4 sm:$0xff]  }
 0x47e   : > { %9815 = vmatpush1.bf16.msra.mxu1 %v13751_v34  ;;  %9775 = vmatprep.subr.bf16.mxu0 %v13756_v21  ;;  %v13807_v34 = vld [vmem:[%s14400_s14 + $0x1e34] ss:$36 sps:$4 sm:$0xff]  }
 0x47f   : > { %9816 = vmatprep.subr.bf16.mxu1 %v13759_v22  ;;  %v13802_v21 = vld [vmem:[%s14400_s14 + $0x19b0] ss:$36 sps:$4 sm:$0xff]  }
 0x480   : > { %v13805_v22 = vld [vmem:[%s14400_s14 + $0x1e30] ss:$36 sps:$4 sm:$0xff]  }
 0x481   : > { %9776 = vmatpush1.bf16.msra.mxu0 %v13754_v36  ;;  %v13810_v36 = vld [vmem:[%s14400_s14 + $0x19fc] ss:$36 sps:$4 sm:$0xff]  }
 0x482   : > { %9817 = vmatpush1.bf16.msra.mxu1 %v13757_v28  ;;  %9777 = vmatprep.subr.bf16.mxu0 %v13762_v29  ;;  %v13813_v28 = vld [vmem:[%s14400_s14 + $0x1e7c] ss:$36 sps:$4 sm:$0xff]  }
 0x483   : > { %9818 = vmatprep.subr.bf16.mxu1 %v13765_v47  ;;  %v13808_v29 = vld [vmem:[%s14400_s14 + $0x19f8] ss:$36 sps:$4 sm:$0xff]  }
 0x484   : > { %v13811_v47 = vld [vmem:[%s14400_s14 + $0x1e78] ss:$36 sps:$4 sm:$0xff]  }
 0x485   : > { %9778 = vmatpush1.bf16.msra.mxu0 %v13760_v31  ;;  %v13816_v31 = vld [vmem:[%s14400_s14 + $0x1a44] ss:$36 sps:$4 sm:$0xff]  }
 0x486   : > { %9819 = vmatpush1.bf16.msra.mxu1 %v13763_v5  ;;  %9779 = vmatprep.subr.bf16.mxu0 %v13768_v32  ;;  %v13819_v5 = vld [vmem:[%s14400_s14 + $0x1ec4] ss:$36 sps:$4 sm:$0xff]  }
 0x487   : > { %9820 = vmatprep.subr.bf16.mxu1 %v13771_v49  ;;  %v9475_v46 = vpop.f32.mrb[48].mxu0  ;;  %v13814_v32 = vld [vmem:[%s14400_s14 + $0x1a40] ss:$36 sps:$4 sm:$0xff]  }
 0x488   : > { %v9516_v62 = vpop.f32.mrb[48].mxu1  ;;  %v9476_v2 = vadd.f32 %v9475_v46, %v15615_v13  ;;  %v9477_v50 = vpop.f32.mrb[49].mxu0  ;;  %v13780_v13 = vld [vmem:[%s14400_s14 + $0x1894] ss:$36 sps:$4 sm:$0xff]   ;;  %v13817_v49 = vld [vmem:[%s14400_s14 + $0x1ec0] ss:$36 sps:$4 sm:$0xff]  }
 0x489   : > { %v9518_v54 = vpop.f32.mrb[49].mxu1  ;;  %v9478_v27 = vadd.f32 %v9477_v50, %v15619_v16  ;;  %v9479_v55 = vpop.f32.mrb[50].mxu0  ;;  %9780 = vmatpush1.bf16.msra.mxu0 %v13766_v57  ;;  %v13822_v57 = vld [vmem:[%s14400_s14 + $0x1a8c] ss:$36 sps:$4 sm:$0xff]   ;;  %v13828_v46 = vld [vmem:[%s14400_s14 + $0x1ad4] ss:$36 sps:$4 sm:$0xff]  }
 0x48a   : > { %9821 = vmatpush1.bf16.msra.mxu1 %v13769_v51  ;;  %v9520_v58 = vpop.f32.mrb[50].mxu1  ;;  %v15689_v59 = vadd.f32 %v9516_v62, %v9476_v2  ;;  %v9480_v63 = vpop.f32.mrb[51].mxu0  ;;  %9781 = vmatprep.subr.bf16.mxu0 %v13774_v44  ;;  %v13825_v51 = vld [vmem:[%s14400_s14 + $0x1f0c] ss:$36 sps:$4 sm:$0xff]   ;;  %v13831_v62 = vld [vmem:[%s14400_s14 + $0x1f54] ss:$36 sps:$4 sm:$0xff]  }
 0x48b   : > { %9822 = vmatprep.subr.bf16.mxu1 %v13777_v45  ;;  %v9521_v16 = vpop.f32.mrb[51].mxu1  ;;  %v15693_v1 = vadd.f32 %v9518_v54, %v9478_v27  ;;  %v13820_v44 = vld [vmem:[%s14400_s14 + $0x1a88] ss:$36 sps:$4 sm:$0xff]   ;;  %v13826_v2 = vld [vmem:[%s14400_s14 + $0x1ad0] ss:$36 sps:$4 sm:$0xff]  }
 0x48c   : > { %v13823_v45 = vld [vmem:[%s14400_s14 + $0x1f08] ss:$36 sps:$4 sm:$0xff]   ;;  %v13829_v50 = vld [vmem:[%s14400_s14 + $0x1f50] ss:$36 sps:$4 sm:$0xff]   ;;  %v13834_v54 = vld [vmem:[%s14400_s14 + $0x1f9c] ss:$36 sps:$4 sm:$0xff]  }
 0x48d   : > { %9782 = vmatpush1.bf16.msra.mxu0 %v13772_v56  ;;  %v13837_v27 = vld [vmem:[%s14400_s14 + $0x241c] ss:$36 sps:$4 sm:$0xff]   ;;  %v13843_v58 = vld [vmem:[%s14400_s14 + $0x2464] ss:$36 sps:$4 sm:$0xff]   ;;  %v13849_v16 = vld [vmem:[%s14400_s14 + $0x24ac] ss:$36 sps:$4 sm:$0xff]  }
 0x48e   : > { %9823 = vmatpush1.bf16.msra.mxu1 %v13775_v11  ;;  %9783 = vmatprep.subr.bf16.mxu0 %v13780_v13  ;;  %v13832_v55 = vld [vmem:[%s14400_s14 + $0x1f98] ss:$36 sps:$4 sm:$0xff]   ;;  %v13840_v11 = vld [vmem:[%s14400_s14 + $0x1fe4] ss:$36 sps:$4 sm:$0xff]  }
 0x48f   : > { %9824 = vmatprep.subr.bf16.mxu1 %v13783_v0  ;;  %v13835_v56 = vld [vmem:[%s14400_s14 + $0x2418] ss:$36 sps:$4 sm:$0xff]   ;;  %v13838_v63 = vld [vmem:[%s14400_s14 + $0x1fe0] ss:$36 sps:$4 sm:$0xff]   ;;  %v13846_v0 = vld [vmem:[%s14400_s14 + $0x202c] ss:$36 sps:$4 sm:$0xff]  }
 0x490   : > { %v13841_v13 = vld [vmem:[%s14400_s14 + $0x2460] ss:$36 sps:$4 sm:$0xff]  }
 0x491   : > { %9784 = vmatpush1.bf16.msra.mxu0 %v13778_v42  ;;  %v13844_v42 = vld [vmem:[%s14400_s14 + $0x2028] ss:$36 sps:$4 sm:$0xff]  }
 0x492   : > { %9825 = vmatpush1.bf16.msra.mxu1 %v13781_v3  ;;  %9785 = vmatprep.subr.bf16.mxu0 %v13786_v18  ;;  %v13847_v3 = vld [vmem:[%s14400_s14 + $0x24a8] ss:$36 sps:$4 sm:$0xff]   ;;  %v13852_v18 = vld [vmem:[%s14400_s14 + $0x2074] ss:$36 sps:$4 sm:$0xff]  }
 0x493   : > { %9826 = vmatprep.subr.bf16.mxu1 %v13789_v4  ;;  %v13855_v4 = vld [vmem:[%s14400_s14 + $0x24f4] ss:$36 sps:$4 sm:$0xff]  }
 0x495   : > { %9786 = vmatpush1.bf16.msra.mxu0 %v13784_v6  ;;  %v13850_v6 = vld [vmem:[%s14400_s14 + $0x2070] ss:$36 sps:$4 sm:$0xff]  }
 0x496   : > { %9827 = vmatpush1.bf16.msra.mxu1 %v13787_v14  ;;  %9787 = vmatprep.subr.bf16.mxu0 %v13792_v9  ;;  %v13853_v14 = vld [vmem:[%s14400_s14 + $0x24f0] ss:$36 sps:$4 sm:$0xff]   ;;  %v13858_v9 = vld [vmem:[%s14400_s14 + $0x20bc] ss:$36 sps:$4 sm:$0xff]  }
 0x497   : > { %9828 = vmatprep.subr.bf16.mxu1 %v13795_v10  ;;  %v13861_v10 = vld [vmem:[%s14400_s14 + $0x253c] ss:$36 sps:$4 sm:$0xff]  }
 0x499   : > { %9788 = vmatpush1.bf16.msra.mxu0 %v13790_v19  ;;  %v13856_v19 = vld [vmem:[%s14400_s14 + $0x20b8] ss:$36 sps:$4 sm:$0xff]  }
 0x49a   : > { %9829 = vmatpush1.bf16.msra.mxu1 %v13793_v12  ;;  %9789 = vmatprep.subr.bf16.mxu0 %v13798_v15  ;;  %v13859_v12 = vld [vmem:[%s14400_s14 + $0x2538] ss:$36 sps:$4 sm:$0xff]   ;;  %v13864_v15 = vld [vmem:[%s14400_s14 + $0x2104] ss:$36 sps:$4 sm:$0xff]  }
 0x49b   : > { %9830 = vmatprep.subr.bf16.mxu1 %v13801_v53  ;;  %v13867_v53 = vld [vmem:[%s14400_s14 + $0x2584] ss:$36 sps:$4 sm:$0xff]  }
 0x49d   : > { %9790 = vmatpush1.bf16.msra.mxu0 %v13796_v30  ;;  %v13862_v30 = vld [vmem:[%s14400_s14 + $0x2100] ss:$36 sps:$4 sm:$0xff]  }
 0x49e   : > { %9831 = vmatpush1.bf16.msra.mxu1 %v13799_v35  ;;  %9791 = vmatprep.subr.bf16.mxu0 %v13804_v33  ;;  %v13865_v35 = vld [vmem:[%s14400_s14 + $0x2580] ss:$36 sps:$4 sm:$0xff]   ;;  %v13870_v33 = vld [vmem:[%s14400_s14 + $0x214c] ss:$36 sps:$4 sm:$0xff]  }
 0x49f   : > { %9832 = vmatprep.subr.bf16.mxu1 %v13807_v34  ;;  %v13873_v34 = vld [vmem:[%s14400_s14 + $0x25cc] ss:$36 sps:$4 sm:$0xff]  }
 0x4a1   : > { %9792 = vmatpush1.bf16.msra.mxu0 %v13802_v21  ;;  %v316_v21 = vld [vmem:[#allocation2 + $0x20] sm:$0xff] }
 0x4a2   : > { %9833 = vmatpush1.bf16.msra.mxu1 %v13805_v22  ;;  %9793 = vmatprep.subr.bf16.mxu0 %v13810_v36 }
 0x4a3   : > { %9834 = vmatprep.subr.bf16.mxu1 %v13813_v28 }
 0x4a5   : > { %9794 = vmatpush1.bf16.msra.mxu0 %v13808_v29  ;;  %v317_v29 = vld [vmem:[#allocation2 + $0x28] sm:$0xff] }
 0x4a6   : > { %9835 = vmatpush1.bf16.msra.mxu1 %v13811_v47  ;;  %9795 = vmatprep.subr.bf16.mxu0 %v13816_v31 }
 0x4a7   : > { %9836 = vmatprep.subr.bf16.mxu1 %v13819_v5 }
 0x4a9   : > { %9796 = vmatpush1.bf16.msra.mxu0 %v13814_v32 }
 0x4aa   : > { %9837 = vmatpush1.bf16.msra.mxu1 %v13817_v49  ;;  %9797 = vmatprep.subr.bf16.mxu0 %v13822_v57  ;;  %v13868_v49 = vld [vmem:[%s14400_s14 + $0x2148] ss:$36 sps:$4 sm:$0xff]  }
 0x4ab   : > { %9838 = vmatprep.subr.bf16.mxu1 %v13825_v51  ;;  %v13871_v57 = vld [vmem:[%s14400_s14 + $0x25c8] ss:$36 sps:$4 sm:$0xff]  }
 0x4ad   : > { %9798 = vmatpush1.bf16.msra.mxu0 %v13820_v44 }
 0x4ae   : > { %9839 = vmatpush1.bf16.msra.mxu1 %v13823_v45  ;;  %9799 = vmatprep.subr.bf16.mxu0 %v13828_v46  ;;  %v13879_v46 = vld [vmem:[%s14400_s14 + $0x2614] ss:$36 sps:$4 sm:$0xff]  }
 0x4af   : > { %9840 = vmatprep.subr.bf16.mxu1 %v13831_v62 }
 0x4b1   : > { %9800 = vmatpush1.bf16.msra.mxu0 %v13826_v2  ;;  %v13874_v2 = vld [vmem:[%s14400_s14 + $0x2190] ss:$36 sps:$4 sm:$0xff]  }
 0x4b2   : > { %9841 = vmatpush1.bf16.msra.mxu1 %v13829_v50  ;;  %9851 = vmatprep.subr.bf16.mxu0 %v13834_v54  ;;  %v13877_v50 = vld [vmem:[%s14400_s14 + $0x2610] ss:$36 sps:$4 sm:$0xff]   ;;  %v13882_v54 = vld [vmem:[%s14400_s14 + $0x21dc] ss:$36 sps:$4 sm:$0xff]  }
 0x4b3   : > { %9892 = vmatprep.subr.bf16.mxu1 %v13837_v27  ;;  %v13885_v27 = vld [vmem:[%s14400_s14 + $0x265c] ss:$36 sps:$4 sm:$0xff]  }
 0x4b4   : > { %9802 = vmatmul.mubr.bf16.vlgmr.msra.gmra.mrb[64].mxu0 %v14676_v40 }
 0x4b5   : > { %9843 = vmatmul.mubr.bf16.vlgmr.msra.gmra.mrb[64].mxu1 %v14761_v60  ;;  %9852 = vmatpush1.bf16.msra.mxu0 %v13832_v55  ;;  %v13880_v55 = vld [vmem:[%s14400_s14 + $0x21d8] ss:$36 sps:$4 sm:$0xff]  }
 0x4b6   : > { %9893 = vmatpush1.bf16.msra.mxu1 %v13835_v56  ;;  %9853 = vmatprep.subr.bf16.mxu0 %v13840_v11  ;;  %v13883_v56 = vld [vmem:[%s14400_s14 + $0x2658] ss:$36 sps:$4 sm:$0xff]   ;;  %v13888_v11 = vld [vmem:[%s14400_s14 + $0x2224] ss:$36 sps:$4 sm:$0xff]  }
 0x4b7   : > { %9894 = vmatprep.subr.bf16.mxu1 %v13843_v58  ;;  %9883 = vmatprep.mubr.bf16.mxu0 %v14692_v24  ;;  %v13891_v58 = vld [vmem:[%s14400_s14 + $0x26a4] ss:$36 sps:$4 sm:$0xff]  }
 0x4b8   : > { %9924 = vmatprep.mubr.bf16.mxu1 %v14775_v41 }
 0x4b9   : > { %9854 = vmatpush1.bf16.msra.mxu0 %v13838_v63  ;;  %v13886_v63 = vld [vmem:[%s14400_s14 + $0x2220] ss:$36 sps:$4 sm:$0xff]  }
 0x4ba   : > { %9895 = vmatpush1.bf16.msra.mxu1 %v13841_v13  ;;  %9855 = vmatprep.subr.bf16.mxu0 %v13846_v0  ;;  %v13889_v13 = vld [vmem:[%s14400_s14 + $0x26a0] ss:$36 sps:$4 sm:$0xff]   ;;  %v13894_v0 = vld [vmem:[%s14400_s14 + $0x226c] ss:$36 sps:$4 sm:$0xff]  }
 0x4bb   : > { %9896 = vmatprep.subr.bf16.mxu1 %v13849_v16  ;;  %v13897_v16 = vld [vmem:[%s14400_s14 + $0x26ec] ss:$36 sps:$4 sm:$0xff]  }
 0x4bd   : > { %9856 = vmatpush1.bf16.msra.mxu0 %v13844_v42  ;;  %v13892_v42 = vld [vmem:[%s14400_s14 + $0x2268] ss:$36 sps:$4 sm:$0xff]  }
 0x4be   : > { %9897 = vmatpush1.bf16.msra.mxu1 %v13847_v3  ;;  %9857 = vmatprep.subr.bf16.mxu0 %v13852_v18  ;;  %v13895_v3 = vld [vmem:[%s14400_s14 + $0x26e8] ss:$36 sps:$4 sm:$0xff]   ;;  %v13900_v18 = vld [vmem:[%s14400_s14 + $0x22b4] ss:$36 sps:$4 sm:$0xff]  }
 0x4bf   : > { %9898 = vmatprep.subr.bf16.mxu1 %v13855_v4  ;;  %v13903_v4 = vld [vmem:[%s14400_s14 + $0x2734] ss:$36 sps:$4 sm:$0xff]  }
 0x4c1   : > { %9858 = vmatpush1.bf16.msra.mxu0 %v13850_v6  ;;  %v13898_v6 = vld [vmem:[%s14400_s14 + $0x22b0] ss:$36 sps:$4 sm:$0xff]  }
 0x4c2   : > { %9899 = vmatpush1.bf16.msra.mxu1 %v13853_v14  ;;  %9859 = vmatprep.subr.bf16.mxu0 %v13858_v9  ;;  %v13901_v14 = vld [vmem:[%s14400_s14 + $0x2730] ss:$36 sps:$4 sm:$0xff]   ;;  %v13906_v9 = vld [vmem:[%s14400_s14 + $0x22fc] ss:$36 sps:$4 sm:$0xff]  }
 0x4c3   : > { %9900 = vmatprep.subr.bf16.mxu1 %v13861_v10  ;;  %v13909_v10 = vld [vmem:[%s14400_s14 + $0x277c] ss:$36 sps:$4 sm:$0xff]  }
 0x4c5   : > { %9860 = vmatpush1.bf16.msra.mxu0 %v13856_v19  ;;  %v13904_v19 = vld [vmem:[%s14400_s14 + $0x22f8] ss:$36 sps:$4 sm:$0xff]  }
 0x4c6   : > { %9901 = vmatpush1.bf16.msra.mxu1 %v13859_v12  ;;  %9861 = vmatprep.subr.bf16.mxu0 %v13864_v15  ;;  %v13907_v12 = vld [vmem:[%s14400_s14 + $0x2778] ss:$36 sps:$4 sm:$0xff]   ;;  %v13912_v15 = vld [vmem:[%s14400_s14 + $0x2344] ss:$36 sps:$4 sm:$0xff]  }
 0x4c7   : > { %9902 = vmatprep.subr.bf16.mxu1 %v13867_v53  ;;  %v9557_v22 = vpop.f32.mrb[52].mxu0  ;;  %v13915_v53 = vld [vmem:[%s14400_s14 + $0x27c4] ss:$36 sps:$4 sm:$0xff]  }
 0x4c8   : > { %v15759_v36 = vpop.f32.mrb[52].mxu1  ;;  %v9558_v28 = vadd.f32 %v9557_v22, %v15689_v59  ;;  %v9559_v47 = vpop.f32.mrb[53].mxu0  ;;  %v13876_v59 = vld [vmem:[%s14400_s14 + $0x2194] ss:$36 sps:$4 sm:$0xff]   ;;  %v13919_v22 = vld [vmem:[%s14400_s14 + $0x2808] ss:$36 sps:$4 sm:$0xff]  }
 0x4c9   : > { %v15762_v31 = vpop.f32.mrb[53].mxu1  ;;  %v9560_v5 = vadd.f32 %v9559_v47, %v15693_v1  ;;  %v9561_v32 = vpop.f32.mrb[54].mxu0  ;;  %9862 = vmatpush1.bf16.msra.mxu0 %v13862_v30  ;;  %v13910_v30 = vld [vmem:[%s14400_s14 + $0x2340] ss:$36 sps:$4 sm:$0xff]   ;;  %v13922_v47 = vld [vmem:[%s14400_s14 + $0x23d0] ss:$36 sps:$4 sm:$0xff]  }
 0x4ca   : > { %9903 = vmatpush1.bf16.msra.mxu1 %v13865_v35  ;;  %v9602_v51 = vpop.f32.mrb[54].mxu1  ;;  %v10297_v44 = vadd.f32 %v9558_v28, %v316_v21  ;;  %v9562_v45 = vpop.f32.mrb[55].mxu0  ;;  %9863 = vmatprep.subr.bf16.mxu0 %v13870_v33  ;;  %v13913_v35 = vld [vmem:[%s14400_s14 + $0x27c0] ss:$36 sps:$4 sm:$0xff]   ;;  %v13918_v33 = vld [vmem:[%s14400_s14 + $0x238c] ss:$36 sps:$4 sm:$0xff]  }
 0x4cb   : > { %9904 = vmatprep.subr.bf16.mxu1 %v13873_v34  ;;  %v9603_v62 = vpop.f32.mrb[55].mxu1  ;;  %v10298_v1 = vadd.f32 %v9560_v5, %v317_v29  ;;  %v13921_v34 = vld [vmem:[%s14400_s14 + $0x280c] ss:$36 sps:$4 sm:$0xff]   ;;  %v13924_v28 = vld [vmem:[%s14400_s14 + $0x23d4] ss:$36 sps:$4 sm:$0xff]  }
 0x4cc   : > { %10306 = vst [vmem:[#allocation2 + $0x20] sm:$0xff] %v10297_v44  ;;  %v13916_v21 = vld [vmem:[%s14400_s14 + $0x2388] ss:$36 sps:$4 sm:$0xff]   ;;  %v13927_v29 = vld [vmem:[%s14400_s14 + $0x2854] ss:$36 sps:$4 sm:$0xff]  }
 0x4cd   : > { %10307 = vst [vmem:[#allocation2 + $0x28] sm:$0xff] %v10298_v1  ;;  %9864 = vmatpush1.bf16.msra.mxu0 %v13868_v49  ;;  %v13925_v5 = vld [vmem:[%s14400_s14 + $0x2850] ss:$36 sps:$4 sm:$0xff]   ;;  %v13928_v32 = vld [vmem:[%s14400_s14 + $0x260] ss:$36 sps:$4 sm:$0xff]  }
 0x4ce   : > { %9905 = vmatpush1.bf16.msra.mxu1 %v13871_v57  ;;  %9865 = vmatprep.subr.bf16.mxu0 %v13876_v59  ;;  %v13929_v49 = vld [vmem:[%s14400_s14 + $0x6e0] ss:$36 sps:$4 sm:$0xff]   ;;  %v13932_v44 = vld [vmem:[%s14400_s14 + $0x2a8] ss:$36 sps:$4 sm:$0xff]   ;;  %v13936_v62 = vld [vmem:[%s14400_s14 + $0x2f0] ss:$36 sps:$4 sm:$0xff]  }
 0x4cf   : > { %9906 = vmatprep.subr.bf16.mxu1 %v13879_v46  ;;  %v13930_v57 = vld [vmem:[%s14400_s14 + $0x20] ss:$36 sps:$4 sm:$0xff]   ;;  %v13933_v45 = vld [vmem:[%s14400_s14 + $0x728] ss:$36 sps:$4 sm:$0xff]   ;;  %v13937_v1 = vld [vmem:[%s14400_s14 + $0x770] ss:$36 sps:$4 sm:$0xff]  }
 0x4d0   : > { %v13931_v51 = vld [vmem:[%s14400_s14 + $0x4a0] ss:$36 sps:$4 sm:$0xff]   ;;  %v13934_v59 = vld [vmem:[%s14400_s14 + $0x68] ss:$36 sps:$4 sm:$0xff]  }
 0x4d1   : > { %9866 = vmatpush1.bf16.msra.mxu0 %v13874_v2  ;;  %v13935_v46 = vld [vmem:[%s14400_s14 + $0x4e8] ss:$36 sps:$4 sm:$0xff]   ;;  %v13938_v2 = vld [vmem:[%s14400_s14 + $0xb0] ss:$36 sps:$4 sm:$0xff]  }
 0x4d2   : > { %9907 = vmatpush1.bf16.msra.mxu1 %v13877_v50  ;;  %9867 = vmatprep.subr.bf16.mxu0 %v13882_v54  ;;  %v13939_v50 = vld [vmem:[%s14400_s14 + $0x530] ss:$36 sps:$4 sm:$0xff]   ;;  %v13940_v54 = vld [vmem:[%s14400_s14 + $0x338] ss:$36 sps:$4 sm:$0xff]  }
 0x4d3   : > { %9908 = vmatprep.subr.bf16.mxu1 %v13885_v27  ;;  %v13941_v27 = vld [vmem:[%s14400_s14 + $0x7b8] ss:$36 sps:$4 sm:$0xff]  }
 0x4d5   : > { %9868 = vmatpush1.bf16.msra.mxu0 %v13880_v55  ;;  %v13942_v55 = vld [vmem:[%s14400_s14 + $0xf8] ss:$36 sps:$4 sm:$0xff]  }
 0x4d6   : > { %9909 = vmatpush1.bf16.msra.mxu1 %v13883_v56  ;;  %9869 = vmatprep.subr.bf16.mxu0 %v13888_v11  ;;  %v13945_v56 = vld [vmem:[%s14400_s14 + $0x800] ss:$36 sps:$4 sm:$0xff]  }
 0x4d7   : > { %9910 = vmatprep.subr.bf16.mxu1 %v13891_v58  ;;  %v13946_v11 = vld [vmem:[%s14400_s14 + $0x140] ss:$36 sps:$4 sm:$0xff]  }
 0x4d8   : > { %v13947_v58 = vld [vmem:[%s14400_s14 + $0x5c0] ss:$36 sps:$4 sm:$0xff]  }
 0x4d9   : > { %9870 = vmatpush1.bf16.msra.mxu0 %v13886_v63  ;;  %v13948_v63 = vld [vmem:[%s14400_s14 + $0x3c8] ss:$36 sps:$4 sm:$0xff]  }
 0x4da   : > { %9911 = vmatpush1.bf16.msra.mxu1 %v13889_v13  ;;  %9871 = vmatprep.subr.bf16.mxu0 %v13894_v0  ;;  %v13949_v13 = vld [vmem:[%s14400_s14 + $0x848] ss:$36 sps:$4 sm:$0xff]  }
 0x4db   : > { %9912 = vmatprep.subr.bf16.mxu1 %v13897_v16  ;;  %v13950_v0 = vld [vmem:[%s14400_s14 + $0x188] ss:$36 sps:$4 sm:$0xff]  }
 0x4dc   : > { %v13951_v16 = vld [vmem:[%s14400_s14 + $0x608] ss:$36 sps:$4 sm:$0xff]  }
 0x4dd   : > { %9872 = vmatpush1.bf16.msra.mxu0 %v13892_v42  ;;  %v13952_v42 = vld [vmem:[%s14400_s14 + $0x410] ss:$36 sps:$4 sm:$0xff]  }
 0x4de   : > { %9913 = vmatpush1.bf16.msra.mxu1 %v13895_v3  ;;  %9873 = vmatprep.subr.bf16.mxu0 %v13900_v18  ;;  %v13953_v3 = vld [vmem:[%s14400_s14 + $0x890] ss:$36 sps:$4 sm:$0xff]  }
 0x4df   : > { %9914 = vmatprep.subr.bf16.mxu1 %v13903_v4 }
 0x4e1   : > { %9874 = vmatpush1.bf16.msra.mxu0 %v13898_v6 }
 0x4e2   : > { %9915 = vmatpush1.bf16.msra.mxu1 %v13901_v14  ;;  %9875 = vmatprep.subr.bf16.mxu0 %v13906_v9 }
 0x4e3   : > { %9916 = vmatprep.subr.bf16.mxu1 %v13909_v10 }
 0x4e5   : > { %9876 = vmatpush1.bf16.msra.mxu0 %v13904_v19 }
 0x4e6   : > { %9917 = vmatpush1.bf16.msra.mxu1 %v13907_v12  ;;  %9877 = vmatprep.subr.bf16.mxu0 %v13912_v15  ;;  %v13954_v12 = vld [vmem:[%s14400_s14 + $0x1d0] ss:$36 sps:$4 sm:$0xff]  }
 0x4e7   : > { %9918 = vmatprep.subr.bf16.mxu1 %v13915_v53  ;;  %v13955_v15 = vld [vmem:[%s14400_s14 + $0x650] ss:$36 sps:$4 sm:$0xff]  }
 0x4e9   : > { %9878 = vmatpush1.bf16.msra.mxu0 %v13910_v30 }
 0x4ea   : > { %9919 = vmatpush1.bf16.msra.mxu1 %v13913_v35  ;;  %9879 = vmatprep.subr.bf16.mxu0 %v13918_v33  ;;  %v13957_v33 = vld [vmem:[%s14400_s14 + $0x8d8] ss:$36 sps:$4 sm:$0xff]  }
 0x4eb   : > { %9920 = vmatprep.subr.bf16.mxu1 %v13921_v34 }
 0x4ed   : > { %9880 = vmatpush1.bf16.msra.mxu0 %v13916_v21  ;;  %v13958_v21 = vld [vmem:[%s14400_s14 + $0x218] ss:$36 sps:$4 sm:$0xff]  }
 0x4ee   : > { %9921 = vmatpush1.bf16.msra.mxu1 %v13919_v22  ;;  %9881 = vmatprep.subr.bf16.mxu0 %v13924_v28  ;;  %v13959_v22 = vld [vmem:[%s14400_s14 + $0x698] ss:$36 sps:$4 sm:$0xff]   ;;  %v13960_v28 = vld [vmem:[%s14400_s14 + $0xb60] ss:$36 sps:$4 sm:$0xff]  }
 0x4ef   : > { %9922 = vmatprep.subr.bf16.mxu1 %v13927_v29  ;;  %v13962_v29 = vld [vmem:[%s14400_s14 + $0xfe0] ss:$36 sps:$4 sm:$0xff]  }
 0x4f1   : > { %9882 = vmatpush1.bf16.msra.mxu0 %v13922_v47  ;;  %v13961_v47 = vld [vmem:[%s14400_s14 + $0x920] ss:$36 sps:$4 sm:$0xff]  }
 0x4f2   : > { %9923 = vmatpush1.bf16.msra.mxu1 %v13925_v5  ;;  %11900 = vmatprep.subr.bf16.mxu0 %v13928_v32  ;;  %v13963_v5 = vld [vmem:[%s14400_s14 + $0xda0] ss:$36 sps:$4 sm:$0xff]   ;;  %v13964_v32 = vld [vmem:[%s14400_s14 + $0xba8] ss:$36 sps:$4 sm:$0xff]  }
 0x4f3   : > { %11922 = vmatprep.subr.bf16.mxu1 %v13929_v49  ;;  %v13966_v49 = vld [vmem:[%s14400_s14 + $0x1028] ss:$36 sps:$4 sm:$0xff]  }
 0x4f4   : > { %9884 = vmatmul.mubr.bf16.vlgmr.msra.gmra.mrb[68].mxu0 %v14765_v61 }
 0x4f5   : > { %9925 = vmatmul.mubr.bf16.vlgmr.msra.gmra.mrb[68].mxu1 %v14849_v43  ;;  %11901 = vmatpush3.bf16.msra.mxu0 %v13930_v57  ;;  %v13965_v57 = vld [vmem:[%s14400_s14 + $0x968] ss:$36 sps:$4 sm:$0xff]  }
 0x4f6   : > { %11923 = vmatpush3.bf16.msra.mxu1 %v13931_v51  ;;  %11902 = vmatprep.subr.bf16.mxu0 %v13932_v44  ;;  %v13967_v51 = vld [vmem:[%s14400_s14 + $0xde8] ss:$36 sps:$4 sm:$0xff]   ;;  %v13968_v44 = vld [vmem:[%s14400_s14 + $0xbf0] ss:$36 sps:$4 sm:$0xff]  }
 0x4f7   : > { %11924 = vmatprep.subr.bf16.mxu1 %v13933_v45  ;;  %9965 = vmatprep.mubr.bf16.mxu0 %v14465_v48  ;;  %v13943_v48 = vld [vmem:[%s14400_s14 + $0x578] ss:$36 sps:$4 sm:$0xff]   ;;  %v13970_v45 = vld [vmem:[%s14400_s14 + $0x1070] ss:$36 sps:$4 sm:$0xff]  }
 0x4f8   : > { %10005 = vmatprep.mubr.bf16.mxu1 %v14470_v52  ;;  %v13944_v52 = vld [vmem:[%s14400_s14 + $0x380] ss:$36 sps:$4 sm:$0xff]  }
 0x4f9   : > { %11903 = vmatpush3.bf16.msra.mxu0 %v13934_v59  ;;  %v13972_v59 = vld [vmem:[%s14400_s14 + $0xc38] ss:$36 sps:$4 sm:$0xff]  }
 0x4fa   : > { %11925 = vmatpush3.bf16.msra.mxu1 %v13935_v46  ;;  %11904 = vmatprep.subr.bf16.mxu0 %v13936_v62  ;;  %v13974_v46 = vld [vmem:[%s14400_s14 + $0x10b8] ss:$36 sps:$4 sm:$0xff]  }
 0x4fb   : > { %11926 = vmatprep.subr.bf16.mxu1 %v13937_v1  ;;  %v13973_v62 = vld [vmem:[%s14400_s14 + $0x9f8] ss:$36 sps:$4 sm:$0xff]   ;;  %v13978_v1 = vld [vmem:[%s14400_s14 + $0x1100] ss:$36 sps:$4 sm:$0xff]  }
 0x4fd   : > { %11905 = vmatpush3.bf16.msra.mxu0 %v13938_v2  ;;  %v13977_v2 = vld [vmem:[%s14400_s14 + $0xa40] ss:$36 sps:$4 sm:$0xff]  }
 0x4fe   : > { %11927 = vmatpush3.bf16.msra.mxu1 %v13939_v50  ;;  %11906 = vmatprep.subr.bf16.mxu0 %v13940_v54  ;;  %v13979_v50 = vld [vmem:[%s14400_s14 + $0xec0] ss:$36 sps:$4 sm:$0xff]   ;;  %v13980_v54 = vld [vmem:[%s14400_s14 + $0xcc8] ss:$36 sps:$4 sm:$0xff]  }
 0x4ff   : > { %11928 = vmatprep.subr.bf16.mxu1 %v13941_v27  ;;  %v13982_v27 = vld [vmem:[%s14400_s14 + $0x1148] ss:$36 sps:$4 sm:$0xff]  }
 0x501   : > { %11907 = vmatpush3.bf16.msra.mxu0 %v13942_v55  ;;  %v13981_v55 = vld [vmem:[%s14400_s14 + $0xa88] ss:$36 sps:$4 sm:$0xff]  }
 0x502   : > { %11929 = vmatpush3.bf16.msra.mxu1 %v13943_v48  ;;  %11908 = vmatprep.subr.bf16.mxu0 %v13944_v52  ;;  %v13983_v48 = vld [vmem:[%s14400_s14 + $0xf08] ss:$36 sps:$4 sm:$0xff]   ;;  %v13984_v52 = vld [vmem:[%s14400_s14 + $0xd10] ss:$36 sps:$4 sm:$0xff]  }
 0x503   : > { %11930 = vmatprep.subr.bf16.mxu1 %v13945_v56  ;;  %v13986_v56 = vld [vmem:[%s14400_s14 + $0x1190] ss:$36 sps:$4 sm:$0xff]  }
 0x505   : > { %11909 = vmatpush3.bf16.msra.mxu0 %v13946_v11  ;;  %v13985_v11 = vld [vmem:[%s14400_s14 + $0xad0] ss:$36 sps:$4 sm:$0xff]  }
 0x506   : > { %11931 = vmatpush3.bf16.msra.mxu1 %v13947_v58  ;;  %11910 = vmatprep.subr.bf16.mxu0 %v13948_v63  ;;  %v13987_v58 = vld [vmem:[%s14400_s14 + $0xf50] ss:$36 sps:$4 sm:$0xff]   ;;  %v13988_v63 = vld [vmem:[%s14400_s14 + $0xd58] ss:$36 sps:$4 sm:$0xff]  }
 0x507   : > { %11932 = vmatprep.subr.bf16.mxu1 %v13949_v13  ;;  %v9639_v18 = vpop.f32.mrb[56].mxu0  ;;  %v13990_v13 = vld [vmem:[%s14400_s14 + $0x11d8] ss:$36 sps:$4 sm:$0xff]  }
 0x508   : > { %v9680_v4 = vpop.f32.mrb[56].mxu1  ;;  %v9640_v6 = vadd.f32 %v9639_v18, %v15759_v36  ;;  %v9641_v14 = vpop.f32.mrb[57].mxu0  ;;  %v13956_v36 = vld [vmem:[%s14400_s14 + $0x458] ss:$36 sps:$4 sm:$0xff]   ;;  %v13993_v18 = vld [vmem:[%s14400_s14 + $0x1220] ss:$36 sps:$4 sm:$0xff]  }
 0x509   : > { %v9682_v9 = vpop.f32.mrb[57].mxu1  ;;  %v9642_v10 = vadd.f32 %v9641_v14, %v15762_v31  ;;  %v9643_v19 = vpop.f32.mrb[58].mxu0  ;;  %11911 = vmatpush3.bf16.msra.mxu0 %v13950_v0  ;;  %v13989_v0 = vld [vmem:[%s14400_s14 + $0xb18] ss:$36 sps:$4 sm:$0xff]   ;;  %v13998_v14 = vld [vmem:[%s14400_s14 + $0x1928] ss:$36 sps:$4 sm:$0xff]  }
 0x50a   : > { %11933 = vmatpush3.bf16.msra.mxu1 %v13951_v16  ;;  %v9684_v53 = vpop.f32.mrb[58].mxu1  ;;  %v15837_v30 = vadd.f32 %v9680_v4, %v9640_v6  ;;  %v9644_v35 = vpop.f32.mrb[59].mxu0  ;;  %11912 = vmatprep.subr.bf16.mxu0 %v13952_v42  ;;  %v13991_v16 = vld [vmem:[%s14400_s14 + $0xf98] ss:$36 sps:$4 sm:$0xff]   ;;  %v13992_v42 = vld [vmem:[%s14400_s14 + $0x1460] ss:$36 sps:$4 sm:$0xff]  }
 0x50b   : > { %11934 = vmatprep.subr.bf16.mxu1 %v13953_v3  ;;  %v9685_v31 = vpop.f32.mrb[59].mxu1  ;;  %v15841_v34 = vadd.f32 %v9682_v9, %v9642_v10  ;;  %v13994_v3 = vld [vmem:[%s14400_s14 + $0x18e0] ss:$36 sps:$4 sm:$0xff]   ;;  %v13996_v6 = vld [vmem:[%s14400_s14 + $0x14a8] ss:$36 sps:$4 sm:$0xff]  }
 0x50c   : > { %v13995_v4 = vld [vmem:[%s14400_s14 + $0x16a0] ss:$36 sps:$4 sm:$0xff]   ;;  %v13997_v9 = vld [vmem:[%s14400_s14 + $0x1268] ss:$36 sps:$4 sm:$0xff]   ;;  %v14000_v19 = vld [vmem:[%s14400_s14 + $0x14f0] ss:$36 sps:$4 sm:$0xff]  }
 0x50d   : > { %11913 = vmatpush3.bf16.msra.mxu0 %v13954_v12  ;;  %v13999_v10 = vld [vmem:[%s14400_s14 + $0x16e8] ss:$36 sps:$4 sm:$0xff]   ;;  %v14002_v12 = vld [vmem:[%s14400_s14 + $0x1970] ss:$36 sps:$4 sm:$0xff]   ;;  %v14006_v53 = vld [vmem:[%s14400_s14 + $0x19b8] ss:$36 sps:$4 sm:$0xff]  }
 0x50e   : > { %11935 = vmatpush3.bf16.msra.mxu1 %v13955_v15  ;;  %11914 = vmatprep.subr.bf16.mxu0 %v13956_v36  ;;  %v14004_v15 = vld [vmem:[%s14400_s14 + $0x1538] ss:$36 sps:$4 sm:$0xff]   ;;  %v14010_v36 = vld [vmem:[%s14400_s14 + $0x1a00] ss:$36 sps:$4 sm:$0xff]  }
 0x50f   : > { %11936 = vmatprep.subr.bf16.mxu1 %v13957_v33  ;;  %v14005_v35 = vld [vmem:[%s14400_s14 + $0x12f8] ss:$36 sps:$4 sm:$0xff]   ;;  %v14009_v33 = vld [vmem:[%s14400_s14 + $0x1340] ss:$36 sps:$4 sm:$0xff]  }
 0x510   : > { %v14011_v31 = vld [vmem:[%s14400_s14 + $0x17c0] ss:$36 sps:$4 sm:$0xff]  }
 0x511   : > { %11915 = vmatpush3.bf16.msra.mxu0 %v13958_v21  ;;  %v14012_v21 = vld [vmem:[%s14400_s14 + $0x15c8] ss:$36 sps:$4 sm:$0xff]  }
 0x512   : > { %11937 = vmatpush3.bf16.msra.mxu1 %v13959_v22  ;;  %11944 = vmatprep.subr.bf16.mxu0 %v13960_v28  ;;  %v14014_v22 = vld [vmem:[%s14400_s14 + $0x1a48] ss:$36 sps:$4 sm:$0xff]  }
 0x513   : > { %11966 = vmatprep.subr.bf16.mxu1 %v13962_v29  ;;  %v14013_v28 = vld [vmem:[%s14400_s14 + $0x1388] ss:$36 sps:$4 sm:$0xff]  }
 0x514   : > { %9966 = vmatmul.mubr.bf16.vlgmr.msra.gmra.mrb[72].mxu0 %v14492_v7  ;;  %v13969_v7 = vld [vmem:[%s14400_s14 + $0x9b0] ss:$36 sps:$4 sm:$0xff]   ;;  %v14015_v29 = vld [vmem:[%s14400_s14 + $0x1808] ss:$36 sps:$4 sm:$0xff]  }
 0x515   : > { %10006 = vmatmul.mubr.bf16.vlgmr.msra.gmra.mrb[72].mxu1 %v14494_v8  ;;  %11945 = vmatpush3.bf16.msra.mxu0 %v13961_v47  ;;  %v13971_v8 = vld [vmem:[%s14400_s14 + $0xe30] ss:$36 sps:$4 sm:$0xff]  }
 0x516   : > { %11967 = vmatpush3.bf16.msra.mxu1 %v13963_v5  ;;  %11946 = vmatprep.subr.bf16.mxu0 %v13964_v32  ;;  %v14016_v47 = vld [vmem:[%s14400_s14 + $0x1610] ss:$36 sps:$4 sm:$0xff]  }
 0x517   : > { %11968 = vmatprep.subr.bf16.mxu1 %v13966_v49  ;;  %10045 = vmatprep.mubr.bf16.mxu0 %v14532_v37  ;;  %v13975_v37 = vld [vmem:[%s14400_s14 + $0xe78] ss:$36 sps:$4 sm:$0xff]   ;;  %v14018_v5 = vld [vmem:[%s14400_s14 + $0x1a90] ss:$36 sps:$4 sm:$0xff]  }
 0x518   : > { %10085 = vmatprep.mubr.bf16.mxu1 %v14536_v38  ;;  %v13976_v38 = vld [vmem:[%s14400_s14 + $0xc80] ss:$36 sps:$4 sm:$0xff]  }
 0x519   : > { %11947 = vmatpush3.bf16.msra.mxu0 %v13965_v57 }
 0x51a   : > { %11969 = vmatpush3.bf16.msra.mxu1 %v13967_v51  ;;  %11948 = vmatprep.subr.bf16.mxu0 %v13968_v44 }
 0x51b   : > { %11970 = vmatprep.subr.bf16.mxu1 %v13970_v45 }
 0x51d   : > { %11949 = vmatpush3.bf16.msra.mxu0 %v13969_v7 }
 0x51e   : > { %11971 = vmatpush3.bf16.msra.mxu1 %v13971_v8  ;;  %11950 = vmatprep.subr.bf16.mxu0 %v13972_v59  ;;  %v14017_v8 = vld [vmem:[%s14400_s14 + $0x13d0] ss:$36 sps:$4 sm:$0xff]  }
 0x51f   : > { %11972 = vmatprep.subr.bf16.mxu1 %v13974_v46  ;;  %v14019_v59 = vld [vmem:[%s14400_s14 + $0x1850] ss:$36 sps:$4 sm:$0xff]  }
 0x521   : > { %11951 = vmatpush3.bf16.msra.mxu0 %v13973_v62 }
 0x522   : > { %11973 = vmatpush3.bf16.msra.mxu1 %v13975_v37  ;;  %11952 = vmatprep.subr.bf16.mxu0 %v13976_v38  ;;  %v14022_v38 = vld [vmem:[%s14400_s14 + $0x1ad8] ss:$36 sps:$4 sm:$0xff]  }
 0x523   : > { %11974 = vmatprep.subr.bf16.mxu1 %v13978_v1 }
 0x525   : > { %11953 = vmatpush3.bf16.msra.mxu0 %v13977_v2  ;;  %v14021_v2 = vld [vmem:[%s14400_s14 + $0x1418] ss:$36 sps:$4 sm:$0xff]  }
 0x526   : > { %11975 = vmatpush3.bf16.msra.mxu1 %v13979_v50  ;;  %11954 = vmatprep.subr.bf16.mxu0 %v13980_v54  ;;  %v14023_v50 = vld [vmem:[%s14400_s14 + $0x1898] ss:$36 sps:$4 sm:$0xff]   ;;  %v14024_v54 = vld [vmem:[%s14400_s14 + $0x1d60] ss:$36 sps:$4 sm:$0xff]  }
 0x527   : > { %11976 = vmatprep.subr.bf16.mxu1 %v13982_v27  ;;  %v14026_v27 = vld [vmem:[%s14400_s14 + $0x21e0] ss:$36 sps:$4 sm:$0xff]  }
 0x529   : > { %11955 = vmatpush3.bf16.msra.mxu0 %v13981_v55  ;;  %v14025_v55 = vld [vmem:[%s14400_s14 + $0x1b20] ss:$36 sps:$4 sm:$0xff]  }
 0x52a   : > { %11977 = vmatpush3.bf16.msra.mxu1 %v13983_v48  ;;  %11956 = vmatprep.subr.bf16.mxu0 %v13984_v52  ;;  %v14027_v48 = vld [vmem:[%s14400_s14 + $0x1fa0] ss:$36 sps:$4 sm:$0xff]   ;;  %v14028_v52 = vld [vmem:[%s14400_s14 + $0x1da8] ss:$36 sps:$4 sm:$0xff]  }
 0x52b   : > { %11978 = vmatprep.subr.bf16.mxu1 %v13986_v56  ;;  %v14030_v56 = vld [vmem:[%s14400_s14 + $0x2228] ss:$36 sps:$4 sm:$0xff]  }
 0x52d   : > { %11957 = vmatpush3.bf16.msra.mxu0 %v13985_v11  ;;  %v14029_v11 = vld [vmem:[%s14400_s14 + $0x1b68] ss:$36 sps:$4 sm:$0xff]  }
 0x52e   : > { %11979 = vmatpush3.bf16.msra.mxu1 %v13987_v58  ;;  %11958 = vmatprep.subr.bf16.mxu0 %v13988_v63  ;;  %v14031_v58 = vld [vmem:[%s14400_s14 + $0x1fe8] ss:$36 sps:$4 sm:$0xff]   ;;  %v14032_v63 = vld [vmem:[%s14400_s14 + $0x1df0] ss:$36 sps:$4 sm:$0xff]  }
 0x52f   : > { %11980 = vmatprep.subr.bf16.mxu1 %v13990_v13  ;;  %v14034_v13 = vld [vmem:[%s14400_s14 + $0x2270] ss:$36 sps:$4 sm:$0xff]  }
 0x531   : > { %11959 = vmatpush3.bf16.msra.mxu0 %v13989_v0  ;;  %v14036_v0 = vld [vmem:[%s14400_s14 + $0x1e38] ss:$36 sps:$4 sm:$0xff]  }
 0x532   : > { %11981 = vmatpush3.bf16.msra.mxu1 %v13991_v16  ;;  %11988 = vmatprep.subr.bf16.mxu0 %v13992_v42  ;;  %v14038_v16 = vld [vmem:[%s14400_s14 + $0x22b8] ss:$36 sps:$4 sm:$0xff]  }
 0x533   : > { %12010 = vmatprep.subr.bf16.mxu1 %v13994_v3  ;;  %v14037_v42 = vld [vmem:[%s14400_s14 + $0x1bf8] ss:$36 sps:$4 sm:$0xff]   ;;  %v14042_v3 = vld [vmem:[%s14400_s14 + $0x2300] ss:$36 sps:$4 sm:$0xff]  }
 0x534   : > { %10046 = vmatmul.mubr.bf16.vlgmr.msra.gmra.mrb[76].mxu0 %v14580_v17  ;;  %v14001_v17 = vld [vmem:[%s14400_s14 + $0x12b0] ss:$36 sps:$4 sm:$0xff]  }
 0x535   : > { %10086 = vmatmul.mubr.bf16.vlgmr.msra.gmra.mrb[76].mxu1 %v14586_v20  ;;  %11989 = vmatpush3.bf16.msra.mxu0 %v13993_v18  ;;  %v14003_v20 = vld [vmem:[%s14400_s14 + $0x1730] ss:$36 sps:$4 sm:$0xff]   ;;  %v14041_v18 = vld [vmem:[%s14400_s14 + $0x1c40] ss:$36 sps:$4 sm:$0xff]  }
 0x536   : > { %12011 = vmatpush3.bf16.msra.mxu1 %v13995_v4  ;;  %11990 = vmatprep.subr.bf16.mxu0 %v13996_v6  ;;  %v14043_v4 = vld [vmem:[%s14400_s14 + $0x20c0] ss:$36 sps:$4 sm:$0xff]   ;;  %v14044_v6 = vld [vmem:[%s14400_s14 + $0x1ec8] ss:$36 sps:$4 sm:$0xff]  }
 0x537   : > { %12012 = vmatprep.subr.bf16.mxu1 %v13998_v14  ;;  %10125 = vmatprep.mubr.bf16.mxu0 %v14598_v25  ;;  %v14007_v25 = vld [vmem:[%s14400_s14 + $0x1778] ss:$36 sps:$4 sm:$0xff]   ;;  %v14046_v14 = vld [vmem:[%s14400_s14 + $0x2348] ss:$36 sps:$4 sm:$0xff]  }
 0x538   : > { %10165 = vmatprep.mubr.bf16.mxu1 %v14602_v26  ;;  %v14008_v26 = vld [vmem:[%s14400_s14 + $0x1580] ss:$36 sps:$4 sm:$0xff]  }
 0x539   : > { %11991 = vmatpush3.bf16.msra.mxu0 %v13997_v9  ;;  %v14045_v9 = vld [vmem:[%s14400_s14 + $0x1c88] ss:$36 sps:$4 sm:$0xff]  }
 0x53a   : > { %12013 = vmatpush3.bf16.msra.mxu1 %v13999_v10  ;;  %11992 = vmatprep.subr.bf16.mxu0 %v14000_v19  ;;  %v14047_v10 = vld [vmem:[%s14400_s14 + $0x2108] ss:$36 sps:$4 sm:$0xff]   ;;  %v14048_v19 = vld [vmem:[%s14400_s14 + $0x1f10] ss:$36 sps:$4 sm:$0xff]  }
 0x53b   : > { %12014 = vmatprep.subr.bf16.mxu1 %v14002_v12  ;;  %v14050_v12 = vld [vmem:[%s14400_s14 + $0x2390] ss:$36 sps:$4 sm:$0xff]  }
 0x53d   : > { %11993 = vmatpush3.bf16.msra.mxu0 %v14001_v17  ;;  %v14049_v17 = vld [vmem:[%s14400_s14 + $0x1cd0] ss:$36 sps:$4 sm:$0xff]  }
 0x53e   : > { %12015 = vmatpush3.bf16.msra.mxu1 %v14003_v20  ;;  %11994 = vmatprep.subr.bf16.mxu0 %v14004_v15  ;;  %v14051_v20 = vld [vmem:[%s14400_s14 + $0x2150] ss:$36 sps:$4 sm:$0xff]   ;;  %v14052_v15 = vld [vmem:[%s14400_s14 + $0x1f58] ss:$36 sps:$4 sm:$0xff]  }
 0x53f   : > { %12016 = vmatprep.subr.bf16.mxu1 %v14006_v53  ;;  %v14054_v53 = vld [vmem:[%s14400_s14 + $0x23d8] ss:$36 sps:$4 sm:$0xff]  }
 0x541   : > { %11995 = vmatpush3.bf16.msra.mxu0 %v14005_v35  ;;  %v14053_v35 = vld [vmem:[%s14400_s14 + $0x1d18] ss:$36 sps:$4 sm:$0xff]  }
 0x542   : > { %12017 = vmatpush3.bf16.msra.mxu1 %v14007_v25  ;;  %11996 = vmatprep.subr.bf16.mxu0 %v14008_v26  ;;  %v14055_v25 = vld [vmem:[%s14400_s14 + $0x2198] ss:$36 sps:$4 sm:$0xff]   ;;  %v14056_v26 = vld [vmem:[%s14400_s14 + $0x2660] ss:$36 sps:$4 sm:$0xff]  }
 0x543   : > { %12018 = vmatprep.subr.bf16.mxu1 %v14010_v36  ;;  %v14057_v36 = vld [vmem:[%s14400_s14 + $0x2420] ss:$36 sps:$4 sm:$0xff]  }
 0x545   : > { %11997 = vmatpush3.bf16.msra.mxu0 %v14009_v33  ;;  %v14058_v33 = vld [vmem:[%s14400_s14 + $0x26a8] ss:$36 sps:$4 sm:$0xff]  }
 0x546   : > { %12019 = vmatpush3.bf16.msra.mxu1 %v14011_v31  ;;  %11998 = vmatprep.subr.bf16.mxu0 %v14012_v21  ;;  %v14059_v31 = vld [vmem:[%s14400_s14 + $0x2468] ss:$36 sps:$4 sm:$0xff]   ;;  %v14060_v21 = vld [vmem:[%s14400_s14 + $0x26f0] ss:$36 sps:$4 sm:$0xff]  }
 0x547   : > { %12020 = vmatprep.subr.bf16.mxu1 %v14014_v22  ;;  %v9721_v32 = vpop.f32.mrb[60].mxu0  ;;  %v14061_v22 = vld [vmem:[%s14400_s14 + $0x24b0] ss:$36 sps:$4 sm:$0xff]  }
 0x548   : > { %v9762_v49 = vpop.f32.mrb[60].mxu1  ;;  %v9722_v57 = vadd.f32 %v9721_v32, %v15837_v30  ;;  %v9723_v51 = vpop.f32.mrb[61].mxu0  ;;  %v14020_v30 = vld [vmem:[%s14400_s14 + $0x1658] ss:$36 sps:$4 sm:$0xff]  }
 0x549   : > { %v9764_v44 = vpop.f32.mrb[61].mxu1  ;;  %v9724_v45 = vadd.f32 %v9723_v51, %v15841_v34  ;;  %v9725_v7 = vpop.f32.mrb[62].mxu0  ;;  %11999 = vmatpush3.bf16.msra.mxu0 %v14013_v28  ;;  %v14062_v28 = vld [vmem:[%s14400_s14 + $0x2738] ss:$36 sps:$4 sm:$0xff]  }
 0x54a   : > { %12021 = vmatpush3.bf16.msra.mxu1 %v14015_v29  ;;  %v9766_v46 = vpop.f32.mrb[62].mxu1  ;;  %v15915_v62 = vadd.f32 %v9762_v49, %v9722_v57  ;;  %v9726_v37 = vpop.f32.mrb[63].mxu0  ;;  %12000 = vmatprep.subr.bf16.mxu0 %v14016_v47  ;;  %v14063_v29 = vld [vmem:[%s14400_s14 + $0x24f8] ss:$36 sps:$4 sm:$0xff]   ;;  %v14066_v47 = vld [vmem:[%s14400_s14 + $0x27c8] ss:$36 sps:$4 sm:$0xff]  }
 0x54b   : > { %12022 = vmatprep.subr.bf16.mxu1 %v14018_v5  ;;  %v9767_v34 = vpop.f32.mrb[63].mxu1  ;;  %v15919_v1 = vadd.f32 %v9764_v44, %v9724_v45  ;;  %v14067_v5 = vld [vmem:[%s14400_s14 + $0x2588] ss:$36 sps:$4 sm:$0xff]  }
 0x54d   : > { %12001 = vmatpush3.bf16.msra.mxu0 %v14017_v8  ;;  %v14069_v8 = vld [vmem:[%s14400_s14 + $0x25d0] ss:$36 sps:$4 sm:$0xff]  }
 0x54e   : > { %12023 = vmatpush3.bf16.msra.mxu1 %v14019_v59  ;;  %12002 = vmatprep.subr.bf16.mxu0 %v14020_v30  ;;  %v14070_v30 = vld [vmem:[%s14400_s14 + $0x2858] ss:$36 sps:$4 sm:$0xff]  }
 0x54f   : > { %12024 = vmatprep.subr.bf16.mxu1 %v14022_v38 }
 0x551   : > { %12003 = vmatpush3.bf16.msra.mxu0 %v14021_v2  ;;  %v14071_v2 = vld [vmem:[%s14400_s14 + $0x2618] ss:$36 sps:$4 sm:$0xff]  }
 0x552   : > { %12025 = vmatpush3.bf16.msra.mxu1 %v14023_v50  ;;  %12032 = vmatprep.subr.bf16.mxu0 %v14024_v54 }
 0x553   : > { %12054 = vmatprep.subr.bf16.mxu1 %v14026_v27 }
 0x554   : > { %10126 = vmatmul.mubr.bf16.vlgmr.msra.gmra.mrb[80].mxu0 %v14672_v39  ;;  %v14033_v39 = vld [vmem:[%s14400_s14 + $0x1bb0] ss:$36 sps:$4 sm:$0xff]  }
 0x555   : > { %10166 = vmatmul.mubr.bf16.vlgmr.msra.gmra.mrb[80].mxu1 %v14676_v40  ;;  %12033 = vmatpush3.bf16.msra.mxu0 %v14025_v55  ;;  %v14035_v40 = vld [vmem:[%s14400_s14 + $0x2030] ss:$36 sps:$4 sm:$0xff]  }
 0x556   : > { %12055 = vmatpush3.bf16.msra.mxu1 %v14027_v48  ;;  %12034 = vmatprep.subr.bf16.mxu0 %v14028_v52  ;;  %v318_v52 = vld [vmem:[#allocation2 + $0x30] sm:$0xff] }
 0x557   : > { %12056 = vmatprep.subr.bf16.mxu1 %v14030_v56  ;;  %10205 = vmatprep.mubr.bf16.mxu0 %v14688_v23  ;;  %v14039_v23 = vld [vmem:[%s14400_s14 + $0x2078] ss:$36 sps:$4 sm:$0xff]  }
 0x558   : > { %10245 = vmatprep.mubr.bf16.mxu1 %v14692_v24  ;;  %v14040_v24 = vld [vmem:[%s14400_s14 + $0x1e80] ss:$36 sps:$4 sm:$0xff]  }
 0x559   : > { %12035 = vmatpush3.bf16.msra.mxu0 %v14029_v11 }
 0x55a   : > { %12057 = vmatpush3.bf16.msra.mxu1 %v14031_v58  ;;  %12036 = vmatprep.subr.bf16.mxu0 %v14032_v63  ;;  %v319_v63 = vld [vmem:[#allocation2 + $0x38] sm:$0xff] }
 0x55b   : > { %12058 = vmatprep.subr.bf16.mxu1 %v14034_v13 }
 0x55d   : > { %12037 = vmatpush3.bf16.msra.mxu0 %v14033_v39 }
 0x55e   : > { %12059 = vmatpush3.bf16.msra.mxu1 %v14035_v40  ;;  %12038 = vmatprep.subr.bf16.mxu0 %v14036_v0 }
 0x55f   : > { %12060 = vmatprep.subr.bf16.mxu1 %v14038_v16 }
 0x561   : > { %12039 = vmatpush3.bf16.msra.mxu0 %v14037_v42 }
 0x562   : > { %12061 = vmatpush3.bf16.msra.mxu1 %v14039_v23  ;;  %12040 = vmatprep.subr.bf16.mxu0 %v14040_v24 }
 0x563   : > { %12062 = vmatprep.subr.bf16.mxu1 %v14042_v3 }
 0x565   : > { %12041 = vmatpush3.bf16.msra.mxu0 %v14041_v18 }
 0x566   : > { %12063 = vmatpush3.bf16.msra.mxu1 %v14043_v4  ;;  %12042 = vmatprep.subr.bf16.mxu0 %v14044_v6 }
 0x567   : > { %12064 = vmatprep.subr.bf16.mxu1 %v14046_v14 }
 0x569   : > { %12043 = vmatpush3.bf16.msra.mxu0 %v14045_v9 }
 0x56a   : > { %12065 = vmatpush3.bf16.msra.mxu1 %v14047_v10  ;;  %12044 = vmatprep.subr.bf16.mxu0 %v14048_v19 }
 0x56b   : > { %12066 = vmatprep.subr.bf16.mxu1 %v14050_v12 }
 0x56d   : > { %12045 = vmatpush3.bf16.msra.mxu0 %v14049_v17 }
 0x56e   : > { %12067 = vmatpush3.bf16.msra.mxu1 %v14051_v20  ;;  %12046 = vmatprep.subr.bf16.mxu0 %v14052_v15 }
 0x56f   : > { %12068 = vmatprep.subr.bf16.mxu1 %v14054_v53 }
 0x571   : > { %12047 = vmatpush3.bf16.msra.mxu0 %v14053_v35 }
 0x572   : > { %12069 = vmatpush3.bf16.msra.mxu1 %v14055_v25  ;;  %12076 = vmatprep.subr.bf16.mxu0 %v14056_v26 }
 0x574   : > { %10206 = vmatmul.mubr.bf16.vlgmr.msra.gmra.mrb[84].mxu0 %v14761_v60  ;;  %v14064_v60 = vld [vmem:[%s14400_s14 + $0x2780] ss:$36 sps:$4 sm:$0xff]  }
 0x575   : > { %10246 = vmatmul.mubr.bf16.vlgmr.msra.gmra.mrb[84].mxu1 %v14765_v61  ;;  %12077 = vmatpush3.bf16.msra.mxu0 %v14057_v36  ;;  %v14065_v61 = vld [vmem:[%s14400_s14 + $0x2540] ss:$36 sps:$4 sm:$0xff]  }
 0x576   : > { %10285 = vmatprep.mubr.bf16.mxu0 %v14775_v41  ;;  %12078 = vmatprep.subr.bf16.mxu0 %v14058_v33  ;;  %v14068_v41 = vld [vmem:[%s14400_s14 + $0x2810] ss:$36 sps:$4 sm:$0xff]  }
 0x579   : > { %12079 = vmatpush3.bf16.msra.mxu0 %v14059_v31 }
 0x57a   : > { %12080 = vmatprep.subr.bf16.mxu0 %v14060_v21 }
 0x57d   : > { %12081 = vmatpush3.bf16.msra.mxu0 %v14061_v22 }
 0x57e   : > { %12082 = vmatprep.subr.bf16.mxu0 %v14062_v28 }
 0x581   : > { %12083 = vmatpush3.bf16.msra.mxu0 %v14063_v29 }
 0x582   : > { %12084 = vmatprep.subr.bf16.mxu0 %v14064_v60 }
 0x585   : > { %12085 = vmatpush3.bf16.msra.mxu0 %v14065_v61 }
 0x586   : > { %12086 = vmatprep.subr.bf16.mxu0 %v14066_v47 }
 0x587   : > { %v9803_v32 = vpop.f32.mrb[64].mxu0 }
 0x588   : > { %v9844_v49 = vpop.f32.mrb[64].mxu1  ;;  %v9804_v57 = vadd.f32 %v9803_v32, %v15915_v62  ;;  %v9805_v51 = vpop.f32.mrb[65].mxu0 }
 0x589   : > { %v9846_v44 = vpop.f32.mrb[65].mxu1  ;;  %v9806_v45 = vadd.f32 %v9805_v51, %v15919_v1  ;;  %v9807_v7 = vpop.f32.mrb[66].mxu0  ;;  %12087 = vmatpush3.bf16.msra.mxu0 %v14067_v5 }
 0x58a   : > { %v9848_v59 = vpop.f32.mrb[66].mxu1  ;;  %v9845_v46 = vadd.f32 %v9844_v49, %v9804_v57  ;;  %v9808_v37 = vpop.f32.mrb[67].mxu0  ;;  %12088 = vmatprep.subr.bf16.mxu0 %v14068_v41 }
 0x58b   : > { %v9849_v38 = vpop.f32.mrb[67].mxu1  ;;  %v9847_v34 = vadd.f32 %v9846_v44, %v9806_v45 }
 0x58d   : > { %12089 = vmatpush3.bf16.msra.mxu0 %v14069_v8 }
 0x58e   : > { %12090 = vmatprep.subr.bf16.mxu0 %v14070_v30 }
 0x591   : > { %12091 = vmatpush3.bf16.msra.mxu0 %v14071_v2 }
 0x594   : > { %10286 = vmatmul.mubr.bf16.vlgmr.msra.gmra.mrb[88].mxu0 %v14849_v43 }
 0x5c7   : > { %v9885_v62 = vpop.f32.mrb[68].mxu0 }
 0x5c8   : > { %v9926_v50 = vpop.f32.mrb[68].mxu1  ;;  %v9886_v54 = vadd.f32 %v9885_v62, %v9845_v46  ;;  %v9887_v1 = vpop.f32.mrb[69].mxu0 }
 0x5c9   : > { %v9928_v27 = vpop.f32.mrb[69].mxu1  ;;  %v9888_v55 = vadd.f32 %v9887_v1, %v9847_v34  ;;  %v9889_v48 = vpop.f32.mrb[70].mxu0  ;;  %v320_v1 = vld [vmem:[#allocation2 + $0x40] sm:$0xff] }
 0x5ca   : > { %v9930_v56 = vpop.f32.mrb[70].mxu1  ;;  %v9927_v11 = vadd.f32 %v9926_v50, %v9886_v54  ;;  %v9890_v58 = vpop.f32.mrb[71].mxu0 }
 0x5cb   : > { %v9931_v13 = vpop.f32.mrb[71].mxu1  ;;  %v9929_v39 = vadd.f32 %v9928_v27, %v9888_v55  ;;  %v10315_v58 = vld [vmem:[#allocation2] sm:$0xff] (!%p11894_p7) }
 0x5cc   : > { %v10299_v40 = vadd.f32 %v9927_v11, %v318_v52  ;;  %v10328_v52 = vlaneseq (!%p11894_p7)  ;;  %v10324_v11 = vld [vmem:[#allocation5] sm:$0xff] (!%p11894_p7) }
 0x5cd   : > { %v10300_v0 = vadd.f32 %v9929_v39, %v319_v63 }
 0x5ce   : > { %10308 = vst [vmem:[#allocation2 + $0x30] sm:$0xff] %v10299_v40  ;;  %v10329_v56 = vshrl.u32 (!%p11894_p7), %v10328_v52, 7 }
 0x5cf   : > { %10309 = vst [vmem:[#allocation2 + $0x38] sm:$0xff] %v10300_v0  ;;  %v10316_v0 = vld [vmem:[#allocation2 + $0x8] sm:$0xff] (!%p11894_p7) }
 0x5d0   : > { %v10330_v63 = vsub.s32 (!%p11894_p7), 0, %v10329_v56  ;;  %v10334_v13 = vsub.s32 (!%p11894_p7), 1, %v10329_v56  ;;  %v10338_v39 = vsub.s32 (!%p11894_p7), 2, %v10329_v56  ;;  %v10342_v40 = vsub.s32 (!%p11894_p7), 3, %v10329_v56 }
 0x5e7   : > { %v11916_v16 = vpop.f32.mrb[72].mxu0 }
 0x5e8   : > { %v11938_v43 = vpop.f32.mrb[72].mxu1  ;;  %v11917_v42 = vpop.f32.mrb[73].mxu0 }
 0x5e9   : > { %v11939_v23 = vpop.f32.mrb[73].mxu1  ;;  %v11918_v24 = vadd.f32 %v11917_v42, %v11916_v16  ;;  %v11919_v18 = vpop.f32.mrb[74].mxu0  ;;  %v10317_v16 = vld [vmem:[#allocation2 + $0x10] sm:$0xff] (!%p11894_p7)  ;;  %v10346_v42 = vsub.s32 (!%p11894_p7), 4, %v10329_v56 }
 0x5ea   : > { %v11940_v3 = vadd.f32 %v11939_v23, %v11938_v43  ;;  %v11941_v4 = vpop.f32.mrb[74].mxu1  ;;  %v11920_v6 = vpop.f32.mrb[75].mxu0  ;;  %v10318_v43 = vld [vmem:[#allocation2 + $0x18] sm:$0xff] (!%p11894_p7)  ;;  %v10350_v23 = vsub.s32 (!%p11894_p7), 5, %v10329_v56  ;;  %v10335_v18 = vrot.slane (!%p11894_p7), %v10324_v11, %v10334_v13 }
 0x5eb   : > { %v11942_v14 = vpop.f32.mrb[75].mxu1  ;;  %v10339_v4 = vrot.slane (!%p11894_p7), %v10324_v11, %v10338_v39  ;;  %v10343_v6 = vrot.slane (!%p11894_p7), %v10324_v11, %v10342_v40 }
 0x5ec   : > { %v10008_v9 = vadd.f32 %v11940_v3, %v11918_v24  ;;  %v10354_v24 = vsub.s32 (!%p11894_p7), 6, %v10329_v56  ;;  %v10331_v3 = vrot.slane (!%p11894_p7), %v10324_v11, %v10330_v63  ;;  %v10319_v14 = vld [vmem:[#allocation2 + $0x20] sm:$0xff] (!%p11894_p7) }
 0x607   : > { %v11960_v10 = vpop.f32.mrb[76].mxu0 }
 0x608   : > { %v11982_v19 = vpop.f32.mrb[76].mxu1  ;;  %v11961_v12 = vpop.f32.mrb[77].mxu0 }
 0x609   : > { %v11983_v17 = vpop.f32.mrb[77].mxu1  ;;  %v11962_v20 = vadd.f32 %v11961_v12, %v11960_v10  ;;  %v11963_v15 = vpop.f32.mrb[78].mxu0  ;;  %v10351_v10 = vrot.slane (!%p11894_p7), %v10324_v11, %v10350_v23  ;;  %v10373_v12 = vadd.f32 (!%p11894_p7), %v10331_v3, %v10315_v58  ;;  %v11896_v58 = vld [vmem:[#allocation7 + $0x8] ss:$0 sm:$0xff] (!%p11894_p7) }
 0x60a   : > { %v11984_v53 = vadd.f32 %v11983_v17, %v11982_v19  ;;  %v11985_v35 = vpop.f32.mrb[78].mxu1  ;;  %v11964_v25 = vpop.f32.mrb[79].mxu0  ;;  %v10358_v19 = vsub.s32 (!%p11894_p7), 7, %v10329_v56  ;;  %v10374_v17 = vadd.f32 (!%p11894_p7), %v10335_v18, %v10316_v0  ;;  %v10376_v15 = vadd.f32 (!%p11894_p7), %v10343_v6, %v10318_v43 }
 0x60b   : > { %v11986_v26 = vpop.f32.mrb[79].mxu1  ;;  %v10048_v36 = vadd.f32 %v11962_v20, %v10008_v9  ;;  %v10347_v9 = vrot.slane (!%p11894_p7), %v10324_v11, %v10346_v42  ;;  %v10375_v20 = vadd.f32 (!%p11894_p7), %v10339_v4, %v10317_v16  ;;  %v10355_v35 = vrot.slane (!%p11894_p7), %v10324_v11, %v10354_v24  ;;  %v10391_v25 = vld [vmem:[#allocation7] sm:$0xff] (!%p11894_p7) }
 0x60c   : > { %v10321_v26 = vld [vmem:[#allocation2 + $0x30] sm:$0xff] (!%p11894_p7) }
 0x60d   : > { %v10088_v33 = vadd.f32 %v11984_v53, %v10048_v36  ;;  %v10320_v53 = vld [vmem:[#allocation2 + $0x28] sm:$0xff] (!%p11894_p7)  ;;  %v10377_v36 = vadd.f32 (!%p11894_p7), %v10347_v9, %v10319_v14 }
 0x627   : > { %v12004_v31 = vpop.f32.mrb[80].mxu0 }
 0x628   : > { %v12026_v21 = vpop.f32.mrb[80].mxu1  ;;  %v12005_v22 = vpop.f32.mrb[81].mxu0 }
 0x629   : > { %v12027_v28 = vpop.f32.mrb[81].mxu1  ;;  %v12006_v29 = vadd.f32 %v12005_v22, %v12004_v31  ;;  %v12007_v60 = vpop.f32.mrb[82].mxu0  ;;  %v10383_v31 = vmax.f32 (!%p11894_p7), %v10374_v17, 0.0  ;;  %v10384_v22 = vmax.f32 (!%p11894_p7), %v10375_v20, 0.0 }
 0x62a   : > { %v12028_v61 = vadd.f32 %v12027_v28, %v12026_v21  ;;  %v12029_v47 = vpop.f32.mrb[82].mxu1  ;;  %v12008_v5 = vpop.f32.mrb[83].mxu0  ;;  %v10359_v21 = vrot.slane (!%p11894_p7), %v10324_v11, %v10358_v19  ;;  %v10322_v28 = vld [vmem:[#allocation2 + $0x38] sm:$0xff] (!%p11894_p7)  ;;  %v10385_v60 = vmax.f32 (!%p11894_p7), %v10376_v15, 0.0 }
 0x62b   : > { %v12030_v41 = vpop.f32.mrb[83].mxu1  ;;  %v10128_v32 = vadd.f32 %v12006_v29, %v10088_v33  ;;  %v10382_v33 = vmax.f32 (!%p11894_p7), %v10373_v12, 0.0  ;;  %v10378_v29 = vadd.f32 (!%p11894_p7), %v10351_v10, %v10320_v53  ;;  %v10402_v47 = vrot.slane (!%p11894_p7), %v10391_v25, %v10334_v13 }
 0x62c   : > { %v10379_v5 = vadd.f32 (!%p11894_p7), %v10355_v35, %v10321_v26  ;;  %v10406_v41 = vrot.slane (!%p11894_p7), %v10391_v25, %v10338_v39 }
 0x62d   : > { %v10168_v49 = vadd.f32 %v12028_v61, %v10128_v32  ;;  %v10398_v61 = vrot.slane (!%p11894_p7), %v10391_v25, %v10330_v63  ;;  %v10410_v32 = vrot.slane (!%p11894_p7), %v10391_v25, %v10342_v40 }
 0x647   : > { %v12048_v57 = vpop.f32.mrb[84].mxu0 }
 0x648   : > { %v12070_v51 = vpop.f32.mrb[84].mxu1  ;;  %v12049_v44 = vpop.f32.mrb[85].mxu0 }
 0x649   : > { %v12071_v45 = vpop.f32.mrb[85].mxu1  ;;  %v12050_v7 = vadd.f32 %v12049_v44, %v12048_v57  ;;  %v12051_v8 = vpop.f32.mrb[86].mxu0  ;;  %v11895_v57 = vld [vmem:[#allocation5 + $0x8] ss:$0 sm:$0xff] (!%p11894_p7)  ;;  %v10414_v44 = vrot.slane (!%p11894_p7), %v10391_v25, %v10346_v42 }
 0x64a   : > { %v12072_v59 = vadd.f32 %v12071_v45, %v12070_v51  ;;  %v12073_v46 = vpop.f32.mrb[86].mxu1  ;;  %v12052_v37 = vpop.f32.mrb[87].mxu0  ;;  %v10386_v51 = vmax.f32 (!%p11894_p7), %v10377_v36, 0.0  ;;  %v10440_v45 = vmul.f32 (!%p11894_p7), %v10398_v61, %v10382_v33  ;;  %v10380_v8 = vadd.f32 (!%p11894_p7), %v10359_v21, %v10322_v28 }
 0x64b   : > { %v12074_v30 = vpop.f32.mrb[87].mxu1  ;;  %v10208_v38 = vadd.f32 %v12050_v7, %v10168_v49  ;;  %v10441_v7 = vmul.f32 (!%p11894_p7), %v10402_v47, %v10383_v31  ;;  %v10387_v46 = vmax.f32 (!%p11894_p7), %v10378_v29, 0.0  ;;  %v10418_v37 = vrot.slane (!%p11894_p7), %v10391_v25, %v10350_v23 }
 0x64c   : > { %v10443_v30 = vmul.f32 (!%p11894_p7), %v10410_v32, %v10385_v60 }
 0x64d   : > { %v10248_v34 = vadd.f32 %v12072_v59, %v10208_v38  ;;  %v10442_v59 = vmul.f32 (!%p11894_p7), %v10406_v41, %v10384_v22  ;;  %v10449_v38 = vadd.f32 (!%p11894_p7), %v10441_v7, %v10440_v45 }
 0x667   : > { %v12092_v2 = vpop.f32.mrb[88].mxu0 }
 0x668   : > { %v12093_v62 = vpop.f32.mrb[89].mxu0 }
 0x669   : > { %v12094_v50 = vadd.f32 %v12093_v62, %v12092_v2  ;;  %v12095_v54 = vpop.f32.mrb[90].mxu0  ;;  %10314 = sbr.rel (%p11894_p7) target bundleno = 1806 (0x70e), region = 56  ;;  %v10388_v2 = vmax.f32 (!%p11894_p7), %v10379_v5, 0.0  ;;  %v10422_v62 = vrot.slane (!%p11894_p7), %v10391_v25, %v10354_v24 }
 0x66a   : > { %v12096_v27 = vpop.f32.mrb[91].mxu0  ;;  %v10450_v54 = vadd.f32 (!%p11894_p7), %v10449_v38, %v10442_v59 }
 0x66b   : > { %v10288_v55 = vadd.f32 %v12094_v50, %v10248_v34  ;;  %v10444_v50 = vmul.f32 (!%p11894_p7), %v10414_v44, %v10386_v51  ;;  %v10426_v27 = vrot.slane (!%p11894_p7), %v10391_v25, %v10358_v19  ;;  %v10446_v56 = vmul.f32 (!%p11894_p7), %v10422_v62, %v10388_v2 }
 0x66d   : > { %v10301_v48 = vadd.f32 %v10288_v55, %v320_v1  ;;  %v10389_v1 = vmax.f32 (!%p11894_p7), %v10380_v8, 0.0  ;;  %v10445_v55 = vmul.f32 (!%p11894_p7), %v10418_v37, %v10387_v46 }
 0x66f   : > { %10310 = vst [vmem:[#allocation2 + $0x40] sm:$0xff] %v10301_v48  ;;  %v10451_v48 = vadd.f32 (!%p11894_p7), %v10450_v54, %v10443_v30  ;;  %v10447_v63 = vmul.f32 (!%p11894_p7), %v10426_v27, %v10389_v1 }
 0x671   : > { %v10452_v11 = vadd.f32 %v10451_v48, %v10444_v50 }
 0x673   : > { %v10453_v13 = vadd.f32 %v10452_v11, %v10445_v55 }
 0x675   : > { %v10454_v40 = vadd.f32 %v10453_v13, %v10446_v56 }
 0x676   : > { %v10323_v49 = vld [vmem:[#allocation2 + $0x40] sm:$0xff] }
 0x677   : > { %v10381_v34 = vadd.f32 %v11895_v57, %v10323_v49  ;;  %v10455_v0 = vadd.f32 %v10454_v40, %v10447_v63 }
 0x679   : > { %v10390_v52 = vmax.f32 %v10381_v34, 0.0 }
 0x67b   : > { %v10448_v39 = vmul.f32 %v11896_v58, %v10390_v52 }
 0x67d   : > { %v10456_v16 = vadd.f32 %v10455_v0, %v10448_v39 }
 0x67f   : > { %10457 = vadd.xlane.f32.xlu0 %v10456_v16 }
 0x70c   : > { %v10458_v43 = vpop.xlane.xlu0 %10457 }
 0x70d   : > { %10460 = vst.msk [vmem:[%s16007_s4] sm:$0xff] %vm10459_vm0, %v10458_v43 }
 0x70e PF: > { %s18_s20 = sadd.s32 1, %s14212_s20   ;;  %s16022_s15 = smov %s14196_s16 }
 0x70f   : > { %p15_p9 = scmp.ge.s32.totalorder %s18_s20, 4   ;;  %s16023_s16 = smov %s14200_s17 }
 0x710   : > { %s16024_s17 = smov %s14367_s5  ;;  %s16025_s18 = smov %s14208_s19 }
 0x711   : > { %s16026_s19 = smov %s16028_s26  ;;  %17 = sbr.rel (!%p15_p9) target bundleno = 5 (0x5), region = 97 }
 0x718   :  { %10480 = vsyncpa [#allocation4], 1 }
 0x719   :  { %10482 = vsyncpa [#allocation4 + $0x1], 1 }
 0x71a   :  { %10483 = vsyncpa [#allocation6], 1 }

</bundles_post_ra>
